<compile_context>
chip_gen: v5e
topology: v5e:2x2
jax: 0.10.0
libtpu: 0.0.40
codegen_flags: <defaults>
</compile_context>

<pallas_src>
import functools

import jax
import jax.numpy as jnp
from jax import lax
from jax.experimental import pallas as pl
from jax.experimental.pallas import tpu as pltpu

D_MODEL = 128          # output_channel_num / d_model
NHEAD = 8
HEAD_DIM = D_MODEL // NHEAD
LN_EPS = 1e-5          # torch.nn.LayerNorm default eps
ATTN_EPS = 1e-6        # LinearAttention eps


# ---------------------------------------------------------------------------
# in-kernel helpers (traced inside the Pallas kernel body)
# ---------------------------------------------------------------------------
def _bdot(a, b):
    # MXU matmul: bf16 operands, f32 accumulation.
    return jnp.dot(a.astype(jnp.bfloat16), b.astype(jnp.bfloat16),
                   preferred_element_type=jnp.float32)


def _elu_plus_one(x):
    # elu_feature_map(x) = elu(x) + 1  (alpha = 1)
    return jnp.where(x > 0, x + 1.0, jnp.exp(x))


def _layer_norm(x, gamma, beta):
    # One-pass variance (E[x^2] - E[x]^2) so the two lane reductions are
    # independent.  Biased variance, matching torch LayerNorm.
    mean = jnp.mean(x, axis=-1, keepdims=True)
    mean_sq = jnp.mean(x * x, axis=-1, keepdims=True)
    var = mean_sq - mean * mean
    return (x - mean) * lax.rsqrt(var + LN_EPS) * gamma + beta


# ---------------------------------------------------------------------------
# fused Pallas kernel: full encoder + decoder, one grid step per batch block
# ---------------------------------------------------------------------------
def _dtr_fused_kernel(depth_ref, ctx_ref, pos_ref, w_ref, w2_ref, ln_ref,
                      o_ref):
    B, L, C = depth_ref.shape          # B = batch elements per grid step
    BL = B * L

    def W(lo, hi):
        # Slice of the fused (C, 17C) bf16 weight slab, lane-aligned to C.
        return w_ref[:, lo * C:hi * C]

    def ln(x, row):
        # gamma at `row`, beta at `row + 1` in the (10, C) f32 LN slab.
        return _layer_norm(x, ln_ref[row:row + 1, :], ln_ref[row + 1:row + 2, :])

    def linear_attention(q, k, v):
        # q/k/v: (BL, C) f32.  "Transformers are RNNs" linear attention with a
        # block-diagonal head mask so every matmul stays 128 lanes wide.
        # The reference's /v_length ... *v_length pair cancels exactly.
        Q = _elu_plus_one(q)
        K = _elu_plus_one(k)
        Kb = K.reshape(B, L, C).astype(jnp.bfloat16)
        Vb = v.reshape(B, L, C).astype(jnp.bfloat16)
        # KV[b,d,e] = sum_l K[b,l,d] * V[b,l,e]; restrict to per-head blocks.
        KV = jnp.einsum('bld,blv->bdv', Kb, Vb,
                        preferred_element_type=jnp.float32)          # (B, C, C)
        KV = KV * W(0, 1).astype(jnp.float32)
        num = jnp.einsum('bld,bdv->blv',
                         Q.reshape(B, L, C).astype(jnp.bfloat16),
                         KV.astype(jnp.bfloat16),
                         preferred_element_type=jnp.float32)          # (B, L, C)
        Ksum = jnp.sum(K.reshape(B, L, C), axis=1, keepdims=True)     # (B, 1, C)
        # denom[l,e] = sum_{d in head(e)} Q[l,d] * Ksum[d]  (bf16 MXU matmul;
        # the 0/1 mask is exact in bf16).
        qks = (Q.reshape(B, L, C) * Ksum).reshape(BL, C)
        denom = _bdot(qks, W(0, 1))                                   # (BL, C)
        Z = pl.reciprocal(denom + ATTN_EPS, approx=True)
        return num.reshape(BL, C) * Z

    def attn_self(x, wqkv, wm, ln_row):
        qkv = _bdot(x, wqkv)                                          # (BL, 3C)
        msg = linear_attention(qkv[:, :C], qkv[:, C:2 * C], qkv[:, 2 * C:])
        return x + ln(_bdot(msg, wm), ln_row)     # drop_path = Identity

    def attn_cross(x, src, wq, wkv, wm, ln_row):
        q = _bdot(x, wq)                                              # (BL, C)
        kv = _bdot(src, wkv)                                          # (BL, 2C)
        msg = linear_attention(q, kv[:, :C], kv[:, C:])
        return x + ln(_bdot(msg, wm), ln_row)

    def mlp(x, w1, w2, ln_row):
        h = jnp.maximum(_bdot(x, w1), 0.0)                            # ReLU
        return x + ln(_bdot(h, w2), ln_row)

    # --- encoder on (context + positional encoding) ---
    ctx = (ctx_ref[...] + pos_ref[...]).reshape(BL, C)
    ctx = attn_self(ctx, W(1, 4), W(4, 5), 0)                 # fused q|k|v, merge, norm1
    ctx = mlp(ctx, W(5, 7), w2_ref[:, :C], 2)                 # mlp, norm2

    # --- decoder on depth features, attending to encoded context ---
    x = depth_ref[...].reshape(BL, C)
    x = attn_self(x, W(7, 10), W(10, 11), 4)                  # self-attn, norm0
    x = attn_cross(x, ctx, W(11, 12), W(12, 14), W(14, 15), 6)  # cross-attn, norm1
    x = mlp(x, W(15, 17), w2_ref[:, C:], 8)                   # mlp, norm2

    o_ref[...] = x.reshape(B, L, C).astype(o_ref.dtype)


# ---------------------------------------------------------------------------
# wrapper
# ---------------------------------------------------------------------------
def depth_aware_transformer(depth_feat, context_feat, depth_pos, params, *,
                            fold_batch=True):
    N, L, C = depth_feat.shape
    bb = N if fold_batch else 1          # batch elements per grid step
    grid = (N // bb,)

    seq_spec = pl.BlockSpec((bb, L, C), lambda g: (g, 0, 0))
    const2d = lambda g: (0, 0)

    w, w2, ln = params["w"], params["w2"], params["ln"]
    return pl.pallas_call(
        _dtr_fused_kernel,
        out_shape=jax.ShapeDtypeStruct((N, L, C), depth_feat.dtype),
        grid=grid,
        in_specs=[seq_spec, seq_spec, seq_spec,
                  pl.BlockSpec(w.shape, const2d),
                  pl.BlockSpec(w2.shape, const2d),
                  pl.BlockSpec(ln.shape, const2d)],
        out_specs=seq_spec,
        compiler_params=pltpu.CompilerParams(
            dimension_semantics=("parallel",)),
    )(depth_feat, context_feat, depth_pos, w, w2, ln)


# ---------------------------------------------------------------------------
# deterministic synthetic parameters, pre-packed for the fused kernel
# ---------------------------------------------------------------------------
def _head_mask(C):
    # Block-diagonal (C, C) head mask: NHEAD blocks of HEAD_DIM x HEAD_DIM ones.
    r = jnp.arange(C) // HEAD_DIM
    return (r[:, None] == r[None, :]).astype(jnp.bfloat16)


def init_params(key, C):
    """Synthetic weights, packed into the 3 fused kernel inputs.

    Real PyTorch weights would be transposed ((out, in) -> (in, out)) and
    concatenated in the same column order.
    """
    def w(k, cols):
        return (jax.random.normal(k, (C, cols), jnp.float32) * 0.05
                ).astype(jnp.bfloat16)

    ks = jax.random.split(key, 11)
    # (C, 17C) bf16 slab; column blocks (units of C):
    #   [0:1  head mask] [1:4  enc q|k|v] [4:5  enc merge] [5:7  enc mlp.0]
    #   [7:10 dec q|k|v (self)] [10:11 dec merge0] [11:12 dec q_proj1]
    #   [12:14 dec k|v (cross)] [14:15 dec merge1] [15:17 dec mlp.0]
    slab = jnp.concatenate([
        _head_mask(C),
        w(ks[0], 3 * C), w(ks[1], C), w(ks[2], 2 * C),
        w(ks[3], 3 * C), w(ks[4], C), w(ks[5], C),
        w(ks[6], 2 * C), w(ks[7], C), w(ks[8], 2 * C),
    ], axis=1)
    # (2C, 2C) bf16: [encoder mlp.2 | decoder mlp.2]
    w2 = jnp.concatenate([
        (jax.random.normal(ks[9], (2 * C, C), jnp.float32) * 0.05
         ).astype(jnp.bfloat16),
        (jax.random.normal(ks[10], (2 * C, C), jnp.float32) * 0.05
         ).astype(jnp.bfloat16),
    ], axis=1)
    # (10, C) f32 LayerNorm slab, rows:
    #   [e_g1, e_b1, e_g2, e_b2, d_g0, d_b0, d_g1, d_b1, d_g2, d_b2]
    g = jnp.ones((1, C), jnp.float32)
    b = jnp.zeros((1, C), jnp.float32)
    ln = jnp.concatenate([g, b] * 5, axis=0)
    return {"w": slab, "w2": w2, "ln": ln}


if __name__ == "__main__":
    N, L, C = 2, 64, D_MODEL
    key = jax.random.PRNGKey(0)
    k1, k2, k3, kp = jax.random.split(key, 4)
    depth_feat = jax.random.normal(k1, (N, L, C), jnp.float32)
    context_feat = jax.random.normal(k2, (N, L, C), jnp.float32)
    depth_pos = jax.random.normal(k3, (N, L, C), jnp.float32)
    params = init_params(kp, C)

    # Fold the batch into one grid step on single-TensorCore chips (v5e/v6e);
    # on v7x keep grid=(N,) so each of its two TensorCores takes a batch element.
    kind = getattr(jax.devices()[0], "device_kind", "") or ""
    fold = "v7" not in kind.lower()

    fn = jax.jit(depth_aware_transformer, static_argnames=("fold_batch",))
    out = fn(depth_feat, context_feat, depth_pos, params, fold_batch=fold)
    jax.block_until_ready(out)
    assert out.shape == (N, L, C) and out.dtype == jnp.float32
    assert bool(jnp.all(jnp.isfinite(out)))
    print("KERNEL_OK")
</pallas_src>

<mosaic_0001>
module attributes {stable_mosaic.version = 11 : i64} {
  func.func @_dtr_fused_kernel(%arg0: i32, %arg1: memref<2x64x128xf32, #tpu.memory_space<vmem>>, %arg2: memref<2x64x128xf32, #tpu.memory_space<vmem>>, %arg3: memref<2x64x128xf32, #tpu.memory_space<vmem>>, %arg4: memref<128x2176xbf16, #tpu.memory_space<vmem>>, %arg5: memref<256x256xbf16, #tpu.memory_space<vmem>>, %arg6: memref<10x128xf32, #tpu.memory_space<vmem>>, %arg7: memref<2x64x128xf32, #tpu.memory_space<vmem>>) attributes {dimension_semantics = [#tpu.dimension_semantics<parallel>], iteration_bounds = array<i64: 1>, scalar_prefetch = 0 : i64, scratch_operands = 0 : i64, tpu.core_type = #tpu.core_type<tc>, window_params = [{transform_indices = @transform_0, window_bounds = array<i64: 2, 64, 128>}, {transform_indices = @transform_1, window_bounds = array<i64: 2, 64, 128>}, {transform_indices = @transform_2, window_bounds = array<i64: 2, 64, 128>}, {pipeline_mode = #tpu.pipeline_mode<synchronous>, transform_indices = @transform_3, window_bounds = array<i64: 128, 2176>}, {pipeline_mode = #tpu.pipeline_mode<synchronous>, transform_indices = @transform_4, window_bounds = array<i64: 256, 256>}, {pipeline_mode = #tpu.pipeline_mode<synchronous>, transform_indices = @transform_5, window_bounds = array<i64: 10, 128>}, {transform_indices = @transform_6, window_bounds = array<i64: 2, 64, 128>}]} {
    %c0 = arith.constant 0 : index
    %c0_0 = arith.constant 0 : index
    %c0_1 = arith.constant 0 : index
    %0 = vector.load %arg2[%c0, %c0_0, %c0_1] : memref<2x64x128xf32, #tpu.memory_space<vmem>>, vector<2x64x128xf32>
    %c0_2 = arith.constant 0 : index
    %c0_3 = arith.constant 0 : index
    %c0_4 = arith.constant 0 : index
    %1 = vector.load %arg3[%c0_2, %c0_3, %c0_4] : memref<2x64x128xf32, #tpu.memory_space<vmem>>, vector<2x64x128xf32>
    %2 = arith.addf %0, %1 : vector<2x64x128xf32>
    %3 = vector.shape_cast %2 : vector<2x64x128xf32> to vector<128x128xf32>
    %c0_5 = arith.constant 0 : index
    %c128 = arith.constant 128 : index
    %4 = vector.load %arg4[%c0_5, %c128] : memref<128x2176xbf16, #tpu.memory_space<vmem>>, vector<128x384xbf16>
    %c0_6 = arith.constant 0 : index
    %c512 = arith.constant 512 : index
    %5 = vector.load %arg4[%c0_6, %c512] : memref<128x2176xbf16, #tpu.memory_space<vmem>>, vector<128x128xbf16>
    %6 = arith.truncf %3 : vector<128x128xf32> to vector<128x128xbf16>
    %cst = arith.constant dense<0.000000e+00> : vector<128x384xf32>
    %7 = tpu.matmul %6, %4, %cst {dimension_numbers = #tpu.dot_dimension_numbers<[1], [0], [0], [1], [0, 0, 1, 1], [], []>} : vector<128x128xbf16>, vector<128x384xbf16>, vector<128x384xf32> -> vector<128x384xf32>
    %8 = vector.extract_strided_slice %7 {offsets = [0, 0], sizes = [128, 128], strides = [1, 1]} : vector<128x384xf32> to vector<128x128xf32>
    %9 = vector.extract_strided_slice %7 {offsets = [0, 128], sizes = [128, 128], strides = [1, 1]} : vector<128x384xf32> to vector<128x128xf32>
    %10 = vector.extract_strided_slice %7 {offsets = [0, 256], sizes = [128, 128], strides = [1, 1]} : vector<128x384xf32> to vector<128x128xf32>
    %cst_7 = arith.constant 0.000000e+00 : f32
    %11 = vector.broadcast %cst_7 : f32 to vector<128x128xf32>
    %12 = arith.cmpf ogt, %8, %11 : vector<128x128xf32>
    %cst_8 = arith.constant 1.000000e+00 : f32
    %13 = vector.broadcast %cst_8 : f32 to vector<128x128xf32>
    %14 = arith.addf %8, %13 : vector<128x128xf32>
    %15 = math.exp %8 : vector<128x128xf32>
    %16 = arith.select %12, %14, %15 : vector<128x128xi1>, vector<128x128xf32>
    %cst_9 = arith.constant 0.000000e+00 : f32
    %17 = vector.broadcast %cst_9 : f32 to vector<128x128xf32>
    %18 = arith.cmpf ogt, %9, %17 : vector<128x128xf32>
    %cst_10 = arith.constant 1.000000e+00 : f32
    %19 = vector.broadcast %cst_10 : f32 to vector<128x128xf32>
    %20 = arith.addf %9, %19 : vector<128x128xf32>
    %21 = math.exp %9 : vector<128x128xf32>
    %22 = arith.select %18, %20, %21 : vector<128x128xi1>, vector<128x128xf32>
    %23 = vector.shape_cast %22 : vector<128x128xf32> to vector<2x64x128xf32>
    %24 = arith.truncf %23 : vector<2x64x128xf32> to vector<2x64x128xbf16>
    %25 = vector.shape_cast %10 : vector<128x128xf32> to vector<2x64x128xf32>
    %26 = arith.truncf %25 : vector<2x64x128xf32> to vector<2x64x128xbf16>
    "tpu.trace_start"() <{level = 10 : i32, message = "bld,blv->bdv"}> : () -> ()
    %cst_11 = arith.constant dense<0.000000e+00> : vector<2x128x128xf32>
    %27 = tpu.matmul %24, %26, %cst_11 {dimension_numbers = #tpu.dot_dimension_numbers<[1], [1], [2], [2], [0, 0, 0, 2, 1, 2], [0], [0]>} : vector<2x64x128xbf16>, vector<2x64x128xbf16>, vector<2x128x128xf32> -> vector<2x128x128xf32>
    "tpu.trace_stop"() : () -> ()
    %c0_12 = arith.constant 0 : index
    %c0_13 = arith.constant 0 : index
    %28 = vector.load %arg4[%c0_12, %c0_13] : memref<128x2176xbf16, #tpu.memory_space<vmem>>, vector<128x128xbf16>
    %29 = arith.extf %28 : vector<128x128xbf16> to vector<128x128xf32>
    %30 = vector.shape_cast %29 : vector<128x128xf32> to vector<1x128x128xf32>
    %31 = vector.broadcast %30 : vector<1x128x128xf32> to vector<2x128x128xf32>
    %32 = arith.mulf %27, %31 : vector<2x128x128xf32>
    %33 = vector.shape_cast %16 : vector<128x128xf32> to vector<2x64x128xf32>
    %34 = arith.truncf %33 : vector<2x64x128xf32> to vector<2x64x128xbf16>
    %35 = arith.truncf %32 : vector<2x128x128xf32> to vector<2x128x128xbf16>
    "tpu.trace_start"() <{level = 10 : i32, message = "bld,bdv->blv"}> : () -> ()
    %cst_14 = arith.constant dense<0.000000e+00> : vector<2x64x128xf32>
    %36 = tpu.matmul %34, %35, %cst_14 {dimension_numbers = #tpu.dot_dimension_numbers<[2], [1], [1], [2], [0, 0, 0, 1, 1, 2], [0], [0]>} : vector<2x64x128xbf16>, vector<2x128x128xbf16>, vector<2x64x128xf32> -> vector<2x64x128xf32>
    "tpu.trace_stop"() : () -> ()
    %37 = vector.shape_cast %22 : vector<128x128xf32> to vector<2x64x128xf32>
    %cst_15 = arith.constant dense<0.000000e+00> : vector<2x128xf32>
    %38 = vector.multi_reduction <add>, %37, %cst_15 [1] : vector<2x64x128xf32> to vector<2x128xf32>
    %39 = vector.shape_cast %38 : vector<2x128xf32> to vector<2x1x128xf32>
    %40 = vector.shape_cast %16 : vector<128x128xf32> to vector<2x64x128xf32>
    %41 = vector.broadcast %39 : vector<2x1x128xf32> to vector<2x64x128xf32>
    %42 = arith.mulf %40, %41 : vector<2x64x128xf32>
    %43 = vector.shape_cast %42 : vector<2x64x128xf32> to vector<128x128xf32>
    %c0_16 = arith.constant 0 : index
    %c0_17 = arith.constant 0 : index
    %44 = vector.load %arg4[%c0_16, %c0_17] : memref<128x2176xbf16, #tpu.memory_space<vmem>>, vector<128x128xbf16>
    %45 = arith.truncf %43 : vector<128x128xf32> to vector<128x128xbf16>
    %cst_18 = arith.constant dense<0.000000e+00> : vector<128x128xf32>
    %46 = tpu.matmul %45, %44, %cst_18 {dimension_numbers = #tpu.dot_dimension_numbers<[1], [0], [0], [1], [0, 0, 1, 1], [], []>} : vector<128x128xbf16>, vector<128x128xbf16>, vector<128x128xf32> -> vector<128x128xf32>
    %cst_19 = arith.constant 9.99999997E-7 : f32
    %47 = vector.broadcast %cst_19 : f32 to vector<128x128xf32>
    %48 = arith.addf %46, %47 : vector<128x128xf32>
    %49 = tpu.reciprocal %48 {approx = true} : vector<128x128xf32> -> vector<128x128xf32>
    %50 = vector.shape_cast %36 : vector<2x64x128xf32> to vector<128x128xf32>
    %51 = arith.mulf %50, %49 : vector<128x128xf32>
    %52 = arith.truncf %51 : vector<128x128xf32> to vector<128x128xbf16>
    %cst_20 = arith.constant dense<0.000000e+00> : vector<128x128xf32>
    %53 = tpu.matmul %52, %5, %cst_20 {dimension_numbers = #tpu.dot_dimension_numbers<[1], [0], [0], [1], [0, 0, 1, 1], [], []>} : vector<128x128xbf16>, vector<128x128xbf16>, vector<128x128xf32> -> vector<128x128xf32>
    %c0_21 = arith.constant 0 : index
    %c0_22 = arith.constant 0 : index
    %54 = vector.load %arg6[%c0_21, %c0_22] : memref<10x128xf32, #tpu.memory_space<vmem>>, vector<1x128xf32>
    %c1 = arith.constant 1 : index
    %c0_23 = arith.constant 0 : index
    %55 = vector.load %arg6[%c1, %c0_23] : memref<10x128xf32, #tpu.memory_space<vmem>>, vector<1x128xf32>
    %cst_24 = arith.constant dense<0.000000e+00> : vector<128xf32>
    %56 = vector.multi_reduction <add>, %53, %cst_24 [1] : vector<128x128xf32> to vector<128xf32>
    %57 = vector.shape_cast %56 : vector<128xf32> to vector<128x1xf32>
    %cst_25 = arith.constant 1.280000e+02 : f32
    %58 = vector.broadcast %cst_25 : f32 to vector<128x1xf32>
    %59 = arith.divf %57, %58 : vector<128x1xf32>
    %60 = arith.mulf %53, %53 : vector<128x128xf32>
    %cst_26 = arith.constant dense<0.000000e+00> : vector<128xf32>
    %61 = vector.multi_reduction <add>, %60, %cst_26 [1] : vector<128x128xf32> to vector<128xf32>
    %62 = vector.shape_cast %61 : vector<128xf32> to vector<128x1xf32>
    %cst_27 = arith.constant 1.280000e+02 : f32
    %63 = vector.broadcast %cst_27 : f32 to vector<128x1xf32>
    %64 = arith.divf %62, %63 : vector<128x1xf32>
    %65 = arith.mulf %59, %59 : vector<128x1xf32>
    %66 = arith.subf %64, %65 : vector<128x1xf32>
    %67 = vector.broadcast %59 : vector<128x1xf32> to vector<128x128xf32>
    %68 = arith.subf %53, %67 : vector<128x128xf32>
    %cst_28 = arith.constant 9.99999974E-6 : f32
    %69 = vector.broadcast %cst_28 : f32 to vector<128x1xf32>
    %70 = arith.addf %66, %69 : vector<128x1xf32>
    %71 = math.rsqrt %70 : vector<128x1xf32>
    %72 = vector.broadcast %71 : vector<128x1xf32> to vector<128x128xf32>
    %73 = arith.mulf %68, %72 : vector<128x128xf32>
    %74 = vector.broadcast %54 : vector<1x128xf32> to vector<128x128xf32>
    %75 = arith.mulf %73, %74 : vector<128x128xf32>
    %76 = vector.broadcast %55 : vector<1x128xf32> to vector<128x128xf32>
    %77 = arith.addf %75, %76 : vector<128x128xf32>
    %78 = arith.addf %3, %77 : vector<128x128xf32>
    %c0_29 = arith.constant 0 : index
    %c640 = arith.constant 640 : index
    %79 = vector.load %arg4[%c0_29, %c640] : memref<128x2176xbf16, #tpu.memory_space<vmem>>, vector<128x256xbf16>
    %c0_30 = arith.constant 0 : index
    %c0_31 = arith.constant 0 : index
    %80 = vector.load %arg5[%c0_30, %c0_31] : memref<256x256xbf16, #tpu.memory_space<vmem>>, vector<256x128xbf16>
    %81 = arith.truncf %78 : vector<128x128xf32> to vector<128x128xbf16>
    %cst_32 = arith.constant dense<0.000000e+00> : vector<128x256xf32>
    %82 = tpu.matmul %81, %79, %cst_32 {dimension_numbers = #tpu.dot_dimension_numbers<[1], [0], [0], [1], [0, 0, 1, 1], [], []>} : vector<128x128xbf16>, vector<128x256xbf16>, vector<128x256xf32> -> vector<128x256xf32>
    %cst_33 = arith.constant 0.000000e+00 : f32
    %83 = vector.broadcast %cst_33 : f32 to vector<128x256xf32>
    %84 = arith.maximumf %82, %83 : vector<128x256xf32>
    %85 = arith.truncf %84 : vector<128x256xf32> to vector<128x256xbf16>
    %cst_34 = arith.constant dense<0.000000e+00> : vector<128x128xf32>
    %86 = tpu.matmul %85, %80, %cst_34 {dimension_numbers = #tpu.dot_dimension_numbers<[1], [0], [0], [1], [0, 0, 1, 1], [], []>} : vector<128x256xbf16>, vector<256x128xbf16>, vector<128x128xf32> -> vector<128x128xf32>
    %c2 = arith.constant 2 : index
    %c0_35 = arith.constant 0 : index
    %87 = vector.load %arg6[%c2, %c0_35] : memref<10x128xf32, #tpu.memory_space<vmem>>, vector<1x128xf32>
    %c3 = arith.constant 3 : index
    %c0_36 = arith.constant 0 : index
    %88 = vector.load %arg6[%c3, %c0_36] : memref<10x128xf32, #tpu.memory_space<vmem>>, vector<1x128xf32>
    %cst_37 = arith.constant dense<0.000000e+00> : vector<128xf32>
    %89 = vector.multi_reduction <add>, %86, %cst_37 [1] : vector<128x128xf32> to vector<128xf32>
    %90 = vector.shape_cast %89 : vector<128xf32> to vector<128x1xf32>
    %cst_38 = arith.constant 1.280000e+02 : f32
    %91 = vector.broadcast %cst_38 : f32 to vector<128x1xf32>
    %92 = arith.divf %90, %91 : vector<128x1xf32>
    %93 = arith.mulf %86, %86 : vector<128x128xf32>
    %cst_39 = arith.constant dense<0.000000e+00> : vector<128xf32>
    %94 = vector.multi_reduction <add>, %93, %cst_39 [1] : vector<128x128xf32> to vector<128xf32>
    %95 = vector.shape_cast %94 : vector<128xf32> to vector<128x1xf32>
    %cst_40 = arith.constant 1.280000e+02 : f32
    %96 = vector.broadcast %cst_40 : f32 to vector<128x1xf32>
    %97 = arith.divf %95, %96 : vector<128x1xf32>
    %98 = arith.mulf %92, %92 : vector<128x1xf32>
    %99 = arith.subf %97, %98 : vector<128x1xf32>
    %100 = vector.broadcast %92 : vector<128x1xf32> to vector<128x128xf32>
    %101 = arith.subf %86, %100 : vector<128x128xf32>
    %cst_41 = arith.constant 9.99999974E-6 : f32
    %102 = vector.broadcast %cst_41 : f32 to vector<128x1xf32>
    %103 = arith.addf %99, %102 : vector<128x1xf32>
    %104 = math.rsqrt %103 : vector<128x1xf32>
    %105 = vector.broadcast %104 : vector<128x1xf32> to vector<128x128xf32>
    %106 = arith.mulf %101, %105 : vector<128x128xf32>
    %107 = vector.broadcast %87 : vector<1x128xf32> to vector<128x128xf32>
    %108 = arith.mulf %106, %107 : vector<128x128xf32>
    %109 = vector.broadcast %88 : vector<1x128xf32> to vector<128x128xf32>
    %110 = arith.addf %108, %109 : vector<128x128xf32>
    %111 = arith.addf %78, %110 : vector<128x128xf32>
    %c0_42 = arith.constant 0 : index
    %c0_43 = arith.constant 0 : index
    %c0_44 = arith.constant 0 : index
    %112 = vector.load %arg1[%c0_42, %c0_43, %c0_44] : memref<2x64x128xf32, #tpu.memory_space<vmem>>, vector<2x64x128xf32>
    %113 = vector.shape_cast %112 : vector<2x64x128xf32> to vector<128x128xf32>
    %c0_45 = arith.constant 0 : index
    %c896 = arith.constant 896 : index
    %114 = vector.load %arg4[%c0_45, %c896] : memref<128x2176xbf16, #tpu.memory_space<vmem>>, vector<128x384xbf16>
    %c0_46 = arith.constant 0 : index
    %c1280 = arith.constant 1280 : index
    %115 = vector.load %arg4[%c0_46, %c1280] : memref<128x2176xbf16, #tpu.memory_space<vmem>>, vector<128x128xbf16>
    %116 = arith.truncf %113 : vector<128x128xf32> to vector<128x128xbf16>
    %cst_47 = arith.constant dense<0.000000e+00> : vector<128x384xf32>
    %117 = tpu.matmul %116, %114, %cst_47 {dimension_numbers = #tpu.dot_dimension_numbers<[1], [0], [0], [1], [0, 0, 1, 1], [], []>} : vector<128x128xbf16>, vector<128x384xbf16>, vector<128x384xf32> -> vector<128x384xf32>
    %118 = vector.extract_strided_slice %117 {offsets = [0, 0], sizes = [128, 128], strides = [1, 1]} : vector<128x384xf32> to vector<128x128xf32>
    %119 = vector.extract_strided_slice %117 {offsets = [0, 128], sizes = [128, 128], strides = [1, 1]} : vector<128x384xf32> to vector<128x128xf32>
    %120 = vector.extract_strided_slice %117 {offsets = [0, 256], sizes = [128, 128], strides = [1, 1]} : vector<128x384xf32> to vector<128x128xf32>
    %cst_48 = arith.constant 0.000000e+00 : f32
    %121 = vector.broadcast %cst_48 : f32 to vector<128x128xf32>
    %122 = arith.cmpf ogt, %118, %121 : vector<128x128xf32>
    %cst_49 = arith.constant 1.000000e+00 : f32
    %123 = vector.broadcast %cst_49 : f32 to vector<128x128xf32>
    %124 = arith.addf %118, %123 : vector<128x128xf32>
    %125 = math.exp %118 : vector<128x128xf32>
    %126 = arith.select %122, %124, %125 : vector<128x128xi1>, vector<128x128xf32>
    %cst_50 = arith.constant 0.000000e+00 : f32
    %127 = vector.broadcast %cst_50 : f32 to vector<128x128xf32>
    %128 = arith.cmpf ogt, %119, %127 : vector<128x128xf32>
    %cst_51 = arith.constant 1.000000e+00 : f32
    %129 = vector.broadcast %cst_51 : f32 to vector<128x128xf32>
    %130 = arith.addf %119, %129 : vector<128x128xf32>
    %131 = math.exp %119 : vector<128x128xf32>
    %132 = arith.select %128, %130, %131 : vector<128x128xi1>, vector<128x128xf32>
    %133 = vector.shape_cast %132 : vector<128x128xf32> to vector<2x64x128xf32>
    %134 = arith.truncf %133 : vector<2x64x128xf32> to vector<2x64x128xbf16>
    %135 = vector.shape_cast %120 : vector<128x128xf32> to vector<2x64x128xf32>
    %136 = arith.truncf %135 : vector<2x64x128xf32> to vector<2x64x128xbf16>
    "tpu.trace_start"() <{level = 10 : i32, message = "bld,blv->bdv"}> : () -> ()
    %cst_52 = arith.constant dense<0.000000e+00> : vector<2x128x128xf32>
    %137 = tpu.matmul %134, %136, %cst_52 {dimension_numbers = #tpu.dot_dimension_numbers<[1], [1], [2], [2], [0, 0, 0, 2, 1, 2], [0], [0]>} : vector<2x64x128xbf16>, vector<2x64x128xbf16>, vector<2x128x128xf32> -> vector<2x128x128xf32>
    "tpu.trace_stop"() : () -> ()
    %c0_53 = arith.constant 0 : index
    %c0_54 = arith.constant 0 : index
    %138 = vector.load %arg4[%c0_53, %c0_54] : memref<128x2176xbf16, #tpu.memory_space<vmem>>, vector<128x128xbf16>
    %139 = arith.extf %138 : vector<128x128xbf16> to vector<128x128xf32>
    %140 = vector.shape_cast %139 : vector<128x128xf32> to vector<1x128x128xf32>
    %141 = vector.broadcast %140 : vector<1x128x128xf32> to vector<2x128x128xf32>
    %142 = arith.mulf %137, %141 : vector<2x128x128xf32>
    %143 = vector.shape_cast %126 : vector<128x128xf32> to vector<2x64x128xf32>
    %144 = arith.truncf %143 : vector<2x64x128xf32> to vector<2x64x128xbf16>
    %145 = arith.truncf %142 : vector<2x128x128xf32> to vector<2x128x128xbf16>
    "tpu.trace_start"() <{level = 10 : i32, message = "bld,bdv->blv"}> : () -> ()
    %cst_55 = arith.constant dense<0.000000e+00> : vector<2x64x128xf32>
    %146 = tpu.matmul %144, %145, %cst_55 {dimension_numbers = #tpu.dot_dimension_numbers<[2], [1], [1], [2], [0, 0, 0, 1, 1, 2], [0], [0]>} : vector<2x64x128xbf16>, vector<2x128x128xbf16>, vector<2x64x128xf32> -> vector<2x64x128xf32>
    "tpu.trace_stop"() : () -> ()
    %147 = vector.shape_cast %132 : vector<128x128xf32> to vector<2x64x128xf32>
    %cst_56 = arith.constant dense<0.000000e+00> : vector<2x128xf32>
    %148 = vector.multi_reduction <add>, %147, %cst_56 [1] : vector<2x64x128xf32> to vector<2x128xf32>
    %149 = vector.shape_cast %148 : vector<2x128xf32> to vector<2x1x128xf32>
    %150 = vector.shape_cast %126 : vector<128x128xf32> to vector<2x64x128xf32>
    %151 = vector.broadcast %149 : vector<2x1x128xf32> to vector<2x64x128xf32>
    %152 = arith.mulf %150, %151 : vector<2x64x128xf32>
    %153 = vector.shape_cast %152 : vector<2x64x128xf32> to vector<128x128xf32>
    %c0_57 = arith.constant 0 : index
    %c0_58 = arith.constant 0 : index
    %154 = vector.load %arg4[%c0_57, %c0_58] : memref<128x2176xbf16, #tpu.memory_space<vmem>>, vector<128x128xbf16>
    %155 = arith.truncf %153 : vector<128x128xf32> to vector<128x128xbf16>
    %cst_59 = arith.constant dense<0.000000e+00> : vector<128x128xf32>
    %156 = tpu.matmul %155, %154, %cst_59 {dimension_numbers = #tpu.dot_dimension_numbers<[1], [0], [0], [1], [0, 0, 1, 1], [], []>} : vector<128x128xbf16>, vector<128x128xbf16>, vector<128x128xf32> -> vector<128x128xf32>
    %cst_60 = arith.constant 9.99999997E-7 : f32
    %157 = vector.broadcast %cst_60 : f32 to vector<128x128xf32>
    %158 = arith.addf %156, %157 : vector<128x128xf32>
    %159 = tpu.reciprocal %158 {approx = true} : vector<128x128xf32> -> vector<128x128xf32>
    %160 = vector.shape_cast %146 : vector<2x64x128xf32> to vector<128x128xf32>
    %161 = arith.mulf %160, %159 : vector<128x128xf32>
    %162 = arith.truncf %161 : vector<128x128xf32> to vector<128x128xbf16>
    %cst_61 = arith.constant dense<0.000000e+00> : vector<128x128xf32>
    %163 = tpu.matmul %162, %115, %cst_61 {dimension_numbers = #tpu.dot_dimension_numbers<[1], [0], [0], [1], [0, 0, 1, 1], [], []>} : vector<128x128xbf16>, vector<128x128xbf16>, vector<128x128xf32> -> vector<128x128xf32>
    %c4 = arith.constant 4 : index
    %c0_62 = arith.constant 0 : index
    %164 = vector.load %arg6[%c4, %c0_62] : memref<10x128xf32, #tpu.memory_space<vmem>>, vector<1x128xf32>
    %c5 = arith.constant 5 : index
    %c0_63 = arith.constant 0 : index
    %165 = vector.load %arg6[%c5, %c0_63] : memref<10x128xf32, #tpu.memory_space<vmem>>, vector<1x128xf32>
    %cst_64 = arith.constant dense<0.000000e+00> : vector<128xf32>
    %166 = vector.multi_reduction <add>, %163, %cst_64 [1] : vector<128x128xf32> to vector<128xf32>
    %167 = vector.shape_cast %166 : vector<128xf32> to vector<128x1xf32>
    %cst_65 = arith.constant 1.280000e+02 : f32
    %168 = vector.broadcast %cst_65 : f32 to vector<128x1xf32>
    %169 = arith.divf %167, %168 : vector<128x1xf32>
    %170 = arith.mulf %163, %163 : vector<128x128xf32>
    %cst_66 = arith.constant dense<0.000000e+00> : vector<128xf32>
    %171 = vector.multi_reduction <add>, %170, %cst_66 [1] : vector<128x128xf32> to vector<128xf32>
    %172 = vector.shape_cast %171 : vector<128xf32> to vector<128x1xf32>
    %cst_67 = arith.constant 1.280000e+02 : f32
    %173 = vector.broadcast %cst_67 : f32 to vector<128x1xf32>
    %174 = arith.divf %172, %173 : vector<128x1xf32>
    %175 = arith.mulf %169, %169 : vector<128x1xf32>
    %176 = arith.subf %174, %175 : vector<128x1xf32>
    %177 = vector.broadcast %169 : vector<128x1xf32> to vector<128x128xf32>
    %178 = arith.subf %163, %177 : vector<128x128xf32>
    %cst_68 = arith.constant 9.99999974E-6 : f32
    %179 = vector.broadcast %cst_68 : f32 to vector<128x1xf32>
    %180 = arith.addf %176, %179 : vector<128x1xf32>
    %181 = math.rsqrt %180 : vector<128x1xf32>
    %182 = vector.broadcast %181 : vector<128x1xf32> to vector<128x128xf32>
    %183 = arith.mulf %178, %182 : vector<128x128xf32>
    %184 = vector.broadcast %164 : vector<1x128xf32> to vector<128x128xf32>
    %185 = arith.mulf %183, %184 : vector<128x128xf32>
    %186 = vector.broadcast %165 : vector<1x128xf32> to vector<128x128xf32>
    %187 = arith.addf %185, %186 : vector<128x128xf32>
    %188 = arith.addf %113, %187 : vector<128x128xf32>
    %c0_69 = arith.constant 0 : index
    %c1408 = arith.constant 1408 : index
    %189 = vector.load %arg4[%c0_69, %c1408] : memref<128x2176xbf16, #tpu.memory_space<vmem>>, vector<128x128xbf16>
    %c0_70 = arith.constant 0 : index
    %c1536 = arith.constant 1536 : index
    %190 = vector.load %arg4[%c0_70, %c1536] : memref<128x2176xbf16, #tpu.memory_space<vmem>>, vector<128x256xbf16>
    %c0_71 = arith.constant 0 : index
    %c1792 = arith.constant 1792 : index
    %191 = vector.load %arg4[%c0_71, %c1792] : memref<128x2176xbf16, #tpu.memory_space<vmem>>, vector<128x128xbf16>
    %192 = arith.truncf %188 : vector<128x128xf32> to vector<128x128xbf16>
    %cst_72 = arith.constant dense<0.000000e+00> : vector<128x128xf32>
    %193 = tpu.matmul %192, %189, %cst_72 {dimension_numbers = #tpu.dot_dimension_numbers<[1], [0], [0], [1], [0, 0, 1, 1], [], []>} : vector<128x128xbf16>, vector<128x128xbf16>, vector<128x128xf32> -> vector<128x128xf32>
    %194 = arith.truncf %111 : vector<128x128xf32> to vector<128x128xbf16>
    %cst_73 = arith.constant dense<0.000000e+00> : vector<128x256xf32>
    %195 = tpu.matmul %194, %190, %cst_73 {dimension_numbers = #tpu.dot_dimension_numbers<[1], [0], [0], [1], [0, 0, 1, 1], [], []>} : vector<128x128xbf16>, vector<128x256xbf16>, vector<128x256xf32> -> vector<128x256xf32>
    %196 = vector.extract_strided_slice %195 {offsets = [0, 0], sizes = [128, 128], strides = [1, 1]} : vector<128x256xf32> to vector<128x128xf32>
    %197 = vector.extract_strided_slice %195 {offsets = [0, 128], sizes = [128, 128], strides = [1, 1]} : vector<128x256xf32> to vector<128x128xf32>
    %cst_74 = arith.constant 0.000000e+00 : f32
    %198 = vector.broadcast %cst_74 : f32 to vector<128x128xf32>
    %199 = arith.cmpf ogt, %193, %198 : vector<128x128xf32>
    %cst_75 = arith.constant 1.000000e+00 : f32
    %200 = vector.broadcast %cst_75 : f32 to vector<128x128xf32>
    %201 = arith.addf %193, %200 : vector<128x128xf32>
    %202 = math.exp %193 : vector<128x128xf32>
    %203 = arith.select %199, %201, %202 : vector<128x128xi1>, vector<128x128xf32>
    %cst_76 = arith.constant 0.000000e+00 : f32
    %204 = vector.broadcast %cst_76 : f32 to vector<128x128xf32>
    %205 = arith.cmpf ogt, %196, %204 : vector<128x128xf32>
    %cst_77 = arith.constant 1.000000e+00 : f32
    %206 = vector.broadcast %cst_77 : f32 to vector<128x128xf32>
    %207 = arith.addf %196, %206 : vector<128x128xf32>
    %208 = math.exp %196 : vector<128x128xf32>
    %209 = arith.select %205, %207, %208 : vector<128x128xi1>, vector<128x128xf32>
    %210 = vector.shape_cast %209 : vector<128x128xf32> to vector<2x64x128xf32>
    %211 = arith.truncf %210 : vector<2x64x128xf32> to vector<2x64x128xbf16>
    %212 = vector.shape_cast %197 : vector<128x128xf32> to vector<2x64x128xf32>
    %213 = arith.truncf %212 : vector<2x64x128xf32> to vector<2x64x128xbf16>
    "tpu.trace_start"() <{level = 10 : i32, message = "bld,blv->bdv"}> : () -> ()
    %cst_78 = arith.constant dense<0.000000e+00> : vector<2x128x128xf32>
    %214 = tpu.matmul %211, %213, %cst_78 {dimension_numbers = #tpu.dot_dimension_numbers<[1], [1], [2], [2], [0, 0, 0, 2, 1, 2], [0], [0]>} : vector<2x64x128xbf16>, vector<2x64x128xbf16>, vector<2x128x128xf32> -> vector<2x128x128xf32>
    "tpu.trace_stop"() : () -> ()
    %c0_79 = arith.constant 0 : index
    %c0_80 = arith.constant 0 : index
    %215 = vector.load %arg4[%c0_79, %c0_80] : memref<128x2176xbf16, #tpu.memory_space<vmem>>, vector<128x128xbf16>
    %216 = arith.extf %215 : vector<128x128xbf16> to vector<128x128xf32>
    %217 = vector.shape_cast %216 : vector<128x128xf32> to vector<1x128x128xf32>
    %218 = vector.broadcast %217 : vector<1x128x128xf32> to vector<2x128x128xf32>
    %219 = arith.mulf %214, %218 : vector<2x128x128xf32>
    %220 = vector.shape_cast %203 : vector<128x128xf32> to vector<2x64x128xf32>
    %221 = arith.truncf %220 : vector<2x64x128xf32> to vector<2x64x128xbf16>
    %222 = arith.truncf %219 : vector<2x128x128xf32> to vector<2x128x128xbf16>
    "tpu.trace_start"() <{level = 10 : i32, message = "bld,bdv->blv"}> : () -> ()
    %cst_81 = arith.constant dense<0.000000e+00> : vector<2x64x128xf32>
    %223 = tpu.matmul %221, %222, %cst_81 {dimension_numbers = #tpu.dot_dimension_numbers<[2], [1], [1], [2], [0, 0, 0, 1, 1, 2], [0], [0]>} : vector<2x64x128xbf16>, vector<2x128x128xbf16>, vector<2x64x128xf32> -> vector<2x64x128xf32>
    "tpu.trace_stop"() : () -> ()
    %224 = vector.shape_cast %209 : vector<128x128xf32> to vector<2x64x128xf32>
    %cst_82 = arith.constant dense<0.000000e+00> : vector<2x128xf32>
    %225 = vector.multi_reduction <add>, %224, %cst_82 [1] : vector<2x64x128xf32> to vector<2x128xf32>
    %226 = vector.shape_cast %225 : vector<2x128xf32> to vector<2x1x128xf32>
    %227 = vector.shape_cast %203 : vector<128x128xf32> to vector<2x64x128xf32>
    %228 = vector.broadcast %226 : vector<2x1x128xf32> to vector<2x64x128xf32>
    %229 = arith.mulf %227, %228 : vector<2x64x128xf32>
    %230 = vector.shape_cast %229 : vector<2x64x128xf32> to vector<128x128xf32>
    %c0_83 = arith.constant 0 : index
    %c0_84 = arith.constant 0 : index
    %231 = vector.load %arg4[%c0_83, %c0_84] : memref<128x2176xbf16, #tpu.memory_space<vmem>>, vector<128x128xbf16>
    %232 = arith.truncf %230 : vector<128x128xf32> to vector<128x128xbf16>
    %cst_85 = arith.constant dense<0.000000e+00> : vector<128x128xf32>
    %233 = tpu.matmul %232, %231, %cst_85 {dimension_numbers = #tpu.dot_dimension_numbers<[1], [0], [0], [1], [0, 0, 1, 1], [], []>} : vector<128x128xbf16>, vector<128x128xbf16>, vector<128x128xf32> -> vector<128x128xf32>
    %cst_86 = arith.constant 9.99999997E-7 : f32
    %234 = vector.broadcast %cst_86 : f32 to vector<128x128xf32>
    %235 = arith.addf %233, %234 : vector<128x128xf32>
    %236 = tpu.reciprocal %235 {approx = true} : vector<128x128xf32> -> vector<128x128xf32>
    %237 = vector.shape_cast %223 : vector<2x64x128xf32> to vector<128x128xf32>
    %238 = arith.mulf %237, %236 : vector<128x128xf32>
    %239 = arith.truncf %238 : vector<128x128xf32> to vector<128x128xbf16>
    %cst_87 = arith.constant dense<0.000000e+00> : vector<128x128xf32>
    %240 = tpu.matmul %239, %191, %cst_87 {dimension_numbers = #tpu.dot_dimension_numbers<[1], [0], [0], [1], [0, 0, 1, 1], [], []>} : vector<128x128xbf16>, vector<128x128xbf16>, vector<128x128xf32> -> vector<128x128xf32>
    %c6 = arith.constant 6 : index
    %c0_88 = arith.constant 0 : index
    %241 = vector.load %arg6[%c6, %c0_88] : memref<10x128xf32, #tpu.memory_space<vmem>>, vector<1x128xf32>
    %c7 = arith.constant 7 : index
    %c0_89 = arith.constant 0 : index
    %242 = vector.load %arg6[%c7, %c0_89] : memref<10x128xf32, #tpu.memory_space<vmem>>, vector<1x128xf32>
    %cst_90 = arith.constant dense<0.000000e+00> : vector<128xf32>
    %243 = vector.multi_reduction <add>, %240, %cst_90 [1] : vector<128x128xf32> to vector<128xf32>
    %244 = vector.shape_cast %243 : vector<128xf32> to vector<128x1xf32>
    %cst_91 = arith.constant 1.280000e+02 : f32
    %245 = vector.broadcast %cst_91 : f32 to vector<128x1xf32>
    %246 = arith.divf %244, %245 : vector<128x1xf32>
    %247 = arith.mulf %240, %240 : vector<128x128xf32>
    %cst_92 = arith.constant dense<0.000000e+00> : vector<128xf32>
    %248 = vector.multi_reduction <add>, %247, %cst_92 [1] : vector<128x128xf32> to vector<128xf32>
    %249 = vector.shape_cast %248 : vector<128xf32> to vector<128x1xf32>
    %cst_93 = arith.constant 1.280000e+02 : f32
    %250 = vector.broadcast %cst_93 : f32 to vector<128x1xf32>
    %251 = arith.divf %249, %250 : vector<128x1xf32>
    %252 = arith.mulf %246, %246 : vector<128x1xf32>
    %253 = arith.subf %251, %252 : vector<128x1xf32>
    %254 = vector.broadcast %246 : vector<128x1xf32> to vector<128x128xf32>
    %255 = arith.subf %240, %254 : vector<128x128xf32>
    %cst_94 = arith.constant 9.99999974E-6 : f32
    %256 = vector.broadcast %cst_94 : f32 to vector<128x1xf32>
    %257 = arith.addf %253, %256 : vector<128x1xf32>
    %258 = math.rsqrt %257 : vector<128x1xf32>
    %259 = vector.broadcast %258 : vector<128x1xf32> to vector<128x128xf32>
    %260 = arith.mulf %255, %259 : vector<128x128xf32>
    %261 = vector.broadcast %241 : vector<1x128xf32> to vector<128x128xf32>
    %262 = arith.mulf %260, %261 : vector<128x128xf32>
    %263 = vector.broadcast %242 : vector<1x128xf32> to vector<128x128xf32>
    %264 = arith.addf %262, %263 : vector<128x128xf32>
    %265 = arith.addf %188, %264 : vector<128x128xf32>
    %c0_95 = arith.constant 0 : index
    %c1920 = arith.constant 1920 : index
    %266 = vector.load %arg4[%c0_95, %c1920] : memref<128x2176xbf16, #tpu.memory_space<vmem>>, vector<128x256xbf16>
    %c0_96 = arith.constant 0 : index
    %c128_97 = arith.constant 128 : index
    %267 = vector.load %arg5[%c0_96, %c128_97] : memref<256x256xbf16, #tpu.memory_space<vmem>>, vector<256x128xbf16>
    %268 = arith.truncf %265 : vector<128x128xf32> to vector<128x128xbf16>
    %cst_98 = arith.constant dense<0.000000e+00> : vector<128x256xf32>
    %269 = tpu.matmul %268, %266, %cst_98 {dimension_numbers = #tpu.dot_dimension_numbers<[1], [0], [0], [1], [0, 0, 1, 1], [], []>} : vector<128x128xbf16>, vector<128x256xbf16>, vector<128x256xf32> -> vector<128x256xf32>
    %cst_99 = arith.constant 0.000000e+00 : f32
    %270 = vector.broadcast %cst_99 : f32 to vector<128x256xf32>
    %271 = arith.maximumf %269, %270 : vector<128x256xf32>
    %272 = arith.truncf %271 : vector<128x256xf32> to vector<128x256xbf16>
    %cst_100 = arith.constant dense<0.000000e+00> : vector<128x128xf32>
    %273 = tpu.matmul %272, %267, %cst_100 {dimension_numbers = #tpu.dot_dimension_numbers<[1], [0], [0], [1], [0, 0, 1, 1], [], []>} : vector<128x256xbf16>, vector<256x128xbf16>, vector<128x128xf32> -> vector<128x128xf32>
    %c8 = arith.constant 8 : index
    %c0_101 = arith.constant 0 : index
    %274 = vector.load %arg6[%c8, %c0_101] : memref<10x128xf32, #tpu.memory_space<vmem>>, vector<1x128xf32>
    %c9 = arith.constant 9 : index
    %c0_102 = arith.constant 0 : index
    %275 = vector.load %arg6[%c9, %c0_102] : memref<10x128xf32, #tpu.memory_space<vmem>>, vector<1x128xf32>
    %cst_103 = arith.constant dense<0.000000e+00> : vector<128xf32>
    %276 = vector.multi_reduction <add>, %273, %cst_103 [1] : vector<128x128xf32> to vector<128xf32>
    %277 = vector.shape_cast %276 : vector<128xf32> to vector<128x1xf32>
    %cst_104 = arith.constant 1.280000e+02 : f32
    %278 = vector.broadcast %cst_104 : f32 to vector<128x1xf32>
    %279 = arith.divf %277, %278 : vector<128x1xf32>
    %280 = arith.mulf %273, %273 : vector<128x128xf32>
    %cst_105 = arith.constant dense<0.000000e+00> : vector<128xf32>
    %281 = vector.multi_reduction <add>, %280, %cst_105 [1] : vector<128x128xf32> to vector<128xf32>
    %282 = vector.shape_cast %281 : vector<128xf32> to vector<128x1xf32>
    %cst_106 = arith.constant 1.280000e+02 : f32
    %283 = vector.broadcast %cst_106 : f32 to vector<128x1xf32>
    %284 = arith.divf %282, %283 : vector<128x1xf32>
    %285 = arith.mulf %279, %279 : vector<128x1xf32>
    %286 = arith.subf %284, %285 : vector<128x1xf32>
    %287 = vector.broadcast %279 : vector<128x1xf32> to vector<128x128xf32>
    %288 = arith.subf %273, %287 : vector<128x128xf32>
    %cst_107 = arith.constant 9.99999974E-6 : f32
    %289 = vector.broadcast %cst_107 : f32 to vector<128x1xf32>
    %290 = arith.addf %286, %289 : vector<128x1xf32>
    %291 = math.rsqrt %290 : vector<128x1xf32>
    %292 = vector.broadcast %291 : vector<128x1xf32> to vector<128x128xf32>
    %293 = arith.mulf %288, %292 : vector<128x128xf32>
    %294 = vector.broadcast %274 : vector<1x128xf32> to vector<128x128xf32>
    %295 = arith.mulf %293, %294 : vector<128x128xf32>
    %296 = vector.broadcast %275 : vector<1x128xf32> to vector<128x128xf32>
    %297 = arith.addf %295, %296 : vector<128x128xf32>
    %298 = arith.addf %265, %297 : vector<128x128xf32>
    %299 = vector.shape_cast %298 : vector<128x128xf32> to vector<2x64x128xf32>
    %c0_108 = arith.constant 0 : index
    %c0_109 = arith.constant 0 : index
    %c0_110 = arith.constant 0 : index
    %300 = vector.load %arg7[%c0_108, %c0_109, %c0_110] : memref<2x64x128xf32, #tpu.memory_space<vmem>>, vector<2x64x128xf32>
    tpu.vector_store %arg7[%c0_108, %c0_109, %c0_110], %299 {strides = array<i32>} : memref<2x64x128xf32, #tpu.memory_space<vmem>>, vector<2x64x128xf32>,
    return
  }
  func.func @transform_0(%arg0: i32) -> (i32, i32, i32) {
    %c0_i32 = arith.constant 0 : i32
    %c0_i32_0 = arith.constant 0 : i32
    %c0_i32_1 = arith.constant 0 : i32
    return %arg0, %c0_i32, %c0_i32_0 : i32, i32, i32
  }
  func.func @transform_1(%arg0: i32) -> (i32, i32, i32) {
    %c0_i32 = arith.constant 0 : i32
    %c0_i32_0 = arith.constant 0 : i32
    %c0_i32_1 = arith.constant 0 : i32
    return %arg0, %c0_i32, %c0_i32_0 : i32, i32, i32
  }
  func.func @transform_2(%arg0: i32) -> (i32, i32, i32) {
    %c0_i32 = arith.constant 0 : i32
    %c0_i32_0 = arith.constant 0 : i32
    %c0_i32_1 = arith.constant 0 : i32
    return %arg0, %c0_i32, %c0_i32_0 : i32, i32, i32
  }
  func.func @transform_3(%arg0: i32) -> (i32, i32) {
    %c0_i32 = arith.constant 0 : i32
    %c0_i32_0 = arith.constant 0 : i32
    %c0_i32_1 = arith.constant 0 : i32
    return %c0_i32, %c0_i32_0 : i32, i32
  }
  func.func @transform_4(%arg0: i32) -> (i32, i32) {
    %c0_i32 = arith.constant 0 : i32
    %c0_i32_0 = arith.constant 0 : i32
    %c0_i32_1 = arith.constant 0 : i32
    return %c0_i32, %c0_i32_0 : i32, i32
  }
  func.func @transform_5(%arg0: i32) -> (i32, i32) {
    %c0_i32 = arith.constant 0 : i32
    %c0_i32_0 = arith.constant 0 : i32
    %c0_i32_1 = arith.constant 0 : i32
    return %c0_i32, %c0_i32_0 : i32, i32
  }
  func.func @transform_6(%arg0: i32) -> (i32, i32, i32) {
    %c0_i32 = arith.constant 0 : i32
    %c0_i32_0 = arith.constant 0 : i32
    %c0_i32_1 = arith.constant 0 : i32
    return %arg0, %c0_i32, %c0_i32_0 : i32, i32, i32
  }
}

</mosaic_0001>

<bundles_post_ra>
// kernel: depth_aware_transformer.1
= control target key start
LH: loop header
LB: loop body
LE: loop exit
PB: predicated region body
PF: predicated region fallthrough
CT: control target
= control target key end

     0   :  { %11 = vsyncpa [#allocation3], 0  ;;  %s12367_s0 = inlined_call_operand.hbm [shape: f32[2,64,128], index: 0, kind: input, shape index: {}]   ;;  %s12368_s1 = inlined_call_operand.hbm [shape: f32[2,64,128], index: 1, kind: input, shape index: {}]   ;;  %s12369_s2 = inlined_call_operand.hbm [shape: f32[2,64,128], index: 2, kind: input, shape index: {}]   ;;  %s12370_s3 = inlined_call_operand.hbm [shape: bf16[128,2176], index: 3, kind: input, shape index: {}]   ;;  %s12371_s4 = inlined_call_operand.hbm [shape: bf16[256,256], index: 4, kind: input, shape index: {}]   ;;  %s12372_s5 = inlined_call_operand.hbm [shape: f32[10,128], index: 5, kind: input, shape index: {}]   ;;  %s12373_s6 = inlined_call_operand.hbm [shape: f32[2,64,128], index: 6, kind: output, shape index: {}]  }
   0x1   :  { %12 = vsyncpa [#allocation6], 0 }
   0x2   :  { %13 = vsyncpa [#allocation9], 0 }
   0x3   :  { %14 = vsyncpa [#allocation12], 0 }
   0x4   :  { %15 = vsyncpa [#allocation4], 0  ;;  %s33_s23 = sshll.u32 %s12368_s1, 4  ;;  %s9091_s24 = smov [#allocation5]   ;;  %s34_s23 = int_to_ptr.hbm [resolvable:$true] %s33_s23 }
   0x5   :  { %s35_s25 = sshll.u32 %s9091_s24, 4  ;;  %s59_s28 = sshll.u32 %s12370_s3, 4  ;;  %s36_s25 = int_to_ptr.vmem [resolvable:$true] %s35_s25  ;;  %s60_s28 = int_to_ptr.hbm [resolvable:$true] %s59_s28 }
   0x6   :  { %s9092_s29 = smov 128   ;;  %s9093_s30 = smov 8  }
   0x7   :  { %41 = dma.hbm_to_vmem [thread:$0]  %s34_s23, 2048, %s36_s25, [#allocation6], %s9092_s29, %s9092_s29, %s9093_s30  }
   0x8   :  { %s9094_s7 = smov [#allocation8]   ;;  %s9095_s9 = smov 1088  }
   0x9   :  { %s61_s8 = sshll.u32 %s9094_s7, 4  ;;  %s9096_s1 = smov 68   ;;  %s62_s8 = int_to_ptr.vmem [resolvable:$true] %s61_s8 }
   0xa   :  { %67 = dma.hbm_to_vmem [thread:$0]  %s60_s28, 17408, %s62_s8, [#allocation9], %s9095_s9, %s9095_s9, %s9096_s1  }
   0xb   :  { %s20_s12 = sshll.u32 %s12367_s0, 4  ;;  %s9097_s13 = smov [#allocation2]   ;;  %s21_s12 = int_to_ptr.hbm [resolvable:$true] %s20_s12 }
   0xc   :  { %s22_s3 = sshll.u32 %s9097_s13, 4  ;;  %s46_s16 = sshll.u32 %s12369_s2, 4  ;;  %s23_s3 = int_to_ptr.vmem [resolvable:$true] %s22_s3  ;;  %s47_s16 = int_to_ptr.hbm [resolvable:$true] %s46_s16 }
   0xd   :  { %28 = dma.hbm_to_vmem [thread:$0]  %s21_s12, 2048, %s23_s3, [#allocation3], %s9092_s29, %s9092_s29, %s9093_s30  }
   0xe   :  { %s9098_s17 = smov [#allocation7]   ;;  %s72_s21 = sshll.u32 %s12371_s4, 4  ;;  %s73_s21 = int_to_ptr.hbm [resolvable:$true] %s72_s21 }
   0xf   :  { %s48_s18 = sshll.u32 %s9098_s17, 4  ;;  %s85_s2 = sshll.u32 %s12372_s5, 4  ;;  %s49_s18 = int_to_ptr.vmem [resolvable:$true] %s48_s18  ;;  %s86_s2 = int_to_ptr.hbm [resolvable:$true] %s85_s2 }
  0x10   :  { %54 = dma.hbm_to_vmem [thread:$0]  %s47_s16, 2048, %s49_s18, [#allocation6], %s9092_s29, %s9092_s29, %s9093_s30  }
  0x11   :  { %s9099_s23 = smov [#allocation10]   ;;  %s9100_s25 = smov [#allocation11]  }
  0x12   :  { %s74_s24 = sshll.u32 %s9099_s23, 4  ;;  %s87_s4 = sshll.u32 %s9100_s25, 4  ;;  %s75_s24 = int_to_ptr.vmem [resolvable:$true] %s74_s24  ;;  %s88_s4 = int_to_ptr.vmem [resolvable:$true] %s87_s4 }
  0x13   :  { %80 = dma.hbm_to_vmem [thread:$0]  %s73_s21, 4096, %s75_s24, [#allocation9], %s9092_s29, %s9092_s29, %s9093_s30  }
  0x14   :  { %93 = dma.hbm_to_vmem [thread:$0]  %s86_s2, 256, %s88_s4, [#allocation12], %s9092_s29, %s9092_s29, %s9093_s30  }
  0x15   :  { %9081 = dma.done.wait [#allocation3], 2048  }
  0x16   :  { %9082 = vsyncadd [#allocation3], 4294965248 }
  0x17   :  { %9083 = dma.done.wait [#allocation6], 4096  }
  0x18   :  { %9084 = vsyncadd [#allocation6], 4294963200 }
  0x19   :  { %9085 = dma.done.wait [#allocation9], 21504  }
  0x1a   :  { %9086 = vsyncadd [#allocation9], 4294945792 }
  0x1b   :  { %9087 = dma.done.wait [#allocation12], 256  }
  0x1c   :  { %9088 = vsyncadd [#allocation12], 4294967040  ;;  %v7528_v0 = vld [vmem:[#allocation8 + $0x3bc] sm:$0xf]  ;;  %v8248_v1 = vld [vmem:[#allocation8 + $0x3fc] sm:$0xf0] }
  0x1d   :  { %v7516_v2 = vld [vmem:[#allocation8 + $0x334] sm:$0xf]  ;;  %v7529_v3 = vor.u32 %v8248_v1, %v7528_v0  ;;  %v8245_v4 = vld [vmem:[#allocation8 + $0x374] sm:$0xf0]  ;;  %v7504_v6 = vld [vmem:[#allocation8 + $0x2ac] sm:$0xf] }
  0x1e   :  { %v7517_v5 = vor.u32 %v8245_v4, %v7516_v2  ;;  %v8242_v7 = vld [vmem:[#allocation8 + $0x2ec] sm:$0xf0]  ;;  %v7492_v9 = vld [vmem:[#allocation8 + $0x224] sm:$0xf]  ;;  %v8239_v10 = vld [vmem:[#allocation8 + $0x264] sm:$0xf0] }
  0x1f   :  { %8410 = vmatpush.bf16.msra.mxu1 %v7529_v3  ;;  %351 = vmatpush.bf16.msra.mxu0 %v7529_v3  ;;  %v7505_v8 = vor.u32 %v8242_v7, %v7504_v6  ;;  %v7493_v11 = vor.u32 %v8239_v10, %v7492_v9  ;;  %v7480_v12 = vld [vmem:[#allocation8 + $0x19c] sm:$0xf]  ;;  %v8236_v13 = vld [vmem:[#allocation8 + $0x1dc] sm:$0xf0]  ;;  %v7468_v15 = vld [vmem:[#allocation8 + $0x114] sm:$0xf] }
  0x20   :  { %v7481_v14 = vor.u32 %v8236_v13, %v7480_v12  ;;  %v8233_v16 = vld [vmem:[#allocation8 + $0x154] sm:$0xf0]  ;;  %v7456_v18 = vld [vmem:[#allocation8 + $0x8c] sm:$0xf]  ;;  %v8230_v19 = vld [vmem:[#allocation8 + $0xcc] sm:$0xf0] }
  0x21   :  { %v7469_v17 = vor.u32 %v8233_v16, %v7468_v15  ;;  %v127_v20 = vld [vmem:[#allocation5 + $0x40] sm:$0xff]  ;;  %v7457_v21 = vor.u32 %v8230_v19, %v7456_v18  ;;  %v128_v22 = vld [vmem:[#allocation5 + $0x48] sm:$0xff]  ;;  %v8244_v34 = vld [vmem:[#allocation8 + $0x338] sm:$0xf]  ;;  %s9102_s5 = smov [#allocation13]   ;;  %s7426_s7 = sshll.u32 %s12373_s6, 4  ;;  %s7427_s7 = int_to_ptr.hbm [resolvable:$true] %s7426_s7 }
  0x22   :  { %v143_v23 = vld [vmem:[#allocation7 + $0x40] sm:$0xff]  ;;  %v144_v24 = vld [vmem:[#allocation7 + $0x48] sm:$0xff]  ;;  %v7518_v35 = vld [vmem:[#allocation8 + $0x378] sm:$0xf0]  ;;  %s7424_s26 = sshll.u32 %s9102_s5, 4  ;;  %s7425_s26 = int_to_ptr.vmem [resolvable:$true] %s7424_s26 }
  0x23   :  { %8411 = vmatpush.bf16.msra.mxu1 %v7517_v5  ;;  %352 = vmatpush.bf16.msra.mxu0 %v7517_v5  ;;  %v7444_v25 = vld [vmem:[#allocation8 + $0x4] sm:$0xf]  ;;  %v8227_v26 = vld [vmem:[#allocation8 + $0x44] sm:$0xf0]  ;;  %v9171_v27 = vadd.f32 %v143_v23, %v127_v20  ;;  %v9173_v28 = vadd.f32 %v144_v24, %v128_v22  ;;  %v8247_v31 = vld [vmem:[#allocation8 + $0x3c0] sm:$0xf]  ;;  %v7521_v36 = vor.u32 %v8244_v34, %v7518_v35 }
  0x24   :  { %v7445_v29 = vor.u32 %v8227_v26, %v7444_v25  ;;  %v7530_v32 = vld [vmem:[#allocation8 + $0x400] sm:$0xf0]  ;;  %v8241_v37 = vld [vmem:[#allocation8 + $0x2b0] sm:$0xf]  ;;  %v7506_v38 = vld [vmem:[#allocation8 + $0x2f0] sm:$0xf0] }
  0x25   :  { %12479 = vst [vmem:[#allocation19_spill] sm:$0xff] %v9171_v27  ;;  %v9177_v30 = vpack.c.bf16 %v9173_v28, %v9171_v27  ;;  %v7533_v33 = vor.u32 %v8247_v31, %v7530_v32  ;;  %v129_v39 = vld [vmem:[#allocation5 + $0x50] sm:$0xff]  ;;  %v130_v40 = vld [vmem:[#allocation5 + $0x58] sm:$0xff]  ;;  %v7509_v43 = vor.u32 %v8241_v37, %v7506_v38  ;;  %v8238_v44 = vld [vmem:[#allocation8 + $0x228] sm:$0xf] }
  0x26   :  { %12480 = vst [vmem:[#allocation20_spill] sm:$0xff] %v9173_v28  ;;  %v145_v41 = vld [vmem:[#allocation7 + $0x50] sm:$0xff]  ;;  %v146_v42 = vld [vmem:[#allocation7 + $0x58] sm:$0xff]  ;;  %v7494_v45 = vld [vmem:[#allocation8 + $0x268] sm:$0xf0] }
  0x27   :  { %8412 = vmatpush.bf16.msra.mxu1 %v7505_v8  ;;  %353 = vmatpush.bf16.msra.mxu0 %v7505_v8  ;;  %v9180_v46 = vadd.f32 %v145_v41, %v129_v39  ;;  %v9182_v47 = vadd.f32 %v146_v42, %v130_v40  ;;  %v7497_v48 = vor.u32 %v8238_v44, %v7494_v45  ;;  %v8235_v50 = vld [vmem:[#allocation8 + $0x1a0] sm:$0xf]  ;;  %v7482_v51 = vld [vmem:[#allocation8 + $0x1e0] sm:$0xf0]  ;;  %v8232_v53 = vld [vmem:[#allocation8 + $0x118] sm:$0xf] }
  0x28   :  { %v7485_v52 = vor.u32 %v8235_v50, %v7482_v51  ;;  %v7470_v54 = vld [vmem:[#allocation8 + $0x158] sm:$0xf0]  ;;  %v8229_v56 = vld [vmem:[#allocation8 + $0x90] sm:$0xf]  ;;  %v7458_v57 = vld [vmem:[#allocation8 + $0xd0] sm:$0xf0] }
  0x29   :  { %12481 = vst [vmem:[#allocation21_spill] sm:$0xff] %v9180_v46  ;;  %v9186_v49 = vpack.c.bf16 %v9182_v47, %v9180_v46  ;;  %v7473_v55 = vor.u32 %v8232_v53, %v7470_v54  ;;  %v119_v58 = vld [vmem:[#allocation5] sm:$0xff]  ;;  %v120_v59 = vld [vmem:[#allocation5 + $0x8] sm:$0xff]  ;;  %v7461_v4 = vor.u32 %v8229_v56, %v7458_v57  ;;  %v121_v12 = vld [vmem:[#allocation5 + $0x10] sm:$0xff] }
  0x2a   :  { %12482 = vst [vmem:[#allocation22_spill] sm:$0xff] %v9182_v47  ;;  %v135_v60 = vld [vmem:[#allocation7] sm:$0xff]  ;;  %v136_v61 = vld [vmem:[#allocation7 + $0x8] sm:$0xff]  ;;  %v122_v13 = vld [vmem:[#allocation5 + $0x18] sm:$0xff] }
  0x2b   :  { %8413 = vmatpush.bf16.msra.mxu1 %v7493_v11  ;;  %354 = vmatpush.bf16.msra.mxu0 %v7493_v11  ;;  %v9189_v62 = vadd.f32 %v135_v60, %v119_v58  ;;  %v131_v63 = vld [vmem:[#allocation5 + $0x60] sm:$0xff]  ;;  %v9191_v0 = vadd.f32 %v136_v61, %v120_v59  ;;  %v132_v1 = vld [vmem:[#allocation5 + $0x68] sm:$0xff]  ;;  %v138_v15 = vld [vmem:[#allocation7 + $0x18] sm:$0xff] }
  0x2c   :  { %v147_v2 = vld [vmem:[#allocation7 + $0x60] sm:$0xff]  ;;  %v148_v3 = vld [vmem:[#allocation7 + $0x68] sm:$0xff]  ;;  %v133_v18 = vld [vmem:[#allocation5 + $0x70] sm:$0xff] }
  0x2d   :  { %v8226_v5 = vld [vmem:[#allocation8 + $0x8] sm:$0xf]  ;;  %v7446_v6 = vld [vmem:[#allocation8 + $0x48] sm:$0xf0]  ;;  %v9195_v7 = vpack.c.bf16 %v9191_v0, %v9189_v62  ;;  %v9197_v8 = vadd.f32 %v147_v2, %v131_v63  ;;  %v9199_v9 = vadd.f32 %v148_v3, %v132_v1  ;;  %v134_v19 = vld [vmem:[#allocation5 + $0x78] sm:$0xff] }
  0x2e   :  { %v7449_v10 = vor.u32 %v8226_v5, %v7446_v6  ;;  %v149_v20 = vld [vmem:[#allocation7 + $0x70] sm:$0xff]  ;;  %v123_v26 = vld [vmem:[#allocation5 + $0x20] sm:$0xff]  ;;  %v140_v32 = vld [vmem:[#allocation7 + $0x28] sm:$0xff] }
  0x2f   :  { %8414 = vmatpush.bf16.msra.mxu1 %v7481_v14  ;;  %355 = vmatpush.bf16.msra.mxu0 %v7481_v14  ;;  %12483 = vst [vmem:[#allocation23_spill] sm:$0xff] %v9197_v8  ;;  %v9204_v11 = vpack.c.bf16 %v9199_v9, %v9197_v8  ;;  %v137_v14 = vld [vmem:[#allocation7 + $0x10] sm:$0xff]  ;;  %v9213_v23 = vadd.f32 %v149_v20, %v133_v18  ;;  %v139_v31 = vld [vmem:[#allocation7 + $0x20] sm:$0xff]  ;;  %v126_v37 = vld [vmem:[#allocation5 + $0x38] sm:$0xff] }
  0x30   :  { %12484 = vst [vmem:[#allocation24_spill] sm:$0xff] %v9199_v9  ;;  %v9207_v16 = vadd.f32 %v137_v14, %v121_v12  ;;  %v141_v38 = vld [vmem:[#allocation7 + $0x30] sm:$0xff]  ;;  %v142_v39 = vld [vmem:[#allocation7 + $0x38] sm:$0xff]  ;;  %v8249_v44 = vld [vmem:[#allocation8 + $0x404] sm:$0xf0] }
  0x31   :  { %12485 = vst [vmem:[#allocation25_spill] sm:$0xff] %v9213_v23  ;;  %v9231_v41 = vadd.f32 %v142_v39, %v126_v37  ;;  %v8246_v50 = vld [vmem:[#allocation8 + $0x37c] sm:$0xf0]  ;;  %v8243_v53 = vld [vmem:[#allocation8 + $0x2f4] sm:$0xf0] }
  0x32   :  { %v8240_v56 = vld [vmem:[#allocation8 + $0x26c] sm:$0xf0]  ;;  %v7488_v58 = vld [vmem:[#allocation8 + $0x1a4] sm:$0xf]  ;;  %v8237_v59 = vld [vmem:[#allocation8 + $0x1e4] sm:$0xf0] }
  0x33   :  { %8415 = vmatpush.bf16.msra.mxu1 %v7469_v17  ;;  %356 = vmatpush.bf16.msra.mxu0 %v7469_v17  ;;  %v9209_v17 = vadd.f32 %v138_v15, %v122_v13  ;;  %12488 = vst [vmem:[#allocation28_spill] sm:$0xff] %v9231_v41  ;;  %v7489_v60 = vor.u32 %v8237_v59, %v7488_v58  ;;  %v7476_v61 = vld [vmem:[#allocation8 + $0x11c] sm:$0xf]  ;;  %v8234_v63 = vld [vmem:[#allocation8 + $0x15c] sm:$0xf0] }
  0x34   :  { %v7477_v1 = vor.u32 %v8234_v63, %v7476_v61  ;;  %v7464_v2 = vld [vmem:[#allocation8 + $0x94] sm:$0xf]  ;;  %v8231_v3 = vld [vmem:[#allocation8 + $0xd4] sm:$0xf0]  ;;  %v7452_v5 = vld [vmem:[#allocation8 + $0xc] sm:$0xf] }
  0x35   :  { %v216_v22 = vpack.c.bf16 %v9209_v17, %v9207_v16  ;;  %v8228_v6 = vld [vmem:[#allocation8 + $0x4c] sm:$0xf0] }
  0x37   :  { %8416 = vmatpush.bf16.msra.mxu1 %v7457_v21  ;;  %357 = vmatpush.bf16.msra.mxu0 %v7457_v21  ;;  %v150_v21 = vld [vmem:[#allocation7 + $0x78] sm:$0xff] }
  0x38   :  { %v9215_v24 = vadd.f32 %v150_v21, %v134_v19 }
  0x3a   :  { %12486 = vst [vmem:[#allocation26_spill] sm:$0xff] %v9215_v24  ;;  %v9219_v25 = vpack.c.bf16 %v9215_v24, %v9213_v23 }
  0x3b   :  { %8417 = vmatpush.bf16.msra.mxu1 %v7445_v29  ;;  %358 = vmatpush.bf16.msra.mxu0 %v7445_v29  ;;  %v124_v29 = vld [vmem:[#allocation5 + $0x28] sm:$0xff] }
  0x3c   :  { %v9224_v34 = vadd.f32 %v140_v32, %v124_v29 }
  0x3e   :  { %379 = vmatmul.bf16.vlgmr.msra.gmra.mxu1 %v9177_v30  ;;  %359 = vmatmul.bf16.vlgmr.msra.gmra.mxu0 %v9195_v7 }
  0x3f   :  { %400 = vmatpush.bf16.msrb.mxu1 %v7533_v33  ;;  %v9222_v33 = vadd.f32 %v139_v31, %v123_v26 }
  0x41   :  { %v217_v35 = vpack.c.bf16 %v9224_v34, %v9222_v33 }
  0x43   :  { %401 = vmatpush.bf16.msrb.mxu1 %v7521_v36  ;;  %v125_v36 = vld [vmem:[#allocation5 + $0x30] sm:$0xff] }
  0x44   :  { %v9229_v40 = vadd.f32 %v141_v38, %v125_v36 }
  0x46   :  { %12487 = vst [vmem:[#allocation27_spill] sm:$0xff] %v9229_v40  ;;  %v218_v42 = vpack.c.bf16 %v9231_v41, %v9229_v40  ;;  %v9454_v40 = vld [vmem:[#allocation8 + $0x154] sm:$0xf] }
  0x47   :  { %402 = vmatpush.bf16.msrb.mxu1 %v7509_v43  ;;  %v7536_v43 = vld [vmem:[#allocation8 + $0x3c4] sm:$0xf] }
  0x48   :  { %v7537_v45 = vor.u32 %v8249_v44, %v7536_v43 }
  0x4a   :  { %449 = vmatpush.bf16.msra.mxu2 %v7537_v45 }
  0x4b   :  { %403 = vmatpush.bf16.msrb.mxu1 %v7497_v48  ;;  %v7524_v48 = vld [vmem:[#allocation8 + $0x33c] sm:$0xf] }
  0x4c   :  { %v7525_v51 = vor.u32 %v8246_v50, %v7524_v48 }
  0x4e   :  { %384 = vmatmul.bf16.gmra.mxu1 %v9186_v49  ;;  %364 = vmatmul.bf16.gmra.mxu0 %v216_v22 }
  0x4f   :  { %404 = vmatpush.bf16.msrb.mxu1 %v7485_v52  ;;  %450 = vmatpush.bf16.msra.mxu2 %v7525_v51  ;;  %v7512_v52 = vld [vmem:[#allocation8 + $0x2b4] sm:$0xf] }
  0x50   :  { %v7513_v54 = vor.u32 %v8243_v53, %v7512_v52 }
  0x53   :  { %405 = vmatpush.bf16.msrb.mxu1 %v7473_v55  ;;  %451 = vmatpush.bf16.msra.mxu2 %v7513_v54  ;;  %v7500_v55 = vld [vmem:[#allocation8 + $0x22c] sm:$0xf] }
  0x54   :  { %v7501_v57 = vor.u32 %v8240_v56, %v7500_v55 }
  0x57   :  { %406 = vmatpush.bf16.msrb.mxu1 %v7461_v4  ;;  %452 = vmatpush.bf16.msra.mxu2 %v7501_v57  ;;  %v7465_v4 = vor.u32 %v8231_v3, %v7464_v2 }
  0x5b   :  { %407 = vmatpush.bf16.msrb.mxu1 %v7449_v10  ;;  %453 = vmatpush.bf16.msra.mxu2 %v7489_v60  ;;  %v7453_v10 = vor.u32 %v8228_v6, %v7452_v5 }
  0x5e   :  { %389 = vmatmul.bf16.gmra.mxu1 %v9204_v11  ;;  %369 = vmatmul.bf16.gmra.mxu0 %v217_v35 }
  0x5f   :  { %454 = vmatpush.bf16.msra.mxu2 %v7477_v1 }
  0x63   :  { %455 = vmatpush.bf16.msra.mxu2 %v7465_v4 }
  0x67   :  { %456 = vmatpush.bf16.msra.mxu2 %v7453_v10 }
  0x6a   :  { %457 = vmatmul.bf16.vlgmr.msra.gmra.mxu2 %v9195_v7 }
  0x6e   :  { %394 = vmatmul.bf16.gmra.mxu1 %v9219_v25  ;;  %374 = vmatmul.bf16.gmra.mxu0 %v218_v42 }
  0x7a   :  { %462 = vmatmul.bf16.gmra.mxu2 %v216_v22 }
  0x7e   :  { %408 = vmatmul.bf16.vlgmr.msrb.gmra.mxu1 %v9195_v7 }
  0x8a   :  { %467 = vmatmul.bf16.gmra.mxu2 %v217_v35 }
  0x8e   :  { %413 = vmatmul.bf16.gmra.mxu1 %v216_v22 }
  0x9a   :  { %472 = vmatmul.bf16.gmra.mxu2 %v218_v42 }
  0x9e   :  { %418 = vmatmul.bf16.gmra.mxu1 %v217_v35 }
  0xaa   :  { %477 = vmatmul.bf16.gmra.mxu2 %v9177_v30 }
  0xae   :  { %423 = vmatmul.bf16.gmra.mxu1 %v218_v42 }
  0xba   :  { %482 = vmatmul.bf16.gmra.mxu2 %v9186_v49 }
  0xbb   :  { %v9235_v12 = vpop.f32.mrf.mxu1 }
  0xbe   :  { %428 = vmatmul.bf16.gmra.mxu1 %v9177_v30 }
  0xc3   :  { %v9239_v13 = vpop.f32.mrf.mxu1 }
  0xca   :  { %487 = vmatmul.bf16.gmra.mxu2 %v9204_v11 }
  0xcb   :  { %v9241_v14 = vpop.f32.mrf.mxu1 }
  0xce   :  { %433 = vmatmul.bf16.gmra.mxu1 %v9186_v49 }
  0xd3   :  { %v9244_v15 = vpop.f32.mrf.mxu1 }
  0xda   :  { %492 = vmatmul.bf16.gmra.mxu2 %v9219_v25 }
  0xdb   :  { %v9246_v18 = vpop.f32.mrf.mxu1 }
  0xde   :  { %438 = vmatmul.bf16.gmra.mxu1 %v9204_v11 }
  0xe3   :  { %v9249_v19 = vpop.f32.mrf.mxu1 }
  0xeb   :  { %v9251_v20 = vpop.f32.mrf.mxu1 }
  0xee   :  { %443 = vmatmul.bf16.gmra.mxu1 %v9219_v25 }
  0xf3   :  { %v9254_v7 = vpop.f32.mrf.mxu1 }
  0xfb   :  { %v409_v21 = vpop.f32.mrf.mxu1 }
  0xfc   :  { %v610_v22 = vmul.f32 1.442695, %v409_v21  ;;  %v594_v32 = vadd.f32 1.0, %v409_v21  ;;  %vm578_vm0 = vcmp.gt.f32.partialorder %v409_v21, 0.0 }
  0xfe   :  { %8445 = vpow2.f32 %v610_v22 }
 0x103   :  { %v411_v26 = vpop.f32.mrf.mxu1 }
 0x104   :  { %v612_v29 = vmul.f32 1.442695, %v411_v26  ;;  %v8446_v31 = vpop.eup %8445  ;;  %v595_v36 = vadd.f32 1.0, %v411_v26  ;;  %vm579_vm1 = vcmp.gt.f32.partialorder %v411_v26, 0.0 }
 0x105   :  { %v642_v35 = vsel %vm578_vm0, %v594_v32, %v8446_v31  ;;  %vm754_vm0 = vcmask 523264  }
 0x106   :  { %8447 = vpow2.f32 %v612_v29  ;;  %v658_v42 = vpack.c.bf16 %v642_v35, %v642_v35 }
 0x108   :  { %v698_v45 = vunpack.c.l.b16 %v658_v42 }
 0x10b   :  { %v414_v37 = vpop.f32.mrf.mxu1 }
 0x10c   :  { %v8448_v38 = vpop.eup %8447  ;;  %v614_v39 = vmul.f32 1.442695, %v414_v37  ;;  %v596_v51 = vadd.f32 1.0, %v414_v37  ;;  %vm580_vm2 = vcmp.gt.f32.partialorder %v414_v37, 0.0 }
 0x10d   :  { %v643_v43 = vsel %vm579_vm1, %v595_v36, %v8448_v38 }
 0x10e   :  { %8449 = vpow2.f32 %v614_v39  ;;  %v659_v44 = vpack.c.bf16 %v643_v43, %v643_v43  ;;  %v1279_v30 = vadd.f32 %v643_v43, %v642_v35 }
 0x110   :  { %v699_v48 = vunpack.c.l.b16 %v659_v44 }
 0x112   :  { %v706_v50 = vpack.c.b16 %v699_v48, %v698_v45 }
 0x113   :  { %v416_v52 = vpop.f32.mrf.mxu1 }
 0x114   :  { %v8450_v53 = vpop.eup %8449  ;;  %v616_v54 = vmul.f32 1.442695, %v416_v52  ;;  %714 = vxpose.xlu0.c.b16.start [1/4] (short) %v706_v50, 128  ;;  %v597_v57 = vadd.f32 1.0, %v416_v52  ;;  %vm581_vm3 = vcmp.gt.f32.partialorder %v416_v52, 0.0 }
 0x115   :  { %v644_v55 = vsel %vm580_vm2, %v596_v51, %v8450_v53 }
 0x116   :  { %8451 = vpow2.f32 %v616_v54  ;;  %v1280_v56 = vadd.f32 %v1279_v30, %v644_v55  ;;  %v660_v60 = vpack.c.bf16 %v644_v55, %v644_v55 }
 0x118   :  { %v700_v2 = vunpack.c.l.b16 %v660_v60 }
 0x11b   :  { %v419_v58 = vpop.f32.mrf.mxu1 }
 0x11c   :  { %v8452_v59 = vpop.eup %8451  ;;  %v618_v49 = vmul.f32 1.442695, %v419_v58  ;;  %v598_v5 = vadd.f32 1.0, %v419_v58  ;;  %vm582_vm4 = vcmp.gt.f32.partialorder %v419_v58, 0.0  ;;  %v9262_v58 = vpop.f32.mrf.mxu2 }
 0x11d   :  { %v645_v61 = vsel %vm581_vm3, %v597_v57, %v8452_v59 }
 0x11e   :  { %8453 = vpow2.f32 %v618_v49  ;;  %v661_v63 = vpack.c.bf16 %v645_v61, %v645_v61  ;;  %v1281_v1 = vadd.f32 %v1280_v56, %v645_v61 }
 0x120   :  { %v701_v3 = vunpack.c.l.b16 %v661_v63 }
 0x122   :  { %v707_v4 = vpack.c.b16 %v701_v3, %v700_v2 }
 0x123   :  { %v421_v6 = vpop.f32.mrf.mxu1 }
 0x124   :  { %v8454_v10 = vpop.eup %8453  ;;  %v620_v21 = vmul.f32 1.442695, %v421_v6  ;;  %715 = vxpose.xlu0.c.b16.cont [2/4] (short) %v707_v4, 128  ;;  %v599_v29 = vadd.f32 1.0, %v421_v6  ;;  %vm583_vm5 = vcmp.gt.f32.partialorder %v421_v6, 0.0  ;;  %v9264_v2 = vpop.f32.mrf.mxu2 }
 0x125   :  { %v646_v22 = vsel %vm582_vm4, %v598_v5, %v8454_v10 }
 0x126   :  { %8455 = vpow2.f32 %v620_v21  ;;  %v1282_v26 = vadd.f32 %v1281_v1, %v646_v22  ;;  %v662_v35 = vpack.c.bf16 %v646_v22, %v646_v22 }
 0x128   :  { %v702_v39 = vunpack.c.l.b16 %v662_v35 }
 0x12b   :  { %v424_v31 = vpop.f32.mrf.mxu1 }
 0x12c   :  { %v8456_v32 = vpop.eup %8455  ;;  %v622_v11 = vmul.f32 1.442695, %v424_v31  ;;  %v600_v44 = vadd.f32 1.0, %v424_v31  ;;  %vm584_vm6 = vcmp.gt.f32.partialorder %v424_v31, 0.0  ;;  %v9266_v22 = vpop.f32.mrf.mxu2 }
 0x12d   :  { %v647_v36 = vsel %vm583_vm5, %v599_v29, %v8456_v32 }
 0x12e   :  { %8457 = vpow2.f32 %v622_v11  ;;  %v663_v37 = vpack.c.bf16 %v647_v36, %v647_v36  ;;  %v1283_v38 = vadd.f32 %v1282_v26, %v647_v36 }
 0x130   :  { %v703_v42 = vunpack.c.l.b16 %v663_v37 }
 0x132   :  { %v708_v43 = vpack.c.b16 %v703_v42, %v702_v39 }
 0x133   :  { %v426_v30 = vpop.f32.mrf.mxu1 }
 0x134   :  { %v8458_v45 = vpop.eup %8457  ;;  %v624_v48 = vmul.f32 1.442695, %v426_v30  ;;  %716 = vxpose.xlu0.c.b16.cont [3/4] (short) %v708_v43, 128  ;;  %v601_v52 = vadd.f32 1.0, %v426_v30  ;;  %vm585_vm7 = vcmp.gt.f32.partialorder %v426_v30, 0.0  ;;  %v9268_v42 = vpop.f32.mrf.mxu2 }
 0x135   :  { %v648_v50 = vsel %vm584_vm6, %v600_v44, %v8458_v45 }
 0x136   :  { %8459 = vpow2.f32 %v624_v48  ;;  %v1284_v51 = vadd.f32 %v1283_v38, %v648_v50  ;;  %v664_v25 = vpack.c.bf16 %v648_v50, %v648_v50 }
 0x138   :  { %v704_v59 = vunpack.c.l.b16 %v664_v25 }
 0x13b   :  { %v429_v53 = vpop.f32.mrf.mxu1 }
 0x13c   :  { %v8460_v54 = vpop.eup %8459  ;;  %v626_v61 = vmul.f32 1.442695, %v429_v53  ;;  %v602_v6 = vadd.f32 1.0, %v429_v53  ;;  %vm586_vm8 = vcmp.gt.f32.partialorder %v429_v53, 0.0  ;;  %v468_v25 = vpop.f32.mrf.mxu2 }
 0x13d   :  { %v649_v55 = vsel %vm585_vm7, %v601_v52, %v8460_v54 }
 0x13e   :  { %v665_v56 = vpack.c.bf16 %v649_v55, %v649_v55  ;;  %v9260_v57 = vadd.f32 %v1284_v51, %v649_v55  ;;  %8461 = vpow2.f32 %v626_v61 }
 0x140   :  { %v705_v49 = vunpack.c.l.b16 %v665_v56 }
 0x142   :  { %v709_v60 = vpack.c.b16 %v705_v49, %v704_v59 }
 0x143   :  { %v431_v63 = vpop.f32.mrf.mxu1 }
 0x144   :  { %v628_v1 = vmul.f32 1.442695, %v431_v63  ;;  %717 = vxpose.xlu0.c.b16.end [4/4] (short) %v709_v60, 128  ;;  %v8462_v5 = vpop.eup %8461  ;;  %v603_v10 = vadd.f32 1.0, %v431_v63  ;;  %vm587_vm9 = vcmp.gt.f32.partialorder %v431_v63, 0.0 }
 0x145   :  { %v650_v29 = vsel %vm586_vm8, %v602_v6, %v8462_v5  ;;  %v470_v5 = vpop.f32.mrf.mxu2 }
 0x146   :  { %8463 = vpow2.f32 %v628_v1  ;;  %v666_v38 = vpack.c.bf16 %v650_v29, %v650_v29 }
 0x148   :  { %v836_v44 = vunpack.c.l.b16 %v666_v38 }
 0x14b   :  { %v434_v3 = vpop.f32.mrf.mxu1 }
 0x14c   :  { %v630_v4 = vmul.f32 1.442695, %v434_v3  ;;  %v8464_v21 = vpop.eup %8463  ;;  %v604_v26 = vadd.f32 1.0, %v434_v3  ;;  %vm588_vm10 = vcmp.gt.f32.partialorder %v434_v3, 0.0 }
 0x14d   :  { %v651_v31 = vsel %vm587_vm9, %v603_v10, %v8464_v21  ;;  %vm506_vm9 = vcmp.gt.f32.partialorder %v9235_v12, 0.0 }
 0x14e   :  { %8465 = vpow2.f32 %v630_v4  ;;  %v1292_v32 = vadd.f32 %v651_v31, %v650_v29  ;;  %v667_v39 = vpack.c.bf16 %v651_v31, %v651_v31 }
 0x150   :  { %v837_v30 = vunpack.c.l.b16 %v667_v39 }
 0x152   :  { %v844_v48 = vpack.c.b16 %v837_v30, %v836_v44 }
 0x153   :  { %v436_v11 = vpop.f32.mrf.mxu1 }
 0x154   :  { %v8466_v35 = vpop.eup %8465  ;;  %v632_v36 = vmul.f32 1.442695, %v436_v11  ;;  %v605_v45 = vadd.f32 1.0, %v436_v11  ;;  %vm589_vm11 = vcmp.gt.f32.partialorder %v436_v11, 0.0  ;;  %852 = vxpose.xlu1.c.b16.start [1/4] (short) %v844_v48, 128  ;;  %v473_v11 = vpop.f32.mrf.mxu2 }
 0x155   :  { %v652_v37 = vsel %vm588_vm10, %v604_v26, %v8466_v35  ;;  %v680_v44 = vpack.c.bf16 %v473_v11, %v473_v11  ;;  %vm507_vm10 = vcmp.gt.f32.partialorder %v9239_v13, 0.0 }
 0x156   :  { %8467 = vpow2.f32 %v632_v36  ;;  %v1293_v43 = vadd.f32 %v1292_v32, %v652_v37  ;;  %v668_v55 = vpack.c.bf16 %v652_v37, %v652_v37 }
 0x158   :  { %v838_v63 = vunpack.c.l.b16 %v668_v55 }
 0x15b   :  { %v439_v50 = vpop.f32.mrf.mxu1 }
 0x15c   :  { %v8468_v51 = vpop.eup %8467  ;;  %v634_v52 = vmul.f32 1.442695, %v439_v50  ;;  %v606_v59 = vadd.f32 1.0, %v439_v50  ;;  %vm590_vm12 = vcmp.gt.f32.partialorder %v439_v50, 0.0  ;;  %v678_v50 = vpack.c.bf16 %v468_v25, %v468_v25 }
 0x15d   :  { %v653_v53 = vsel %vm589_vm11, %v605_v45, %v8468_v51  ;;  %v679_v51 = vpack.c.bf16 %v470_v5, %v470_v5  ;;  %v674_v25 = vpack.c.bf16 %v9262_v58, %v9262_v58  ;;  %v675_v5 = vpack.c.bf16 %v9264_v2, %v9264_v2 }
 0x15e   :  { %8469 = vpow2.f32 %v634_v52  ;;  %v1294_v54 = vadd.f32 %v1293_v43, %v653_v53  ;;  %v669_v56 = vpack.c.bf16 %v653_v53, %v653_v53  ;;  %v475_v53 = vpop.f32.mrf.mxu2  ;;  %vm508_vm11 = vcmp.gt.f32.partialorder %v9241_v14, 0.0 }
 0x15f   :  { %v681_v55 = vpack.c.bf16 %v475_v53, %v475_v53 }
 0x160   :  { %v839_v1 = vunpack.c.l.b16 %v669_v56 }
 0x162   :  { %v845_v6 = vpack.c.b16 %v839_v1, %v838_v63  ;;  %v743_v63 = vunpack.c.l.b16 %v679_v51  ;;  %v745_v1 = vunpack.c.l.b16 %v681_v55  ;;  %v8264_v51 = vld [vmem:[#allocation8 + $0x370] sm:$0xf0]  ;;  %v8263_v55 = vld [vmem:[#allocation8 + $0x2e8] sm:$0xf0] }
 0x163   :  { %v441_v49 = vpop.f32.mrf.mxu1 }
 0x164   :  { %v8470_v60 = vpop.eup %8469  ;;  %v636_v61 = vmul.f32 1.442695, %v441_v49  ;;  %v607_v10 = vadd.f32 1.0, %v441_v49  ;;  %vm591_vm13 = vcmp.gt.f32.partialorder %v441_v49, 0.0  ;;  %853 = vxpose.xlu1.c.b16.cont [2/4] (short) %v845_v6, 128 }
 0x165   :  { %v654_v3 = vsel %vm590_vm12, %v606_v59, %v8470_v60  ;;  %v676_v59 = vpack.c.bf16 %v9266_v22, %v9266_v22  ;;  %v677_v60 = vpack.c.bf16 %v9268_v42, %v9268_v42  ;;  %vm509_vm12 = vcmp.gt.f32.partialorder %v9244_v15, 0.0 }
 0x166   :  { %8471 = vpow2.f32 %v636_v61  ;;  %v1295_v4 = vadd.f32 %v1294_v54, %v654_v3  ;;  %v670_v35 = vpack.c.bf16 %v654_v3, %v654_v3  ;;  %v744_v54 = vunpack.c.l.b16 %v680_v44 }
 0x167   :  { %v742_v61 = vunpack.c.l.b16 %v678_v50  ;;  %v741_v22 = vunpack.c.l.b16 %v677_v60  ;;  %v7580_v50 = vld [vmem:[#allocation8 + $0x330] sm:$0xf] }
 0x168   :  { %v840_v30 = vunpack.c.l.b16 %v670_v35  ;;  %v9280_v35 = vpop.f32.mrf.mxu2  ;;  %v7581_v53 = vor.u32 %v8264_v51, %v7580_v50 }
 0x16b   :  { %v444_v21 = vpop.f32.mrf.mxu1 }
 0x16c   :  { %v8472_v26 = vpop.eup %8471  ;;  %v638_v29 = vmul.f32 1.442695, %v444_v21  ;;  %v608_v37 = vadd.f32 1.0, %v444_v21  ;;  %vm592_vm14 = vcmp.gt.f32.partialorder %v444_v21, 0.0  ;;  %v748_v21 = vpack.c.b16 %v743_v63, %v742_v61 }
 0x16d   :  { %v655_v31 = vsel %vm591_vm13, %v607_v10, %v8472_v26  ;;  %v740_v10 = vunpack.c.l.b16 %v676_v59  ;;  %v7572_v59 = vld [vmem:[#allocation8 + $0x220] sm:$0xf]  ;;  %vm510_vm13 = vcmp.gt.f32.partialorder %v9246_v18, 0.0 }
 0x16e   :  { %8473 = vpow2.f32 %v638_v29  ;;  %v1296_v32 = vadd.f32 %v1295_v4, %v655_v31  ;;  %v671_v36 = vpack.c.bf16 %v655_v31, %v655_v31  ;;  %v749_v4 = vpack.c.b16 %v745_v1, %v744_v54  ;;  %v7576_v54 = vld [vmem:[#allocation8 + $0x2a8] sm:$0xf]  ;;  %v7568_v1 = vld [vmem:[#allocation8 + $0x198] sm:$0xf] }
 0x16f   :  { %v738_v31 = vunpack.c.l.b16 %v674_v25  ;;  %v747_v11 = vpack.c.b16 %v741_v22, %v740_v10  ;;  %v360_v22 = vpop.f32.mrf.mxu0 }
 0x170   :  { %v841_v45 = vunpack.c.l.b16 %v671_v36  ;;  %783 = vmatpush.bf16.msrb.mxu2 %v749_v4  ;;  %8418 = vmatpush.bf16.msra.mxu3 %v749_v4  ;;  %vm498_vm1 = vcmp.gt.f32.partialorder %v360_v22, 0.0 }
 0x172   :  { %v846_v56 = vpack.c.b16 %v841_v45, %v840_v30  ;;  %v7584_v30 = vld [vmem:[#allocation8 + $0x3b8] sm:$0xf]  ;;  %v8265_v45 = vld [vmem:[#allocation8 + $0x3f8] sm:$0xf0] }
 0x173   :  { %v446_v38 = vpop.f32.mrf.mxu1 }
 0x174   :  { %v8474_v39 = vpop.eup %8473  ;;  %v640_v43 = vmul.f32 1.442695, %v446_v38  ;;  %v609_v49 = vadd.f32 1.0, %v446_v38  ;;  %vm593_vm15 = vcmp.gt.f32.partialorder %v446_v38, 0.0  ;;  %854 = vxpose.xlu1.c.b16.cont [3/4] (short) %v846_v56, 128  ;;  %784 = vmatpush.bf16.msrb.mxu2 %v748_v21  ;;  %v9282_v38 = vpop.f32.mrf.mxu2  ;;  %v7577_v56 = vor.u32 %v8263_v55, %v7576_v54 }
 0x175   :  { %v656_v48 = vsel %vm592_vm14, %v608_v37, %v8474_v39  ;;  %8419 = vmatpush.bf16.msra.mxu3 %v748_v21  ;;  %vm511_vm14 = vcmp.gt.f32.partialorder %v9249_v19, 0.0 }
 0x176   :  { %8475 = vpow2.f32 %v640_v43  ;;  %v1297_v52 = vadd.f32 %v1296_v32, %v656_v48  ;;  %v672_v26 = vpack.c.bf16 %v656_v48, %v656_v48  ;;  %v739_v32 = vunpack.c.l.b16 %v675_v5  ;;  %v7564_v5 = vld [vmem:[#allocation8 + $0x110] sm:$0xf] }
 0x177   :  { %v7585_v48 = vor.u32 %v8265_v45, %v7584_v30 }
 0x178   :  { %v842_v58 = vunpack.c.l.b16 %v672_v26  ;;  %785 = vmatpush.bf16.msrb.mxu2 %v747_v11  ;;  %v746_v2 = vpack.c.b16 %v739_v32, %v738_v31  ;;  %v7560_v31 = vld [vmem:[#allocation8 + $0x88] sm:$0xf]  ;;  %v8259_v32 = vld [vmem:[#allocation8 + $0xc8] sm:$0xf0] }
 0x179   :  { %8420 = vmatpush.bf16.msra.mxu3 %v747_v11 }
 0x17c   :  { %v8476_v3 = vpop.eup %8475  ;;  %786 = vmatpush.bf16.msrb.mxu2 %v746_v2  ;;  %v483_v39 = vpop.f32.mrf.mxu2 }
 0x17d   :  { %v657_v6 = vsel %vm593_vm15, %v609_v49, %v8476_v3  ;;  %8421 = vmatpush.bf16.msra.mxu3 %v746_v2  ;;  %v8262_v49 = vld [vmem:[#allocation8 + $0x260] sm:$0xf0]  ;;  %v8261_v3 = vld [vmem:[#allocation8 + $0x1d8] sm:$0xf0]  ;;  %v7556_v2 = vld [vmem:[#allocation8] sm:$0xf]  ;;  %v684_v50 = vpack.c.bf16 %v483_v39, %v483_v39 }
 0x17e   :  { %v9278_v42 = vadd.f32 %v1297_v52, %v657_v6  ;;  %v673_v29 = vpack.c.bf16 %v657_v6, %v657_v6  ;;  %v7573_v61 = vor.u32 %v8262_v49, %v7572_v59  ;;  %v7569_v25 = vor.u32 %v8261_v3, %v7568_v1  ;;  %v8260_v6 = vld [vmem:[#allocation8 + $0x150] sm:$0xf0] }
 0x17f   :  { %v7565_v26 = vor.u32 %v8260_v6, %v7564_v5  ;;  %v683_v59 = vpack.c.bf16 %v9282_v38, %v9282_v38  ;;  %v878_v49 = vunpack.c.l.b16 %v684_v50  ;;  %vm512_vm15 = vcmp.gt.f32.partialorder %v9251_v20, 0.0 }
 0x180   :  { %v843_v36 = vunpack.c.l.b16 %v673_v29  ;;  %1393 = vmatpush.bf16.msra.mxu2 %v7585_v48 }
 0x182   :  { %v847_v37 = vpack.c.b16 %v843_v36, %v842_v58  ;;  %v7561_v58 = vor.u32 %v8259_v32, %v7560_v31 }
 0x184   :  { %855 = vxpose.xlu1.c.b16.end [4/4] (short) %v847_v37, 128  ;;  %v485_v43 = vpop.f32.mrf.mxu2  ;;  %1394 = vmatpush.bf16.msra.mxu2 %v7581_v53  ;;  %v8258_v37 = vld [vmem:[#allocation8 + $0x40] sm:$0xf0]  ;;  %v362_v53 = vpop.f32.mrf.mxu0 }
 0x185   :  { %v7557_v48 = vor.u32 %v8258_v37, %v7556_v2  ;;  %v685_v51 = vpack.c.bf16 %v485_v43, %v485_v43  ;;  %v877_v43 = vunpack.c.l.b16 %v683_v59  ;;  %v515_v31 = vadd.f32 1.0, %v362_v53 }
 0x186   :  { %vm499_vm2 = vcmp.gt.f32.partialorder %v362_v53, 0.0 }
 0x188   :  { %1395 = vmatpush.bf16.msra.mxu2 %v7577_v56  ;;  %v682_v56 = vpack.c.bf16 %v9280_v35, %v9280_v35 }
 0x18a   :  { %v876_v39 = vunpack.c.l.b16 %v682_v56 }
 0x18c   :  { %v488_v44 = vpop.f32.mrf.mxu2  ;;  %1396 = vmatpush.bf16.msra.mxu2 %v7573_v61  ;;  %v365_v1 = vpop.f32.mrf.mxu0  ;;  %v884_v35 = vpack.c.b16 %v877_v43, %v876_v39 }
 0x18d   :  { %v686_v30 = vpack.c.bf16 %v488_v44, %v488_v44  ;;  %vm500_vm3 = vcmp.gt.f32.partialorder %v365_v1, 0.0 }
 0x18f   :  { %v880_v54 = vunpack.c.l.b16 %v686_v30 }
 0x190   :  { %1397 = vmatpush.bf16.msra.mxu2 %v7569_v25  ;;  %v532_v25 = vmul.f32 1.442695, %v362_v53 }
 0x194   :  { %v490_v52 = vpop.f32.mrf.mxu2  ;;  %1398 = vmatpush.bf16.msra.mxu2 %v7565_v26  ;;  %v367_v6 = vpop.f32.mrf.mxu0 }
 0x195   :  { %v687_v45 = vpack.c.bf16 %v490_v52, %v490_v52  ;;  %v1286_v52 = vrot.slane %v9260_v57, 4  ;;  %v536_v37 = vmul.f32 1.442695, %v367_v6  ;;  %v517_v53 = vadd.f32 1.0, %v367_v6 }
 0x196   :  { %vm501_vm4 = vcmp.gt.f32.partialorder %v367_v6, 0.0 }
 0x197   :  { %v881_v55 = vunpack.c.l.b16 %v687_v45  ;;  %v1287_v3 = vadd.f32 %v1286_v52, %v9260_v57 }
 0x198   :  { %1399 = vmatpush.bf16.msra.mxu2 %v7561_v58 }
 0x199   :  { %v886_v44 = vpack.c.b16 %v881_v55, %v880_v54  ;;  %v1288_v38 = vrot.slane %v1287_v3, 2 }
 0x19b   :  { %v1289_v5 = vadd.f32 %v1288_v38, %v1287_v3 }
 0x19c   :  { %v493_v60 = vpop.f32.mrf.mxu2  ;;  %1400 = vmatpush.bf16.msra.mxu2 %v7557_v48  ;;  %v370_v2 = vpop.f32.mrf.mxu0 }
 0x19d   :  { %v688_v63 = vpack.c.bf16 %v493_v60, %v493_v60  ;;  %v879_v60 = vunpack.c.l.b16 %v685_v51  ;;  %v516_v51 = vadd.f32 1.0, %v365_v1  ;;  %vm502_vm5 = vcmp.gt.f32.partialorder %v370_v2, 0.0 }
 0x19f   :  { %v882_v21 = vunpack.c.l.b16 %v688_v63  ;;  %v885_v63 = vpack.c.b16 %v879_v60, %v878_v49  ;;  %v538_v49 = vmul.f32 1.442695, %v370_v2 }
 0x1a4   :  { %v495_v10 = vpop.f32.mrf.mxu2  ;;  %v372_v54 = vpop.f32.mrf.mxu0 }
 0x1a5   :  { %v689_v29 = vpack.c.bf16 %v495_v10, %v495_v10  ;;  %v540_v60 = vmul.f32 1.442695, %v372_v54  ;;  %v519_v3 = vadd.f32 1.0, %v372_v54  ;;  %vm503_vm6 = vcmp.gt.f32.partialorder %v372_v54, 0.0 }
 0x1a6   :  { %v548_v54 = vmul.f32 1.442695, %v9239_v13 }
 0x1a7   :  { %v883_v11 = vunpack.c.l.b16 %v689_v29  ;;  %v514_v29 = vadd.f32 1.0, %v360_v22 }
 0x1a9   :  { %v887_v36 = vpack.c.b16 %v883_v11, %v882_v21  ;;  %v1290_v21 = vrot.slane %v1289_v5, 1 }
 0x1ab   :  { %920 = vmatpush.bf16.msrb.mxu3 %v887_v36  ;;  %v9293_v57 = vadd.f32 %v1290_v21, %v1289_v5  ;;  %v534_v36 = vmul.f32 1.442695, %v365_v1  ;;  %v518_v1 = vadd.f32 1.0, %v370_v2 }
 0x1ac   :  { %v375_v52 = vpop.f32.mrf.mxu0 }
 0x1ad   :  { %v542_v5 = vmul.f32 1.442695, %v375_v52  ;;  %vm504_vm7 = vcmp.gt.f32.partialorder %v375_v52, 0.0 }
 0x1af   :  { %921 = vmatpush.bf16.msrb.mxu3 %v886_v44 }
 0x1b3   :  { %922 = vmatpush.bf16.msrb.mxu3 %v885_v63 }
 0x1b7   :  { %923 = vmatpush.bf16.msrb.mxu3 %v884_v35 }
 0x1c0   :  { %v722_v4 = vpop.trf.xlu0 }
 0x1c1   :  { %7538 = vmatmul.msk.bf16.vlgmr.msrb.gmra.mxu2 %vm754_vm0, %v722_v4  ;;  %v530_v4 = vmul.f32 1.442695, %v360_v22 }
 0x1c3   :  { %8477 = vpow2.f32 %v530_v4 }
 0x1c4   :  { %8479 = vpow2.f32 %v532_v25  ;;  %v377_v25 = vpop.f32.mrf.mxu0 }
 0x1c5   :  { %8481 = vpow2.f32 %v534_v36  ;;  %v544_v6 = vmul.f32 1.442695, %v377_v25  ;;  %v520_v36 = vadd.f32 1.0, %v375_v52  ;;  %v521_v2 = vadd.f32 1.0, %v377_v25 }
 0x1c6   :  { %8483 = vpow2.f32 %v536_v37  ;;  %vm505_vm8 = vcmp.gt.f32.partialorder %v377_v25, 0.0  ;;  %v552_v25 = vmul.f32 1.442695, %v9244_v15 }
 0x1c7   :  { %8485 = vpow2.f32 %v538_v49 }
 0x1c8   :  { %8487 = vpow2.f32 %v540_v60 }
 0x1c9   :  { %v8478_v26 = vpop.eup %8477  ;;  %8489 = vpow2.f32 %v542_v5 }
 0x1ca   :  { %v8480_v32 = vpop.eup %8479  ;;  %v9295_v11 = vsel %vm498_vm1, %v514_v29, %v8478_v26  ;;  %8491 = vpow2.f32 %v544_v6  ;;  %vm513_vm1 = vcmp.gt.f32.partialorder %v9254_v7, 0.0 }
 0x1cb   :  { %v9297_v58 = vsel %vm499_vm2, %v515_v31, %v8480_v32  ;;  %v1305_v30 = vmul.f32 %v9293_v57, %v9295_v11  ;;  %v8482_v50 = vpop.eup %8481  ;;  %v1299_v31 = vrot.slane %v9278_v42, 4 }
 0x1cc   :  { %v1306_v45 = vmul.f32 %v9293_v57, %v9297_v58  ;;  %v8484_v55 = vpop.eup %8483  ;;  %v9304_v56 = vsel %vm500_vm3, %v516_v51, %v8482_v50 }
 0x1cd   :  { %v9306_v59 = vsel %vm501_vm4, %v517_v53, %v8484_v55  ;;  %v8486_v63 = vpop.eup %8485  ;;  %v546_v53 = vmul.f32 1.442695, %v9235_v12 }
 0x1ce   :  { %v1337_v48 = vpack.c.bf16 %v1306_v45, %v1305_v30  ;;  %v1308_v44 = vmul.f32 %v9293_v57, %v9306_v59  ;;  %v8488_v35 = vpop.eup %8487  ;;  %v9313_v4 = vsel %vm502_vm5, %v518_v1, %v8486_v63  ;;  %v1300_v30 = vadd.f32 %v1299_v31, %v9278_v42 }
 0x1cf   :  { %v9315_v38 = vsel %vm503_vm6, %v519_v3, %v8488_v35  ;;  %v8490_v32 = vpop.eup %8489  ;;  %8493 = vpow2.f32 %v546_v53  ;;  %v550_v35 = vmul.f32 1.442695, %v9241_v14 }
 0x1d0   :  { %v723_v61 = vpop.trf.xlu0  ;;  %v1310_v21 = vmul.f32 %v9293_v57, %v9315_v38  ;;  %v8492_v37 = vpop.eup %8491  ;;  %v9324_v45 = vsel %vm504_vm7, %v520_v36, %v8490_v32  ;;  %8495 = vpow2.f32 %v548_v54  ;;  %v554_v36 = vmul.f32 1.442695, %v9246_v18 }
 0x1d1   :  { %7539 = vmatmul.msk.bf16.gmra.mxu2 %vm754_vm0, %v723_v61  ;;  %v1307_v61 = vmul.f32 %v9293_v57, %v9304_v56  ;;  %v1311_v50 = vmul.f32 %v9293_v57, %v9324_v45  ;;  %8497 = vpow2.f32 %v550_v35 }
 0x1d2   :  { %8499 = vpow2.f32 %v552_v25 }
 0x1d3   :  { %v1338_v39 = vpack.c.bf16 %v1308_v44, %v1307_v61  ;;  %8501 = vpow2.f32 %v554_v36 }
 0x1d5   :  { %v8494_v61 = vpop.eup %8493 }
 0x1d6   :  { %v8496_v44 = vpop.eup %8495 }
 0x1e0   :  { %v724_v10 = vpop.trf.xlu0 }
 0x1e1   :  { %7540 = vmatmul.msk.bf16.gmra.mxu2 %vm754_vm0, %v724_v10  ;;  %v1309_v10 = vmul.f32 %v9293_v57, %v9313_v4 }
 0x1e3   :  { %v1339_v26 = vpack.c.bf16 %v1310_v21, %v1309_v10  ;;  %v524_v10 = vadd.f32 1.0, %v9241_v14  ;;  %v525_v21 = vadd.f32 1.0, %v9244_v15 }
 0x1f0   :  { %v725_v22 = vpop.trf.xlu0 }
 0x1f1   :  { %7541 = vmatmul.msk.bf16.vlgmr.msra.gmra.mxu3 %vm754_vm0, %v725_v22  ;;  %1401 = vmatmul.bf16.vlgmr.msra.gmra.mxu2 %v1337_v48  ;;  %v9326_v48 = vsel %vm505_vm8, %v521_v2, %v8492_v37  ;;  %v1301_v22 = vrot.slane %v1300_v30, 2  ;;  %v556_v2 = vmul.f32 1.442695, %v9249_v19 }
 0x1f2   :  { %v1312_v51 = vmul.f32 %v9293_v57, %v9326_v48  ;;  %v523_v57 = vadd.f32 1.0, %v9239_v13 }
 0x1f3   :  { %v1302_v55 = vadd.f32 %v1301_v22, %v1300_v30  ;;  %8503 = vpow2.f32 %v556_v2  ;;  %v526_v22 = vadd.f32 1.0, %v9246_v18 }
 0x1f4   :  { %v1340_v49 = vpack.c.bf16 %v1312_v51, %v1311_v50  ;;  %v9341_v63 = vsel %vm507_vm10, %v523_v57, %v8496_v44  ;;  %v527_v50 = vadd.f32 1.0, %v9249_v19  ;;  %v528_v44 = vadd.f32 1.0, %v9251_v20 }
 0x1f5   :  { %v1303_v42 = vrot.slane %v1302_v55, 1 }
 0x1f7   :  { %v1304_v52 = vadd.f32 %v1303_v42, %v1302_v55 }
 0x1f9   :  { %v1314_v3 = vmul.f32 %v1304_v52, %v9341_v63 }
 0x200   :  { %v726_v43 = vpop.trf.xlu0  ;;  %v860_v37 = vpop.trf.xlu1 }
 0x201   :  { %7542 = vmatmul.msk.bf16.gmra.mxu3 %vm754_vm0, %v726_v43  ;;  %1406 = vmatmul.bf16.gmra.mxu2 %v1338_v39  ;;  %v522_v39 = vadd.f32 1.0, %v9235_v12  ;;  %v8498_v12 = vpop.eup %8497 }
 0x202   :  { %v8500_v13 = vpop.eup %8499 }
 0x203   :  { %v9339_v43 = vsel %vm506_vm9, %v522_v39, %v8494_v61  ;;  %v8502_v14 = vpop.eup %8501  ;;  %v529_v39 = vadd.f32 1.0, %v9254_v7 }
 0x204   :  { %v1313_v1 = vmul.f32 %v1304_v52, %v9339_v43  ;;  %v8504_v15 = vpop.eup %8503  ;;  %v9365_v51 = vsel %vm510_vm13, %v526_v22, %v8502_v14 }
 0x205   :  { %v9367_v53 = vsel %vm511_vm14, %v527_v50, %v8504_v15  ;;  %v1317_v54 = vmul.f32 %v1304_v52, %v9365_v51 }
 0x206   :  { %v1341_v5 = vpack.c.bf16 %v1314_v3, %v1313_v1  ;;  %v1318_v55 = vmul.f32 %v1304_v52, %v9367_v53 }
 0x208   :  { %v1343_v61 = vpack.c.bf16 %v1318_v55, %v1317_v54 }
 0x210   :  { %v727_v29 = vpop.trf.xlu0  ;;  %v861_v42 = vpop.trf.xlu1 }
 0x211   :  { %7543 = vmatmul.msk.bf16.gmra.mxu3 %vm754_vm0, %v727_v29  ;;  %1411 = vmatmul.bf16.gmra.mxu2 %v1339_v26  ;;  %v9352_v26 = vsel %vm508_vm11, %v524_v10, %v8498_v12  ;;  %v9354_v29 = vsel %vm509_vm12, %v525_v21, %v8500_v13  ;;  %v9386_v12 = vld [vmem:[#allocation8 + $0x198] sm:$0xf]  ;;  %v9389_v13 = vld [vmem:[#allocation8 + $0x1dc] sm:$0xf] }
 0x212   :  { %v1315_v31 = vmul.f32 %v1304_v52, %v9352_v26  ;;  %v1316_v32 = vmul.f32 %v1304_v52, %v9354_v29 }
 0x214   :  { %v1342_v30 = vpack.c.bf16 %v1316_v32, %v1315_v31 }
 0x220   :  { %v728_v60 = vpop.trf.xlu0  ;;  %v862_v25 = vpop.trf.xlu1 }
 0x221   :  { %7544 = vmatmul.msk.bf16.gmra.mxu3 %vm754_vm0, %v728_v60  ;;  %1416 = vmatmul.bf16.gmra.mxu2 %v1340_v49  ;;  %v558_v49 = vmul.f32 1.442695, %v9251_v20  ;;  %v560_v60 = vmul.f32 1.442695, %v9254_v7  ;;  %v12374_v7 = vunpack.c.l.bf16 %v9386_v12 }
 0x223   :  { %8505 = vpow2.f32 %v558_v49 }
 0x224   :  { %8507 = vpow2.f32 %v560_v60 }
 0x229   :  { %v8506_v18 = vpop.eup %8505 }
 0x22a   :  { %v8508_v19 = vpop.eup %8507  ;;  %v9378_v57 = vsel %vm512_vm15, %v528_v44, %v8506_v18 }
 0x22b   :  { %v9380_v1 = vsel %vm513_vm1, %v529_v39, %v8508_v19  ;;  %v1319_v3 = vmul.f32 %v1304_v52, %v9378_v57  ;;  %v9412_v39 = vld [vmem:[#allocation8 + $0x3b8] sm:$0xf] }
 0x22c   :  { %v1320_v35 = vmul.f32 %v1304_v52, %v9380_v1  ;;  %v12375_v52 = vunpack.c.l.bf16 %v9389_v13 }
 0x230   :  { %v729_v6 = vpop.trf.xlu0 }
 0x231   :  { %7545 = vmatmul.msk.bf16.gmra.mxu3 %vm754_vm0, %v729_v6  ;;  %1421 = vmatmul.bf16.gmra.mxu2 %v1341_v5  ;;  %v1344_v5 = vpack.c.bf16 %v1320_v35, %v1319_v3  ;;  %v863_v6 = vpop.trf.xlu1  ;;  %v9416_v35 = vld [vmem:[#allocation8 + $0x374] sm:$0xf] }
 0x240   :  { %v864_v36 = vpop.trf.xlu1 }
 0x241   :  { %7546 = vmatmul.msk.bf16.vlgmr.msrb.gmra.mxu3 %vm754_vm0, %v860_v37  ;;  %1426 = vmatmul.bf16.gmra.mxu2 %v1342_v30 }
 0x244   :  { %v9404_v55 = vpop.f32.mrf.mxu2 }
 0x250   :  { %v865_v50 = vpop.trf.xlu1 }
 0x251   :  { %7547 = vmatmul.msk.bf16.gmra.mxu3 %vm754_vm0, %v861_v42  ;;  %1431 = vmatmul.bf16.gmra.mxu2 %v1343_v61  ;;  %v9406_v42 = vpop.f32.mrf.mxu2 }
 0x259   :  { %v9409_v18 = vpop.f32.mrf.mxu2 }
 0x260   :  { %v866_v60 = vpop.trf.xlu1 }
 0x261   :  { %7548 = vmatmul.msk.bf16.gmra.mxu3 %vm754_vm0, %v862_v25  ;;  %1436 = vmatmul.bf16.gmra.mxu2 %v1344_v5  ;;  %v9414_v3 = vpop.f32.mrf.mxu2  ;;  %v12377_v5 = vunpack.c.l.bf16 %v9412_v39 }
 0x269   :  { %v798_v23 = vpop.f32.mrf.mxu2 }
 0x270   :  { %v867_v44 = vpop.trf.xlu1 }
 0x271   :  { %7549 = vmatmul.msk.bf16.gmra.mxu3 %vm754_vm0, %v863_v6  ;;  %v9419_v6 = vld [vmem:[#allocation8 + $0x330] sm:$0xf] }
 0x274   :  { %v803_v20 = vpop.f32.mrf.mxu3 }
 0x275   :  { %v1003_v10 = vmul.f32 %v12374_v7, %v803_v20  ;;  %v9421_v20 = vld [vmem:[#allocation8 + $0x3fc] sm:$0xf] }
 0x277   :  { %v1051_v31 = vpack.c.bf16 %v1003_v10, %v1003_v10  ;;  %v12380_v10 = vunpack.c.l.bf16 %v9416_v35 }
 0x279   :  { %v9396_v37 = vunpack.c.l.b16 %v1051_v31  ;;  %v12387_v31 = vunpack.c.l.bf16 %v9419_v6 }
 0x27c   :  { %v805_v21 = vpop.f32.mrf.mxu3 }
 0x27d   :  { %v1004_v32 = vmul.f32 %v12375_v52, %v805_v21  ;;  %v9424_v21 = vld [vmem:[#allocation8 + $0x2ec] sm:$0xf]  ;;  %v9437_v52 = vld [vmem:[#allocation8 + $0x220] sm:$0xf] }
 0x27e   :  { %v12489_v9 = vunpack.c.l.bf16 %v9424_v21  ;;  %v12391_v47 = vunpack.c.l.bf16 %v9437_v52 }
 0x27f   :  { %v1052_v2 = vpack.c.bf16 %v1004_v32, %v1004_v32 }
 0x281   :  { %v9398_v30 = vunpack.c.l.b16 %v1052_v2  ;;  %7550 = vmatmul.msk.bf16.gmra.mxu3 %vm754_vm0, %v864_v36  ;;  %v12386_v36 = vunpack.c.l.bf16 %v9421_v20  ;;  %v9430_v2 = vld [vmem:[#allocation8 + $0x2a8] sm:$0xf] }
 0x282   :  { %v12392_v14 = vunpack.c.l.bf16 %v9430_v2 }
 0x284   :  { %v808_v15 = vpop.f32.mrf.mxu3 }
 0x28c   :  { %v810_v22 = vpop.f32.mrf.mxu3 }
 0x291   :  { %7551 = vmatmul.msk.bf16.gmra.mxu3 %vm754_vm0, %v865_v50 }
 0x294   :  { %v813_v54 = vpop.f32.mrf.mxu3 }
 0x295   :  { %v1007_v46 = vmul.f32 %v12392_v14, %v813_v54 }
 0x29c   :  { %v815_v49 = vpop.f32.mrf.mxu3 }
 0x2a1   :  { %7552 = vmatmul.msk.bf16.gmra.mxu3 %vm754_vm0, %v866_v60 }
 0x2a4   :  { %v818_v61 = vpop.f32.mrf.mxu3 }
 0x2a5   :  { %v1009_v24 = vmul.f32 %v12387_v31, %v818_v61 }
 0x2a7   :  { %v1057_v28 = vpack.c.bf16 %v1009_v24, %v1009_v24  ;;  %v9461_v24 = vld [vmem:[#allocation8 + $0x88] sm:$0xf] }
 0x2a9   :  { %v1129_v54 = vunpack.c.l.b16 %v1057_v28 }
 0x2ac   :  { %v820_v19 = vpop.f32.mrf.mxu3 }
 0x2ad   :  { %v1010_v60 = vmul.f32 %v12380_v10, %v820_v19  ;;  %v1008_v19 = vmul.f32 %v12489_v9, %v815_v49  ;;  %v1005_v49 = vmul.f32 %v12391_v47, %v808_v15  ;;  %v12395_v15 = vunpack.c.l.bf16 %v9461_v24 }
 0x2af   :  { %v1058_v10 = vpack.c.bf16 %v1010_v60, %v1010_v60  ;;  %v9463_v60 = vld [vmem:[#allocation8 + $0xcc] sm:$0xf]  ;;  %v999_v14 = vmul.f32 %v12395_v15, %v9409_v18 }
 0x2b0   :  { %v984_v28 = vunpack.c.l.bf16 %v9463_v60 }
 0x2b1   :  { %7553 = vmatmul.msk.bf16.gmra.mxu3 %vm754_vm0, %v867_v44  ;;  %v9435_v44 = vld [vmem:[#allocation8 + $0x264] sm:$0xf]  ;;  %v1130_v31 = vunpack.c.l.b16 %v1058_v10 }
 0x2b2   :  { %v12390_v50 = vunpack.c.l.bf16 %v9435_v44 }
 0x2b4   :  { %v823_v25 = vpop.f32.mrf.mxu3 }
 0x2b5   :  { %v1011_v32 = vmul.f32 %v12377_v5, %v823_v25 }
 0x2b7   :  { %v1059_v25 = vpack.c.bf16 %v1011_v32, %v1011_v32  ;;  %v9450_v32 = vld [vmem:[#allocation8 + $0x110] sm:$0xf] }
 0x2b9   :  { %v1131_v27 = vunpack.c.l.b16 %v1059_v25  ;;  %v1139_v25 = vpack.c.b16 %v1130_v31, %v1129_v54 }
 0x2bc   :  { %v825_v7 = vpop.f32.mrf.mxu3 }
 0x2bd   :  { %v1012_v5 = vmul.f32 %v12386_v36, %v825_v7  ;;  %v1006_v7 = vmul.f32 %v12390_v50, %v810_v22  ;;  %v1056_v36 = vpack.c.bf16 %v1008_v19, %v1008_v19  ;;  %v12394_v22 = vunpack.c.l.bf16 %v9454_v40  ;;  %v800_v19 = vpop.f32.mrf.mxu2 }
 0x2bf   :  { %v1060_v8 = vpack.c.bf16 %v1012_v5, %v1012_v5  ;;  %v1055_v5 = vpack.c.bf16 %v1007_v46, %v1007_v46  ;;  %v1054_v10 = vpack.c.bf16 %v1006_v7, %v1006_v7  ;;  %v9468_v46 = vld [vmem:[#allocation8] sm:$0xf]  ;;  %v1002_v7 = vmul.f32 %v12394_v22, %v800_v19 }
 0x2c1   :  { %v1132_v61 = vunpack.c.l.b16 %v1060_v8  ;;  %v12393_v8 = vunpack.c.l.bf16 %v9450_v32  ;;  %v1127_v50 = vunpack.c.l.b16 %v1055_v5  ;;  %v981_v5 = vunpack.c.l.bf16 %v9468_v46 }
 0x2c2   :  { %v1050_v19 = vpack.c.bf16 %v1002_v7, %v1002_v7 }
 0x2c3   :  { %v1140_v41 = vpack.c.b16 %v1132_v61, %v1131_v27  ;;  %v1128_v27 = vunpack.c.l.b16 %v1056_v36  ;;  %v1053_v61 = vpack.c.bf16 %v1005_v49, %v1005_v49  ;;  %v1001_v47 = vmul.f32 %v12393_v8, %v798_v23 }
 0x2c4   :  { %v9456_v9 = vpop.f32.mrf.mxu3  ;;  %v1126_v36 = vunpack.c.l.b16 %v1054_v10  ;;  %v1000_v23 = vmul.f32 %v984_v28, %v9414_v3  ;;  %v1122_v18 = vunpack.c.l.b16 %v1050_v19 }
 0x2c5   :  { %1149 = vmatpush.bf16.msrb.mxu0 %v1140_v41  ;;  %v9470_v41 = vld [vmem:[#allocation8 + $0x44] sm:$0xf]  ;;  %v1138_v31 = vpack.c.b16 %v1128_v27, %v1127_v50  ;;  %v1125_v49 = vunpack.c.l.b16 %v1053_v61  ;;  %v1049_v8 = vpack.c.bf16 %v1001_v47, %v1001_v47  ;;  %v997_v50 = vmul.f32 %v981_v5, %v9404_v55 }
 0x2c6   :  { %v1047_v61 = vpack.c.bf16 %v999_v14, %v999_v14  ;;  %v12490_v47 = vpack.c.b16 %v9398_v30, %v9396_v37  ;;  %v1029_v55 = vpack.c.bf16 %v9295_v11, %v9295_v11  ;;  %v1030_v14 = vpack.c.bf16 %v9297_v58, %v9297_v58 }
 0x2c7   :  { %v1137_v10 = vpack.c.b16 %v1126_v36, %v1125_v49  ;;  %v1121_v22 = vunpack.c.l.b16 %v1049_v8  ;;  %v1045_v3 = vpack.c.bf16 %v997_v50, %v997_v50  ;;  %v1031_v11 = vpack.c.bf16 %v9304_v56, %v9304_v56 }
 0x2c8   :  { %v1119_v36 = vunpack.c.l.b16 %v1047_v61  ;;  %v1085_v37 = vunpack.c.l.b16 %v1029_v55  ;;  %v1086_v30 = vunpack.c.l.b16 %v1030_v14  ;;  %v1032_v58 = vpack.c.bf16 %v9306_v59, %v9306_v59 }
 0x2c9   :  { %1150 = vmatpush.bf16.msrb.mxu0 %v1139_v25  ;;  %v982_v25 = vunpack.c.l.bf16 %v9470_v41  ;;  %v1035_v14 = vpack.c.bf16 %v9324_v45, %v9324_v45  ;;  %v1013_v60 = vmul.f32 %v981_v5, %v9456_v9  ;;  %v1038_v41 = vpack.c.bf16 %v9341_v63, %v9341_v63 }
 0x2cb   :  { %v998_v27 = vmul.f32 %v982_v25, %v9406_v42  ;;  %v1117_v42 = vunpack.c.l.b16 %v1045_v3  ;;  %v1187_v9 = vunpack.c.l.b16 %v1038_v41 }
 0x2cc   :  { %v9476_v54 = vpop.f32.mrf.mxu3 }
 0x2cd   :  { %1151 = vmatpush.bf16.msrb.mxu0 %v1138_v31  ;;  %v1048_v31 = vpack.c.bf16 %v1000_v23, %v1000_v23  ;;  %v1046_v7 = vpack.c.bf16 %v998_v27, %v998_v27  ;;  %v1093_v27 = vpack.c.b16 %v1086_v30, %v1085_v37 }
 0x2cf   :  { %v1120_v49 = vunpack.c.l.b16 %v1048_v31  ;;  %v1118_v8 = vunpack.c.l.b16 %v1046_v7  ;;  %v1087_v31 = vunpack.c.l.b16 %v1031_v11  ;;  %v1033_v7 = vpack.c.bf16 %v9313_v4, %v9313_v4  ;;  %v7616_v11 = vld [vmem:[#allocation8 + $0x3c8] sm:$0xf] }
 0x2d1   :  { %1152 = vmatpush.bf16.msrb.mxu0 %v1137_v10  ;;  %v1135_v10 = vpack.c.b16 %v1122_v18, %v1121_v22  ;;  %v1134_v23 = vpack.c.b16 %v1120_v49, %v1119_v36  ;;  %v1133_v50 = vpack.c.b16 %v1118_v8, %v1117_v42  ;;  %v1088_v18 = vunpack.c.l.b16 %v1032_v58  ;;  %v8257_v58 = vld [vmem:[#allocation8 + $0x408] sm:$0xf0] }
 0x2d2   :  { %v1034_v36 = vpack.c.bf16 %v9315_v38, %v9315_v38  ;;  %v1089_v56 = vunpack.c.l.b16 %v1033_v7  ;;  %v1036_v42 = vpack.c.bf16 %v9326_v48, %v9326_v48  ;;  %v8255_v48 = vld [vmem:[#allocation8 + $0x2f8] sm:$0xf0] }
 0x2d4   :  { %v9492_v15 = vpop.f32.mrf.mxu3  ;;  %v1092_v37 = vunpack.c.l.b16 %v1036_v42  ;;  %v8254_v42 = vld [vmem:[#allocation8 + $0x270] sm:$0xf0] }
 0x2d5   :  { %1153 = vmatpush.bf16.msrb.mxu0 %v12490_v47  ;;  %v1094_v47 = vpack.c.b16 %v1088_v18, %v1087_v31  ;;  %v7617_v31 = vor.u32 %v8257_v58, %v7616_v11  ;;  %v7612_v18 = vld [vmem:[#allocation8 + $0x340] sm:$0xf]  ;;  %v12493_v58 = vunpack.c.l.bf16 %v9419_v6 }
 0x2d9   :  { %1154 = vmatpush.bf16.msrb.mxu0 %v1135_v10  ;;  %v1090_v10 = vunpack.c.l.b16 %v1034_v36  ;;  %v7608_v36 = vld [vmem:[#allocation8 + $0x2b8] sm:$0xf] }
 0x2db   :  { %v1095_v55 = vpack.c.b16 %v1090_v10, %v1089_v56  ;;  %v7609_v56 = vor.u32 %v8255_v48, %v7608_v36  ;;  %v12491_v10 = vunpack.c.l.bf16 %v9412_v39  ;;  %v7600_v36 = vld [vmem:[#allocation8 + $0x1a8] sm:$0xf]  ;;  %v8253_v48 = vld [vmem:[#allocation8 + $0x1e8] sm:$0xf0]  ;;  %v12495_v39 = vunpack.c.l.bf16 %v9424_v21  ;;  %v7592_v21 = vld [vmem:[#allocation8 + $0x98] sm:$0xf] }
 0x2dc   :  { %v9501_v19 = vpop.f32.mrf.mxu3 }
 0x2dd   :  { %1155 = vmatpush.bf16.msrb.mxu0 %v1134_v23  ;;  %v1091_v23 = vunpack.c.l.b16 %v1035_v14  ;;  %v7604_v14 = vld [vmem:[#allocation8 + $0x230] sm:$0xf] }
 0x2df   :  { %v1096_v4 = vpack.c.b16 %v1092_v37, %v1091_v23  ;;  %v7605_v23 = vor.u32 %v8254_v42, %v7604_v14  ;;  %v12492_v37 = vunpack.c.l.bf16 %v9416_v35  ;;  %v12496_v35 = vunpack.c.l.bf16 %v9430_v2 }
 0x2e1   :  { %1156 = vmatpush.bf16.msrb.mxu0 %v1133_v50 }
 0x2e4   :  { %v9503_v61 = vpop.f32.mrf.mxu3  ;;  %1157 = vmatmul.bf16.vlgmr.msrb.gmra.mxu0 %v1093_v27 }
 0x2e5   :  { %1530 = vmatpush.bf16.msra.mxu0 %v7617_v31 }
 0x2ec   :  { %v9509_v22 = vpop.f32.mrf.mxu3 }
 0x2f4   :  { %v9511_v3 = vpop.f32.mrf.mxu3  ;;  %1162 = vmatmul.bf16.gmra.mxu0 %v1094_v47  ;;  %v8256_v47 = vld [vmem:[#allocation8 + $0x380] sm:$0xf0] }
 0x2f5   :  { %v7613_v7 = vor.u32 %v8256_v47, %v7612_v18  ;;  %v12494_v47 = vunpack.c.l.bf16 %v9421_v20  ;;  %v7596_v20 = vld [vmem:[#allocation8 + $0x120] sm:$0xf] }
 0x2f7   :  { %1531 = vmatpush.bf16.msra.mxu0 %v7613_v7 }
 0x2fb   :  { %1532 = vmatpush.bf16.msra.mxu0 %v7609_v56  ;;  %v7601_v56 = vor.u32 %v8253_v48, %v7600_v36 }
 0x2fc   :  { %v9517_v49 = vpop.f32.mrf.mxu3 }
 0x2ff   :  { %1533 = vmatpush.bf16.msra.mxu0 %v7605_v23 }
 0x303   :  { %1534 = vmatpush.bf16.msra.mxu0 %v7601_v56 }
 0x304   :  { %v945_v59 = vpop.f32.mrf.mxu3  ;;  %1167 = vmatmul.bf16.gmra.mxu0 %v1095_v55 }
 0x30c   :  { %v947_v8 = vpop.f32.mrf.mxu3 }
 0x314   :  { %v950_v30 = vpop.f32.mrf.mxu3  ;;  %1172 = vmatmul.bf16.gmra.mxu0 %v1096_v4 }
 0x31c   :  { %v952_v38 = vpop.f32.mrf.mxu3 }
 0x324   :  { %v955_v50 = vpop.f32.mrf.mxu3 }
 0x325   :  { %v1025_v31 = vmul.f32 %v12493_v58, %v955_v50  ;;  %v12497_v50 = vunpack.c.l.bf16 %v9435_v44  ;;  %v12499_v44 = vunpack.c.l.bf16 %v9389_v13 }
 0x327   :  { %v1073_v42 = vpack.c.bf16 %v1025_v31, %v1025_v31  ;;  %v1402_v31 = vpop.f32.mrf.mxu2 }
 0x328   :  { %v1403_v5 = vadd.f32 1e-06, %v1402_v31  ;;  %v1039_v31 = vpack.c.bf16 %v9352_v26, %v9352_v26  ;;  %v1042_v26 = vpack.c.bf16 %v9367_v53, %v9367_v53 }
 0x329   :  { %v1230_v2 = vunpack.c.l.b16 %v1073_v42  ;;  %v8250_v42 = vld [vmem:[#allocation8 + $0x50] sm:$0xf0] }
 0x32a   :  { %8509 = vrcp.f32 %v1403_v5 }
 0x32c   :  { %v957_v27 = vpop.f32.mrf.mxu3 }
 0x32d   :  { %v1026_v4 = vmul.f32 %v12492_v37, %v957_v27  ;;  %v1023_v27 = vmul.f32 %v12496_v35, %v950_v30  ;;  %v8252_v37 = vld [vmem:[#allocation8 + $0x160] sm:$0xf0] }
 0x32e   :  { %v7597_v36 = vor.u32 %v8252_v37, %v7596_v20  ;;  %v1016_v20 = vmul.f32 %v984_v28, %v9501_v19 }
 0x32f   :  { %v1071_v48 = vpack.c.bf16 %v1023_v27, %v1023_v27  ;;  %v7588_v27 = vld [vmem:[#allocation8 + $0x10] sm:$0xf] }
 0x330   :  { %1535 = vmatpush.bf16.msra.mxu0 %v7597_v36  ;;  %v8510_v63 = vpop.eup %8509 }
 0x334   :  { %v960_v45 = vpop.f32.mrf.mxu3 }
 0x335   :  { %v1027_v55 = vmul.f32 %v12491_v10, %v960_v45  ;;  %v1024_v45 = vmul.f32 %v12495_v39, %v952_v38  ;;  %v1074_v10 = vpack.c.bf16 %v1026_v4, %v1026_v4  ;;  %v8251_v38 = vld [vmem:[#allocation8 + $0xd8] sm:$0xf0]  ;;  %v12498_v4 = vunpack.c.l.bf16 %v9437_v52 }
 0x336   :  { %v7593_v30 = vor.u32 %v8251_v38, %v7592_v21  ;;  %v1228_v52 = vunpack.c.l.b16 %v1071_v48  ;;  %v1061_v48 = vpack.c.bf16 %v1013_v60, %v1013_v60 }
 0x337   :  { %v1075_v18 = vpack.c.bf16 %v1027_v55, %v1027_v55  ;;  %v1022_v55 = vmul.f32 %v12497_v50, %v947_v8  ;;  %v1231_v58 = vunpack.c.l.b16 %v1074_v10  ;;  %v1020_v8 = vmul.f32 %v12499_v44, %v9517_v49 }
 0x338   :  { %1536 = vmatpush.bf16.msra.mxu0 %v7593_v30  ;;  %v12502_v50 = vunpack.c.l.bf16 %v9450_v32  ;;  %v1014_v32 = vmul.f32 %v982_v25, %v9476_v54  ;;  %v1037_v44 = vpack.c.bf16 %v9339_v43, %v9339_v43  ;;  %v1218_v46 = vunpack.c.l.b16 %v1061_v48 }
 0x339   :  { %v1232_v23 = vunpack.c.l.b16 %v1075_v18  ;;  %v1070_v18 = vpack.c.bf16 %v1022_v55, %v1022_v55  ;;  %v1240_v39 = vpack.c.b16 %v1231_v58, %v1230_v2  ;;  %v12503_v58 = vunpack.c.l.bf16 %v9461_v24 }
 0x33a   :  { %v1017_v55 = vmul.f32 %v12502_v50, %v9503_v61  ;;  %v1064_v61 = vpack.c.bf16 %v1016_v20, %v1016_v20  ;;  %v1040_v43 = vpack.c.bf16 %v9354_v29, %v9354_v29 }
 0x33b   :  { %v1227_v13 = vunpack.c.l.b16 %v1070_v18 }
 0x33c   :  { %v962_v11 = vpop.f32.mrf.mxu3  ;;  %v1065_v36 = vpack.c.bf16 %v1017_v55, %v1017_v55  ;;  %v1221_v24 = vunpack.c.l.b16 %v1064_v61 }
 0x33d   :  { %v1028_v7 = vmul.f32 %v12494_v47, %v962_v11  ;;  %v1072_v11 = vpack.c.bf16 %v1024_v45, %v1024_v45  ;;  %v12500_v45 = vunpack.c.l.bf16 %v9386_v12 }
 0x33e   :  { %v1222_v19 = vunpack.c.l.b16 %v1065_v36 }
 0x33f   :  { %v1076_v14 = vpack.c.bf16 %v1028_v7, %v1028_v7  ;;  %v1021_v7 = vmul.f32 %v12498_v4, %v945_v59  ;;  %v1229_v56 = vunpack.c.l.b16 %v1072_v11  ;;  %v1019_v10 = vmul.f32 %v12500_v45, %v9511_v3  ;;  %v1404_v11 = vpop.f32.mrf.mxu2 }
 0x340   :  { %v12501_v59 = vunpack.c.l.bf16 %v9454_v40 }
 0x341   :  { %v1233_v6 = vunpack.c.l.b16 %v1076_v14  ;;  %v1069_v14 = vpack.c.bf16 %v1021_v7, %v1021_v7  ;;  %v1239_v49 = vpack.c.b16 %v1229_v56, %v1228_v52  ;;  %v1067_v12 = vpack.c.bf16 %v1019_v10, %v1019_v10 }
 0x342   :  { %v1018_v35 = vmul.f32 %v12501_v59, %v9509_v22  ;;  %v1062_v7 = vpack.c.bf16 %v1014_v32, %v1014_v32  ;;  %v1186_v56 = vunpack.c.l.b16 %v1037_v44 }
 0x343   :  { %v1241_v47 = vpack.c.b16 %v1233_v6, %v1232_v23  ;;  %v1068_v23 = vpack.c.bf16 %v1020_v8, %v1020_v8  ;;  %v7589_v6 = vor.u32 %v8250_v42, %v7588_v27  ;;  %v1226_v3 = vunpack.c.l.b16 %v1069_v14 }
 0x344   :  { %v1066_v40 = vpack.c.bf16 %v1018_v35, %v1018_v35  ;;  %v1224_v21 = vunpack.c.l.b16 %v1067_v12  ;;  %v1219_v25 = vunpack.c.l.b16 %v1062_v7  ;;  %v1405_v8 = vadd.f32 1e-06, %v1404_v11 }
 0x345   :  { %1250 = vmatpush.bf16.msra.mxu1 %v1241_v47  ;;  %1537 = vmatpush.bf16.msra.mxu0 %v7589_v6  ;;  %v1225_v22 = vunpack.c.l.b16 %v1068_v23  ;;  %v1238_v37 = vpack.c.b16 %v1227_v13, %v1226_v3  ;;  %v1015_v47 = vmul.f32 %v12503_v58, %v9492_v15  ;;  %v1194_v45 = vpack.c.b16 %v1187_v9, %v1186_v56 }
 0x346   :  { %v1223_v38 = vunpack.c.l.b16 %v1066_v40  ;;  %v1234_v18 = vpack.c.b16 %v1219_v25, %v1218_v46  ;;  %8511 = vrcp.f32 %v1405_v8  ;;  %v1189_v13 = vunpack.c.l.b16 %v1040_v43 }
 0x347   :  { %v1237_v4 = vpack.c.b16 %v1225_v22, %v1224_v21  ;;  %v1063_v28 = vpack.c.bf16 %v1015_v47, %v1015_v47  ;;  %v1407_v54 = vpop.f32.mrf.mxu2  ;;  %v1188_v6 = vunpack.c.l.b16 %v1039_v31  ;;  %v1041_v11 = vpack.c.bf16 %v9365_v51, %v9365_v51 }
 0x348   :  { %v1236_v15 = vpack.c.b16 %v1223_v38, %v1222_v19  ;;  %v1408_v42 = vadd.f32 1e-06, %v1407_v54  ;;  %v1191_v47 = vunpack.c.l.b16 %v1042_v26  ;;  %v1044_v7 = vpack.c.bf16 %v9380_v1, %v9380_v1 }
 0x349   :  { %1251 = vmatpush.bf16.msra.mxu1 %v1240_v39  ;;  %v1220_v2 = vunpack.c.l.b16 %v1063_v28  ;;  %v1195_v55 = vpack.c.b16 %v1189_v13, %v1188_v6  ;;  %v1190_v21 = vunpack.c.l.b16 %v1041_v11 }
 0x34a   :  { %8513 = vrcp.f32 %v1408_v42 }
 0x34b   :  { %v1235_v30 = vpack.c.b16 %v1221_v24, %v1220_v2  ;;  %v1196_v38 = vpack.c.b16 %v1191_v47, %v1190_v21  ;;  %v1193_v2 = vunpack.c.l.b16 %v1044_v7 }
 0x34c   :  { %v8512_v14 = vpop.eup %8511 }
 0x34d   :  { %1252 = vmatpush.bf16.msra.mxu1 %v1239_v49 }
 0x34f   :  { %v1409_v10 = vpop.f32.mrf.mxu2 }
 0x350   :  { %v1410_v49 = vadd.f32 1e-06, %v1409_v10  ;;  %v8514_v12 = vpop.eup %8513 }
 0x351   :  { %1253 = vmatpush.bf16.msra.mxu1 %v1238_v37 }
 0x352   :  { %8515 = vrcp.f32 %v1410_v49 }
 0x355   :  { %1254 = vmatpush.bf16.msra.mxu1 %v1237_v4 }
 0x357   :  { %v1412_v23 = vpop.f32.mrf.mxu2 }
 0x358   :  { %v8516_v20 = vpop.eup %8515  ;;  %v1413_v58 = vadd.f32 1e-06, %v1412_v23 }
 0x359   :  { %1255 = vmatpush.bf16.msra.mxu1 %v1236_v15  ;;  %v1043_v15 = vpack.c.bf16 %v9378_v57, %v9378_v57 }
 0x35a   :  { %8517 = vrcp.f32 %v1413_v58 }
 0x35b   :  { %v1192_v54 = vunpack.c.l.b16 %v1043_v15 }
 0x35d   :  { %1256 = vmatpush.bf16.msra.mxu1 %v1235_v30  ;;  %v1197_v30 = vpack.c.b16 %v1193_v2, %v1192_v54 }
 0x35f   :  { %v1414_v3 = vpop.f32.mrf.mxu2 }
 0x360   :  { %v1415_v36 = vadd.f32 1e-06, %v1414_v3  ;;  %v8518_v4 = vpop.eup %8517 }
 0x361   :  { %v1158_v39 = vpop.f32.mrf.mxu0  ;;  %1257 = vmatpush.bf16.msra.mxu1 %v1234_v18 }
 0x362   :  { %v1458_v59 = vmul.f32 %v8510_v63, %v1158_v39  ;;  %8519 = vrcp.f32 %v1415_v36 }
 0x364   :  { %1258 = vmatmul.bf16.vlgmr.msra.gmra.mxu1 %v1194_v45 }
 0x367   :  { %v1417_v61 = vpop.f32.mrf.mxu2 }
 0x368   :  { %v8520_v60 = vpop.eup %8519  ;;  %v1418_v48 = vadd.f32 1e-06, %v1417_v61 }
 0x369   :  { %v1160_v52 = vpop.f32.mrf.mxu0 }
 0x36a   :  { %v1459_v35 = vmul.f32 %v8512_v14, %v1160_v52  ;;  %8521 = vrcp.f32 %v1418_v48 }
 0x36c   :  { %v1474_v27 = vpack.c.bf16 %v1459_v35, %v1458_v59 }
 0x36e   :  { %1538 = vmatmul.bf16.vlgmr.msra.gmra.mxu0 %v1474_v27 }
 0x36f   :  { %v1419_v51 = vpop.f32.mrf.mxu2 }
 0x370   :  { %v1420_v41 = vadd.f32 1e-06, %v1419_v51  ;;  %v8522_v44 = vpop.eup %8521 }
 0x371   :  { %v1163_v50 = vpop.f32.mrf.mxu0 }
 0x372   :  { %v1460_v29 = vmul.f32 %v8514_v12, %v1163_v50  ;;  %8523 = vrcp.f32 %v1420_v41 }
 0x374   :  { %1263 = vmatmul.bf16.gmra.mxu1 %v1195_v55 }
 0x377   :  { %v1422_v18 = vpop.f32.mrf.mxu2 }
 0x378   :  { %v8524_v46 = vpop.eup %8523  ;;  %v1423_v39 = vadd.f32 1e-06, %v1422_v18  ;;  %v9101_v18 = vmov 128.0  }
 0x379   :  { %v1165_v40 = vpop.f32.mrf.mxu0 }
 0x37a   :  { %v1461_v22 = vmul.f32 %v8516_v20, %v1165_v40  ;;  %8525 = vrcp.f32 %v1423_v39 }
 0x37c   :  { %v1475_v37 = vpack.c.bf16 %v1461_v22, %v1460_v29 }
 0x37e   :  { %1543 = vmatmul.bf16.gmra.mxu0 %v1475_v37 }
 0x37f   :  { %v1424_v56 = vpop.f32.mrf.mxu2 }
 0x380   :  { %v1425_v45 = vadd.f32 1e-06, %v1424_v56  ;;  %v8526_v14 = vpop.eup %8525 }
 0x381   :  { %v1168_v32 = vpop.f32.mrf.mxu0 }
 0x382   :  { %v1462_v19 = vmul.f32 %v8518_v4, %v1168_v32  ;;  %8527 = vrcp.f32 %v1425_v45 }
 0x384   :  { %1268 = vmatmul.bf16.gmra.mxu1 %v1196_v38 }
 0x387   :  { %v1427_v57 = vpop.f32.mrf.mxu2 }
 0x388   :  { %v8528_v52 = vpop.eup %8527  ;;  %v1428_v42 = vadd.f32 1e-06, %v1427_v57 }
 0x389   :  { %v1170_v28 = vpop.f32.mrf.mxu0 }
 0x38a   :  { %v1463_v53 = vmul.f32 %v8520_v60, %v1170_v28  ;;  %8529 = vrcp.f32 %v1428_v42 }
 0x38c   :  { %v1476_v24 = vpack.c.bf16 %v1463_v53, %v1462_v19 }
 0x38e   :  { %1548 = vmatmul.bf16.gmra.mxu0 %v1476_v24 }
 0x38f   :  { %v1429_v63 = vpop.f32.mrf.mxu2 }
 0x390   :  { %v1430_v13 = vadd.f32 1e-06, %v1429_v63  ;;  %v8530_v55 = vpop.eup %8529 }
 0x391   :  { %v1173_v25 = vpop.f32.mrf.mxu0 }
 0x392   :  { %v1464_v5 = vmul.f32 %v8522_v44, %v1173_v25  ;;  %8531 = vrcp.f32 %v1430_v13  ;;  %v8279_v13 = vld [vmem:[#allocation8 + $0x384] sm:$0xf0] }
 0x394   :  { %1273 = vmatmul.bf16.gmra.mxu1 %v1197_v30 }
 0x397   :  { %v1432_v23 = vpop.f32.mrf.mxu2 }
 0x398   :  { %v8532_v3 = vpop.eup %8531  ;;  %v1433_v37 = vadd.f32 1e-06, %v1432_v23  ;;  %v7668_v23 = vld [vmem:[#allocation8 + $0x344] sm:$0xf] }
 0x399   :  { %v1175_v9 = vpop.f32.mrf.mxu0 }
 0x39a   :  { %v1465_v1 = vmul.f32 %v8524_v46, %v1175_v9  ;;  %8533 = vrcp.f32 %v1433_v37 }
 0x39c   :  { %v1477_v8 = vpack.c.bf16 %v1465_v1, %v1464_v5 }
 0x39e   :  { %1553 = vmatmul.bf16.gmra.mxu0 %v1477_v8 }
 0x39f   :  { %v1434_v12 = vpop.f32.mrf.mxu2 }
 0x3a0   :  { %v1435_v11 = vadd.f32 1e-06, %v1434_v12  ;;  %v8534_v61 = vpop.eup %8533  ;;  %v7670_v12 = vld [vmem:[#allocation8 + $0x388] sm:$0xf0] }
 0x3a2   :  { %8535 = vrcp.f32 %v1435_v11  ;;  %v7662_v11 = vld [vmem:[#allocation8 + $0x300] sm:$0xf0] }
 0x3a7   :  { %v1437_v47 = vpop.f32.mrf.mxu2 }
 0x3a8   :  { %v8536_v38 = vpop.eup %8535  ;;  %v1438_v51 = vadd.f32 1e-06, %v1437_v47 }
 0x3aa   :  { %8537 = vrcp.f32 %v1438_v51 }
 0x3af   :  { %v1439_v53 = vpop.f32.mrf.mxu2 }
 0x3b0   :  { %v1440_v24 = vadd.f32 1e-06, %v1439_v53  ;;  %v8538_v2 = vpop.eup %8537 }
 0x3b2   :  { %8539 = vrcp.f32 %v1440_v24  ;;  %v7644_v24 = vld [vmem:[#allocation8 + $0x1ac] sm:$0xf] }
 0x3b3   :  { %8541 = vrcp.f32 %v9101_v18 }
 0x3b8   :  { %v8540_v41 = vpop.eup %8539 }
 0x3b9   :  { %v8542_v57 = vpop.eup %8541 }
 0x3ba   :  { %v1614_v39 = vmul.f32 128.0, %v8542_v57  ;;  %vm1618_vm2 = vweird.f32 %v8542_v57 }
 0x3e1   :  { %v1259_v10 = vpop.f32.mrf.mxu1 }
 0x3e2   :  { %v1466_v35 = vmul.f32 %v8526_v14, %v1259_v10  ;;  %v1615_v10 = vsub.f32 1.0, %v1614_v39  ;;  %v7676_v14 = vld [vmem:[#allocation8 + $0x3cc] sm:$0xf] }
 0x3e4   :  { %v1616_v63 = vmul.f32 %v8542_v57, %v1615_v10  ;;  %v7628_v10 = vld [vmem:[#allocation8 + $0x9c] sm:$0xf] }
 0x3e6   :  { %v1617_v42 = vadd.f32 %v8542_v57, %v1616_v63  ;;  %v8269_v63 = vld [vmem:[#allocation8 + $0xdc] sm:$0xf0] }
 0x3e9   :  { %v1261_v59 = vpop.f32.mrf.mxu1 }
 0x3ea   :  { %v1467_v43 = vmul.f32 %v8528_v52, %v1261_v59  ;;  %v8281_v52 = vld [vmem:[#allocation8 + $0x40c] sm:$0xf0] }
 0x3eb   :  { %v9579_v27 = vpop.f32.mrf.mxu0  ;;  %v8280_v59 = vld [vmem:[#allocation8 + $0x3d0] sm:$0xf] }
 0x3ec   :  { %v1478_v31 = vpack.c.bf16 %v1467_v43, %v1466_v35  ;;  %1581 = vadd.xlane.f32.xlu2 %v9579_v27  ;;  %v1636_v6 = vmul.f32 %v9579_v27, %v9579_v27  ;;  %v7677_v35 = vor.u32 %v8281_v52, %v7676_v14  ;;  %v7678_v43 = vld [vmem:[#allocation8 + $0x410] sm:$0xf0]  ;;  %v8268_v14 = vld [vmem:[#allocation8 + $0xa0] sm:$0xf] }
 0x3ee   :  { %1558 = vmatmul.bf16.gmra.mxu0 %v1478_v31  ;;  %v7681_v31 = vor.u32 %v8280_v59, %v7678_v43  ;;  %2126 = vmatpush.bf16.msrb.mxu1 %v7677_v35  ;;  %v7629_v59 = vor.u32 %v8269_v63, %v7628_v10  ;;  %v7630_v35 = vld [vmem:[#allocation8 + $0xe0] sm:$0xf0] }
 0x3f0   :  { %2175 = vmatpush.bf16.msra.mxu3 %v7681_v31 }
 0x3f1   :  { %v1264_v49 = vpop.f32.mrf.mxu1 }
 0x3f2   :  { %v1468_v40 = vmul.f32 %v8530_v55, %v1264_v49  ;;  %v8278_v49 = vld [vmem:[#allocation8 + $0x348] sm:$0xf]  ;;  %v7669_v55 = vor.u32 %v8279_v13, %v7668_v23  ;;  %v7620_v13 = vld [vmem:[#allocation8 + $0x14] sm:$0xf] }
 0x3f3   :  { %v9584_v50 = vpop.f32.mrf.mxu0 }
 0x3f4   :  { %1652 = vadd.xlane.f32.xlu2 %v1636_v6  ;;  %v1637_v36 = vmul.f32 %v9584_v50, %v9584_v50  ;;  %2127 = vmatpush.bf16.msrb.mxu1 %v7669_v55 }
 0x3f9   :  { %v1266_v20 = vpop.f32.mrf.mxu1 }
 0x3fa   :  { %v1469_v29 = vmul.f32 %v8532_v3, %v1266_v20  ;;  %v7673_v3 = vor.u32 %v8278_v49, %v7670_v12  ;;  %v9619_v20 = vsel %vm1618_vm2, %v8542_v57, %v1617_v42  ;;  %v7638_v57 = vld [vmem:[#allocation8 + $0x168] sm:$0xf0]  ;;  %v7633_v42 = vor.u32 %v8268_v14, %v7630_v35  ;;  %v8267_v49 = vld [vmem:[#allocation8 + $0x54] sm:$0xf0] }
 0x3fb   :  { %v9586_v22 = vpop.f32.mrf.mxu0  ;;  %12504 = vst [vmem:[#allocation29_spill] sm:$0xff] %v9619_v20  ;;  %v7621_v12 = vor.u32 %v8267_v49, %v7620_v13 }
 0x3fc   :  { %v1479_v26 = vpack.c.bf16 %v1469_v29, %v1468_v40  ;;  %1583 = vadd.xlane.f32.xlu2 %v9584_v50  ;;  %v1638_v48 = vmul.f32 %v9586_v22, %v9586_v22  ;;  %2176 = vmatpush.bf16.msra.mxu3 %v7673_v3  ;;  %v7660_v40 = vld [vmem:[#allocation8 + $0x2bc] sm:$0xf]  ;;  %v8277_v29 = vld [vmem:[#allocation8 + $0x2fc] sm:$0xf0]  ;;  %v8266_v3 = vld [vmem:[#allocation8 + $0x18] sm:$0xf] }
 0x3fd   :  { %v7661_v37 = vor.u32 %v8277_v29, %v7660_v40  ;;  %v7622_v40 = vld [vmem:[#allocation8 + $0x58] sm:$0xf0] }
 0x3fe   :  { %1563 = vmatmul.bf16.gmra.mxu0 %v1479_v26  ;;  %v8276_v26 = vld [vmem:[#allocation8 + $0x2c0] sm:$0xf] }
 0x3ff   :  { %v7665_v47 = vor.u32 %v8276_v26, %v7662_v11  ;;  %2128 = vmatpush.bf16.msrb.mxu1 %v7661_v37  ;;  %v7625_v37 = vor.u32 %v8266_v3, %v7622_v40 }
 0x401   :  { %v1269_v58 = vpop.f32.mrf.mxu1  ;;  %2177 = vmatpush.bf16.msra.mxu3 %v7665_v47 }
 0x402   :  { %v1470_v60 = vmul.f32 %v8534_v61, %v1269_v58  ;;  %v8274_v61 = vld [vmem:[#allocation8 + $0x238] sm:$0xf] }
 0x403   :  { %v9591_v21 = vpop.f32.mrf.mxu0 }
 0x404   :  { %1654 = vadd.xlane.f32.xlu2 %v1637_v36  ;;  %v1639_v32 = vmul.f32 %v9591_v21, %v9591_v21  ;;  %v7652_v36 = vld [vmem:[#allocation8 + $0x234] sm:$0xf] }
 0x406   :  { %1658 = vadd.xlane.f32.xlu0 %v1639_v32  ;;  %v8275_v32 = vld [vmem:[#allocation8 + $0x274] sm:$0xf0] }
 0x409   :  { %v1271_v4 = vpop.f32.mrf.mxu1 }
 0x40a   :  { %v1471_v28 = vmul.f32 %v8536_v38, %v1271_v4  ;;  %v7653_v4 = vor.u32 %v8275_v32, %v7652_v36 }
 0x40b   :  { %v9595_v19 = vpop.f32.mrf.mxu0 }
 0x40c   :  { %v1480_v7 = vpack.c.bf16 %v1471_v28, %v1470_v60  ;;  %1585 = vadd.xlane.f32.xlu2 %v9586_v22  ;;  %1589 = vadd.xlane.f32.xlu1 %v9595_v19  ;;  %v1640_v46 = vmul.f32 %v9595_v19, %v9595_v19  ;;  %v7654_v60 = vld [vmem:[#allocation8 + $0x278] sm:$0xf0] }
 0x40d   :  { %2129 = vmatpush.bf16.msrb.mxu1 %v7653_v4 }
 0x40e   :  { %1568 = vmatmul.bf16.gmra.mxu0 %v1480_v7  ;;  %v7657_v7 = vor.u32 %v8274_v61, %v7654_v60 }
 0x410   :  { %2178 = vmatpush.bf16.msra.mxu3 %v7657_v7 }
 0x411   :  { %v1274_v15 = vpop.f32.mrf.mxu1 }
 0x412   :  { %v1472_v25 = vmul.f32 %v8538_v2, %v1274_v15  ;;  %v8273_v15 = vld [vmem:[#allocation8 + $0x1ec] sm:$0xf0] }
 0x413   :  { %v9604_v9 = vpop.f32.mrf.mxu0 }
 0x414   :  { %1656 = vadd.xlane.f32.xlu2 %v1638_v48  ;;  %v1641_v5 = vmul.f32 %v9604_v9, %v9604_v9  ;;  %v8272_v48 = vld [vmem:[#allocation8 + $0x1b0] sm:$0xf] }
 0x419   :  { %v1276_v54 = vpop.f32.mrf.mxu1 }
 0x41a   :  { %v1473_v30 = vmul.f32 %v8540_v41, %v1276_v54  ;;  %v7645_v41 = vor.u32 %v8273_v15, %v7644_v24  ;;  %v7646_v54 = vld [vmem:[#allocation8 + $0x1f0] sm:$0xf0] }
 0x41b   :  { %v9609_v1 = vpop.f32.mrf.mxu0 }
 0x41c   :  { %v1481_v44 = vpack.c.bf16 %v1473_v30, %v1472_v25  ;;  %1587 = vadd.xlane.f32.xlu2 %v9591_v21  ;;  %v1642_v8 = vmul.f32 %v9609_v1, %v9609_v1  ;;  %v7649_v30 = vor.u32 %v8272_v48, %v7646_v54  ;;  %2130 = vmatpush.bf16.msrb.mxu1 %v7645_v41 }
 0x41e   :  { %1573 = vmatmul.bf16.gmra.mxu0 %v1481_v44  ;;  %2179 = vmatpush.bf16.msra.mxu3 %v7649_v30  ;;  %v7636_v44 = vld [vmem:[#allocation8 + $0x124] sm:$0xf] }
 0x423   :  { %v9614_v56 = vpop.f32.mrf.mxu0 }
 0x424   :  { %1660 = vadd.xlane.f32.xlu2 %v1640_v46  ;;  %v1643_v45 = vmul.f32 %v9614_v56, %v9614_v56  ;;  %v8271_v46 = vld [vmem:[#allocation8 + $0x164] sm:$0xf0] }
 0x425   :  { %v7637_v18 = vor.u32 %v8271_v46, %v7636_v44  ;;  %v9651_v46 = vld [vmem:[#allocation11] ss:$0 sm:$0xff] }
 0x427   :  { %2131 = vmatpush.bf16.msrb.mxu1 %v7637_v18 }
 0x42b   :  { %2132 = vmatpush.bf16.msrb.mxu1 %v7629_v59 }
 0x42c   :  { %1591 = vadd.xlane.f32.xlu2 %v9604_v9 }
 0x42f   :  { %2133 = vmatpush.bf16.msrb.mxu1 %v7621_v12 }
 0x434   :  { %1662 = vadd.xlane.f32.xlu2 %v1641_v5  ;;  %v8270_v5 = vld [vmem:[#allocation8 + $0x128] sm:$0xf] }
 0x435   :  { %v7641_v39 = vor.u32 %v8270_v5, %v7638_v57 }
 0x437   :  { %2180 = vmatpush.bf16.msra.mxu3 %v7641_v39 }
 0x43b   :  { %2181 = vmatpush.bf16.msra.mxu3 %v7633_v42 }
 0x43c   :  { %1593 = vadd.xlane.f32.xlu2 %v9609_v1 }
 0x43f   :  { %2182 = vmatpush.bf16.msra.mxu3 %v7625_v37 }
 0x444   :  { %1664 = vadd.xlane.f32.xlu2 %v1642_v8 }
 0x44c   :  { %1595 = vadd.xlane.f32.xlu2 %v9614_v56 }
 0x454   :  { %1666 = vadd.xlane.f32.xlu2 %v1643_v45 }
 0x45f   :  { %v1582_v6 = vpop.xlane.xlu2 %1581 }
 0x460   :  { %v9622_v58 = vmul.f32 %v9619_v20, %v1582_v6 }
 0x462   :  { %v1700_v28 = vmul.f32 %v9622_v58, %v9622_v58  ;;  %v1732_v41 = vsub.f32 %v9579_v27, %v9622_v58  ;;  %v9656_v27 = vld [vmem:[#allocation11 + $0x1] ss:$0 sm:$0xff] }
 0x467   :  { %v1653_v38 = vpop.xlane.xlu2 %1652 }
 0x468   :  { %v1684_v53 = vmul.f32 %v1653_v38, %v9619_v20 }
 0x46a   :  { %v1716_v51 = vsub.f32 %v1684_v53, %v1700_v28 }
 0x46b   :  { %v9627_v2 = vpop.f32.mrf.mxu0 }
 0x46c   :  { %v1748_v25 = vadd.f32 1e-05, %v1716_v51  ;;  %1597 = vadd.xlane.f32.xlu2 %v9627_v2  ;;  %v1644_v45 = vmul.f32 %v9627_v2, %v9627_v2 }
 0x46e   :  { %8543 = vrsqrt.f32 %v1748_v25  ;;  %vm1770_vm4 = vweird.f32 %v1748_v25 }
 0x46f   :  { %v1584_v8 = vpop.xlane.xlu2 %1583 }
 0x470   :  { %v1621_v31 = vmul.f32 %v9619_v20, %v1584_v8 }
 0x472   :  { %v1701_v29 = vmul.f32 %v1621_v31, %v1621_v31 }
 0x473   :  { %v9632_v52 = vpop.f32.mrf.mxu0 }
 0x474   :  { %v8544_v43 = vpop.eup %8543  ;;  %1668 = vadd.xlane.f32.xlu2 %v1644_v45  ;;  %v1645_v4 = vmul.f32 %v9632_v52, %v9632_v52  ;;  %v1733_v45 = vsub.f32 %v9584_v50, %v1621_v31 }
 0x475   :  { %v1765_v23 = vmul.f32 %v8544_v43, %v1748_v25  ;;  %vm1771_vm3 = vweird.f32 %v8544_v43 }
 0x476   :  { %vm1772_vm5 = vmor %vm1770_vm4, %vm1771_vm3 }
 0x477   :  { %v1766_v6 = vmul.f32 %v8544_v43, %v1765_v23  ;;  %v1655_v55 = vpop.xlane.xlu2 %1654 }
 0x478   :  { %v1685_v26 = vmul.f32 %v1655_v55, %v9619_v20 }
 0x479   :  { %v1767_v47 = vmul.f32 0.5, %v1766_v6  ;;  %v1659_v10 = vpop.xlane.xlu0 %1658 }
 0x47a   :  { %v1717_v11 = vsub.f32 %v1685_v26, %v1701_v29 }
 0x47b   :  { %v9636_v36 = vpop.f32.mrf.mxu0  ;;  %v1768_v61 = vsub.f32 1.5, %v1767_v47 }
 0x47c   :  { %v1749_v32 = vadd.f32 1e-05, %v1717_v11  ;;  %1599 = vadd.xlane.f32.xlu2 %v9632_v52  ;;  %v1646_v50 = vmul.f32 %v9636_v36, %v9636_v36 }
 0x47d   :  { %v1769_v60 = vmul.f32 %v8544_v43, %v1768_v61 }
 0x47e   :  { %8545 = vrsqrt.f32 %v1749_v32  ;;  %vm1780_vm7 = vweird.f32 %v1749_v32 }
 0x47f   :  { %v1586_v38 = vpop.xlane.xlu2 %1585  ;;  %v1773_v24 = vsel %vm1772_vm5, %v8544_v43, %v1769_v60  ;;  %v1687_v43 = vmul.f32 %v1659_v10, %v9619_v20  ;;  %v1590_v42 = vpop.xlane.xlu1 %1589 }
 0x480   :  { %v9644_v7 = vmul.f32 %v9619_v20, %v1586_v38  ;;  %v1924_v5 = vmul.f32 %v1773_v24, %v1732_v41  ;;  %v9674_v12 = vmul.f32 %v9619_v20, %v1590_v42 }
 0x482   :  { %v1702_v54 = vmul.f32 %v9644_v7, %v9644_v7  ;;  %v1941_v58 = vmul.f32 %v9651_v46, %v1924_v5 }
 0x483   :  { %v9641_v28 = vpop.f32.mrf.mxu0 }
 0x484   :  { %v8546_v53 = vpop.eup %8545  ;;  %1670 = vadd.xlane.f32.xlu2 %v1645_v4  ;;  %v1958_v23 = vadd.f32 %v9656_v27, %v1941_v58 }
 0x485   :  { %v1775_v51 = vmul.f32 %v8546_v53, %v1749_v32  ;;  %vm1781_vm6 = vweird.f32 %v8546_v53  ;;  %v1704_v32 = vmul.f32 %v9674_v12, %v9674_v12 }
 0x486   :  { %vm1782_vm8 = vmor %vm1780_vm7, %vm1781_vm6  ;;  %v9677_v26 = vadd.f32 %v1958_v23, %v9189_v62 }
 0x487   :  { %v1776_v15 = vmul.f32 %v8546_v53, %v1775_v51  ;;  %v1657_v48 = vpop.xlane.xlu2 %1656 }
 0x488   :  { %v1686_v30 = vmul.f32 %v1657_v48, %v9619_v20  ;;  %12505 = vst [vmem:[#allocation30_spill] sm:$0xff] %v9677_v26 }
 0x489   :  { %v1777_v44 = vmul.f32 0.5, %v1776_v15 }
 0x48a   :  { %v1718_v8 = vsub.f32 %v1686_v30, %v1702_v54  ;;  %v1734_v30 = vsub.f32 %v9586_v22, %v9644_v7 }
 0x48b   :  { %v1778_v18 = vsub.f32 1.5, %v1777_v44  ;;  %v9653_v25 = vpop.f32.mrf.mxu0  ;;  %v1647_v44 = vmul.f32 %v9641_v28, %v9641_v28 }
 0x48c   :  { %v1750_v57 = vadd.f32 1e-05, %v1718_v8  ;;  %1601 = vadd.xlane.f32.xlu2 %v9636_v36 }
 0x48d   :  { %v1779_v39 = vmul.f32 %v8546_v53, %v1778_v18 }
 0x48e   :  { %8547 = vrsqrt.f32 %v1750_v57  ;;  %vm1790_vm10 = vweird.f32 %v1750_v57 }
 0x48f   :  { %v1783_v63 = vsel %vm1782_vm8, %v8546_v53, %v1779_v39  ;;  %v1588_v14 = vpop.xlane.xlu2 %1587 }
 0x490   :  { %v1925_v59 = vmul.f32 %v1783_v63, %v1733_v45  ;;  %v9661_v35 = vmul.f32 %v9619_v20, %v1588_v14 }
 0x492   :  { %v1942_v13 = vmul.f32 %v9651_v46, %v1925_v59  ;;  %v1703_v49 = vmul.f32 %v9661_v35, %v9661_v35  ;;  %v1735_v63 = vsub.f32 %v9591_v21, %v9661_v35 }
 0x493   :  { %v9670_v31 = vpop.f32.mrf.mxu0 }
 0x494   :  { %v8548_v6 = vpop.eup %8547  ;;  %v1959_v55 = vadd.f32 %v9656_v27, %v1942_v13  ;;  %v1719_v3 = vsub.f32 %v1687_v43, %v1703_v49  ;;  %1672 = vadd.xlane.f32.xlu2 %v1646_v50 }
 0x495   :  { %v1785_v40 = vmul.f32 %v8548_v6, %v1750_v57  ;;  %vm1791_vm9 = vweird.f32 %v8548_v6 }
 0x496   :  { %v1751_v29 = vadd.f32 1e-05, %v1719_v3  ;;  %v9680_v37 = vadd.f32 %v1959_v55, %v9191_v0  ;;  %vm1792_vm11 = vmor %vm1790_vm10, %vm1791_vm9 }
 0x497   :  { %v1786_v11 = vmul.f32 %v8548_v6, %v1785_v40  ;;  %v1661_v47 = vpop.xlane.xlu2 %1660 }
 0x498   :  { %12506 = vst [vmem:[#allocation31_spill] sm:$0xff] %v9680_v37  ;;  %8549 = vrsqrt.f32 %v1751_v29  ;;  %v1688_v61 = vmul.f32 %v1661_v47, %v9619_v20  ;;  %v2038_v38 = vpack.c.bf16 %v9680_v37, %v9677_v26  ;;  %vm1800_vm13 = vweird.f32 %v1751_v29  ;;  %v10170_v26 = vld [vmem:[#allocation8 + $0xcc] sm:$0xf]  ;;  %v10175_v37 = vld [vmem:[#allocation8 + $0x330] sm:$0xf] }
 0x499   :  { %v1787_v4 = vmul.f32 0.5, %v1786_v11 }
 0x49a   :  { %v1720_v60 = vsub.f32 %v1688_v61, %v1704_v32  ;;  %2134 = vmatmul.bf16.vlgmr.msrb.gmra.mxu1 %v2038_v38  ;;  %2183 = vmatmul.bf16.vlgmr.msra.gmra.mxu3 %v2038_v38  ;;  %v1648_v61 = vmul.f32 %v9653_v25, %v9653_v25 }
 0x49b   :  { %v1788_v62 = vsub.f32 1.5, %v1787_v4  ;;  %v9687_v53 = vpop.f32.mrf.mxu0 }
 0x49c   :  { %v1752_v0 = vadd.f32 1e-05, %v1720_v60  ;;  %1603 = vadd.xlane.f32.xlu2 %v9641_v28 }
 0x49d   :  { %v1789_v51 = vmul.f32 %v8548_v6, %v1788_v62 }
 0x49e   :  { %v8550_v24 = vpop.eup %8549  ;;  %8551 = vrsqrt.f32 %v1752_v0  ;;  %vm1810_vm1 = vweird.f32 %v1752_v0 }
 0x49f   :  { %v1795_v15 = vmul.f32 %v8550_v24, %v1751_v29  ;;  %v1592_v48 = vpop.xlane.xlu2 %1591  ;;  %v1793_v41 = vsel %vm1792_vm11, %v8548_v6, %v1789_v51  ;;  %vm1801_vm12 = vweird.f32 %v8550_v24  ;;  %v1736_v51 = vsub.f32 %v9595_v19, %v9674_v12 }
 0x4a0   :  { %v9697_v39 = vmul.f32 %v9619_v20, %v1592_v48  ;;  %v1926_v57 = vmul.f32 %v1793_v41, %v1734_v30  ;;  %vm1802_vm14 = vmor %vm1800_vm13, %vm1801_vm12 }
 0x4a1   :  { %v1796_v54 = vmul.f32 %v8550_v24, %v1795_v15 }
 0x4a2   :  { %v1705_v14 = vmul.f32 %v9697_v39, %v9697_v39  ;;  %v1943_v43 = vmul.f32 %v9651_v46, %v1926_v57 }
 0x4a3   :  { %v1797_v5 = vmul.f32 0.5, %v1796_v54  ;;  %v9694_v8 = vpop.f32.mrf.mxu0 }
 0x4a4   :  { %v8552_v18 = vpop.eup %8551  ;;  %1674 = vadd.xlane.f32.xlu2 %v1647_v44  ;;  %1611 = vadd.xlane.f32.xlu1 %v9694_v8  ;;  %v1651_v49 = vmul.f32 %v9694_v8, %v9694_v8  ;;  %v1960_v21 = vadd.f32 %v9656_v27, %v1943_v43 }
 0x4a5   :  { %v1798_v58 = vsub.f32 1.5, %v1797_v5  ;;  %v1805_v45 = vmul.f32 %v8552_v18, %v1752_v0  ;;  %vm1811_vm15 = vweird.f32 %v8552_v18  ;;  %v1737_v5 = vsub.f32 %v9604_v9, %v9697_v39 }
 0x4a6   :  { %v9713_v29 = vadd.f32 %v1960_v21, %v9207_v16  ;;  %vm1812_vm2 = vmor %vm1810_vm1, %vm1811_vm15 }
 0x4a7   :  { %v1799_v10 = vmul.f32 %v8550_v24, %v1798_v58  ;;  %v1806_v22 = vmul.f32 %v8552_v18, %v1805_v45  ;;  %v1663_v7 = vpop.xlane.xlu2 %1662 }
 0x4a8   :  { %v1689_v59 = vmul.f32 %v1663_v7, %v9619_v20  ;;  %12507 = vst [vmem:[#allocation32_spill] sm:$0xff] %v9713_v29 }
 0x4a9   :  { %v1803_v42 = vsel %vm1802_vm14, %v8550_v24, %v1799_v10  ;;  %v1807_v50 = vmul.f32 0.5, %v1806_v22  ;;  %v1649_v10 = vmul.f32 %v9670_v31, %v9670_v31 }
 0x4aa   :  { %v1927_v23 = vmul.f32 %v1803_v42, %v1735_v63  ;;  %v1721_v13 = vsub.f32 %v1689_v59, %v1705_v14 }
 0x4ab   :  { %v1808_v3 = vsub.f32 1.5, %v1807_v50 }
 0x4ac   :  { %v1944_v6 = vmul.f32 %v9651_v46, %v1927_v23  ;;  %v1753_v55 = vadd.f32 1e-05, %v1721_v13  ;;  %1605 = vadd.xlane.f32.xlu2 %v9653_v25  ;;  %1682 = vadd.xlane.f32.xlu1 %v1651_v49 }
 0x4ad   :  { %v1809_v32 = vmul.f32 %v8552_v18, %v1808_v3 }
 0x4ae   :  { %8553 = vrsqrt.f32 %v1753_v55  ;;  %v1961_v35 = vadd.f32 %v9656_v27, %v1944_v6  ;;  %vm1820_vm4 = vweird.f32 %v1753_v55 }
 0x4af   :  { %v1594_v40 = vpop.xlane.xlu2 %1593 }
 0x4b0   :  { %v9716_v11 = vadd.f32 %v1961_v35, %v9209_v17  ;;  %v9723_v4 = vmul.f32 %v9619_v20, %v1594_v40  ;;  %v1813_v17 = vsel %vm1812_vm2, %v8552_v18, %v1809_v32 }
 0x4b1   :  { %v1928_v54 = vmul.f32 %v1813_v17, %v1736_v51 }
 0x4b2   :  { %12508 = vst [vmem:[#allocation33_spill] sm:$0xff] %v9716_v11  ;;  %v2039_v47 = vpack.c.bf16 %v9716_v11, %v9713_v29  ;;  %v1706_v24 = vmul.f32 %v9723_v4, %v9723_v4  ;;  %v10159_v11 = vld [vmem:[#allocation8 + $0x198] sm:$0xf] }
 0x4b3   :  { %v1945_v19 = vmul.f32 %v9651_v46, %v1928_v54  ;;  %v8289_v54 = vld [vmem:[#allocation10 + $0x74] sm:$0xf0] }
 0x4b4   :  { %v8554_v38 = vpop.eup %8553  ;;  %2139 = vmatmul.bf16.gmra.mxu1 %v2039_v47  ;;  %2188 = vmatmul.bf16.gmra.mxu3 %v2039_v47  ;;  %v1738_v47 = vsub.f32 %v9609_v1, %v9723_v4 }
 0x4b5   :  { %v1815_v16 = vmul.f32 %v8554_v38, %v1753_v55  ;;  %1676 = vadd.xlane.f32.xlu2 %v1648_v61  ;;  %vm1821_vm3 = vweird.f32 %v8554_v38  ;;  %v1962_v45 = vadd.f32 %v9656_v27, %v1945_v19 }
 0x4b6   :  { %vm1822_vm5 = vmor %vm1820_vm4, %vm1821_vm3 }
 0x4b7   :  { %v1816_v60 = vmul.f32 %v8554_v38, %v1815_v16  ;;  %v1665_v62 = vpop.xlane.xlu2 %1664  ;;  %v9741_v39 = vadd.f32 %v1962_v45, %v9222_v33  ;;  %v8288_v45 = vld [vmem:[#allocation10 + $0x64] sm:$0xf0] }
 0x4b8   :  { %v1690_v15 = vmul.f32 %v1665_v62, %v9619_v20 }
 0x4b9   :  { %v1817_v48 = vmul.f32 0.5, %v1816_v60  ;;  %12509 = vst [vmem:[#allocation34_spill] sm:$0xff] %v9741_v39 }
 0x4ba   :  { %v1722_v41 = vsub.f32 %v1690_v15, %v1706_v24 }
 0x4bb   :  { %v1818_v30 = vsub.f32 1.5, %v1817_v48 }
 0x4bc   :  { %v1754_v0 = vadd.f32 1e-05, %v1722_v41  ;;  %v7712_v41 = vld [vmem:[#allocation10 + $0x70] sm:$0xf] }
 0x4bd   :  { %v1819_v44 = vmul.f32 %v8554_v38, %v1818_v30  ;;  %1607 = vadd.xlane.f32.xlu2 %v9670_v31  ;;  %v7713_v30 = vor.u32 %v8289_v54, %v7712_v41  ;;  %v8284_v41 = vld [vmem:[#allocation10 + $0x24] sm:$0xf0] }
 0x4be   :  { %8555 = vrsqrt.f32 %v1754_v0  ;;  %vm1830_vm7 = vweird.f32 %v1754_v0 }
 0x4bf   :  { %v1823_v12 = vsel %vm1822_vm5, %v8554_v38, %v1819_v44  ;;  %v1596_v18 = vpop.xlane.xlu2 %1595  ;;  %v12513_v44 = vld [vmem:[#allocation28_spill] sm:$0xff]  ;;  %2368 = vmatpush.bf16.msrb.mxu2 %v7713_v30 }
 0x4c0   :  { %v1929_v57 = vmul.f32 %v1823_v12, %v1737_v5  ;;  %v1627_v7 = vmul.f32 %v9619_v20, %v1596_v18 }
 0x4c2   :  { %v1946_v58 = vmul.f32 %v9651_v46, %v1929_v57  ;;  %v1707_v42 = vmul.f32 %v1627_v7, %v1627_v7  ;;  %v1739_v17 = vsub.f32 %v9614_v56, %v1627_v7  ;;  %v7744_v7 = vld [vmem:[#allocation10 + $0xf0] sm:$0xf] }
 0x4c4   :  { %v8556_v22 = vpop.eup %8555  ;;  %v1963_v63 = vadd.f32 %v9656_v27, %v1946_v58  ;;  %v7708_v58 = vld [vmem:[#allocation10 + $0x60] sm:$0xf] }
 0x4c5   :  { %v1825_v9 = vmul.f32 %v8556_v22, %v1754_v0  ;;  %1678 = vadd.xlane.f32.xlu2 %v1649_v10  ;;  %vm1831_vm6 = vweird.f32 %v8556_v22  ;;  %v12511_v0 = vld [vmem:[#allocation27_spill] sm:$0xff]  ;;  %v7709_v10 = vor.u32 %v8288_v45, %v7708_v58  ;;  %v8283_v58 = vld [vmem:[#allocation10 + $0x14] sm:$0xf0] }
 0x4c6   :  { %v9744_v14 = vadd.f32 %v1963_v63, %v9224_v34  ;;  %v1650_v34 = vmul.f32 %v9687_v53, %v9687_v53  ;;  %vm1832_vm8 = vmor %vm1830_vm7, %vm1831_vm6  ;;  %v8297_v63 = vld [vmem:[#allocation10 + $0xf4] sm:$0xf0] }
 0x4c7   :  { %v1826_v59 = vmul.f32 %v8556_v22, %v1825_v9  ;;  %v1667_v43 = vpop.xlane.xlu2 %1666  ;;  %2369 = vmatpush.bf16.msrb.mxu2 %v7709_v10  ;;  %v7745_v9 = vor.u32 %v8297_v63, %v7744_v7  ;;  %v7724_v10 = vld [vmem:[#allocation10 + $0xa0] sm:$0xf] }
 0x4c8   :  { %12510 = vst [vmem:[#allocation35_spill] sm:$0xff] %v9744_v14  ;;  %v1691_v23 = vmul.f32 %v1667_v43, %v9619_v20  ;;  %v2040_v13 = vpack.c.bf16 %v9744_v14, %v9741_v39  ;;  %v7704_v43 = vld [vmem:[#allocation10 + $0x50] sm:$0xf]  ;;  %v10146_v39 = vld [vmem:[#allocation8 + $0x44] sm:$0xf] }
 0x4c9   :  { %v1827_v50 = vmul.f32 0.5, %v1826_v59  ;;  %2417 = vmatpush.bf16.msrb.mxu0 %v7745_v9 }
 0x4ca   :  { %v1723_v49 = vsub.f32 %v1691_v23, %v1707_v42  ;;  %2144 = vmatmul.bf16.gmra.mxu1 %v2040_v13  ;;  %2193 = vmatmul.bf16.gmra.mxu3 %v2040_v13  ;;  %v8287_v42 = vld [vmem:[#allocation10 + $0x54] sm:$0xf0]  ;;  %v7740_v13 = vld [vmem:[#allocation10 + $0xe0] sm:$0xf] }
 0x4cb   :  { %v1828_v33 = vsub.f32 1.5, %v1827_v50  ;;  %v7705_v23 = vor.u32 %v8287_v42, %v7704_v43  ;;  %v7684_v43 = vld [vmem:[#allocation10] sm:$0xf]  ;;  %v8282_v42 = vld [vmem:[#allocation10 + $0x4] sm:$0xf0] }
 0x4cc   :  { %v1755_v6 = vadd.f32 1e-05, %v1723_v49  ;;  %v8296_v49 = vld [vmem:[#allocation10 + $0xe4] sm:$0xf0] }
 0x4cd   :  { %1609 = vadd.xlane.f32.xlu2 %v9687_v53  ;;  %v1829_v55 = vmul.f32 %v8556_v22, %v1828_v33  ;;  %2370 = vmatpush.bf16.msrb.mxu2 %v7705_v23  ;;  %v7700_v33 = vld [vmem:[#allocation10 + $0x40] sm:$0xf]  ;;  %v7685_v23 = vor.u32 %v8282_v42, %v7684_v43 }
 0x4ce   :  { %8557 = vrsqrt.f32 %v1755_v6  ;;  %vm1840_vm10 = vweird.f32 %v1755_v6 }
 0x4cf   :  { %v1833_v3 = vsel %vm1832_vm8, %v8556_v22, %v1829_v55  ;;  %v8286_v55 = vld [vmem:[#allocation10 + $0x44] sm:$0xf0] }
 0x4d0   :  { %v1930_v61 = vmul.f32 %v1833_v3, %v1738_v47 }
 0x4d2   :  { %v1947_v60 = vmul.f32 %v9651_v46, %v1930_v61  ;;  %v8285_v61 = vld [vmem:[#allocation10 + $0x34] sm:$0xf0] }
 0x4d4   :  { %v8558_v21 = vpop.eup %8557  ;;  %v1964_v48 = vadd.f32 %v9656_v27, %v1947_v60  ;;  %v8294_v60 = vld [vmem:[#allocation10 + $0xc4] sm:$0xf0] }
 0x4d5   :  { %v1835_v35 = vmul.f32 %v8558_v21, %v1755_v6  ;;  %1680 = vadd.xlane.f32.xlu2 %v1650_v34  ;;  %vm1841_vm9 = vweird.f32 %v8558_v21  ;;  %v7741_v6 = vor.u32 %v8296_v49, %v7740_v13  ;;  %v7701_v34 = vor.u32 %v8286_v55, %v7700_v33  ;;  %v7720_v13 = vld [vmem:[#allocation10 + $0x90] sm:$0xf]  ;;  %v8291_v49 = vld [vmem:[#allocation10 + $0x94] sm:$0xf0] }
 0x4d6   :  { %vm1842_vm11 = vmor %vm1840_vm10, %vm1841_vm9  ;;  %v9763_v56 = vadd.f32 %v1964_v48, %v12511_v0  ;;  %v7728_v0 = vld [vmem:[#allocation10 + $0xb0] sm:$0xf] }
 0x4d7   :  { %v1836_v40 = vmul.f32 %v8558_v21, %v1835_v35  ;;  %2418 = vmatpush.bf16.msrb.mxu0 %v7741_v6  ;;  %v8295_v35 = vld [vmem:[#allocation10 + $0xd4] sm:$0xf0]  ;;  %2371 = vmatpush.bf16.msrb.mxu2 %v7701_v34  ;;  %v7721_v6 = vor.u32 %v8291_v49, %v7720_v13 }
 0x4d8   :  { %12512 = vst [vmem:[#allocation27_spill] sm:$0xff] %v9763_v56 }
 0x4d9   :  { %v1837_v32 = vmul.f32 0.5, %v1836_v40 }
 0x4db   :  { %v1838_v38 = vsub.f32 1.5, %v1837_v32  ;;  %v7696_v32 = vld [vmem:[#allocation10 + $0x30] sm:$0xf] }
 0x4dd   :  { %v1839_v16 = vmul.f32 %v8558_v21, %v1838_v38 }
 0x4df   :  { %v1843_v62 = vsel %vm1842_vm11, %v8558_v21, %v1839_v16  ;;  %v1598_v51 = vpop.xlane.xlu2 %1597  ;;  %v7736_v21 = vld [vmem:[#allocation10 + $0xd0] sm:$0xf]  ;;  %v7697_v16 = vor.u32 %v8285_v61, %v7696_v32 }
 0x4e0   :  { %v1931_v24 = vmul.f32 %v1843_v62, %v1739_v17  ;;  %v9759_v1 = vmul.f32 %v9619_v20, %v1598_v51  ;;  %v7737_v3 = vor.u32 %v8295_v35, %v7736_v21  ;;  %v7732_v17 = vld [vmem:[#allocation10 + $0xc0] sm:$0xf]  ;;  %v8290_v35 = vld [vmem:[#allocation10 + $0x84] sm:$0xf0] }
 0x4e1   :  { %2372 = vmatpush.bf16.msrb.mxu2 %v7697_v16  ;;  %v7716_v21 = vld [vmem:[#allocation10 + $0x80] sm:$0xf] }
 0x4e2   :  { %v1948_v15 = vmul.f32 %v9651_v46, %v1931_v24  ;;  %v1708_v12 = vmul.f32 %v9759_v1, %v9759_v1  ;;  %2419 = vmatpush.bf16.msrb.mxu0 %v7737_v3  ;;  %v7733_v24 = vor.u32 %v8294_v60, %v7732_v17  ;;  %v1740_v16 = vsub.f32 %v9627_v2, %v9759_v1 }
 0x4e4   :  { %v1965_v4 = vadd.f32 %v9656_v27, %v1948_v15 }
 0x4e6   :  { %v9766_v5 = vadd.f32 %v1965_v4, %v12513_v44  ;;  %v7692_v4 = vld [vmem:[#allocation10 + $0x20] sm:$0xf]  ;;  %2420 = vmatpush.bf16.msrb.mxu0 %v7733_v24  ;;  %v8293_v44 = vld [vmem:[#allocation10 + $0xb4] sm:$0xf0] }
 0x4e7   :  { %v1669_v19 = vpop.xlane.xlu2 %1668  ;;  %v7693_v54 = vor.u32 %v8284_v41, %v7692_v4 }
 0x4e8   :  { %12514 = vst [vmem:[#allocation28_spill] sm:$0xff] %v9766_v5  ;;  %v1692_v18 = vmul.f32 %v1669_v19, %v9619_v20  ;;  %v2041_v57 = vpack.c.bf16 %v9766_v5, %v9763_v56 }
 0x4e9   :  { %2373 = vmatpush.bf16.msrb.mxu2 %v7693_v54 }
 0x4ea   :  { %v1724_v22 = vsub.f32 %v1692_v18, %v1708_v12  ;;  %2149 = vmatmul.bf16.gmra.mxu1 %v2041_v57  ;;  %2198 = vmatmul.bf16.gmra.mxu3 %v2041_v57  ;;  %v7729_v12 = vor.u32 %v8293_v44, %v7728_v0  ;;  %v7688_v57 = vld [vmem:[#allocation10 + $0x10] sm:$0xf] }
 0x4eb   :  { %v7689_v45 = vor.u32 %v8283_v58, %v7688_v57 }
 0x4ec   :  { %v9773_v59 = vadd.f32 1e-05, %v1724_v22  ;;  %2421 = vmatpush.bf16.msrb.mxu0 %v7729_v12  ;;  %v8292_v22 = vld [vmem:[#allocation10 + $0xa4] sm:$0xf0] }
 0x4ed   :  { %2374 = vmatpush.bf16.msrb.mxu2 %v7689_v45  ;;  %v7725_v9 = vor.u32 %v8292_v22, %v7724_v10 }
 0x4ee   :  { %8559 = vrsqrt.f32 %v9773_v59  ;;  %vm1850_vm13 = vweird.f32 %v9773_v59 }
 0x4ef   :  { %v1600_v50 = vpop.xlane.xlu2 %1599 }
 0x4f0   :  { %v9779_v47 = vmul.f32 %v9619_v20, %v1600_v50  ;;  %2422 = vmatpush.bf16.msrb.mxu0 %v7725_v9 }
 0x4f1   :  { %2375 = vmatpush.bf16.msrb.mxu2 %v7685_v23 }
 0x4f2   :  { %v1709_v15 = vmul.f32 %v9779_v47, %v9779_v47 }
 0x4f4   :  { %v9776_v40 = vpop.eup %8559  ;;  %2423 = vmatpush.bf16.msrb.mxu0 %v7721_v6 }
 0x4f5   :  { %v1845_v38 = vmul.f32 %v9776_v40, %v9773_v59  ;;  %vm1851_vm12 = vweird.f32 %v9776_v40 }
 0x4f6   :  { %vm1852_vm14 = vmor %vm1850_vm13, %vm1851_vm12 }
 0x4f7   :  { %v1846_v62 = vmul.f32 %v9776_v40, %v1845_v38  ;;  %v1671_v51 = vpop.xlane.xlu2 %1670  ;;  %v7717_v38 = vor.u32 %v8290_v35, %v7716_v21 }
 0x4f8   :  { %v1693_v48 = vmul.f32 %v1671_v51, %v9619_v20 }
 0x4f9   :  { %v1847_v19 = vmul.f32 0.5, %v1846_v62  ;;  %2424 = vmatpush.bf16.msrb.mxu0 %v7717_v38 }
 0x4fa   :  { %v1725_v30 = vsub.f32 %v1693_v48, %v1709_v15 }
 0x4fb   :  { %v1848_v7 = vsub.f32 1.5, %v1847_v19 }
 0x4fc   :  { %v1757_v18 = vadd.f32 1e-05, %v1725_v30 }
 0x4fd   :  { %v1849_v50 = vmul.f32 %v9776_v40, %v1848_v7 }
 0x4fe   :  { %8561 = vrsqrt.f32 %v1757_v18  ;;  %vm1860_vm1 = vweird.f32 %v1757_v18 }
 0x4ff   :  { %v1602_v63 = vpop.xlane.xlu2 %1601  ;;  %v1853_v3 = vsel %vm1852_vm14, %v9776_v40, %v1849_v50  ;;  %v1741_v40 = vsub.f32 %v9632_v52, %v9779_v47  ;;  %v12517_v52 = vld [vmem:[#allocation20_spill] sm:$0xff] }
 0x500   :  { %v9790_v55 = vmul.f32 %v9619_v20, %v1602_v63  ;;  %v1932_v51 = vmul.f32 %v1853_v3, %v1740_v16 }
 0x502   :  { %v1710_v17 = vmul.f32 %v9790_v55, %v9790_v55  ;;  %v1949_v2 = vmul.f32 %v9651_v46, %v1932_v51 }
 0x504   :  { %v8562_v33 = vpop.eup %8561  ;;  %v1966_v30 = vadd.f32 %v9656_v27, %v1949_v2 }
 0x505   :  { %v1855_v34 = vmul.f32 %v8562_v33, %v1757_v18  ;;  %vm1861_vm15 = vweird.f32 %v8562_v33  ;;  %v12515_v18 = vld [vmem:[#allocation19_spill] sm:$0xff] }
 0x506   :  { %vm1862_vm2 = vmor %vm1860_vm1, %vm1861_vm15  ;;  %v9807_v57 = vadd.f32 %v1966_v30, %v12515_v18 }
 0x507   :  { %v1856_v32 = vmul.f32 %v8562_v33, %v1855_v34  ;;  %v1673_v61 = vpop.xlane.xlu2 %1672 }
 0x508   :  { %v1694_v60 = vmul.f32 %v1673_v61, %v9619_v20  ;;  %12516 = vst [vmem:[#allocation19_spill] sm:$0xff] %v9807_v57 }
 0x509   :  { %v1857_v62 = vmul.f32 0.5, %v1856_v32 }
 0x50a   :  { %v1726_v59 = vsub.f32 %v1694_v60, %v1710_v17 }
 0x50b   :  { %v1858_v24 = vsub.f32 1.5, %v1857_v62 }
 0x50c   :  { %v1758_v15 = vadd.f32 1e-05, %v1726_v59  ;;  %v1742_v59 = vsub.f32 %v9636_v36, %v9790_v55 }
 0x50d   :  { %v1859_v48 = vmul.f32 %v8562_v33, %v1858_v24 }
 0x50e   :  { %8563 = vrsqrt.f32 %v1758_v15  ;;  %vm1870_vm4 = vweird.f32 %v1758_v15 }
 0x50f   :  { %v1863_v1 = vsel %vm1862_vm2, %v8562_v33, %v1859_v48  ;;  %v1604_v4 = vpop.xlane.xlu2 %1603 }
 0x510   :  { %v1933_v41 = vmul.f32 %v1863_v1, %v1741_v40  ;;  %v1631_v44 = vmul.f32 %v9619_v20, %v1604_v4 }
 0x512   :  { %v1950_v54 = vmul.f32 %v9651_v46, %v1933_v41  ;;  %v1711_v22 = vmul.f32 %v1631_v44, %v1631_v44  ;;  %v1743_v55 = vsub.f32 %v9641_v28, %v1631_v44 }
 0x514   :  { %v8564_v0 = vpop.eup %8563  ;;  %v1967_v19 = vadd.f32 %v9656_v27, %v1950_v54 }
 0x515   :  { %v1865_v12 = vmul.f32 %v8564_v0, %v1758_v15  ;;  %vm1871_vm3 = vweird.f32 %v8564_v0 }
 0x516   :  { %v9810_v47 = vadd.f32 %v1967_v19, %v12517_v52  ;;  %vm1872_vm5 = vmor %vm1870_vm4, %vm1871_vm3 }
 0x517   :  { %v1866_v58 = vmul.f32 %v8564_v0, %v1865_v12  ;;  %v2135_v45 = vpop.f32.mrf.mxu1  ;;  %v1675_v10 = vpop.xlane.xlu2 %1674 }
 0x518   :  { %12518 = vst [vmem:[#allocation20_spill] sm:$0xff] %v9810_v47  ;;  %v1695_v7 = vmul.f32 %v1675_v10, %v9619_v20  ;;  %v2042_v63 = vpack.c.bf16 %v9810_v47, %v9807_v57  ;;  %v2224_v6 = vmax.f32 %v2135_v45, 0.0  ;;  %v1612_v34 = vpop.xlane.xlu1 %1611 }
 0x519   :  { %v1867_v43 = vmul.f32 0.5, %v1866_v58  ;;  %v9824_v54 = vmul.f32 %v9619_v20, %v1612_v34 }
 0x51a   :  { %v1727_v9 = vsub.f32 %v1695_v7, %v1711_v22  ;;  %2154 = vmatmul.bf16.gmra.mxu1 %v2042_v63  ;;  %2203 = vmatmul.bf16.gmra.mxu3 %v2042_v63 }
 0x51b   :  { %v1868_v13 = vsub.f32 1.5, %v1867_v43  ;;  %v1715_v52 = vmul.f32 %v9824_v54, %v9824_v54 }
 0x51c   :  { %v1759_v42 = vadd.f32 1e-05, %v1727_v9 }
 0x51d   :  { %v2184_v23 = vpop.f32.mrf.mxu3  ;;  %v1869_v35 = vmul.f32 %v8564_v0, %v1868_v13  ;;  %v12521_v13 = vld [vmem:[#allocation22_spill] sm:$0xff] }
 0x51e   :  { %8565 = vrsqrt.f32 %v1759_v42  ;;  %v2225_v16 = vmax.f32 %v2184_v23, 0.0  ;;  %vm1880_vm7 = vweird.f32 %v1759_v42 }
 0x51f   :  { %v2137_v49 = vpop.f32.mrf.mxu1  ;;  %v1606_v50 = vpop.xlane.xlu2 %1605  ;;  %v1873_v60 = vsel %vm1872_vm5, %v8564_v0, %v1869_v35 }
 0x520   :  { %v2226_v33 = vmax.f32 %v2137_v49, 0.0  ;;  %v9816_v61 = vmul.f32 %v9619_v20, %v1606_v50  ;;  %v1934_v2 = vmul.f32 %v1873_v60, %v1742_v59  ;;  %v1683_v4 = vpop.xlane.xlu1 %1682 }
 0x521   :  { %v1699_v0 = vmul.f32 %v1683_v4, %v9619_v20 }
 0x522   :  { %v2256_v21 = vpack.c.bf16 %v2226_v33, %v2224_v6  ;;  %v1712_v40 = vmul.f32 %v9816_v61, %v9816_v61  ;;  %v1951_v19 = vmul.f32 %v9651_v46, %v1934_v2 }
 0x523   :  { %v1731_v10 = vsub.f32 %v1699_v0, %v1715_v52  ;;  %v8313_v0 = vld [vmem:[#allocation8 + $0x2c8] sm:$0xf] }
 0x524   :  { %v8566_v3 = vpop.eup %8565  ;;  %2376 = vmatmul.bf16.vlgmr.msrb.gmra.mxu2 %v2256_v21  ;;  %v1968_v7 = vadd.f32 %v9656_v27, %v1951_v19  ;;  %v7810_v19 = vld [vmem:[#allocation8 + $0x308] sm:$0xf0] }
 0x525   :  { %v1875_v32 = vmul.f32 %v8566_v3, %v1759_v42  ;;  %v2186_v38 = vpop.f32.mrf.mxu3  ;;  %vm1881_vm6 = vweird.f32 %v8566_v3  ;;  %v9842_v9 = vadd.f32 1e-05, %v1731_v10  ;;  %v12519_v42 = vld [vmem:[#allocation21_spill] sm:$0xff] }
 0x526   :  { %v2227_v17 = vmax.f32 %v2186_v38, 0.0  ;;  %vm1882_vm8 = vmor %vm1880_vm7, %vm1881_vm6  ;;  %v9847_v23 = vadd.f32 %v1968_v7, %v12519_v42  ;;  %v8310_v7 = vld [vmem:[#allocation8 + $0x240] sm:$0xf] }
 0x527   :  { %v1876_v62 = vmul.f32 %v8566_v3, %v1875_v32  ;;  %vm1920_vm1 = vweird.f32 %v9842_v9 }
 0x528   :  { %v2257_v51 = vpack.c.bf16 %v2227_v17, %v2225_v16  ;;  %v1677_v24 = vpop.xlane.xlu2 %1676  ;;  %12520 = vst [vmem:[#allocation21_spill] sm:$0xff] %v9847_v23  ;;  %v8319_v16 = vld [vmem:[#allocation8 + $0x3d8] sm:$0xf]  ;;  %v7834_v17 = vld [vmem:[#allocation8 + $0x418] sm:$0xf0] }
 0x529   :  { %v1877_v48 = vmul.f32 0.5, %v1876_v62  ;;  %v1696_v15 = vmul.f32 %v1677_v24, %v9619_v20  ;;  %v7837_v62 = vor.u32 %v8319_v16, %v7834_v17 }
 0x52a   :  { %2425 = vmatmul.bf16.vlgmr.msrb.gmra.mxu0 %v2257_v51 }
 0x52b   :  { %v1878_v1 = vsub.f32 1.5, %v1877_v48  ;;  %v1728_v41 = vsub.f32 %v1696_v15, %v1712_v40  ;;  %3119 = vmatpush.bf16.msrb.mxu3 %v7837_v62  ;;  %v8316_v48 = vld [vmem:[#allocation8 + $0x350] sm:$0xf]  ;;  %v7822_v40 = vld [vmem:[#allocation8 + $0x390] sm:$0xf0] }
 0x52c   :  { %v7825_v2 = vor.u32 %v8316_v48, %v7822_v40  ;;  %v8320_v48 = vld [vmem:[#allocation8 + $0x414] sm:$0xf0] }
 0x52d   :  { %v1879_v30 = vmul.f32 %v8566_v3, %v1878_v1  ;;  %v9826_v36 = vadd.f32 1e-05, %v1728_v41 }
 0x52f   :  { %v1883_v12 = vsel %vm1882_vm8, %v8566_v3, %v1879_v30  ;;  %8567 = vrsqrt.f32 %v9826_v36  ;;  %3120 = vmatpush.bf16.msrb.mxu3 %v7825_v2  ;;  %vm1890_vm10 = vweird.f32 %v9826_v36 }
 0x530   :  { %v1935_v18 = vmul.f32 %v1883_v12, %v1743_v55  ;;  %v1608_v58 = vpop.xlane.xlu2 %1607  ;;  %8569 = vrsqrt.f32 %v9842_v9 }
 0x531   :  { %v2140_v45 = vpop.f32.mrf.mxu1  ;;  %v9840_v63 = vmul.f32 %v9619_v20, %v1608_v58 }
 0x532   :  { %v1952_v22 = vmul.f32 %v9651_v46, %v1935_v18  ;;  %v2228_v32 = vmax.f32 %v2140_v45, 0.0  ;;  %v7813_v18 = vor.u32 %v8313_v0, %v7810_v19 }
 0x533   :  { %v1713_v21 = vmul.f32 %v9840_v63, %v9840_v63 }
 0x534   :  { %v1969_v28 = vadd.f32 %v9656_v27, %v1952_v22  ;;  %3121 = vmatpush.bf16.msrb.mxu3 %v7813_v18 }
 0x535   :  { %v9837_v44 = vpop.eup %8567 }
 0x536   :  { %v1885_v43 = vmul.f32 %v9837_v44, %v9826_v36  ;;  %v9850_v49 = vadd.f32 %v1969_v28, %v12521_v13  ;;  %v9859_v1 = vpop.eup %8569  ;;  %vm1891_vm9 = vweird.f32 %v9837_v44  ;;  %v7798_v28 = vld [vmem:[#allocation8 + $0x280] sm:$0xf0] }
 0x537   :  { %v2189_v50 = vpop.f32.mrf.mxu3  ;;  %v1915_v52 = vmul.f32 %v9859_v1, %v9842_v9  ;;  %vm1892_vm11 = vmor %vm1890_vm10, %vm1891_vm9  ;;  %v7801_v13 = vor.u32 %v8310_v7, %v7798_v28  ;;  %v7762_v28 = vld [vmem:[#allocation8 + $0xe8] sm:$0xf0]  ;;  %vm1921_vm15 = vweird.f32 %v9859_v1  ;;  %v7750_v9 = vld [vmem:[#allocation8 + $0x60] sm:$0xf0] }
 0x538   :  { %12522 = vst [vmem:[#allocation22_spill] sm:$0xff] %v9850_v49  ;;  %v1886_v6 = vmul.f32 %v9837_v44, %v1885_v43  ;;  %v1679_v33 = vpop.xlane.xlu2 %1678  ;;  %v2043_v34 = vpack.c.bf16 %v9850_v49, %v9847_v23  ;;  %v2229_v41 = vmax.f32 %v2189_v50, 0.0  ;;  %vm9889_vm2 = vmor %vm1920_vm1, %vm1921_vm15 }
 0x539   :  { %v1697_v35 = vmul.f32 %v1679_v33, %v9619_v20  ;;  %v2142_v3 = vpop.f32.mrf.mxu1  ;;  %v1916_v43 = vmul.f32 %v9859_v1, %v1915_v52  ;;  %3122 = vmatpush.bf16.msrb.mxu3 %v7801_v13  ;;  %v8301_v52 = vld [vmem:[#allocation8 + $0xa8] sm:$0xf] }
 0x53a   :  { %v2230_v38 = vmax.f32 %v2142_v3, 0.0  ;;  %2159 = vmatmul.bf16.gmra.mxu1 %v2043_v34  ;;  %2208 = vmatmul.bf16.gmra.mxu3 %v2043_v34  ;;  %v1887_v59 = vmul.f32 0.5, %v1886_v6  ;;  %v1744_v34 = vsub.f32 %v9653_v25, %v9816_v61  ;;  %v8307_v3 = vld [vmem:[#allocation8 + $0x1b8] sm:$0xf]  ;;  %v1745_v25 = vsub.f32 %v9670_v31, %v9840_v63  ;;  %v7820_v63 = vld [vmem:[#allocation8 + $0x34c] sm:$0xf] }
 0x53b   :  { %v1729_v60 = vsub.f32 %v1697_v35, %v1713_v21 }
 0x53c   :  { %v2258_v51 = vpack.c.bf16 %v2230_v38, %v2228_v32  ;;  %v1888_v4 = vsub.f32 1.5, %v1887_v59  ;;  %v7786_v32 = vld [vmem:[#allocation8 + $0x1f8] sm:$0xf0]  ;;  %v1917_v38 = vmul.f32 0.5, %v1916_v43 }
 0x53d   :  { %v1761_v24 = vadd.f32 1e-05, %v1729_v60  ;;  %v7789_v60 = vor.u32 %v8307_v3, %v7786_v32  ;;  %v12527_v32 = vld [vmem:[#allocation24_spill] sm:$0xff] }
 0x53e   :  { %2381 = vmatmul.bf16.gmra.mxu2 %v2258_v51  ;;  %v1889_v58 = vmul.f32 %v9837_v44, %v1888_v4  ;;  %v7832_v51 = vld [vmem:[#allocation8 + $0x3d4] sm:$0xf]  ;;  %v1918_v40 = vsub.f32 1.5, %v1917_v38 }
 0x53f   :  { %8571 = vrsqrt.f32 %v1761_v24  ;;  %v2191_v15 = vpop.f32.mrf.mxu3  ;;  %3123 = vmatpush.bf16.msrb.mxu3 %v7789_v60  ;;  %vm1900_vm13 = vweird.f32 %v1761_v24  ;;  %v7833_v4 = vor.u32 %v8320_v48, %v7832_v51  ;;  %v7796_v48 = vld [vmem:[#allocation8 + $0x23c] sm:$0xf] }
 0x540   :  { %v2231_v30 = vmax.f32 %v2191_v15, 0.0  ;;  %v1610_v55 = vpop.xlane.xlu2 %1609  ;;  %v1893_v50 = vsel %vm1892_vm11, %v9837_v44, %v1889_v58  ;;  %v1919_v43 = vmul.f32 %v9859_v1, %v1918_v40  ;;  %v8311_v40 = vld [vmem:[#allocation8 + $0x27c] sm:$0xf0] }
 0x541   :  { %v9866_v10 = vmul.f32 %v9619_v20, %v1610_v55  ;;  %v1936_v16 = vmul.f32 %v1893_v50, %v1744_v34  ;;  %3070 = vmatpush.bf16.msra.mxu1 %v7833_v4  ;;  %v7808_v34 = vld [vmem:[#allocation8 + $0x2c4] sm:$0xf]  ;;  %v8308_v4 = vld [vmem:[#allocation8 + $0x1f4] sm:$0xf0] }
 0x542   :  { %v2259_v12 = vpack.c.bf16 %v2231_v30, %v2229_v41  ;;  %v8304_v41 = vld [vmem:[#allocation8 + $0x130] sm:$0xf]  ;;  %v7774_v30 = vld [vmem:[#allocation8 + $0x170] sm:$0xf0] }
 0x543   :  { %v1714_v21 = vmul.f32 %v9866_v10, %v9866_v10  ;;  %v1953_v2 = vmul.f32 %v9651_v46, %v1936_v16  ;;  %v8298_v16 = vld [vmem:[#allocation8 + $0x20] sm:$0xf] }
 0x544   :  { %2430 = vmatmul.bf16.gmra.mxu0 %v2259_v12  ;;  %v7777_v12 = vor.u32 %v8304_v41, %v7774_v30 }
 0x545   :  { %v8572_v45 = vpop.eup %8571 }
 0x546   :  { %v1895_v22 = vmul.f32 %v8572_v45, %v1761_v24  ;;  %vm1901_vm12 = vweird.f32 %v8572_v45  ;;  %3124 = vmatpush.bf16.msrb.mxu3 %v7777_v12  ;;  %v8317_v24 = vld [vmem:[#allocation8 + $0x38c] sm:$0xf0] }
 0x547   :  { %v2145_v42 = vpop.f32.mrf.mxu1  ;;  %vm1902_vm14 = vmor %vm1900_vm13, %vm1901_vm12  ;;  %v7821_v7 = vor.u32 %v8317_v24, %v7820_v63  ;;  %v7760_v24 = vld [vmem:[#allocation8 + $0xa4] sm:$0xf] }
 0x548   :  { %v1896_v6 = vmul.f32 %v8572_v45, %v1895_v22  ;;  %v1681_v33 = vpop.xlane.xlu2 %1680  ;;  %v2232_v0 = vmax.f32 %v2145_v42, 0.0  ;;  %v1970_v22 = vadd.f32 %v9656_v27, %v1953_v2  ;;  %v7797_v2 = vor.u32 %v8311_v40, %v7796_v48  ;;  %v2875_v48 = vld [vmem:[#allocation2 + $0x28] sm:$0xff] }
 0x549   :  { %v1698_v36 = vmul.f32 %v1681_v33, %v9619_v20  ;;  %3071 = vmatpush.bf16.msra.mxu1 %v7821_v7 }
 0x54a   :  { %v1897_v35 = vmul.f32 0.5, %v1896_v6 }
 0x54b   :  { %v1730_v17 = vsub.f32 %v1698_v36, %v1714_v21  ;;  %v8314_v21 = vld [vmem:[#allocation8 + $0x304] sm:$0xf0] }
 0x54c   :  { %v1898_v62 = vsub.f32 1.5, %v1897_v35  ;;  %v12525_v35 = vld [vmem:[#allocation23_spill] sm:$0xff] }
 0x54d   :  { %v9876_v44 = vadd.f32 1e-05, %v1730_v17  ;;  %v2194_v59 = vpop.f32.mrf.mxu3  ;;  %v9894_v3 = vadd.f32 %v1970_v22, %v12525_v35  ;;  %v1923_v17 = vsel %vm9889_vm2, %v9859_v1, %v1919_v43  ;;  %v7784_v1 = vld [vmem:[#allocation8 + $0x1b4] sm:$0xf]  ;;  %v8896_v22 = vld [vmem:[#allocation11 + $0x1] ss:$0 sm:$0xff] }
 0x54e   :  { %v1899_v61 = vmul.f32 %v8572_v45, %v1898_v62  ;;  %v7785_v30 = vor.u32 %v8308_v4, %v7784_v1 }
 0x54f   :  { %8573 = vrsqrt.f32 %v9876_v44  ;;  %v2147_v15 = vpop.f32.mrf.mxu1  ;;  %12526 = vst [vmem:[#allocation23_spill] sm:$0xff] %v9894_v3  ;;  %vm1910_vm4 = vweird.f32 %v9876_v44 }
 0x550   :  { %v1903_v55 = vsel %vm1902_vm14, %v8572_v45, %v1899_v61  ;;  %v2234_v19 = vmax.f32 %v2147_v15, 0.0  ;;  %v7765_v45 = vor.u32 %v8301_v52, %v7762_v28  ;;  %v8302_v52 = vld [vmem:[#allocation8 + $0xe4] sm:$0xf0] }
 0x551   :  { %v1937_v18 = vmul.f32 %v1903_v55, %v1745_v25  ;;  %v1747_v25 = vsub.f32 %v9694_v8, %v9824_v54  ;;  %v7772_v54 = vld [vmem:[#allocation8 + $0x12c] sm:$0xf]  ;;  %v8305_v55 = vld [vmem:[#allocation8 + $0x16c] sm:$0xf0] }
 0x552   :  { %v2260_v31 = vpack.c.bf16 %v2234_v19, %v2232_v0  ;;  %3125 = vmatpush.bf16.msrb.mxu3 %v7765_v45  ;;  %v1746_v0 = vsub.f32 %v9687_v53, %v9866_v10  ;;  %v8895_v19 = vld [vmem:[#allocation11] ss:$0 sm:$0xff]  ;;  %v7773_v63 = vor.u32 %v8305_v55, %v7772_v54  ;;  %v12531_v53 = vld [vmem:[#allocation26_spill] sm:$0xff]  ;;  %v2877_v54 = vld [vmem:[#allocation2 + $0x38] sm:$0xff] }
 0x553   :  { %v1954_v58 = vmul.f32 %v9651_v46, %v1937_v18  ;;  %v2233_v46 = vmax.f32 %v2194_v59, 0.0  ;;  %v7753_v59 = vor.u32 %v8298_v16, %v7750_v9  ;;  %v1939_v15 = vmul.f32 %v1923_v17, %v1747_v25  ;;  %v12529_v45 = vld [vmem:[#allocation25_spill] sm:$0xff]  ;;  %v2873_v25 = vld [vmem:[#allocation2 + $0x18] sm:$0xff] }
 0x554   :  { %2386 = vmatmul.bf16.gmra.mxu2 %v2260_v31 }
 0x555   :  { %v8574_v42 = vpop.eup %8573  ;;  %v2196_v13 = vpop.f32.mrf.mxu3  ;;  %v1971_v50 = vadd.f32 %v9656_v27, %v1954_v58  ;;  %v7809_v27 = vor.u32 %v8314_v21, %v7808_v34  ;;  %v1956_v12 = vmul.f32 %v8895_v19, %v1939_v15 }
 0x556   :  { %v1905_v6 = vmul.f32 %v8574_v42, %v9876_v44  ;;  %v2235_v33 = vmax.f32 %v2196_v13, 0.0  ;;  %3126 = vmatpush.bf16.msrb.mxu3 %v7753_v59  ;;  %vm1911_vm3 = vweird.f32 %v8574_v42  ;;  %v7761_v44 = vor.u32 %v8302_v52, %v7760_v24  ;;  %v2872_v59 = vld [vmem:[#allocation2 + $0x10] sm:$0xff] }
 0x557   :  { %v9897_v38 = vadd.f32 %v1971_v50, %v12527_v32  ;;  %3072 = vmatpush.bf16.msra.mxu1 %v7809_v27  ;;  %vm1912_vm5 = vmor %vm1910_vm4, %vm1911_vm3  ;;  %v1973_v7 = vadd.f32 %v8896_v22, %v1956_v12  ;;  %v7748_v50 = vld [vmem:[#allocation8 + $0x1c] sm:$0xf]  ;;  %v2870_v32 = vld [vmem:[#allocation2] sm:$0xff] }
 0x558   :  { %v1906_v60 = vmul.f32 %v8574_v42, %v1905_v6  ;;  %v2261_v62 = vpack.c.bf16 %v2235_v33, %v2233_v46  ;;  %v8299_v6 = vld [vmem:[#allocation8 + $0x5c] sm:$0xf0]  ;;  %v2871_v27 = vld [vmem:[#allocation2 + $0x8] sm:$0xff] }
 0x559   :  { %12528 = vst [vmem:[#allocation24_spill] sm:$0xff] %v9897_v38  ;;  %v2044_v61 = vpack.c.bf16 %v9897_v38, %v9894_v3  ;;  %v9913_v10 = vadd.f32 %v1973_v7, %v12531_v53  ;;  %v7749_v46 = vor.u32 %v8299_v6, %v7748_v50  ;;  %v2878_v7 = vld [vmem:[#allocation2 + $0x40] sm:$0xff] }
 0x55a   :  { %v1907_v51 = vmul.f32 0.5, %v1906_v60  ;;  %2435 = vmatmul.bf16.gmra.mxu0 %v2261_v62  ;;  %v9917_v60 = vpack.c.bf16 %v2871_v27, %v2870_v32  ;;  %v7840_v32 = vld [vmem:[#allocation8 + $0x3dc] sm:$0xf]  ;;  %v8321_v27 = vld [vmem:[#allocation8 + $0x41c] sm:$0xf0] }
 0x55b   :  { %2164 = vmatmul.bf16.gmra.mxu1 %v2044_v61  ;;  %2213 = vmatmul.bf16.gmra.mxu3 %v2044_v61  ;;  %12532 = vst [vmem:[#allocation26_spill] sm:$0xff] %v9913_v10  ;;  %v9921_v61 = vpack.c.bf16 %v2873_v25, %v2872_v59 }
 0x55c   :  { %v1908_v41 = vsub.f32 1.5, %v1907_v51  ;;  %3073 = vmatpush.bf16.msra.mxu1 %v7797_v2  ;;  %v2874_v51 = vld [vmem:[#allocation2 + $0x20] sm:$0xff] }
 0x55d   :  { %v9925_v15 = vpack.c.bf16 %v2875_v48, %v2874_v51  ;;  %v7828_v48 = vld [vmem:[#allocation8 + $0x354] sm:$0xf] }
 0x55e   :  { %v1909_v8 = vmul.f32 %v8574_v42, %v1908_v41 }
 0x560   :  { %v1913_v18 = vsel %vm1912_vm5, %v8574_v42, %v1909_v8  ;;  %3074 = vmatpush.bf16.msra.mxu1 %v7785_v30  ;;  %v2876_v8 = vld [vmem:[#allocation2 + $0x30] sm:$0xff] }
 0x561   :  { %v1938_v31 = vmul.f32 %v1913_v18, %v1746_v0 }
 0x563   :  { %v1955_v58 = vmul.f32 %v8895_v19, %v1938_v31  ;;  %v9929_v31 = vpack.c.bf16 %v2877_v54, %v2876_v8 }
 0x564   :  { %3075 = vmatpush.bf16.msra.mxu1 %v7773_v63 }
 0x565   :  { %v1972_v28 = vadd.f32 %v8896_v22, %v1955_v58 }
 0x567   :  { %v2150_v43 = vpop.f32.mrf.mxu1  ;;  %v9910_v13 = vadd.f32 %v1972_v28, %v12529_v45  ;;  %v2879_v28 = vld [vmem:[#allocation2 + $0x48] sm:$0xff] }
 0x568   :  { %3076 = vmatpush.bf16.msra.mxu1 %v7761_v44  ;;  %v2236_v21 = vmax.f32 %v2150_v43, 0.0  ;;  %v9939_v43 = vpack.c.bf16 %v2879_v28, %v2878_v7 }
 0x569   :  { %12530 = vst [vmem:[#allocation25_spill] sm:$0xff] %v9910_v13  ;;  %v2045_v42 = vpack.c.bf16 %v9913_v10, %v9910_v13 }
 0x56b   :  { %2169 = vmatmul.bf16.gmra.mxu1 %v2045_v42  ;;  %2218 = vmatmul.bf16.gmra.mxu3 %v2045_v42 }
 0x56c   :  { %3077 = vmatpush.bf16.msra.mxu1 %v7749_v46 }
 0x56d   :  { %v2199_v33 = vpop.f32.mrf.mxu3 }
 0x56e   :  { %v2237_v9 = vmax.f32 %v2199_v33, 0.0 }
 0x56f   :  { %v2152_v34 = vpop.f32.mrf.mxu1 }
 0x570   :  { %v2238_v36 = vmax.f32 %v2152_v34, 0.0 }
 0x572   :  { %v2262_v35 = vpack.c.bf16 %v2238_v36, %v2236_v21  ;;  %v2880_v36 = vld [vmem:[#allocation2 + $0x50] sm:$0xff] }
 0x574   :  { %2391 = vmatmul.bf16.gmra.mxu2 %v2262_v35  ;;  %v2881_v35 = vld [vmem:[#allocation2 + $0x58] sm:$0xff] }
 0x575   :  { %v2201_v16 = vpop.f32.mrf.mxu3  ;;  %v9947_v59 = vpack.c.bf16 %v2881_v35, %v2880_v36  ;;  %v7756_v36 = vld [vmem:[#allocation8 + $0x24] sm:$0xf]  ;;  %v8300_v35 = vld [vmem:[#allocation8 + $0x64] sm:$0xf0] }
 0x576   :  { %v2239_v17 = vmax.f32 %v2201_v16, 0.0 }
 0x578   :  { %v2263_v62 = vpack.c.bf16 %v2239_v17, %v2237_v9  ;;  %v7841_v9 = vor.u32 %v8321_v27, %v7840_v32 }
 0x57a   :  { %2440 = vmatmul.bf16.gmra.mxu0 %v2263_v62  ;;  %3168 = vmatpush.bf16.msra.mxu2 %v7841_v9 }
 0x57b   :  { %3127 = vmatmul.bf16.vlgmr.msrb.gmra.mxu3 %v9917_v60  ;;  %3078 = vmatmul.bf16.vlgmr.msra.gmra.mxu1 %v9917_v60 }
 0x58b   :  { %3132 = vmatmul.bf16.gmra.mxu3 %v9921_v61  ;;  %3083 = vmatmul.bf16.gmra.mxu1 %v9921_v61 }
 0x597   :  { %v2155_v40 = vpop.f32.mrf.mxu1 }
 0x598   :  { %v2240_v4 = vmax.f32 %v2155_v40, 0.0  ;;  %v8318_v40 = vld [vmem:[#allocation8 + $0x394] sm:$0xf0] }
 0x59b   :  { %3137 = vmatmul.bf16.gmra.mxu3 %v9925_v15  ;;  %3088 = vmatmul.bf16.gmra.mxu1 %v9925_v15 }
 0x59d   :  { %v2204_v2 = vpop.f32.mrf.mxu3 }
 0x59e   :  { %v2241_v0 = vmax.f32 %v2204_v2, 0.0  ;;  %v7829_v2 = vor.u32 %v8318_v40, %v7828_v48  ;;  %v2885_v48 = vld [vmem:[#allocation2 + $0x78] sm:$0xff] }
 0x59f   :  { %v2157_v1 = vpop.f32.mrf.mxu1 }
 0x5a0   :  { %v2242_v41 = vmax.f32 %v2157_v1, 0.0  ;;  %3169 = vmatpush.bf16.msra.mxu2 %v7829_v2  ;;  %v7816_v1 = vld [vmem:[#allocation8 + $0x2cc] sm:$0xf] }
 0x5a2   :  { %v2264_v30 = vpack.c.bf16 %v2242_v41, %v2240_v4  ;;  %v8315_v4 = vld [vmem:[#allocation8 + $0x30c] sm:$0xf0] }
 0x5a3   :  { %v7817_v8 = vor.u32 %v8315_v4, %v7816_v1 }
 0x5a4   :  { %2396 = vmatmul.bf16.gmra.mxu2 %v2264_v30 }
 0x5a5   :  { %v2206_v55 = vpop.f32.mrf.mxu3  ;;  %3170 = vmatpush.bf16.msra.mxu2 %v7817_v8 }
 0x5a6   :  { %v2243_v19 = vmax.f32 %v2206_v55, 0.0  ;;  %v7804_v55 = vld [vmem:[#allocation8 + $0x244] sm:$0xf] }
 0x5a7   :  { %v2377_v12 = vpop.f32.mrf.mxu2  ;;  %v2426_v18 = vpop.f32.mrf.mxu0 }
 0x5a8   :  { %v2265_v63 = vpack.c.bf16 %v2243_v19, %v2241_v0  ;;  %v9931_v24 = vadd.f32 %v2426_v18, %v2377_v12  ;;  %v8312_v0 = vld [vmem:[#allocation8 + $0x284] sm:$0xf0]  ;;  %v2882_v12 = vld [vmem:[#allocation2 + $0x60] sm:$0xff] }
 0x5a9   :  { %v7805_v19 = vor.u32 %v8312_v0, %v7804_v55  ;;  %v2883_v18 = vld [vmem:[#allocation2 + $0x68] sm:$0xff] }
 0x5aa   :  { %12533 = vst [vmem:[#allocation36_spill] sm:$0xff] %v9931_v24  ;;  %2445 = vmatmul.bf16.gmra.mxu0 %v2265_v63  ;;  %2468 = vadd.xlane.f32.xlu0 %v9931_v24  ;;  %v2516_v45 = vmul.f32 %v9931_v24, %v9931_v24  ;;  %v7792_v63 = vld [vmem:[#allocation8 + $0x1bc] sm:$0xf]  ;;  %v9957_v7 = vpack.c.bf16 %v2883_v18, %v2882_v12  ;;  %v10183_v24 = vld [vmem:[#allocation8 + $0x2ec] sm:$0xf] }
 0x5ab   :  { %3142 = vmatmul.bf16.gmra.mxu3 %v9929_v31  ;;  %3093 = vmatmul.bf16.gmra.mxu1 %v9929_v31 }
 0x5ac   :  { %3171 = vmatpush.bf16.msra.mxu2 %v7805_v19 }
 0x5af   :  { %v2379_v52 = vpop.f32.mrf.mxu2  ;;  %v2428_v58 = vpop.f32.mrf.mxu0 }
 0x5b0   :  { %v9936_v22 = vadd.f32 %v2428_v58, %v2379_v52  ;;  %v8309_v52 = vld [vmem:[#allocation8 + $0x1fc] sm:$0xf0] }
 0x5b1   :  { %v7793_v58 = vor.u32 %v8309_v52, %v7792_v63 }
 0x5b2   :  { %12534 = vst [vmem:[#allocation37_spill] sm:$0xff] %v9936_v22  ;;  %2470 = vadd.xlane.f32.xlu0 %v9936_v22  ;;  %v2517_v46 = vmul.f32 %v9936_v22, %v9936_v22 }
 0x5b3   :  { %3172 = vmatpush.bf16.msra.mxu2 %v7793_v58 }
 0x5b7   :  { %v2160_v44 = vpop.f32.mrf.mxu1 }
 0x5b8   :  { %v2244_v50 = vmax.f32 %v2160_v44, 0.0 }
 0x5ba   :  { %2532 = vadd.xlane.f32.xlu0 %v2516_v45  ;;  %v7780_v45 = vld [vmem:[#allocation8 + $0x134] sm:$0xf] }
 0x5bb   :  { %3147 = vmatmul.bf16.gmra.mxu3 %v9939_v43  ;;  %3098 = vmatmul.bf16.gmra.mxu1 %v9939_v43 }
 0x5bd   :  { %v2209_v53 = vpop.f32.mrf.mxu3 }
 0x5be   :  { %v2245_v17 = vmax.f32 %v2209_v53, 0.0  ;;  %v8306_v53 = vld [vmem:[#allocation8 + $0x174] sm:$0xf0] }
 0x5bf   :  { %v2162_v42 = vpop.f32.mrf.mxu1 }
 0x5c0   :  { %v2246_v6 = vmax.f32 %v2162_v42, 0.0  ;;  %v7781_v42 = vor.u32 %v8306_v53, %v7780_v45 }
 0x5c1   :  { %v2382_v34 = vpop.f32.mrf.mxu2  ;;  %v2431_v21 = vpop.f32.mrf.mxu0 }
 0x5c2   :  { %v2266_v33 = vpack.c.bf16 %v2246_v6, %v2244_v50  ;;  %2534 = vadd.xlane.f32.xlu0 %v2517_v46  ;;  %v9949_v25 = vadd.f32 %v2431_v21, %v2382_v34  ;;  %3173 = vmatpush.bf16.msra.mxu2 %v7781_v42  ;;  %v7768_v50 = vld [vmem:[#allocation8 + $0xac] sm:$0xf]  ;;  %v8303_v6 = vld [vmem:[#allocation8 + $0xec] sm:$0xf0] }
 0x5c3   :  { %v7769_v46 = vor.u32 %v8303_v6, %v7768_v50 }
 0x5c4   :  { %2401 = vmatmul.bf16.gmra.mxu2 %v2266_v33  ;;  %12535 = vst [vmem:[#allocation38_spill] sm:$0xff] %v9949_v25  ;;  %v2518_v44 = vmul.f32 %v9949_v25, %v9949_v25 }
 0x5c5   :  { %v2211_v16 = vpop.f32.mrf.mxu3 }
 0x5c6   :  { %v2247_v62 = vmax.f32 %v2211_v16, 0.0  ;;  %3174 = vmatpush.bf16.msra.mxu2 %v7769_v46  ;;  %v7757_v16 = vor.u32 %v8300_v35, %v7756_v36 }
 0x5c8   :  { %v2267_v51 = vpack.c.bf16 %v2247_v62, %v2245_v17 }
 0x5c9   :  { %v2384_v41 = vpop.f32.mrf.mxu2  ;;  %v2433_v30 = vpop.f32.mrf.mxu0 }
 0x5ca   :  { %2450 = vmatmul.bf16.gmra.mxu0 %v2267_v51  ;;  %2472 = vadd.xlane.f32.xlu0 %v9949_v25  ;;  %v9954_v54 = vadd.f32 %v2433_v30, %v2384_v41  ;;  %v2884_v51 = vld [vmem:[#allocation2 + $0x70] sm:$0xff] }
 0x5cb   :  { %3152 = vmatmul.bf16.gmra.mxu3 %v9947_v59  ;;  %3103 = vmatmul.bf16.gmra.mxu1 %v9947_v59  ;;  %v9965_v4 = vpack.c.bf16 %v2885_v48, %v2884_v51  ;;  %v10168_v25 = vld [vmem:[#allocation8 + $0x374] sm:$0xf] }
 0x5cc   :  { %12536 = vst [vmem:[#allocation39_spill] sm:$0xff] %v9954_v54  ;;  %v2519_v21 = vmul.f32 %v9954_v54, %v9954_v54  ;;  %3175 = vmatpush.bf16.msra.mxu2 %v7757_v16 }
 0x5d2   :  { %2474 = vadd.xlane.f32.xlu0 %v9954_v54 }
 0x5d7   :  { %v2387_v9 = vpop.f32.mrf.mxu2  ;;  %v2436_v17 = vpop.f32.mrf.mxu0 }
 0x5d8   :  { %v2165_v28 = vpop.f32.mrf.mxu1  ;;  %v9967_v41 = vadd.f32 %v2436_v17, %v2387_v9 }
 0x5d9   :  { %v2248_v32 = vmax.f32 %v2165_v28, 0.0 }
 0x5da   :  { %2536 = vadd.xlane.f32.xlu0 %v2518_v44  ;;  %12537 = vst [vmem:[#allocation40_spill] sm:$0xff] %v9967_v41  ;;  %v2520_v53 = vmul.f32 %v9967_v41, %v9967_v41 }
 0x5db   :  { %3157 = vmatmul.bf16.gmra.mxu3 %v9957_v7  ;;  %3108 = vmatmul.bf16.gmra.mxu1 %v9957_v7 }
 0x5de   :  { %v2214_v33 = vpop.f32.mrf.mxu3 }
 0x5df   :  { %v2249_v2 = vmax.f32 %v2214_v33, 0.0  ;;  %v2389_v55 = vpop.f32.mrf.mxu2  ;;  %v2438_v0 = vpop.f32.mrf.mxu0 }
 0x5e0   :  { %v2167_v34 = vpop.f32.mrf.mxu1  ;;  %v9972_v12 = vadd.f32 %v2438_v0, %v2389_v55 }
 0x5e1   :  { %v2250_v27 = vmax.f32 %v2167_v34, 0.0 }
 0x5e2   :  { %2538 = vadd.xlane.f32.xlu0 %v2519_v21  ;;  %12538 = vst [vmem:[#allocation41_spill] sm:$0xff] %v9972_v12 }
 0x5e3   :  { %v2268_v62 = vpack.c.bf16 %v2250_v27, %v2248_v32 }
 0x5e5   :  { %2406 = vmatmul.bf16.gmra.mxu2 %v2268_v62 }
 0x5e6   :  { %v2216_v40 = vpop.f32.mrf.mxu3 }
 0x5e7   :  { %v2251_v1 = vmax.f32 %v2216_v40, 0.0 }
 0x5e8   :  { %v2170_v30 = vpop.f32.mrf.mxu1 }
 0x5e9   :  { %v2269_v8 = vpack.c.bf16 %v2251_v1, %v2249_v2  ;;  %v2252_v63 = vmax.f32 %v2170_v30, 0.0 }
 0x5ea   :  { %2476 = vadd.xlane.f32.xlu0 %v9967_v41 }
 0x5eb   :  { %2455 = vmatmul.bf16.gmra.mxu0 %v2269_v8  ;;  %3162 = vmatmul.bf16.gmra.mxu3 %v9965_v4 }
 0x5ec   :  { %3113 = vmatmul.bf16.gmra.mxu1 %v9965_v4 }
 0x5ee   :  { %v2219_v19 = vpop.f32.mrf.mxu3 }
 0x5ef   :  { %v2253_v44 = vmax.f32 %v2219_v19, 0.0 }
 0x5f0   :  { %v2172_v18 = vpop.f32.mrf.mxu1 }
 0x5f1   :  { %v2254_v52 = vmax.f32 %v2172_v18, 0.0 }
 0x5f2   :  { %2478 = vadd.xlane.f32.xlu0 %v9972_v12 }
 0x5f3   :  { %v2270_v58 = vpack.c.bf16 %v2254_v52, %v2252_v63 }
 0x5f5   :  { %2411 = vmatmul.bf16.gmra.mxu2 %v2270_v58 }
 0x5f6   :  { %v2221_v28 = vpop.f32.mrf.mxu3 }
 0x5f7   :  { %v2255_v45 = vmax.f32 %v2221_v28, 0.0  ;;  %v2392_v50 = vpop.f32.mrf.mxu2  ;;  %v2441_v6 = vpop.f32.mrf.mxu0 }
 0x5f8   :  { %v9977_v34 = vadd.f32 %v2441_v6, %v2392_v50 }
 0x5f9   :  { %v2271_v42 = vpack.c.bf16 %v2255_v45, %v2253_v44 }
 0x5fa   :  { %2540 = vadd.xlane.f32.xlu0 %v2520_v53  ;;  %12539 = vst [vmem:[#allocation42_spill] sm:$0xff] %v9977_v34 }
 0x5fb   :  { %2460 = vmatmul.bf16.gmra.mxu0 %v2271_v42 }
 0x5fe   :  { %v3128_v46 = vpop.f32.mrf.mxu3 }
 0x5ff   :  { %v3329_v33 = vmul.f32 1.442695, %v3128_v46  ;;  %v2394_v21 = vpop.f32.mrf.mxu2  ;;  %v2443_v36 = vpop.f32.mrf.mxu0  ;;  %v3313_v35 = vadd.f32 1.0, %v3128_v46  ;;  %vm3297_vm6 = vcmp.gt.f32.partialorder %v3128_v46, 0.0 }
 0x600   :  { %v9981_v9 = vadd.f32 %v2443_v36, %v2394_v21 }
 0x601   :  { %8575 = vpow2.f32 %v3329_v33 }
 0x602   :  { %2480 = vadd.xlane.f32.xlu0 %v9977_v34  ;;  %12540 = vst [vmem:[#allocation43_spill] sm:$0xff] %v9981_v9 }
 0x605   :  { %3176 = vmatmul.bf16.vlgmr.msra.gmra.mxu2 %v9917_v60  ;;  %v2522_v60 = vmul.f32 %v9977_v34, %v9977_v34 }
 0x606   :  { %v3130_v32 = vpop.f32.mrf.mxu3 }
 0x607   :  { %v8576_v27 = vpop.eup %8575  ;;  %v3331_v16 = vmul.f32 1.442695, %v3130_v32  ;;  %v3314_v62 = vadd.f32 1.0, %v3130_v32  ;;  %vm3298_vm7 = vcmp.gt.f32.partialorder %v3130_v32, 0.0 }
 0x608   :  { %v3361_v17 = vsel %vm3297_vm6, %v3313_v35, %v8576_v27 }
 0x609   :  { %8577 = vpow2.f32 %v3331_v16  ;;  %v3377_v51 = vpack.c.bf16 %v3361_v17, %v3361_v17 }
 0x60a   :  { %2482 = vadd.xlane.f32.xlu0 %v9981_v9 }
 0x60b   :  { %v3417_v8 = vunpack.c.l.b16 %v3377_v51 }
 0x60e   :  { %v3133_v48 = vpop.f32.mrf.mxu3 }
 0x60f   :  { %v8578_v40 = vpop.eup %8577  ;;  %v3333_v2 = vmul.f32 1.442695, %v3133_v48  ;;  %v3315_v19 = vadd.f32 1.0, %v3133_v48  ;;  %vm3299_vm8 = vcmp.gt.f32.partialorder %v3133_v48, 0.0 }
 0x610   :  { %v3362_v1 = vsel %vm3298_vm7, %v3314_v62, %v8578_v40 }
 0x611   :  { %8579 = vpow2.f32 %v3333_v2  ;;  %v3378_v30 = vpack.c.bf16 %v3362_v1, %v3362_v1  ;;  %v3997_v55 = vadd.f32 %v3362_v1, %v3361_v17  ;;  %v9991_v1 = vpop.f32.mrf.mxu1 }
 0x612   :  { %2544 = vadd.xlane.f32.xlu0 %v2522_v60 }
 0x613   :  { %v3418_v0 = vunpack.c.l.b16 %v3378_v30 }
 0x615   :  { %3181 = vmatmul.bf16.gmra.mxu2 %v9921_v61  ;;  %v3425_v18 = vpack.c.b16 %v3418_v0, %v3417_v8 }
 0x616   :  { %v3135_v63 = vpop.f32.mrf.mxu3 }
 0x617   :  { %v8580_v52 = vpop.eup %8579  ;;  %v3335_v58 = vmul.f32 1.442695, %v3135_v63  ;;  %3433 = vxpose.xlu2.c.b16.start [1/4] (short) %v3425_v18, 128  ;;  %v3316_v45 = vadd.f32 1.0, %v3135_v63  ;;  %vm3300_vm9 = vcmp.gt.f32.partialorder %v3135_v63, 0.0 }
 0x618   :  { %v3363_v28 = vsel %vm3299_vm8, %v3315_v19, %v8580_v52 }
 0x619   :  { %8581 = vpow2.f32 %v3335_v58  ;;  %v3998_v44 = vadd.f32 %v3997_v55, %v3363_v28  ;;  %v3379_v53 = vpack.c.bf16 %v3363_v28, %v3363_v28 }
 0x61b   :  { %v3419_v36 = vunpack.c.l.b16 %v3379_v53 }
 0x61e   :  { %v3138_v42 = vpop.f32.mrf.mxu3 }
 0x61f   :  { %v8582_v50 = vpop.eup %8581  ;;  %v3337_v6 = vmul.f32 1.442695, %v3138_v42  ;;  %v3317_v35 = vadd.f32 1.0, %v3138_v42  ;;  %vm3301_vm10 = vcmp.gt.f32.partialorder %v3138_v42, 0.0 }
 0x620   :  { %v3364_v46 = vsel %vm3300_vm9, %v3316_v45, %v8582_v50  ;;  %vm3217_vm9 = vcmp.gt.f32.partialorder %v9991_v1, 0.0 }
 0x621   :  { %8583 = vpow2.f32 %v3337_v6  ;;  %v3999_v33 = vadd.f32 %v3998_v44, %v3364_v46  ;;  %v3380_v21 = vpack.c.bf16 %v3364_v46, %v3364_v46  ;;  %v9997_v6 = vpop.f32.mrf.mxu1 }
 0x623   :  { %v3420_v61 = vunpack.c.l.b16 %v3380_v21 }
 0x625   :  { %3186 = vmatmul.bf16.gmra.mxu2 %v9925_v15  ;;  %v3426_v32 = vpack.c.b16 %v3420_v61, %v3419_v36 }
 0x626   :  { %v3140_v27 = vpop.f32.mrf.mxu3 }
 0x627   :  { %v8584_v16 = vpop.eup %8583  ;;  %v3339_v17 = vmul.f32 1.442695, %v3140_v27  ;;  %3434 = vxpose.xlu2.c.b16.cont [2/4] (short) %v3426_v32, 128  ;;  %v2397_v62 = vpop.f32.mrf.mxu2  ;;  %v3318_v60 = vadd.f32 1.0, %v3140_v27  ;;  %vm3302_vm11 = vcmp.gt.f32.partialorder %v3140_v27, 0.0 }
 0x628   :  { %v2446_v51 = vpop.f32.mrf.mxu0  ;;  %v3365_v48 = vsel %vm3301_vm10, %v3317_v35, %v8584_v16  ;;  %vm3218_vm10 = vcmp.gt.f32.partialorder %v9997_v6, 0.0 }
 0x629   :  { %v9988_v40 = vadd.f32 %v2446_v51, %v2397_v62  ;;  %v4000_v2 = vadd.f32 %v3999_v33, %v3365_v48  ;;  %8585 = vpow2.f32 %v3339_v17  ;;  %v3381_v30 = vpack.c.bf16 %v3365_v48, %v3365_v48  ;;  %v10003_v62 = vpop.f32.mrf.mxu1 }
 0x62b   :  { %12541 = vst [vmem:[#allocation44_spill] sm:$0xff] %v9988_v40  ;;  %2484 = vadd.xlane.f32.xlu0 %v9988_v40  ;;  %v3421_v28 = vunpack.c.l.b16 %v3381_v30  ;;  %v2524_v21 = vmul.f32 %v9988_v40, %v9988_v40  ;;  %v10141_v40 = vld [vmem:[#allocation8 + $0x110] sm:$0xf] }
 0x62c   :  { %v12428_v56 = vunpack.c.l.bf16 %v10141_v40 }
 0x62e   :  { %v3143_v15 = vpop.f32.mrf.mxu3 }
 0x62f   :  { %v8586_v8 = vpop.eup %8585  ;;  %v3341_v55 = vmul.f32 1.442695, %v3143_v15  ;;  %v2399_v0 = vpop.f32.mrf.mxu2  ;;  %v3319_v45 = vadd.f32 1.0, %v3143_v15  ;;  %vm3303_vm12 = vcmp.gt.f32.partialorder %v3143_v15, 0.0 }
 0x630   :  { %v2448_v19 = vpop.f32.mrf.mxu0  ;;  %v3366_v18 = vsel %vm3302_vm11, %v3318_v60, %v8586_v8  ;;  %vm3219_vm11 = vcmp.gt.f32.partialorder %v10003_v62, 0.0 }
 0x631   :  { %v9993_v63 = vadd.f32 %v2448_v19, %v2399_v0  ;;  %8587 = vpow2.f32 %v3341_v55  ;;  %v4001_v52 = vadd.f32 %v4000_v2, %v3366_v18  ;;  %v3382_v58 = vpack.c.bf16 %v3366_v18, %v3366_v18 }
 0x633   :  { %12542 = vst [vmem:[#allocation45_spill] sm:$0xff] %v9993_v63  ;;  %2486 = vadd.xlane.f32.xlu0 %v9993_v63  ;;  %v3422_v44 = vunpack.c.l.b16 %v3382_v58  ;;  %v2525_v16 = vmul.f32 %v9993_v63, %v9993_v63 }
 0x635   :  { %3191 = vmatmul.bf16.gmra.mxu2 %v9929_v31  ;;  %v3427_v53 = vpack.c.b16 %v3422_v44, %v3421_v28  ;;  %v10010_v28 = vpop.f32.mrf.mxu1 }
 0x636   :  { %v3145_v42 = vpop.f32.mrf.mxu3 }
 0x637   :  { %v8588_v50 = vpop.eup %8587  ;;  %v3343_v46 = vmul.f32 1.442695, %v3145_v42  ;;  %3435 = vxpose.xlu2.c.b16.cont [3/4] (short) %v3427_v53, 128  ;;  %v3320_v61 = vadd.f32 1.0, %v3145_v42  ;;  %vm3304_vm13 = vcmp.gt.f32.partialorder %v3145_v42, 0.0 }
 0x638   :  { %v3367_v33 = vsel %vm3303_vm12, %v3319_v45, %v8588_v50  ;;  %vm3220_vm12 = vcmp.gt.f32.partialorder %v10010_v28, 0.0 }
 0x639   :  { %v4002_v36 = vadd.f32 %v4001_v52, %v3367_v33  ;;  %8589 = vpow2.f32 %v3343_v46  ;;  %v3383_v35 = vpack.c.bf16 %v3367_v33, %v3367_v33 }
 0x63b   :  { %2548 = vadd.xlane.f32.xlu0 %v2524_v21  ;;  %v3423_v48 = vunpack.c.l.b16 %v3383_v35 }
 0x63e   :  { %v3148_v32 = vpop.f32.mrf.mxu3 }
 0x63f   :  { %v8590_v27 = vpop.eup %8589  ;;  %v3345_v31 = vmul.f32 1.442695, %v3148_v32  ;;  %v3321_v15 = vadd.f32 1.0, %v3148_v32  ;;  %vm3305_vm14 = vcmp.gt.f32.partialorder %v3148_v32, 0.0 }
 0x640   :  { %v3368_v17 = vsel %vm3304_vm13, %v3320_v61, %v8590_v27 }
 0x641   :  { %8591 = vpow2.f32 %v3345_v31  ;;  %v3384_v51 = vpack.c.bf16 %v3368_v17, %v3368_v17  ;;  %v10005_v2 = vadd.f32 %v4002_v36, %v3368_v17  ;;  %v10016_v31 = vpop.f32.mrf.mxu1 }
 0x642   :  { %vm3221_vm13 = vcmp.gt.f32.partialorder %v10016_v31, 0.0 }
 0x643   :  { %2550 = vadd.xlane.f32.xlu0 %v2525_v16  ;;  %v3424_v60 = vunpack.c.l.b16 %v3384_v51 }
 0x645   :  { %3196 = vmatmul.bf16.gmra.mxu2 %v9939_v43  ;;  %v3428_v30 = vpack.c.b16 %v3424_v60, %v3423_v48 }
 0x646   :  { %v3150_v8 = vpop.f32.mrf.mxu3 }
 0x647   :  { %v8592_v55 = vpop.eup %8591  ;;  %v3347_v0 = vmul.f32 1.442695, %v3150_v8  ;;  %3436 = vxpose.xlu2.c.b16.end [4/4] (short) %v3428_v30, 128  ;;  %v2402_v19 = vpop.f32.mrf.mxu2  ;;  %v3322_v44 = vadd.f32 1.0, %v3150_v8  ;;  %vm3306_vm15 = vcmp.gt.f32.partialorder %v3150_v8, 0.0 }
 0x648   :  { %v2451_v18 = vpop.f32.mrf.mxu0  ;;  %v3369_v58 = vsel %vm3305_vm14, %v3321_v15, %v8592_v55 }
 0x649   :  { %8593 = vpow2.f32 %v3347_v0  ;;  %v10008_v52 = vadd.f32 %v2451_v18, %v2402_v19  ;;  %v3385_v43 = vpack.c.bf16 %v3369_v58, %v3369_v58  ;;  %v10021_v18 = vpop.f32.mrf.mxu1 }
 0x64a   :  { %vm3222_vm14 = vcmp.gt.f32.partialorder %v10021_v18, 0.0 }
 0x64b   :  { %12543 = vst [vmem:[#allocation46_spill] sm:$0xff] %v10008_v52  ;;  %2488 = vadd.xlane.f32.xlu0 %v10008_v52  ;;  %v3554_v35 = vunpack.c.l.b16 %v3385_v43  ;;  %v2526_v15 = vmul.f32 %v10008_v52, %v10008_v52 }
 0x64e   :  { %v3153_v45 = vpop.f32.mrf.mxu3 }
 0x64f   :  { %v8594_v53 = vpop.eup %8593  ;;  %v3349_v42 = vmul.f32 1.442695, %v3153_v45  ;;  %v2404_v50 = vpop.f32.mrf.mxu2  ;;  %v3323_v27 = vadd.f32 1.0, %v3153_v45  ;;  %vm3307_vm1 = vcmp.gt.f32.partialorder %v3153_v45, 0.0 }
 0x650   :  { %v2453_v46 = vpop.f32.mrf.mxu0  ;;  %v3370_v33 = vsel %vm3306_vm15, %v3322_v44, %v8594_v53 }
 0x651   :  { %v10013_v21 = vadd.f32 %v2453_v46, %v2404_v50  ;;  %8595 = vpow2.f32 %v3349_v42  ;;  %v4010_v36 = vadd.f32 %v3370_v33, %v3369_v58  ;;  %v3386_v61 = vpack.c.bf16 %v3370_v33, %v3370_v33 }
 0x653   :  { %12544 = vst [vmem:[#allocation47_spill] sm:$0xff] %v10013_v21  ;;  %2490 = vadd.xlane.f32.xlu0 %v10013_v21  ;;  %v3555_v32 = vunpack.c.l.b16 %v3386_v61  ;;  %v2527_v44 = vmul.f32 %v10013_v21, %v10013_v21 }
 0x655   :  { %3201 = vmatmul.bf16.gmra.mxu2 %v9947_v59  ;;  %v3562_v16 = vpack.c.b16 %v3555_v32, %v3554_v35 }
 0x656   :  { %v3155_v17 = vpop.f32.mrf.mxu3 }
 0x657   :  { %v8596_v51 = vpop.eup %8595  ;;  %v3351_v48 = vmul.f32 1.442695, %v3155_v17  ;;  %3570 = vxpose.xlu1.c.b16.start [1/4] (short) %v3562_v16, 128  ;;  %v3324_v8 = vadd.f32 1.0, %v3155_v17  ;;  %vm3308_vm2 = vcmp.gt.f32.partialorder %v3155_v17, 0.0  ;;  %v10026_v16 = vpop.f32.mrf.mxu1 }
 0x658   :  { %v3371_v60 = vsel %vm3307_vm1, %v3323_v27, %v8596_v51  ;;  %vm3223_vm15 = vcmp.gt.f32.partialorder %v10026_v16, 0.0 }
 0x659   :  { %v4011_v30 = vadd.f32 %v4010_v36, %v3371_v60  ;;  %8597 = vpow2.f32 %v3351_v48  ;;  %v3387_v55 = vpack.c.bf16 %v3371_v60, %v3371_v60 }
 0x65b   :  { %2552 = vadd.xlane.f32.xlu0 %v2526_v15  ;;  %v3556_v43 = vunpack.c.l.b16 %v3387_v55 }
 0x65e   :  { %v3158_v0 = vpop.f32.mrf.mxu3 }
 0x65f   :  { %v8598_v19 = vpop.eup %8597  ;;  %v3353_v59 = vmul.f32 1.442695, %v3158_v0  ;;  %v3325_v50 = vadd.f32 1.0, %v3158_v0  ;;  %vm3309_vm3 = vcmp.gt.f32.partialorder %v3158_v0, 0.0 }
 0x660   :  { %v3372_v58 = vsel %vm3308_vm2, %v3324_v8, %v8598_v19 }
 0x661   :  { %v3388_v45 = vpack.c.bf16 %v3372_v58, %v3372_v58  ;;  %8599 = vpow2.f32 %v3353_v59  ;;  %v4012_v53 = vadd.f32 %v4011_v30, %v3372_v58 }
 0x663   :  { %2554 = vadd.xlane.f32.xlu0 %v2527_v44  ;;  %v3557_v42 = vunpack.c.l.b16 %v3388_v45 }
 0x665   :  { %3206 = vmatmul.bf16.gmra.mxu2 %v9957_v7  ;;  %v3563_v46 = vpack.c.b16 %v3557_v42, %v3556_v43  ;;  %v10033_v43 = vpop.f32.mrf.mxu1 }
 0x666   :  { %v3160_v33 = vpop.f32.mrf.mxu3  ;;  %vm3224_vm1 = vcmp.gt.f32.partialorder %v10033_v43, 0.0 }
 0x667   :  { %v8600_v36 = vpop.eup %8599  ;;  %v3355_v61 = vmul.f32 1.442695, %v3160_v33  ;;  %3571 = vxpose.xlu1.c.b16.cont [2/4] (short) %v3563_v46, 128  ;;  %v3326_v60 = vadd.f32 1.0, %v3160_v33  ;;  %vm3310_vm4 = vcmp.gt.f32.partialorder %v3160_v33, 0.0 }
 0x668   :  { %v3373_v35 = vsel %vm3309_vm3, %v3325_v50, %v8600_v36  ;;  %v2407_v32 = vpop.f32.mrf.mxu2  ;;  %v2456_v27 = vpop.f32.mrf.mxu0 }
 0x669   :  { %v4013_v17 = vadd.f32 %v4012_v53, %v3373_v35  ;;  %8601 = vpow2.f32 %v3355_v61  ;;  %v10028_v51 = vadd.f32 %v2456_v27, %v2407_v32  ;;  %v3389_v48 = vpack.c.bf16 %v3373_v35, %v3373_v35 }
 0x66b   :  { %12545 = vst [vmem:[#allocation48_spill] sm:$0xff] %v10028_v51  ;;  %2492 = vadd.xlane.f32.xlu0 %v10028_v51  ;;  %v3558_v8 = vunpack.c.l.b16 %v3389_v48  ;;  %v2528_v32 = vmul.f32 %v10028_v51, %v10028_v51 }
 0x66d   :  { %v3099_v27 = vpop.f32.mrf.mxu1 }
 0x66e   :  { %v3163_v7 = vpop.f32.mrf.mxu3  ;;  %vm3225_vm7 = vcmp.gt.f32.partialorder %v3099_v27, 0.0 }
 0x66f   :  { %v8602_v30 = vpop.eup %8601  ;;  %v3357_v15 = vmul.f32 1.442695, %v3163_v7  ;;  %v3327_v53 = vadd.f32 1.0, %v3163_v7  ;;  %vm3311_vm5 = vcmp.gt.f32.partialorder %v3163_v7, 0.0 }
 0x670   :  { %v3374_v55 = vsel %vm3310_vm4, %v3326_v60, %v8602_v30  ;;  %v2409_v0 = vpop.f32.mrf.mxu2  ;;  %v2458_v19 = vpop.f32.mrf.mxu0 }
 0x671   :  { %v3390_v59 = vpack.c.bf16 %v3374_v55, %v3374_v55  ;;  %8603 = vpow2.f32 %v3357_v15  ;;  %v4014_v58 = vadd.f32 %v4013_v17, %v3374_v55  ;;  %v10031_v44 = vadd.f32 %v2458_v19, %v2409_v0 }
 0x673   :  { %12546 = vst [vmem:[#allocation49_spill] sm:$0xff] %v10031_v44  ;;  %v3559_v45 = vunpack.c.l.b16 %v3390_v59  ;;  %2494 = vadd.xlane.f32.xlu0 %v10031_v44  ;;  %v2529_v55 = vmul.f32 %v10031_v44, %v10031_v44 }
 0x675   :  { %3211 = vmatmul.bf16.gmra.mxu2 %v9965_v4  ;;  %v3564_v42 = vpack.c.b16 %v3559_v45, %v3558_v8  ;;  %v3265_v45 = vmul.f32 1.442695, %v3099_v27 }
 0x676   :  { %v3165_v50 = vpop.f32.mrf.mxu3 }
 0x677   :  { %v8604_v46 = vpop.eup %8603  ;;  %v3359_v33 = vmul.f32 1.442695, %v3165_v50  ;;  %3572 = vxpose.xlu1.c.b16.cont [3/4] (short) %v3564_v42, 128  ;;  %v3328_v17 = vadd.f32 1.0, %v3165_v50  ;;  %vm3312_vm6 = vcmp.gt.f32.partialorder %v3165_v50, 0.0 }
 0x678   :  { %v3375_v36 = vsel %vm3311_vm5, %v3327_v53, %v8604_v46  ;;  %v2412_v61 = vpop.f32.mrf.mxu2  ;;  %v3101_v53 = vpop.f32.mrf.mxu1 }
 0x679   :  { %v4015_v35 = vadd.f32 %v4014_v58, %v3375_v36  ;;  %8605 = vpow2.f32 %v3359_v33  ;;  %v3391_v48 = vpack.c.bf16 %v3375_v36, %v3375_v36  ;;  %v2461_v58 = vpop.f32.mrf.mxu0  ;;  %v3267_v46 = vmul.f32 1.442695, %v3101_v53 }
 0x67a   :  { %8607 = vpow2.f32 %v3265_v45  ;;  %vm3226_vm8 = vcmp.gt.f32.partialorder %v3101_v53, 0.0 }
 0x67b   :  { %2556 = vadd.xlane.f32.xlu0 %v2528_v32  ;;  %v3560_v30 = vunpack.c.l.b16 %v3391_v48  ;;  %v10041_v32 = vadd.f32 %v2461_v58, %v2412_v61  ;;  %8609 = vpow2.f32 %v3267_v46  ;;  %v3241_v48 = vadd.f32 1.0, %v3099_v27 }
 0x67d   :  { %12547 = vst [vmem:[#allocation50_spill] sm:$0xff] %v10041_v32 }
 0x67f   :  { %v8606_v60 = vpop.eup %8605 }
 0x680   :  { %v3376_v7 = vsel %vm3312_vm6, %v3328_v17, %v8606_v60  ;;  %v2414_v4 = vpop.f32.mrf.mxu2  ;;  %v8608_v17 = vpop.eup %8607 }
 0x681   :  { %v3392_v15 = vpack.c.bf16 %v3376_v7, %v3376_v7  ;;  %v4016_v8 = vadd.f32 %v4015_v35, %v3376_v7  ;;  %v2463_v60 = vpop.f32.mrf.mxu0  ;;  %v3242_v7 = vadd.f32 1.0, %v3101_v53 }
 0x683   :  { %v4017_v0 = vrot.slane %v4016_v8, 4  ;;  %v3561_v19 = vunpack.c.l.b16 %v3392_v15  ;;  %2558 = vadd.xlane.f32.xlu0 %v2529_v55  ;;  %v8610_v15 = vpop.eup %8609  ;;  %v10046_v55 = vadd.f32 %v2463_v60, %v2414_v4  ;;  %v2530_v4 = vmul.f32 %v10041_v32, %v10041_v32 }
 0x684   :  { %v10050_v61 = vsel %vm3226_vm8, %v3242_v7, %v8610_v15 }
 0x685   :  { %v4018_v59 = vadd.f32 %v4017_v0, %v4016_v8  ;;  %v3565_v42 = vpack.c.b16 %v3561_v19, %v3560_v30  ;;  %12549 = vst [vmem:[#allocation52_spill] sm:$0xff] %v10046_v55  ;;  %v10048_v0 = vsel %vm3225_vm7, %v3241_v48, %v8608_v17  ;;  %v2531_v53 = vmul.f32 %v10046_v55, %v10046_v55 }
 0x687   :  { %v4019_v33 = vrot.slane %v4018_v59, 2  ;;  %3573 = vxpose.xlu1.c.b16.end [4/4] (short) %v3565_v42, 128 }
 0x688   :  { %v3177_v50 = vpop.f32.mrf.mxu2 }
 0x689   :  { %v4020_v36 = vadd.f32 %v4019_v33, %v4018_v59  ;;  %v3393_v51 = vpack.c.bf16 %v3177_v50, %v3177_v50 }
 0x68b   :  { %2496 = vadd.xlane.f32.xlu0 %v10041_v32  ;;  %v4021_v35 = vrot.slane %v4020_v36, 1 }
 0x68d   :  { %v10044_v8 = vadd.f32 %v4021_v35, %v4020_v36 }
 0x68f   :  { %12548 = vst [vmem:[#allocation51_spill] sm:$0xff] %v10044_v8  ;;  %v10055_v19 = vmul.f32 %v10044_v8, %v10048_v0  ;;  %v10059_v59 = vmul.f32 %v10044_v8, %v10050_v61 }
 0x690   :  { %v3179_v30 = vpop.f32.mrf.mxu2 }
 0x691   :  { %12550 = vst [vmem:[#allocation53_spill] sm:$0xff] %v10055_v19  ;;  %v3394_v38 = vpack.c.bf16 %v3179_v30, %v3179_v30 }
 0x692   :  { %12551 = vst [vmem:[#allocation54_spill] sm:$0xff] %v10059_v59 }
 0x693   :  { %2498 = vadd.xlane.f32.xlu0 %v10046_v55 }
 0x698   :  { %v3182_v27 = vpop.f32.mrf.mxu2 }
 0x699   :  { %v3395_v32 = vpack.c.bf16 %v3182_v27, %v3182_v27 }
 0x69b   :  { %2560 = vadd.xlane.f32.xlu0 %v2530_v4  ;;  %v3459_v23 = vunpack.c.l.b16 %v3395_v32 }
 0x6a0   :  { %v3184_v45 = vpop.f32.mrf.mxu2 }
 0x6a1   :  { %v3396_v58 = vpack.c.bf16 %v3184_v45, %v3184_v45 }
 0x6a3   :  { %2562 = vadd.xlane.f32.xlu0 %v2531_v53  ;;  %v3460_v55 = vunpack.c.l.b16 %v3396_v58 }
 0x6a5   :  { %v3466_v44 = vpack.c.b16 %v3460_v55, %v3459_v23  ;;  %v2521_v23 = vmul.f32 %v9972_v12, %v9972_v12 }
 0x6a8   :  { %v3187_v42 = vpop.f32.mrf.mxu2 }
 0x6a9   :  { %v3397_v60 = vpack.c.bf16 %v3187_v42, %v3187_v42 }
 0x6ab   :  { %v3461_v4 = vunpack.c.l.b16 %v3397_v60 }
 0x6b0   :  { %v3189_v46 = vpop.f32.mrf.mxu2 }
 0x6b1   :  { %v3398_v17 = vpack.c.bf16 %v3189_v46, %v3189_v46  ;;  %v3457_v46 = vunpack.c.l.b16 %v3393_v51 }
 0x6b3   :  { %v3462_v13 = vunpack.c.l.b16 %v3398_v17 }
 0x6b5   :  { %v3467_v53 = vpack.c.b16 %v3462_v13, %v3461_v4 }
 0x6b8   :  { %v3192_v33 = vpop.f32.mrf.mxu2  ;;  %v3441_v45 = vpop.trf.xlu2 }
 0x6b9   :  { %v3399_v36 = vpack.c.bf16 %v3192_v33, %v3192_v33  ;;  %v3458_v33 = vunpack.c.l.b16 %v3394_v38 }
 0x6bb   :  { %v3463_v7 = vunpack.c.l.b16 %v3399_v36  ;;  %v3465_v36 = vpack.c.b16 %v3458_v33, %v3457_v46 }
 0x6c0   :  { %v3194_v35 = vpop.f32.mrf.mxu2 }
 0x6c1   :  { %v3400_v48 = vpack.c.bf16 %v3194_v35, %v3194_v35 }
 0x6c3   :  { %v3464_v15 = vunpack.c.l.b16 %v3400_v48 }
 0x6c5   :  { %v3468_v10 = vpack.c.b16 %v3464_v15, %v3463_v7 }
 0x6c7   :  { %3501 = vmatpush.bf16.msra.mxu0 %v3468_v10 }
 0x6c8   :  { %v3197_v3 = vpop.f32.mrf.mxu2  ;;  %v3442_v10 = vpop.trf.xlu2 }
 0x6c9   :  { %v3401_v46 = vpack.c.bf16 %v3197_v3, %v3197_v3 }
 0x6cb   :  { %3502 = vmatpush.bf16.msra.mxu0 %v3467_v53 }
 0x6cf   :  { %3503 = vmatpush.bf16.msra.mxu0 %v3466_v44 }
 0x6d0   :  { %v3199_v42 = vpop.f32.mrf.mxu2 }
 0x6d3   :  { %3504 = vmatpush.bf16.msra.mxu0 %v3465_v36  ;;  %v3402_v36 = vpack.c.bf16 %v3199_v42, %v3199_v42  ;;  %v2523_v42 = vmul.f32 %v9981_v9, %v9981_v9 }
 0x6d6   :  { %7842 = vmatmul.msk.bf16.vlgmr.msra.gmra.mxu0 %vm754_vm0, %v3441_v45 }
 0x6d8   :  { %v3202_v27 = vpop.f32.mrf.mxu2  ;;  %v3443_v50 = vpop.trf.xlu2 }
 0x6d9   :  { %v3403_v48 = vpack.c.bf16 %v3202_v27, %v3202_v27 }
 0x6db   :  { %v3596_v45 = vunpack.c.l.b16 %v3403_v48 }
 0x6e0   :  { %v3204_v35 = vpop.f32.mrf.mxu2 }
 0x6e1   :  { %v3404_v60 = vpack.c.bf16 %v3204_v35, %v3204_v35 }
 0x6e6   :  { %7843 = vmatmul.msk.bf16.gmra.mxu0 %vm754_vm0, %v3442_v10  ;;  %v3597_v10 = vunpack.c.l.b16 %v3404_v60  ;;  %v10086_v60 = vpop.f32.mrf.mxu1 }
 0x6e7   :  { %vm3227_vm2 = vcmp.gt.f32.partialorder %v10086_v60, 0.0 }
 0x6e8   :  { %v3207_v30 = vpop.f32.mrf.mxu2  ;;  %v3444_v53 = vpop.trf.xlu2 }
 0x6e9   :  { %v3405_v44 = vpack.c.bf16 %v3207_v30, %v3207_v30  ;;  %v3594_v30 = vunpack.c.l.b16 %v3401_v46 }
 0x6eb   :  { %v3598_v7 = vunpack.c.l.b16 %v3405_v44 }
 0x6f0   :  { %v3209_v13 = vpop.f32.mrf.mxu2 }
 0x6f1   :  { %v3406_v32 = vpack.c.bf16 %v3209_v13, %v3209_v13  ;;  %v3595_v13 = vunpack.c.l.b16 %v3402_v36 }
 0x6f3   :  { %v3599_v15 = vunpack.c.l.b16 %v3406_v32  ;;  %v3602_v27 = vpack.c.b16 %v3595_v13, %v3594_v30  ;;  %v10108_v13 = vpop.xlane.xlu0 %2468 }
 0x6f4   :  { %12556 = vst [vmem:[#allocation59_spill] sm:$0xff] %v10108_v13 }
 0x6f6   :  { %7844 = vmatmul.msk.bf16.gmra.mxu0 %vm754_vm0, %v3443_v50  ;;  %v3604_v50 = vpack.c.b16 %v3599_v15, %v3598_v7  ;;  %v10090_v15 = vpop.f32.mrf.mxu1 }
 0x6f7   :  { %12552 = vst [vmem:[#allocation55_spill] sm:$0xff] %v10090_v15 }
 0x6f8   :  { %2542 = vadd.xlane.f32.xlu2 %v2521_v23  ;;  %v3212_v38 = vpop.f32.mrf.mxu2  ;;  %v3603_v23 = vpack.c.b16 %v3597_v10, %v3596_v45  ;;  %v3445_v35 = vpop.trf.xlu2 }
 0x6f9   :  { %v3407_v51 = vpack.c.bf16 %v3212_v38, %v3212_v38 }
 0x6fb   :  { %v3600_v58 = vunpack.c.l.b16 %v3407_v51 }
 0x6fe   :  { %v10097_v46 = vpop.f32.mrf.mxu1 }
 0x6ff   :  { %12553 = vst [vmem:[#allocation56_spill] sm:$0xff] %v10097_v46 }
 0x700   :  { %v3214_v55 = vpop.f32.mrf.mxu2 }
 0x701   :  { %v3408_v17 = vpack.c.bf16 %v3214_v55, %v3214_v55 }
 0x703   :  { %v3601_v4 = vunpack.c.l.b16 %v3408_v17  ;;  %v3578_v38 = vpop.trf.xlu1 }
 0x705   :  { %v3605_v33 = vpack.c.b16 %v3601_v4, %v3600_v58 }
 0x706   :  { %7845 = vmatmul.msk.bf16.gmra.mxu0 %vm754_vm0, %v3444_v53  ;;  %v10102_v10 = vpop.f32.mrf.mxu1 }
 0x707   :  { %3638 = vmatpush.bf16.msrb.mxu1 %v3605_v33  ;;  %12554 = vst [vmem:[#allocation57_spill] sm:$0xff] %v10102_v10  ;;  %v10198_v10 = vld [vmem:[#allocation8 + $0x264] sm:$0xf] }
 0x708   :  { %v3446_v3 = vpop.trf.xlu2 }
 0x70b   :  { %3639 = vmatpush.bf16.msrb.mxu1 %v3604_v50 }
 0x70e   :  { %v10106_v30 = vpop.f32.mrf.mxu1 }
 0x70f   :  { %3640 = vmatpush.bf16.msrb.mxu1 %v3603_v23  ;;  %12555 = vst [vmem:[#allocation58_spill] sm:$0xff] %v10106_v30 }
 0x713   :  { %3641 = vmatpush.bf16.msrb.mxu1 %v3602_v27  ;;  %v3579_v51 = vpop.trf.xlu1 }
 0x716   :  { %7846 = vmatmul.msk.bf16.gmra.mxu0 %vm754_vm0, %v3445_v35  ;;  %7850 = vmatmul.msk.bf16.vlgmr.msrb.gmra.mxu1 %vm754_vm0, %v3578_v38  ;;  %v10113_v35 = vpop.f32.mrf.mxu1 }
 0x717   :  { %12557 = vst [vmem:[#allocation60_spill] sm:$0xff] %v10113_v35  ;;  %v3691_v35 = vld [vmem:[#allocation8 + $0x220] sm:$0xf] }
 0x718   :  { %v3447_v44 = vpop.trf.xlu2 }
 0x723   :  { %v3580_v32 = vpop.trf.xlu1 }
 0x726   :  { %7847 = vmatmul.msk.bf16.gmra.mxu0 %vm754_vm0, %v3446_v3  ;;  %7851 = vmatmul.msk.bf16.gmra.mxu1 %vm754_vm0, %v3579_v51  ;;  %v10117_v3 = vpop.xlane.xlu0 %2470  ;;  %v10119_v51 = vld [vmem:[#allocation8] sm:$0xf] }
 0x727   :  { %2546 = vadd.xlane.f32.xlu1 %v2523_v42  ;;  %12558 = vst [vmem:[#allocation61_spill] sm:$0xff] %v10117_v3  ;;  %v12410_v42 = vunpack.c.l.bf16 %v10119_v51 }
 0x728   :  { %v3448_v55 = vpop.trf.xlu2 }
 0x733   :  { %v3581_v58 = vpop.trf.xlu1 }
 0x736   :  { %7848 = vmatmul.msk.bf16.gmra.mxu0 %vm754_vm0, %v3447_v44  ;;  %7852 = vmatmul.msk.bf16.gmra.mxu1 %vm754_vm0, %v3580_v32 }
 0x743   :  { %v3582_v48 = vpop.trf.xlu1 }
 0x746   :  { %7849 = vmatmul.msk.bf16.gmra.mxu0 %vm754_vm0, %v3448_v55  ;;  %7853 = vmatmul.msk.bf16.gmra.mxu1 %vm754_vm0, %v3581_v58  ;;  %v10126_v58 = vpop.xlane.xlu0 %2532 }
 0x747   :  { %12559 = vst [vmem:[#allocation62_spill] sm:$0xff] %v10126_v58 }
 0x753   :  { %v10083_v17 = vpop.f32.mrf.mxu0  ;;  %v3583_v53 = vpop.trf.xlu1 }
 0x756   :  { %7854 = vmatmul.msk.bf16.gmra.mxu1 %vm754_vm0, %v3582_v48 }
 0x75b   :  { %v10088_v7 = vpop.f32.mrf.mxu0 }
 0x763   :  { %v10092_v4 = vpop.f32.mrf.mxu0  ;;  %v3584_v45 = vpop.trf.xlu1 }
 0x766   :  { %7855 = vmatmul.msk.bf16.gmra.mxu1 %vm754_vm0, %v3583_v53 }
 0x76b   :  { %v10095_v33 = vpop.f32.mrf.mxu0 }
 0x773   :  { %v10099_v36 = vpop.f32.mrf.mxu0  ;;  %v3585_v27 = vpop.trf.xlu1 }
 0x776   :  { %7856 = vmatmul.msk.bf16.gmra.mxu1 %vm754_vm0, %v3584_v45  ;;  %v10130_v45 = vld [vmem:[#allocation8 + $0x88] sm:$0xf] }
 0x777   :  { %v12418_v49 = vunpack.c.l.bf16 %v10130_v45 }
 0x77b   :  { %v10104_v50 = vpop.f32.mrf.mxu0 }
 0x783   :  { %v10110_v23 = vpop.f32.mrf.mxu0 }
 0x786   :  { %7857 = vmatmul.msk.bf16.gmra.mxu1 %vm754_vm0, %v3585_v27  ;;  %v10132_v27 = vpop.xlane.xlu0 %2534 }
 0x787   :  { %12560 = vst [vmem:[#allocation63_spill] sm:$0xff] %v10132_v27  ;;  %v12570_v27 = vunpack.c.l.bf16 %v10183_v24 }
 0x78b   :  { %v10115_v38 = vpop.f32.mrf.mxu0 }
 0x78e   :  { %v10139_v47 = vpop.xlane.xlu0 %2472 }
 0x78f   :  { %12561 = vst [vmem:[#allocation64_spill] sm:$0xff] %v10139_v47  ;;  %v12567_v47 = vunpack.c.l.bf16 %v10168_v25 }
 0x793   :  { %v10122_v44 = vpop.f32.mrf.mxu0  ;;  %v3643_v32 = vpop.f32.mrf.mxu1 }
 0x794   :  { %v3731_v55 = vmul.f32 %v12410_v42, %v3643_v32 }
 0x796   :  { %v10144_v34 = vpop.xlane.xlu0 %2474  ;;  %v3779_v12 = vpack.c.bf16 %v3731_v55, %v3731_v55 }
 0x797   :  { %12562 = vst [vmem:[#allocation65_spill] sm:$0xff] %v10144_v34 }
 0x798   :  { %v10161_v19 = vunpack.c.l.b16 %v3779_v12  ;;  %v10177_v12 = vld [vmem:[#allocation8 + $0x3fc] sm:$0xf] }
 0x799   :  { %v12569_v13 = vunpack.c.l.bf16 %v10177_v12 }
 0x79a   :  { %12564 = vst [vmem:[#allocation67_spill] sm:$0xff] %v10161_v19  ;;  %v3707_v19 = vunpack.c.l.bf16 %v3691_v35 }
 0x79b   :  { %v10128_v48 = vpop.f32.mrf.mxu0  ;;  %v3645_v53 = vpop.f32.mrf.mxu1 }
 0x79e   :  { %v10157_v8 = vpop.xlane.xlu0 %2536 }
 0x79f   :  { %12563 = vst [vmem:[#allocation66_spill] sm:$0xff] %v10157_v8  ;;  %v10191_v8 = vld [vmem:[#allocation8 + $0x2a8] sm:$0xf] }
 0x7a3   :  { %v3531_v52 = vpop.f32.mrf.mxu0  ;;  %v3648_v57 = vpop.f32.mrf.mxu1 }
 0x7a4   :  { %v10137_v21 = vmul.f32 %v12418_v49, %v3648_v57  ;;  %v12430_v57 = vunpack.c.l.bf16 %v10146_v39 }
 0x7a6   :  { %v3732_v49 = vmul.f32 %v12430_v57, %v3645_v53  ;;  %v10185_v22 = vpop.xlane.xlu0 %2538 }
 0x7a7   :  { %12566 = vst [vmem:[#allocation69_spill] sm:$0xff] %v10185_v22 }
 0x7a8   :  { %v3780_v29 = vpack.c.bf16 %v3732_v49, %v3732_v49 }
 0x7aa   :  { %v10163_v59 = vunpack.c.l.b16 %v3780_v29 }
 0x7ab   :  { %v3533_v32 = vpop.f32.mrf.mxu0  ;;  %v3650_v42 = vpop.f32.mrf.mxu1 }
 0x7ac   :  { %12565 = vst [vmem:[#allocation68_spill] sm:$0xff] %v10163_v59  ;;  %v3726_v3 = vmul.f32 %v12570_v27, %v3533_v32 }
 0x7ae   :  { %v10221_v15 = vpop.xlane.xlu0 %2476  ;;  %v3774_v35 = vpack.c.bf16 %v3726_v3, %v3726_v3 }
 0x7af   :  { %12572 = vst [vmem:[#allocation70_spill] sm:$0xff] %v10221_v15 }
 0x7b0   :  { %v3846_v3 = vunpack.c.l.b16 %v3774_v35 }
 0x7b3   :  { %v3536_v63 = vpop.f32.mrf.mxu0  ;;  %v3653_v5 = vpop.f32.mrf.mxu1 }
 0x7b4   :  { %v10150_v9 = vmul.f32 %v12428_v56, %v3653_v5  ;;  %v10165_v5 = vld [vmem:[#allocation8 + $0x3b8] sm:$0xf]  ;;  %v3705_v56 = vunpack.c.l.bf16 %v10159_v11  ;;  %v12441_v11 = vunpack.c.l.bf16 %v10170_v26 }
 0x7b5   :  { %v12440_v49 = vunpack.c.l.bf16 %v10165_v5 }
 0x7b6   :  { %v3734_v29 = vmul.f32 %v12441_v11, %v3650_v42  ;;  %v3781_v11 = vpack.c.bf16 %v10137_v21, %v10137_v21 }
 0x7b8   :  { %v3782_v54 = vpack.c.bf16 %v3734_v29, %v3734_v29  ;;  %v10217_v21 = vunpack.c.l.b16 %v3781_v11 }
 0x7ba   :  { %v10219_v29 = vunpack.c.l.b16 %v3782_v54 }
 0x7bb   :  { %v3538_v14 = vpop.f32.mrf.mxu0  ;;  %v10155_v41 = vpop.f32.mrf.mxu1 }
 0x7bc   :  { %v3728_v34 = vmul.f32 %v12567_v47, %v3538_v14  ;;  %v10209_v14 = vld [vmem:[#allocation8 + $0x1dc] sm:$0xf]  ;;  %v3688_v47 = vld [vmem:[#allocation8 + $0x154] sm:$0xf]  ;;  %v3953_v11 = vpack.c.b16 %v10219_v29, %v10217_v21  ;;  %v8012_v29 = vld [vmem:[#allocation8 + $0x3e8] sm:$0xf] }
 0x7bd   :  { %v3704_v54 = vunpack.c.l.bf16 %v3688_v47 }
 0x7be   :  { %v3776_v20 = vpack.c.bf16 %v3728_v34, %v3728_v34  ;;  %v12573_v34 = vunpack.c.l.bf16 %v10198_v10 }
 0x7bf   :  { %v3720_v47 = vmul.f32 %v3704_v54, %v10104_v50  ;;  %v12575_v50 = vunpack.c.l.bf16 %v10170_v26 }
 0x7c0   :  { %v3724_v27 = vmul.f32 %v12573_v34, %v10128_v48  ;;  %v3848_v32 = vunpack.c.l.b16 %v3776_v20 }
 0x7c2   :  { %v3772_v48 = vpack.c.bf16 %v3724_v27, %v3724_v27  ;;  %v10241_v27 = vpop.xlane.xlu0 %2478 }
 0x7c3   :  { %v3541_v53 = vpop.f32.mrf.mxu0  ;;  %v3658_v57 = vpop.f32.mrf.mxu1 }
 0x7c4   :  { %v10173_v55 = vmul.f32 %v3705_v56, %v3658_v57  ;;  %v3729_v57 = vmul.f32 %v12440_v49, %v3541_v53  ;;  %v12568_v49 = vunpack.c.l.bf16 %v10175_v37  ;;  %v3844_v34 = vunpack.c.l.b16 %v3772_v48 }
 0x7c6   :  { %v3727_v30 = vmul.f32 %v12568_v49, %v3536_v63  ;;  %v3777_v58 = vpack.c.bf16 %v3729_v57, %v3729_v57  ;;  %v12571_v63 = vunpack.c.l.bf16 %v10191_v8 }
 0x7c8   :  { %v3725_v49 = vmul.f32 %v12571_v63, %v3531_v52  ;;  %v3775_v57 = vpack.c.bf16 %v3727_v30, %v3727_v30  ;;  %v3849_v59 = vunpack.c.l.b16 %v3777_v58  ;;  %v3723_v30 = vmul.f32 %v3707_v19, %v10122_v44 }
 0x7ca   :  { %v3773_v58 = vpack.c.bf16 %v3725_v49, %v3725_v49  ;;  %v3736_v49 = vmul.f32 %v3704_v54, %v10155_v41  ;;  %v3783_v41 = vpack.c.bf16 %v10150_v9, %v10150_v9  ;;  %v12577_v9 = vunpack.c.l.bf16 %v10146_v39 }
 0x7cb   :  { %v3543_v22 = vpop.f32.mrf.mxu0  ;;  %v10200_v46 = vpop.f32.mrf.mxu1 }
 0x7cc   :  { %v3730_v42 = vmul.f32 %v12569_v13, %v3543_v22  ;;  %v3706_v13 = vunpack.c.l.bf16 %v10209_v14  ;;  %v3845_v44 = vunpack.c.l.b16 %v3773_v58  ;;  %v3768_v58 = vpack.c.bf16 %v3720_v47, %v3720_v47 }
 0x7cd   :  { %v3716_v26 = vmul.f32 %v12577_v9, %v10088_v7  ;;  %v12578_v47 = vunpack.c.l.bf16 %v10119_v51  ;;  %v12580_v9 = vunpack.c.l.bf16 %v10183_v24  ;;  %v3785_v14 = vpack.c.bf16 %v10173_v55, %v10173_v55 }
 0x7ce   :  { %v3778_v53 = vpack.c.bf16 %v3730_v42, %v3730_v42  ;;  %v3722_v15 = vmul.f32 %v3706_v13, %v10115_v38  ;;  %v3235_v55 = vadd.f32 1.0, %v10003_v62 }
 0x7d0   :  { %v3850_v22 = vunpack.c.l.b16 %v3778_v53  ;;  %v3847_v53 = vunpack.c.l.b16 %v3775_v57  ;;  %v3770_v57 = vpack.c.bf16 %v3722_v15, %v3722_v15  ;;  %v3784_v15 = vpack.c.bf16 %v3736_v49, %v3736_v49 }
 0x7d1   :  { %v3234_v49 = vadd.f32 1.0, %v9997_v6 }
 0x7d2   :  { %v3858_v42 = vpack.c.b16 %v3850_v22, %v3849_v59  ;;  %v3857_v20 = vpack.c.b16 %v3848_v32, %v3847_v53  ;;  %v3721_v59 = vmul.f32 %v3705_v56, %v10110_v23  ;;  %v3771_v22 = vpack.c.bf16 %v3723_v30, %v3723_v30 }
 0x7d3   :  { %v3663_v52 = vpop.f32.mrf.mxu1  ;;  %v12574_v56 = vunpack.c.l.bf16 %v10141_v40  ;;  %v3718_v30 = vmul.f32 %v12575_v50, %v10095_v33  ;;  %v3842_v53 = vunpack.c.l.b16 %v3770_v57  ;;  %v12576_v40 = vunpack.c.l.bf16 %v10130_v45 }
 0x7d4   :  { %v10227_v63 = vmul.f32 %v3707_v19, %v3663_v52  ;;  %3867 = vmatpush.bf16.msra.mxu3 %v3858_v42  ;;  %v3249_v19 = vmul.f32 1.442695, %v9991_v1  ;;  %v3856_v42 = vpack.c.b16 %v3846_v3, %v3845_v44  ;;  %v3251_v52 = vmul.f32 1.442695, %v9997_v6 }
 0x7d5   :  { %v3719_v23 = vmul.f32 %v12574_v56, %v10099_v36  ;;  %v3769_v35 = vpack.c.bf16 %v3721_v59, %v3721_v59  ;;  %v3843_v32 = vunpack.c.l.b16 %v3771_v22  ;;  %v3717_v36 = vmul.f32 %v12576_v40, %v10092_v4 }
 0x7d6   :  { %8611 = vpow2.f32 %v3249_v19  ;;  %v10256_v59 = vunpack.c.l.b16 %v3784_v15  ;;  %v3766_v33 = vpack.c.bf16 %v3718_v30, %v3718_v30  ;;  %v3840_v22 = vunpack.c.l.b16 %v3768_v58 }
 0x7d7   :  { %v3855_v54 = vpack.c.b16 %v3844_v34, %v3843_v32  ;;  %8613 = vpow2.f32 %v3251_v52  ;;  %v3767_v48 = vpack.c.bf16 %v3719_v23, %v3719_v23  ;;  %v3841_v3 = vunpack.c.l.b16 %v3769_v35  ;;  %v10270_v52 = vpop.xlane.xlu0 %2540 }
 0x7d8   :  { %3868 = vmatpush.bf16.msra.mxu3 %v3857_v20  ;;  %v10254_v20 = vunpack.c.l.b16 %v3783_v41  ;;  %v3233_v45 = vadd.f32 1.0, %v9991_v1  ;;  %v3715_v57 = vmul.f32 %v12578_v47, %v10083_v17  ;;  %v3765_v34 = vpack.c.bf16 %v3717_v36, %v3717_v36 }
 0x7d9   :  { %v3854_v44 = vpack.c.b16 %v3842_v53, %v3841_v3  ;;  %v3764_v56 = vpack.c.bf16 %v3716_v26, %v3716_v26  ;;  %v3838_v1 = vunpack.c.l.b16 %v3766_v33  ;;  %v3253_v15 = vmul.f32 1.442695, %v10003_v62 }
 0x7da   :  { %v3954_v7 = vpack.c.b16 %v10256_v59, %v10254_v20  ;;  %v3763_v32 = vpack.c.bf16 %v3715_v57, %v3715_v57  ;;  %v3837_v41 = vunpack.c.l.b16 %v3765_v34  ;;  %v3738_v50 = vmul.f32 %v3706_v13, %v10200_v46  ;;  %v7888_v34 = vld [vmem:[#allocation8 + $0x3b8] sm:$0xf] }
 0x7db   :  { %v10239_v38 = vpop.f32.mrf.mxu1  ;;  %v3255_v30 = vmul.f32 1.442695, %v10010_v28  ;;  %v3836_v58 = vunpack.c.l.b16 %v3764_v56  ;;  %8615 = vpow2.f32 %v3253_v15  ;;  %v3236_v57 = vadd.f32 1.0, %v10010_v28 }
 0x7dc   :  { %3869 = vmatpush.bf16.msra.mxu3 %v3856_v42  ;;  %v8612_v19 = vpop.eup %8611  ;;  %v3839_v42 = vunpack.c.l.b16 %v3767_v48  ;;  %v3852_v53 = vpack.c.b16 %v3838_v1, %v3837_v41  ;;  %v3835_v36 = vunpack.c.l.b16 %v3763_v32  ;;  %v12579_v48 = vunpack.c.l.bf16 %v10191_v8 }
 0x7dd   :  { %v8614_v39 = vpop.eup %8613  ;;  %v10272_v35 = vsel %vm3217_vm9, %v3233_v45, %v8612_v19  ;;  %v3786_v46 = vpack.c.bf16 %v3738_v50, %v3738_v50  ;;  %8617 = vpow2.f32 %v3255_v30  ;;  %v12582_v41 = vunpack.c.l.bf16 %v10175_v37  ;;  %v7884_v50 = vld [vmem:[#allocation8 + $0x330] sm:$0xf]  ;;  %v8336_v30 = vld [vmem:[#allocation8 + $0x370] sm:$0xf0] }
 0x7de   :  { %v3853_v23 = vpack.c.b16 %v3840_v22, %v3839_v42  ;;  %v3747_v51 = vpack.c.bf16 %v10272_v35, %v10272_v35  ;;  %v10276_v17 = vsel %vm3218_vm10, %v3234_v49, %v8614_v39  ;;  %v3851_v13 = vpack.c.b16 %v3836_v58, %v3835_v36  ;;  %v8337_v42 = vld [vmem:[#allocation8 + $0x3f8] sm:$0xf0] }
 0x7df   :  { %v3748_v6 = vpack.c.bf16 %v10276_v17, %v10276_v17  ;;  %v10291_v22 = vpop.xlane.xlu0 %2480  ;;  %v10298_v49 = vunpack.c.l.b16 %v3786_v46  ;;  %v3257_v28 = vmul.f32 1.442695, %v10016_v31 }
 0x7e0   :  { %3870 = vmatpush.bf16.msra.mxu3 %v3855_v54  ;;  %v3803_v40 = vunpack.c.l.b16 %v3747_v51  ;;  %v7889_v51 = vor.u32 %v8337_v42, %v7888_v34  ;;  %v7872_v42 = vld [vmem:[#allocation8 + $0x198] sm:$0xf] }
 0x7e1   :  { %v3804_v33 = vunpack.c.l.b16 %v3748_v6  ;;  %v8616_v47 = vpop.eup %8615  ;;  %8619 = vpow2.f32 %v3257_v28  ;;  %v8332_v28 = vld [vmem:[#allocation8 + $0x150] sm:$0xf0] }
 0x7e3   :  { %v3668_v4 = vpop.f32.mrf.mxu1  ;;  %v3811_v24 = vpack.c.b16 %v3804_v33, %v3803_v40  ;;  %v8618_v39 = vpop.eup %8617  ;;  %v8335_v33 = vld [vmem:[#allocation8 + $0x2e8] sm:$0xf0] }
 0x7e4   :  { %3871 = vmatpush.bf16.msra.mxu3 %v3854_v44  ;;  %v3741_v3 = vmul.f32 %v12579_v48, %v3668_v4  ;;  %v12581_v44 = vunpack.c.l.bf16 %v10198_v10  ;;  %v10296_v4 = vunpack.c.l.b16 %v3785_v14  ;;  %v3787_v10 = vpack.c.bf16 %v10227_v63, %v10227_v63 }
 0x7e5   :  { %v10316_v63 = vsel %vm3219_vm11, %v3235_v55, %v8616_v47  ;;  %v10320_v15 = vsel %vm3220_vm12, %v3236_v57, %v8618_v39  ;;  %v12583_v14 = vunpack.c.l.bf16 %v10168_v25  ;;  %v7876_v55 = vld [vmem:[#allocation8 + $0x220] sm:$0xf]  ;;  %v8334_v47 = vld [vmem:[#allocation8 + $0x260] sm:$0xf0]  ;;  %v8333_v39 = vld [vmem:[#allocation8 + $0x1d8] sm:$0xf0] }
 0x7e6   :  { %v3740_v19 = vmul.f32 %v12581_v44, %v10239_v38  ;;  %v3789_v8 = vpack.c.bf16 %v3741_v3, %v3741_v3  ;;  %v3955_v32 = vpack.c.b16 %v10298_v49, %v10296_v4  ;;  %v10322_v58 = vunpack.c.l.b16 %v3787_v10  ;;  %v12588_v49 = vld [vmem:[#allocation67_spill] sm:$0xff] }
 0x7e7   :  { %v3749_v40 = vpack.c.bf16 %v10316_v63, %v10316_v63  ;;  %v3750_v62 = vpack.c.bf16 %v10320_v15, %v10320_v15  ;;  %v10333_v36 = vpop.xlane.xlu0 %2482  ;;  %v3259_v3 = vmul.f32 1.442695, %v10021_v18  ;;  %v7877_v10 = vor.u32 %v8334_v47, %v7876_v55 }
 0x7e8   :  { %3872 = vmatpush.bf16.msra.mxu3 %v3853_v23  ;;  %v3788_v56 = vpack.c.bf16 %v3740_v19, %v3740_v19  ;;  %v10306_v1 = vunpack.c.l.b16 %v3789_v8 }
 0x7e9   :  { %v3805_v19 = vunpack.c.l.b16 %v3749_v40  ;;  %v3806_v8 = vunpack.c.l.b16 %v3750_v62  ;;  %8621 = vpow2.f32 %v3259_v3  ;;  %v7868_v62 = vld [vmem:[#allocation8 + $0x110] sm:$0xf] }
 0x7eb   :  { %v3670_v54 = vpop.f32.mrf.mxu1 }
 0x7ec   :  { %v3742_v26 = vmul.f32 %v12580_v9, %v3670_v54  ;;  %3873 = vmatpush.bf16.msra.mxu3 %v3852_v53  ;;  %v10324_v53 = vunpack.c.l.b16 %v3788_v56  ;;  %v7885_v54 = vor.u32 %v8336_v30, %v7884_v50  ;;  %v8620_v56 = vpop.eup %8619  ;;  %v7873_v50 = vor.u32 %v8333_v39, %v7872_v42 }
 0x7ee   :  { %v3790_v45 = vpack.c.bf16 %v3742_v26, %v3742_v26  ;;  %v7880_v26 = vld [vmem:[#allocation8 + $0x2a8] sm:$0xf]  ;;  %v3956_v44 = vpack.c.b16 %v10324_v53, %v10322_v58  ;;  %v3756_v58 = vpack.c.bf16 %v10050_v61, %v10050_v61  ;;  %v3269_v53 = vmul.f32 1.442695, %v10086_v60  ;;  %v12587_v61 = vld [vmem:[#allocation68_spill] sm:$0xff] }
 0x7ef   :  { %v8622_v30 = vpop.eup %8621 }
 0x7f0   :  { %3874 = vmatpush.bf16.msra.mxu3 %v3851_v13  ;;  %v10308_v23 = vunpack.c.l.b16 %v3790_v45  ;;  %v7881_v13 = vor.u32 %v8335_v33, %v7880_v26  ;;  %v3905_v59 = vunpack.c.l.b16 %v3756_v58  ;;  %v7988_v58 = vld [vmem:[#allocation8 + $0x250] sm:$0xf] }
 0x7f2   :  { %v3957_v37 = vpack.c.b16 %v10308_v23, %v10306_v1  ;;  %v3755_v23 = vpack.c.bf16 %v10048_v0, %v10048_v0 }
 0x7f3   :  { %v3673_v38 = vpop.f32.mrf.mxu1  ;;  %3875 = vmatmul.bf16.vlgmr.msra.gmra.mxu3 %v3811_v24 }
 0x7f4   :  { %v3743_v6 = vmul.f32 %v12582_v41, %v3673_v38  ;;  %4111 = vmatpush.bf16.msrb.mxu3 %v7889_v51  ;;  %v3812_v38 = vpack.c.b16 %v3806_v8, %v3805_v19  ;;  %v3237_v51 = vadd.f32 1.0, %v10016_v31  ;;  %v3238_v41 = vadd.f32 1.0, %v10021_v18 }
 0x7f5   :  { %v3261_v31 = vmul.f32 1.442695, %v10026_v16  ;;  %v12585_v8 = vunpack.c.l.bf16 %v10177_v12  ;;  %v3239_v12 = vadd.f32 1.0, %v10026_v16  ;;  %v3904_v20 = vunpack.c.l.b16 %v3755_v23 }
 0x7f6   :  { %v3791_v48 = vpack.c.bf16 %v3743_v6, %v3743_v6  ;;  %v10345_v6 = vpop.xlane.xlu0 %2544  ;;  %v10353_v3 = vsel %vm3222_vm14, %v3238_v41, %v8622_v30 }
 0x7f7   :  { %v3752_v33 = vpack.c.bf16 %v10353_v3, %v10353_v3  ;;  %8623 = vpow2.f32 %v3261_v31 }
 0x7f8   :  { %4112 = vmatpush.bf16.msrb.mxu3 %v7885_v54  ;;  %v10340_v45 = vunpack.c.l.b16 %v3791_v48  ;;  %v12584_v54 = vunpack.c.l.bf16 %v10165_v5  ;;  %v10351_v48 = vsel %vm3221_vm13, %v3237_v51, %v8620_v56  ;;  %v3263_v5 = vmul.f32 1.442695, %v10033_v43 }
 0x7f9   :  { %v3751_v26 = vpack.c.bf16 %v10351_v48, %v10351_v48  ;;  %v3808_v47 = vunpack.c.l.b16 %v3752_v33 }
 0x7fa   :  { %8625 = vpow2.f32 %v3263_v5 }
 0x7fb   :  { %v3675_v9 = vpop.f32.mrf.mxu1  ;;  %v3807_v55 = vunpack.c.l.b16 %v3751_v26  ;;  %8627 = vpow2.f32 %v3269_v53  ;;  %v8355_v53 = vld [vmem:[#allocation8 + $0x290] sm:$0xf0] }
 0x7fc   :  { %v3744_v46 = vmul.f32 %v12583_v14, %v3675_v9  ;;  %4113 = vmatpush.bf16.msrb.mxu3 %v7881_v13  ;;  %v7869_v9 = vor.u32 %v8332_v28, %v7868_v62  ;;  %v8331_v13 = vld [vmem:[#allocation8 + $0xc8] sm:$0xf0] }
 0x7fd   :  { %v3813_v56 = vpack.c.b16 %v3808_v47, %v3807_v55  ;;  %v8624_v41 = vpop.eup %8623  ;;  %v3243_v55 = vadd.f32 1.0, %v10086_v60 }
 0x7fe   :  { %v3792_v24 = vpack.c.bf16 %v3744_v46, %v3744_v46  ;;  %v7864_v46 = vld [vmem:[#allocation8 + $0x88] sm:$0xf]  ;;  %v10361_v19 = vpop.xlane.xlu0 %2484  ;;  %v10372_v62 = vsel %vm3223_vm15, %v3239_v12, %v8624_v41 }
 0x7ff   :  { %v3753_v26 = vpack.c.bf16 %v10372_v62, %v10372_v62  ;;  %v12594_v41 = vld [vmem:[#allocation62_spill] sm:$0xff] }
 0x800   :  { %v3949_v57 = vunpack.c.l.b16 %v3792_v24  ;;  %4114 = vmatpush.bf16.msrb.mxu3 %v7877_v10  ;;  %v7865_v24 = vor.u32 %v8331_v13, %v7864_v46  ;;  %v8626_v30 = vpop.eup %8625  ;;  %v12590_v13 = vld [vmem:[#allocation29_spill] sm:$0xff] }
 0x801   :  { %v2564_v12 = vmul.f32 %v12594_v41, %v12590_v13 }
 0x802   :  { %v3958_v25 = vpack.c.b16 %v3949_v57, %v10340_v45 }
 0x803   :  { %v3678_v34 = vpop.f32.mrf.mxu1  ;;  %3880 = vmatmul.bf16.gmra.mxu3 %v3812_v38  ;;  %v7860_v38 = vld [vmem:[#allocation8] sm:$0xf] }
 0x804   :  { %v3745_v40 = vmul.f32 %v12584_v54, %v3678_v34  ;;  %4115 = vmatpush.bf16.msrb.mxu3 %v7873_v50  ;;  %v8330_v34 = vld [vmem:[#allocation8 + $0x40] sm:$0xf0]  ;;  %v3240_v50 = vadd.f32 1.0, %v10033_v43  ;;  %v4004_v54 = vrot.slane %v10005_v2, 4  ;;  %v3809_v43 = vunpack.c.l.b16 %v3753_v26 }
 0x805   :  { %v7861_v39 = vor.u32 %v8330_v34, %v7860_v38  ;;  %v8359_v38 = vld [vmem:[#allocation8 + $0x3a0] sm:$0xf0] }
 0x806   :  { %v3793_v18 = vpack.c.bf16 %v3745_v40, %v3745_v40  ;;  %v10370_v40 = vpop.xlane.xlu0 %2486  ;;  %v10374_v28 = vsel %vm3224_vm1, %v3240_v50, %v8626_v30  ;;  %v7996_v50 = vld [vmem:[#allocation8 + $0x2d8] sm:$0xf]  ;;  %v8357_v30 = vld [vmem:[#allocation8 + $0x318] sm:$0xf0] }
 0x807   :  { %v3754_v33 = vpack.c.bf16 %v10374_v28, %v10374_v28 }
 0x808   :  { %4116 = vmatpush.bf16.msrb.mxu3 %v7869_v9  ;;  %v3950_v57 = vunpack.c.l.b16 %v3793_v18  ;;  %v4005_v9 = vadd.f32 %v4004_v54, %v10005_v2 }
 0x809   :  { %v3810_v31 = vunpack.c.l.b16 %v3754_v33 }
 0x80a   :  { %v4006_v16 = vrot.slane %v4005_v9, 2 }
 0x80b   :  { %v3680_v14 = vpop.f32.mrf.mxu1 }
 0x80c   :  { %v3746_v45 = vmul.f32 %v12585_v8, %v3680_v14  ;;  %4117 = vmatpush.bf16.msrb.mxu3 %v7865_v24  ;;  %v4007_v2 = vadd.f32 %v4006_v16, %v4005_v9  ;;  %v3912_v14 = vpack.c.b16 %v3905_v59, %v3904_v20  ;;  %v12591_v8 = vld [vmem:[#allocation61_spill] sm:$0xff] }
 0x80d   :  { %v10417_v21 = vmul.f32 %v12591_v8, %v12590_v13 }
 0x80e   :  { %v3794_v10 = vpack.c.bf16 %v3746_v45, %v3746_v45  ;;  %v10384_v18 = vpop.xlane.xlu0 %2548  ;;  %v4008_v5 = vrot.slane %v4007_v2, 1  ;;  %v8628_v45 = vpop.eup %8627 }
 0x80f   :  { %v10435_v9 = vsel %vm3227_vm2, %v3243_v55, %v8628_v45  ;;  %v7972_v45 = vld [vmem:[#allocation8 + $0x140] sm:$0xf] }
 0x810   :  { %v3951_v42 = vunpack.c.l.b16 %v3794_v10  ;;  %4118 = vmatpush.bf16.msrb.mxu3 %v7861_v39  ;;  %v10395_v1 = vadd.f32 %v4008_v5, %v4007_v2  ;;  %v3757_v33 = vpack.c.bf16 %v10435_v9, %v10435_v9  ;;  %v7997_v2 = vor.u32 %v8357_v30, %v7996_v50  ;;  %v12596_v5 = vld [vmem:[#allocation57_spill] sm:$0xff]  ;;  %v7964_v30 = vld [vmem:[#allocation8 + $0xb8] sm:$0xf] }
 0x811   :  { %v3275_v23 = vmul.f32 1.442695, %v12596_v5  ;;  %vm3230_vm5 = vcmp.gt.f32.partialorder %v12596_v5, 0.0 }
 0x812   :  { %v3959_v51 = vpack.c.b16 %v3951_v42, %v3950_v57  ;;  %v4024_v0 = vmul.f32 %v10395_v1, %v10276_v17  ;;  %v12592_v17 = vld [vmem:[#allocation63_spill] sm:$0xff]  ;;  %v4025_v59 = vmul.f32 %v10395_v1, %v10316_v63 }
 0x813   :  { %3885 = vmatmul.bf16.gmra.mxu3 %v3813_v56  ;;  %v2565_v24 = vmul.f32 %v12592_v17, %v12590_v13  ;;  %v12593_v42 = vld [vmem:[#allocation59_spill] sm:$0xff]  ;;  %v2581_v56 = vmul.f32 %v10417_v21, %v10417_v21 }
 0x814   :  { %3968 = vmatpush.bf16.msrb.mxu2 %v3959_v51  ;;  %v10427_v39 = vmul.f32 %v12593_v42, %v12590_v13 }
 0x815   :  { %v2597_v54 = vsub.f32 %v2565_v24, %v2581_v56  ;;  %v12599_v24 = vld [vmem:[#allocation64_spill] sm:$0xff] }
 0x816   :  { %v2580_v60 = vmul.f32 %v10427_v39, %v10427_v39  ;;  %v10469_v55 = vmul.f32 %v12599_v24, %v12590_v13 }
 0x818   :  { %3969 = vmatpush.bf16.msrb.mxu2 %v3958_v25  ;;  %v3814_v25 = vpack.c.b16 %v3810_v31, %v3809_v43  ;;  %v12595_v43 = vld [vmem:[#allocation56_spill] sm:$0xff] }
 0x819   :  { %v3273_v31 = vmul.f32 1.442695, %v12595_v43  ;;  %vm3229_vm4 = vcmp.gt.f32.partialorder %v12595_v43, 0.0 }
 0x81c   :  { %3970 = vmatpush.bf16.msrb.mxu2 %v3957_v37  ;;  %v10402_v37 = vpop.xlane.xlu0 %2550 }
 0x820   :  { %3971 = vmatpush.bf16.msrb.mxu2 %v3956_v44  ;;  %v12586_v44 = vld [vmem:[#allocation55_spill] sm:$0xff] }
 0x821   :  { %v3271_v4 = vmul.f32 1.442695, %v12586_v44  ;;  %v3244_v47 = vadd.f32 1.0, %v12586_v44  ;;  %vm3228_vm3 = vcmp.gt.f32.partialorder %v12586_v44, 0.0  ;;  %v10447_v44 = vadd.f32 1e-05, %v2597_v54 }
 0x822   :  { %v8349_v54 = vld [vmem:[#allocation8 + $0xf8] sm:$0xf0] }
 0x823   :  { %3890 = vmatmul.bf16.gmra.mxu3 %v3814_v25  ;;  %8629 = vpow2.f32 %v3271_v4  ;;  %v2596_v25 = vsub.f32 %v2564_v12, %v2580_v60  ;;  %v3906_v4 = vunpack.c.l.b16 %v3757_v33  ;;  %v2582_v60 = vmul.f32 %v10469_v55, %v10469_v55 }
 0x824   :  { %3972 = vmatpush.bf16.msrb.mxu2 %v3955_v32  ;;  %v12589_v32 = vpack.c.b16 %v12587_v61, %v12588_v49  ;;  %v10423_v57 = vpop.xlane.xlu0 %2488  ;;  %8631 = vpow2.f32 %v3273_v31  ;;  %v7989_v61 = vor.u32 %v8355_v53, %v7988_v58  ;;  %v12601_v53 = vld [vmem:[#allocation58_spill] sm:$0xff]  ;;  %vm2660_vm10 = vweird.f32 %v10447_v44 }
 0x825   :  { %v10455_v49 = vadd.f32 1e-05, %v2596_v25  ;;  %8633 = vpow2.f32 %v3275_v23  ;;  %vm3231_vm6 = vcmp.gt.f32.partialorder %v12601_v53, 0.0 }
 0x826   :  { %8635 = vrsqrt.f32 %v10447_v44 }
 0x827   :  { %8637 = vrsqrt.f32 %v10455_v49  ;;  %vm2650_vm12 = vweird.f32 %v10455_v49 }
 0x828   :  { %3973 = vmatpush.bf16.msrb.mxu2 %v3954_v7  ;;  %v4023_v7 = vmul.f32 %v10395_v1, %v10272_v35  ;;  %v8004_v35 = vld [vmem:[#allocation8 + $0x360] sm:$0xf] }
 0x829   :  { %v8630_v34 = vpop.eup %8629  ;;  %v8005_v51 = vor.u32 %v8359_v38, %v8004_v35  ;;  %v8353_v35 = vld [vmem:[#allocation8 + $0x208] sm:$0xf0] }
 0x82a   :  { %v4055_v46 = vpack.c.bf16 %v4024_v0, %v4023_v7  ;;  %v10437_v26 = vsel %vm3228_vm3, %v3244_v47, %v8630_v34  ;;  %v4026_v7 = vmul.f32 %v10395_v1, %v10320_v15  ;;  %v8632_v17 = vpop.eup %8631  ;;  %v3245_v47 = vadd.f32 1.0, %v12595_v43  ;;  %v8351_v34 = vld [vmem:[#allocation8 + $0x180] sm:$0xf0] }
 0x82b   :  { %v3758_v16 = vpack.c.bf16 %v10437_v26, %v10437_v26  ;;  %v8634_v42 = vpop.eup %8633  ;;  %v7973_v12 = vor.u32 %v8351_v34, %v7972_v45  ;;  %v10517_v34 = vmul.f32 %v10241_v27, %v12590_v13 }
 0x82c   :  { %3974 = vmatpush.bf16.msrb.mxu2 %v3953_v11  ;;  %v8361_v11 = vld [vmem:[#allocation8 + $0x428] sm:$0xf0]  ;;  %v10453_v0 = vpop.xlane.xlu0 %2490  ;;  %v10477_v50 = vpop.eup %8635  ;;  %v10481_v33 = vsel %vm3229_vm4, %v3245_v47, %v8632_v17 }
 0x82d   :  { %v8013_v10 = vor.u32 %v8361_v11, %v8012_v29  ;;  %v3907_v20 = vunpack.c.l.b16 %v3758_v16  ;;  %v4056_v29 = vpack.c.bf16 %v4026_v7, %v4025_v59  ;;  %v7980_v11 = vld [vmem:[#allocation8 + $0x1c8] sm:$0xf]  ;;  %v10487_v43 = vpop.eup %8637  ;;  %v3759_v25 = vpack.c.bf16 %v10481_v33, %v10481_v33  ;;  %v12602_v59 = vld [vmem:[#allocation60_spill] sm:$0xff] }
 0x82e   :  { %v7981_v38 = vor.u32 %v8353_v35, %v7980_v11  ;;  %v2655_v23 = vmul.f32 %v10477_v50, %v10447_v44  ;;  %v3279_v7 = vmul.f32 1.442695, %v12602_v59  ;;  %vm3232_vm7 = vcmp.gt.f32.partialorder %v12602_v59, 0.0  ;;  %v12604_v44 = vld [vmem:[#allocation37_spill] sm:$0xff] }
 0x82f   :  { %v3913_v8 = vpack.c.b16 %v3907_v20, %v3906_v4  ;;  %v3277_v4 = vmul.f32 1.442695, %v12601_v53  ;;  %v7965_v20 = vor.u32 %v8349_v54, %v7964_v30  ;;  %v12603_v30 = vld [vmem:[#allocation70_spill] sm:$0xff]  ;;  %vm2661_vm8 = vweird.f32 %v10477_v50 }
 0x830   :  { %3975 = vmatpush.bf16.msrb.mxu2 %v12589_v32  ;;  %v12597_v32 = vld [vmem:[#allocation65_spill] sm:$0xff]  ;;  %v2656_v11 = vmul.f32 %v10477_v50, %v2655_v23  ;;  %v10523_v54 = vmul.f32 %v12603_v30, %v12590_v13  ;;  %vm2651_vm9 = vweird.f32 %v10487_v43  ;;  %vm2662_vm11 = vmor %vm2660_vm10, %vm2661_vm8 }
 0x831   :  { %vm2652_vm13 = vmor %vm2650_vm12, %vm2651_vm9  ;;  %v10579_v30 = vld [vmem:[#allocation11 + $0x2] ss:$0 sm:$0xff] }
 0x833   :  { %3976 = vmatmul.bf16.vlgmr.msrb.gmra.mxu2 %v3912_v14  ;;  %4119 = vmatmul.bf16.vlgmr.msrb.gmra.mxu3 %v4055_v46  ;;  %v10459_v14 = vmul.f32 %v12597_v32, %v12590_v13  ;;  %v12598_v46 = vld [vmem:[#allocation69_spill] sm:$0xff]  ;;  %v8347_v32 = vld [vmem:[#allocation8 + $0x70] sm:$0xf0] }
 0x834   :  { %4942 = vmatpush.bf16.msra.mxu2 %v8013_v10  ;;  %v2567_v63 = vmul.f32 %v12598_v46, %v12590_v13  ;;  %v3246_v10 = vadd.f32 1.0, %v12596_v5  ;;  %v10483_v16 = vpop.xlane.xlu0 %2552  ;;  %v2645_v46 = vmul.f32 %v10487_v43, %v10455_v49  ;;  %v2547_v49 = vpop.xlane.xlu1 %2546 }
 0x835   :  { %v2583_v15 = vmul.f32 %v10459_v14, %v10459_v14 }
 0x836   :  { %v10485_v31 = vsel %vm3230_vm5, %v3246_v10, %v8634_v42  ;;  %v2646_v17 = vmul.f32 %v10487_v43, %v2645_v46 }
 0x837   :  { %v2599_v56 = vsub.f32 %v2567_v63, %v2583_v15  ;;  %v3760_v5 = vpack.c.bf16 %v10485_v31, %v10485_v31  ;;  %v4027_v63 = vmul.f32 %v10395_v1, %v10351_v48  ;;  %v4028_v15 = vmul.f32 %v10395_v1, %v10353_v3 }
 0x838   :  { %4943 = vmatpush.bf16.msra.mxu2 %v8005_v51  ;;  %v12600_v51 = vld [vmem:[#allocation66_spill] sm:$0xff]  ;;  %v2657_v48 = vmul.f32 0.5, %v2656_v11  ;;  %v4029_v11 = vmul.f32 %v10395_v1, %v10372_v62 }
 0x839   :  { %v2566_v41 = vmul.f32 %v12600_v51, %v12590_v13  ;;  %v4057_v47 = vpack.c.bf16 %v4028_v15, %v4027_v63  ;;  %v3247_v51 = vadd.f32 1.0, %v12601_v53 }
 0x83b   :  { %v2598_v58 = vsub.f32 %v2566_v41, %v2582_v60  ;;  %v3248_v41 = vadd.f32 1.0, %v12602_v59  ;;  %v2658_v60 = vsub.f32 1.5, %v2657_v48  ;;  %v2584_v59 = vmul.f32 %v10523_v54, %v10523_v54 }
 0x83c   :  { %4944 = vmatpush.bf16.msra.mxu2 %v7997_v2  ;;  %v10489_v2 = vadd.f32 1e-05, %v2599_v56  ;;  %v10511_v10 = vpop.xlane.xlu0 %2554  ;;  %v2647_v56 = vmul.f32 0.5, %v2646_v17 }
 0x83d   :  { %v10507_v35 = vadd.f32 1e-05, %v2598_v58 }
 0x83e   :  { %8639 = vrsqrt.f32 %v10489_v2  ;;  %v2648_v58 = vsub.f32 1.5, %v2647_v56  ;;  %v12605_v56 = vld [vmem:[#allocation36_spill] sm:$0xff]  ;;  %vm2680_vm15 = vweird.f32 %v10489_v2 }
 0x83f   :  { %8641 = vpow2.f32 %v3277_v4  ;;  %vm2670_vm3 = vweird.f32 %v10507_v35 }
 0x840   :  { %4945 = vmatpush.bf16.msra.mxu2 %v7989_v61  ;;  %v7956_v61 = vld [vmem:[#allocation8 + $0x30] sm:$0xf]  ;;  %8643 = vpow2.f32 %v3279_v7 }
 0x841   :  { %v7957_v45 = vor.u32 %v8347_v32, %v7956_v61  ;;  %8645 = vrsqrt.f32 %v10507_v35  ;;  %v2659_v32 = vmul.f32 %v10477_v50, %v2658_v60 }
 0x843   :  { %3981 = vmatmul.bf16.gmra.mxu2 %v3913_v8  ;;  %4124 = vmatmul.bf16.gmra.mxu3 %v4056_v29  ;;  %v3908_v8 = vunpack.c.l.b16 %v3759_v25  ;;  %v3909_v29 = vunpack.c.l.b16 %v3760_v5  ;;  %v2585_v25 = vmul.f32 %v10517_v34, %v10517_v34  ;;  %v2568_v5 = vmul.f32 %v10270_v52, %v12590_v13 }
 0x844   :  { %4946 = vmatpush.bf16.msra.mxu2 %v7981_v38  ;;  %v2543_v38 = vpop.xlane.xlu2 %2542  ;;  %v10513_v3 = vpop.eup %8639  ;;  %v2663_v48 = vsel %vm2662_vm11, %v10477_v50, %v2659_v32 }
 0x845   :  { %v3914_v24 = vpack.c.b16 %v3909_v29, %v3908_v8  ;;  %v8642_v42 = vpop.eup %8641  ;;  %v2569_v27 = vmul.f32 %v2543_v38, %v12590_v13  ;;  %v2675_v4 = vmul.f32 %v10513_v3, %v10489_v2  ;;  %v2600_v63 = vsub.f32 %v2568_v5, %v2584_v59  ;;  %v10554_v15 = vpop.xlane.xlu0 %2492  ;;  %v12606_v2 = vld [vmem:[#allocation39_spill] sm:$0xff] }
 0x846   :  { %v2649_v8 = vmul.f32 %v10487_v43, %v2648_v58  ;;  %v2613_v38 = vsub.f32 %v12604_v44, %v10417_v21  ;;  %v10577_v21 = vmul.f32 %v10333_v36, %v12590_v13  ;;  %v10586_v5 = vmul.f32 %v10291_v22, %v12590_v13 }
 0x847   :  { %v2601_v7 = vsub.f32 %v2569_v27, %v2585_v25  ;;  %v2676_v29 = vmul.f32 %v10513_v3, %v2675_v4  ;;  %vm2681_vm14 = vweird.f32 %v10513_v3  ;;  %v2615_v44 = vsub.f32 %v12606_v2, %v10459_v14  ;;  %v7998_v2 = vld [vmem:[#allocation8 + $0x31c] sm:$0xf0] }
 0x848   :  { %4947 = vmatpush.bf16.msra.mxu2 %v7973_v12  ;;  %v8644_v12 = vpop.eup %8643  ;;  %v2587_v36 = vmul.f32 %v10577_v21, %v10577_v21  ;;  %vm2682_vm2 = vmor %vm2680_vm15, %vm2681_vm14 }
 0x849   :  { %v10532_v23 = vpop.eup %8645  ;;  %v10538_v53 = vsel %vm3232_vm7, %v3248_v41, %v8644_v12  ;;  %v2653_v41 = vsel %vm2652_vm13, %v10487_v43, %v2649_v8  ;;  %v2571_v43 = vmul.f32 %v2547_v49, %v12590_v13  ;;  %v12609_v49 = vld [vmem:[#allocation38_spill] sm:$0xff] }
 0x84a   :  { %v3762_v52 = vpack.c.bf16 %v10538_v53, %v10538_v53  ;;  %v2665_v46 = vmul.f32 %v10532_v23, %v10507_v35  ;;  %vm2671_vm1 = vweird.f32 %v10532_v23 }
 0x84b   :  { %v2603_v22 = vsub.f32 %v2571_v43, %v2587_v36  ;;  %vm2672_vm4 = vmor %vm2670_vm3, %vm2671_vm1  ;;  %v12611_v43 = vld [vmem:[#allocation53_spill] sm:$0xff]  ;;  %v8360_v36 = vld [vmem:[#allocation8 + $0x3ec] sm:$0xf] }
 0x84c   :  { %4948 = vmatpush.bf16.msra.mxu2 %v7965_v20  ;;  %v10536_v20 = vsel %vm3231_vm6, %v3247_v51, %v8642_v42  ;;  %v2666_v62 = vmul.f32 %v10532_v23, %v2665_v46  ;;  %v10569_v42 = vadd.f32 1e-05, %v2600_v63  ;;  %v2612_v51 = vsub.f32 %v12605_v56, %v10427_v39 }
 0x84d   :  { %v3761_v61 = vpack.c.bf16 %v10536_v20, %v10536_v20  ;;  %v10590_v58 = vpop.xlane.xlu0 %2494  ;;  %v2586_v63 = vmul.f32 %v10586_v5, %v10586_v5 }
 0x84e   :  { %v2804_v27 = vmul.f32 %v2653_v41, %v2612_v51  ;;  %v2667_v60 = vmul.f32 0.5, %v2666_v62  ;;  %vm2690_vm9 = vweird.f32 %v10569_v42 }
 0x84f   :  { %v3910_v17 = vunpack.c.l.b16 %v3761_v61  ;;  %v2570_v61 = vmul.f32 %v10345_v6, %v12590_v13 }
 0x850   :  { %4949 = vmatpush.bf16.msra.mxu2 %v7957_v45  ;;  %v10558_v45 = vadd.f32 1e-05, %v2601_v7  ;;  %v2821_v59 = vmul.f32 %v10579_v30, %v2804_v27  ;;  %v2668_v7 = vsub.f32 1.5, %v2667_v60 }
 0x852   :  { %8647 = vrsqrt.f32 %v10558_v45  ;;  %v2669_v6 = vmul.f32 %v10532_v23, %v2668_v7  ;;  %vm2700_vm7 = vweird.f32 %v10558_v45 }
 0x853   :  { %3986 = vmatmul.bf16.gmra.mxu2 %v3914_v24  ;;  %4129 = vmatmul.bf16.gmra.mxu3 %v4057_v47  ;;  %v3911_v24 = vunpack.c.l.b16 %v3762_v52  ;;  %v4030_v47 = vmul.f32 %v10395_v1, %v10374_v28  ;;  %v2677_v28 = vmul.f32 0.5, %v2676_v29  ;;  %v2805_v1 = vmul.f32 %v2663_v48, %v2613_v38  ;;  %v10597_v52 = vld [vmem:[#allocation11 + $0x3] ss:$0 sm:$0xff]  ;;  %v12607_v38 = vld [vmem:[#allocation31_spill] sm:$0xff] }
 0x854   :  { %8649 = vrsqrt.f32 %v10569_v42  ;;  %v10615_v48 = vadd.f32 1e-05, %v2603_v22  ;;  %v2673_v51 = vsel %vm2672_vm4, %v10532_v23, %v2669_v6  ;;  %v10637_v23 = vmul.f32 %v10370_v40, %v12590_v13  ;;  %v8358_v6 = vld [vmem:[#allocation8 + $0x364] sm:$0xf] }
 0x855   :  { %v3915_v50 = vpack.c.b16 %v3911_v24, %v3910_v17  ;;  %v4058_v12 = vpack.c.bf16 %v4030_v47, %v4029_v11  ;;  %v2678_v39 = vsub.f32 1.5, %v2677_v28  ;;  %v2822_v25 = vmul.f32 %v10579_v30, %v2805_v1  ;;  %v10629_v14 = vpop.xlane.xlu0 %2556 }
 0x856   :  { %v2602_v11 = vsub.f32 %v2570_v61, %v2586_v63  ;;  %v2838_v17 = vadd.f32 %v10597_v52, %v2821_v59  ;;  %8651 = vrsqrt.f32 %v10615_v48  ;;  %v8014_v59 = vld [vmem:[#allocation8 + $0x42c] sm:$0xf0]  ;;  %v2573_v40 = vmul.f32 %v10402_v37, %v12590_v13  ;;  %v8356_v37 = vld [vmem:[#allocation8 + $0x2dc] sm:$0xf] }
 0x857   :  { %v2679_v32 = vmul.f32 %v10513_v3, %v2678_v39  ;;  %v2839_v8 = vadd.f32 %v10597_v52, %v2822_v25  ;;  %v12610_v39 = vld [vmem:[#allocation54_spill] sm:$0xff]  ;;  %v8017_v61 = vor.u32 %v8360_v36, %v8014_v59  ;;  %vm2720_vm13 = vweird.f32 %v10615_v48 }
 0x858   :  { %v10592_v4 = vpop.eup %8647  ;;  %v10623_v41 = vadd.f32 1e-05, %v2602_v11  ;;  %v12612_v25 = vpack.c.bf16 %v12610_v39, %v12611_v43  ;;  %v8006_v11 = vld [vmem:[#allocation8 + $0x3a4] sm:$0xf0] }
 0x859   :  { %v2695_v29 = vmul.f32 %v10592_v4, %v10558_v45  ;;  %v2683_v24 = vsel %vm2682_vm2, %v10513_v3, %v2679_v32  ;;  %v2855_v62 = vadd.f32 %v2839_v8, %v12607_v38  ;;  %v12608_v3 = vld [vmem:[#allocation30_spill] sm:$0xff]  ;;  %v10646_v32 = vmul.f32 %v10361_v19, %v12590_v13  ;;  %4991 = vmatpush.bf16.msra.mxu3 %v8017_v61  ;;  %v12617_v61 = vld [vmem:[#allocation32_spill] sm:$0xff] }
 0x85a   :  { %v10601_v46 = vpop.eup %8649  ;;  %v2854_v28 = vadd.f32 %v2838_v17, %v12608_v3  ;;  %v2807_v1 = vmul.f32 %v2683_v24, %v2615_v44  ;;  %8653 = vrsqrt.f32 %v10623_v41  ;;  %v2589_v17 = vmul.f32 %v10637_v23, %v10637_v23 }
 0x85b   :  { %v2685_v47 = vmul.f32 %v10601_v46, %v10569_v42  ;;  %v2696_v56 = vmul.f32 %v10592_v4, %v2695_v29  ;;  %v2572_v19 = vmul.f32 %v10384_v18, %v12590_v13  ;;  %vm2701_vm5 = vweird.f32 %v10592_v4 }
 0x85c   :  { %v10632_v35 = vpack.c.bf16 %v2855_v62, %v2854_v28  ;;  %v10650_v22 = vpop.eup %8651  ;;  %v2588_v62 = vmul.f32 %v10646_v32, %v10646_v32  ;;  %vm2691_vm6 = vweird.f32 %v10601_v46  ;;  %vm10679_vm8 = vmor %vm2700_vm7, %vm2701_vm5  ;;  %vm2710_vm15 = vweird.f32 %v10623_v41 }
 0x85d   :  { %v2697_v27 = vmul.f32 0.5, %v2696_v56  ;;  %v2605_v56 = vsub.f32 %v2573_v40, %v2589_v17  ;;  %v10666_v3 = vpop.xlane.xlu0 %2558  ;;  %vm10699_vm10 = vmor %vm2690_vm9, %vm2691_vm6  ;;  %vm2721_vm11 = vweird.f32 %v10650_v22 }
 0x85e   :  { %vm10755_vm14 = vmor %vm2720_vm13, %vm2721_vm11 }
 0x85f   :  { %v2698_v63 = vsub.f32 1.5, %v2697_v27  ;;  %v10677_v39 = vadd.f32 1e-05, %v2605_v56 }
 0x860   :  { %v10660_v38 = vpop.eup %8653 }
 0x861   :  { %v2699_v28 = vmul.f32 %v10592_v4, %v2698_v63  ;;  %v8354_v63 = vld [vmem:[#allocation8 + $0x254] sm:$0xf]  ;;  %8655 = vrsqrt.f32 %v10677_v39  ;;  %vm2711_vm12 = vweird.f32 %v10660_v38  ;;  %vm2740_vm4 = vweird.f32 %v10677_v39 }
 0x862   :  { %vm10777_vm1 = vmor %vm2710_vm15, %vm2711_vm12 }
 0x863   :  { %3991 = vmatmul.bf16.gmra.mxu2 %v3915_v50  ;;  %4134 = vmatmul.bf16.gmra.mxu3 %v4058_v12  ;;  %v2614_v50 = vsub.f32 %v12609_v49, %v10469_v55  ;;  %v2686_v12 = vmul.f32 %v10601_v46, %v2685_v47  ;;  %v2824_v55 = vmul.f32 %v10579_v30, %v2807_v1 }
 0x864   :  { %v8009_v47 = vor.u32 %v8358_v6, %v8006_v11  ;;  %v8001_v1 = vor.u32 %v8356_v37, %v7998_v2  ;;  %v2604_v49 = vsub.f32 %v2572_v19, %v2588_v62  ;;  %v2703_v45 = vsel %vm10679_vm8, %v10592_v4, %v2699_v28  ;;  %v12618_v6 = vld [vmem:[#allocation41_spill] sm:$0xff]  ;;  %v12621_v4 = vld [vmem:[#allocation40_spill] sm:$0xff]  ;;  %v7982_v62 = vld [vmem:[#allocation8 + $0x20c] sm:$0xf0] }
 0x865   :  { %v2806_v60 = vmul.f32 %v2673_v51, %v2614_v50  ;;  %v2687_v7 = vmul.f32 0.5, %v2686_v12  ;;  %v2841_v24 = vadd.f32 %v10597_v52, %v2824_v55  ;;  %v2715_v51 = vmul.f32 %v10650_v22, %v10615_v48  ;;  %v12613_v50 = vld [vmem:[#allocation33_spill] sm:$0xff]  ;;  %v12616_v55 = vld [vmem:[#allocation51_spill] sm:$0xff] }
 0x866   :  { %4992 = vmatpush.bf16.msra.mxu3 %v8009_v47  ;;  %v4033_v36 = vmul.f32 %v12616_v55, %v10435_v9  ;;  %v4034_v59 = vmul.f32 %v12616_v55, %v10437_v26  ;;  %v2617_v11 = vsub.f32 %v12618_v6, %v10517_v34  ;;  %v10703_v26 = vadd.f32 1e-05, %v2604_v49 }
 0x867   :  { %v2823_v29 = vmul.f32 %v10579_v30, %v2806_v60  ;;  %v2688_v44 = vsub.f32 1.5, %v2687_v7  ;;  %v2857_v12 = vadd.f32 %v2841_v24, %v12613_v50  ;;  %v2705_v60 = vmul.f32 %v10660_v38, %v10623_v41  ;;  %v10731_v43 = vpop.eup %8655 }
 0x868   :  { %v2616_v17 = vsub.f32 %v12621_v4, %v10523_v54  ;;  %v2809_v34 = vmul.f32 %v2703_v45, %v2617_v11  ;;  %v4060_v2 = vpack.c.bf16 %v4034_v59, %v4033_v36  ;;  %8657 = vrsqrt.f32 %v10703_v26  ;;  %v7966_v59 = vld [vmem:[#allocation8 + $0xfc] sm:$0xf0] }
 0x869   :  { %v2840_v18 = vadd.f32 %v10597_v52, %v2823_v29  ;;  %v2689_v27 = vmul.f32 %v10601_v46, %v2688_v44  ;;  %v7990_v29 = vld [vmem:[#allocation8 + $0x294] sm:$0xf0]  ;;  %v2706_v24 = vmul.f32 %v10660_v38, %v2705_v60  ;;  %v10717_v44 = vmul.f32 %v10453_v0, %v12590_v13  ;;  %v8348_v60 = vld [vmem:[#allocation8 + $0xbc] sm:$0xf]  ;;  %v7920_v45 = vld [vmem:[#allocation8 + $0x3e0] sm:$0xf] }
 0x86a   :  { %4993 = vmatpush.bf16.msra.mxu3 %v8001_v1  ;;  %v7993_v42 = vor.u32 %v8354_v63, %v7990_v29  ;;  %v2575_v1 = vmul.f32 %v10511_v10, %v12590_v13  ;;  %v2826_v0 = vmul.f32 %v10579_v30, %v2809_v34  ;;  %v7969_v4 = vor.u32 %v8348_v60, %v7966_v59 }
 0x86b   :  { %v2856_v40 = vadd.f32 %v2840_v18, %v12617_v61  ;;  %v2693_v19 = vsel %vm10699_vm10, %v10601_v46, %v2689_v27  ;;  %v8352_v46 = vld [vmem:[#allocation8 + $0x1cc] sm:$0xf]  ;;  %v2707_v56 = vmul.f32 0.5, %v2706_v24  ;;  %v10724_v18 = vmul.f32 %v10423_v57, %v12590_v13  ;;  %v7974_v27 = vld [vmem:[#allocation8 + $0x184] sm:$0xf0] }
 0x86c   :  { %v2808_v54 = vmul.f32 %v2693_v19, %v2616_v17  ;;  %v7985_v28 = vor.u32 %v8352_v46, %v7982_v62  ;;  %v2574_v57 = vmul.f32 %v10483_v16, %v12590_v13  ;;  %v8329_v61 = vld [vmem:[#allocation8 + $0x420] sm:$0xf0]  ;;  %v2843_v9 = vadd.f32 %v10597_v52, %v2826_v0  ;;  %v12624_v62 = vld [vmem:[#allocation35_spill] sm:$0xff] }
 0x86d   :  { %v10711_v47 = vpack.c.bf16 %v2857_v12, %v2856_v40  ;;  %v8350_v12 = vld [vmem:[#allocation8 + $0x144] sm:$0xf]  ;;  %v2708_v40 = vsub.f32 1.5, %v2707_v56  ;;  %v7921_v63 = vor.u32 %v8329_v61, %v7920_v45  ;;  %v2590_v6 = vmul.f32 %v10724_v18, %v10724_v18  ;;  %v8346_v0 = vld [vmem:[#allocation8 + $0x34] sm:$0xf] }
 0x86e   :  { %4994 = vmatpush.bf16.msra.mxu3 %v7993_v42  ;;  %v2825_v36 = vmul.f32 %v10579_v30, %v2808_v54  ;;  %v7977_v10 = vor.u32 %v8350_v12, %v7974_v27  ;;  %v10738_v29 = vpop.eup %8657  ;;  %v2735_v42 = vmul.f32 %v10731_v43, %v10677_v39  ;;  %v4035_v54 = vmul.f32 %v12616_v55, %v10481_v33  ;;  %v7958_v33 = vld [vmem:[#allocation8 + $0x74] sm:$0xf0] }
 0x86f   :  { %4248 = vmatpush.bf16.msrb.mxu0 %v7921_v63  ;;  %v2606_v17 = vsub.f32 %v2574_v57, %v2590_v6  ;;  %v2709_v24 = vmul.f32 %v10660_v38, %v2708_v40  ;;  %v2725_v34 = vmul.f32 %v10738_v29, %v10703_v26  ;;  %v4036_v46 = vmul.f32 %v12616_v55, %v10485_v31  ;;  %v7916_v12 = vld [vmem:[#allocation8 + $0x358] sm:$0xf]  ;;  %v12625_v31 = vld [vmem:[#allocation43_spill] sm:$0xff] }
 0x870   :  { %v2842_v19 = vadd.f32 %v10597_v52, %v2825_v36  ;;  %v2859_v56 = vadd.f32 %v2843_v9, %v12624_v62  ;;  %v2619_v27 = vsub.f32 %v12625_v31, %v10577_v21  ;;  %v8328_v36 = vld [vmem:[#allocation8 + $0x398] sm:$0xf0]  ;;  %v7912_v9 = vld [vmem:[#allocation8 + $0x2d0] sm:$0xf]  ;;  %vm2741_vm2 = vweird.f32 %v10731_v43 }
 0x871   :  { %v10781_v60 = vadd.f32 1e-05, %v2606_v17  ;;  %v2713_v45 = vsel %vm10777_vm1, %v10660_v38, %v2709_v24  ;;  %v2726_v21 = vmul.f32 %v10738_v29, %v2725_v34  ;;  %v7917_v61 = vor.u32 %v8328_v36, %v7916_v12  ;;  %v8326_v36 = vld [vmem:[#allocation8 + $0x288] sm:$0xf0]  ;;  %vm10834_vm5 = vmor %vm2740_vm4, %vm2741_vm2 }
 0x872   :  { %4995 = vmatpush.bf16.msra.mxu3 %v7985_v28  ;;  %v2736_v28 = vmul.f32 %v10731_v43, %v2735_v42  ;;  %v4061_v63 = vpack.c.bf16 %v4036_v46, %v4035_v54  ;;  %v8327_v42 = vld [vmem:[#allocation8 + $0x310] sm:$0xf0]  ;;  %v10801_v17 = vmul.f32 %v10554_v15, %v12590_v13  ;;  %v2576_v46 = vmul.f32 %v10629_v14, %v12590_v13 }
 0x873   :  { %4139 = vmatmul.bf16.gmra.mxu3 %v12612_v25  ;;  %4950 = vmatmul.bf16.vlgmr.msra.gmra.mxu2 %v10632_v35  ;;  %v2716_v25 = vmul.f32 %v10650_v22, %v2715_v51  ;;  %v10720_v51 = vpop.xlane.xlu0 %2496  ;;  %v4037_v31 = vmul.f32 %v12616_v55, %v10536_v20  ;;  %vm2731_vm3 = vweird.f32 %v10738_v29  ;;  %vm2730_vm6 = vweird.f32 %v10703_v26  ;;  %v12637_v26 = vld [vmem:[#allocation44_spill] sm:$0xff] }
 0x874   :  { %4249 = vmatpush.bf16.msrb.mxu0 %v7917_v61  ;;  %v12633_v61 = vld [vmem:[#allocation45_spill] sm:$0xff]  ;;  %vm10850_vm7 = vmor %vm2730_vm6, %vm2731_vm3  ;;  %vm2750_vm12 = vweird.f32 %v10781_v60 }
 0x875   :  { %v2717_v37 = vmul.f32 0.5, %v2716_v25  ;;  %v2591_v25 = vmul.f32 %v10717_v44, %v10717_v44 }
 0x876   :  { %v10652_v8 = vpop.f32.mrf.mxu3  ;;  %4996 = vmatpush.bf16.msra.mxu3 %v7977_v10  ;;  %v12629_v10 = vld [vmem:[#allocation42_spill] sm:$0xff] }
 0x877   :  { %v2718_v49 = vsub.f32 1.5, %v2717_v37  ;;  %v2607_v11 = vsub.f32 %v2575_v1, %v2591_v25  ;;  %v12628_v25 = vld [vmem:[#allocation34_spill] sm:$0xff]  ;;  %v2618_v59 = vsub.f32 %v12629_v10, %v10586_v5  ;;  %v10796_v5 = vmul.f32 %v10590_v58, %v12590_v13 }
 0x878   :  { %v2858_v57 = vadd.f32 %v2842_v19, %v12628_v25  ;;  %v2577_v19 = vmul.f32 %v10666_v3, %v12590_v13  ;;  %v2592_v3 = vmul.f32 %v10801_v17, %v10801_v17 }
 0x879   :  { %v2719_v16 = vmul.f32 %v10650_v22, %v2718_v49  ;;  %v10753_v37 = vadd.f32 1e-05, %v2607_v11  ;;  %v2737_v11 = vmul.f32 0.5, %v2736_v28  ;;  %v2810_v38 = vmul.f32 %v2713_v45, %v2618_v59 }
 0x87a   :  { %4997 = vmatpush.bf16.msra.mxu3 %v7969_v4  ;;  %v10791_v6 = vpack.c.bf16 %v2859_v56, %v2858_v57  ;;  %v7913_v4 = vor.u32 %v8327_v42, %v7912_v9  ;;  %v2593_v54 = vmul.f32 %v10796_v5, %v10796_v5  ;;  %v2608_v14 = vsub.f32 %v2576_v46, %v2592_v3  ;;  %v7900_v3 = vld [vmem:[#allocation8 + $0x138] sm:$0xf] }
 0x87b   :  { %v10766_v1 = vpop.xlane.xlu0 %2498  ;;  %v2723_v48 = vsel %vm10755_vm14, %v10650_v22, %v2719_v16  ;;  %v7961_v22 = vor.u32 %v8346_v0, %v7958_v33  ;;  %8659 = vrsqrt.f32 %v10753_v37  ;;  %v2727_v16 = vmul.f32 0.5, %v2726_v21 }
 0x87c   :  { %v2811_v40 = vmul.f32 %v2723_v48, %v2619_v27  ;;  %8661 = vrsqrt.f32 %v10781_v60  ;;  %v2738_v34 = vsub.f32 1.5, %v2737_v11  ;;  %4250 = vmatpush.bf16.msrb.mxu0 %v7913_v4  ;;  %v2827_v15 = vmul.f32 %v10579_v30, %v2810_v38  ;;  %v12636_v38 = vld [vmem:[#allocation27_spill] sm:$0xff] }
 0x87d   :  { %v2728_v62 = vsub.f32 1.5, %v2727_v16  ;;  %v2609_v48 = vsub.f32 %v2577_v19, %v2593_v54  ;;  %v4038_v27 = vmul.f32 %v12616_v55, %v10538_v53  ;;  %v12632_v53 = vld [vmem:[#allocation28_spill] sm:$0xff]  ;;  %v10854_v11 = vadd.f32 1e-05, %v2608_v14  ;;  %v8325_v19 = vld [vmem:[#allocation8 + $0x200] sm:$0xf0] }
 0x87e   :  { %v10692_v7 = vpop.f32.mrf.mxu3  ;;  %4998 = vmatpush.bf16.msra.mxu3 %v7961_v22  ;;  %v2828_v24 = vmul.f32 %v10579_v30, %v2811_v40  ;;  %v2739_v33 = vmul.f32 %v10731_v43, %v2738_v34  ;;  %v2844_v41 = vadd.f32 %v10597_v52, %v2827_v15  ;;  %v7908_v22 = vld [vmem:[#allocation8 + $0x248] sm:$0xf]  ;;  %v2621_v40 = vsub.f32 %v12633_v61, %v10637_v23  ;;  %v7904_v23 = vld [vmem:[#allocation8 + $0x1c0] sm:$0xf] }
 0x87f   :  { %v2729_v25 = vmul.f32 %v10738_v29, %v2728_v62  ;;  %v10838_v20 = vadd.f32 1e-05, %v2609_v48  ;;  %v7909_v59 = vor.u32 %v8326_v36, %v7908_v22  ;;  %v2620_v42 = vsub.f32 %v12637_v26, %v10646_v32  ;;  %v8324_v48 = vld [vmem:[#allocation8 + $0x178] sm:$0xf0]  ;;  %v8323_v36 = vld [vmem:[#allocation8 + $0xf0] sm:$0xf0] }
 0x880   :  { %v2845_v0 = vadd.f32 %v10597_v52, %v2828_v24  ;;  %v2743_v39 = vsel %vm10834_vm5, %v10731_v43, %v2739_v33  ;;  %v2860_v9 = vadd.f32 %v2844_v41, %v12636_v38  ;;  %v4062_v4 = vpack.c.bf16 %v4038_v27, %v4037_v31  ;;  %v7892_v61 = vld [vmem:[#allocation8 + $0x28] sm:$0xf] }
 0x881   :  { %4251 = vmatpush.bf16.msrb.mxu0 %v7909_v59  ;;  %v2733_v43 = vsel %vm10850_vm7, %v10738_v29, %v2729_v25  ;;  %8663 = vrsqrt.f32 %v10838_v20  ;;  %v2813_v34 = vmul.f32 %v2743_v39, %v2621_v40  ;;  %v7905_v54 = vor.u32 %v8325_v19, %v7904_v23  ;;  %v8322_v40 = vld [vmem:[#allocation8 + $0x68] sm:$0xf0] }
 0x882   :  { %v2861_v55 = vadd.f32 %v2845_v0, %v12632_v53  ;;  %8665 = vrsqrt.f32 %v10854_v11  ;;  %v10869_v32 = vmul.f32 %v10766_v1, %v12590_v13  ;;  %v2812_v29 = vmul.f32 %v2733_v43, %v2620_v42 }
 0x883   :  { %4144 = vmatmul.bf16.gmra.mxu3 %v4060_v2  ;;  %4955 = vmatmul.bf16.gmra.mxu2 %v10711_v47  ;;  %v10808_v2 = vpop.eup %8659  ;;  %v2561_v56 = vpop.xlane.xlu0 %2560  ;;  %v10874_v0 = vmul.f32 %v10720_v51, %v12590_v13  ;;  %v7901_v14 = vor.u32 %v8324_v48, %v7900_v3  ;;  %v7896_v51 = vld [vmem:[#allocation8 + $0xb0] sm:$0xf]  ;;  %vm2760_vm10 = vweird.f32 %v10753_v37  ;;  %v7893_v42 = vor.u32 %v8322_v40, %v7892_v61  ;;  %v12646_v40 = vld [vmem:[#allocation22_spill] sm:$0xff] }
 0x884   :  { %v10815_v28 = vpop.eup %8661  ;;  %v2755_v12 = vmul.f32 %v10808_v2, %v10753_v37  ;;  %v10864_v24 = vpack.c.bf16 %v2861_v55, %v2860_v9  ;;  %v2595_v41 = vmul.f32 %v10869_v32, %v10869_v32  ;;  %v2578_v25 = vmul.f32 %v2561_v56, %v12590_v13  ;;  %v12652_v61 = vld [vmem:[#allocation23_spill] sm:$0xff] }
 0x885   :  { %v2745_v57 = vmul.f32 %v10815_v28, %v10781_v60  ;;  %4252 = vmatpush.bf16.msrb.mxu0 %v7905_v54  ;;  %v2594_v53 = vmul.f32 %v10874_v0, %v10874_v0  ;;  %v7897_v39 = vor.u32 %v8323_v36, %v7896_v51  ;;  %vm2761_vm8 = vweird.f32 %v10808_v2  ;;  %v12641_v54 = vld [vmem:[#allocation47_spill] sm:$0xff] }
 0x886   :  { %v10729_v50 = vpop.f32.mrf.mxu3  ;;  %v2756_v45 = vmul.f32 %v10808_v2, %v2755_v12  ;;  %v2830_v12 = vmul.f32 %v10579_v30, %v2813_v34  ;;  %vm2751_vm9 = vweird.f32 %v10815_v28  ;;  %vm10901_vm11 = vmor %vm2760_vm10, %vm2761_vm8  ;;  %vm2780_vm1 = vweird.f32 %v10838_v20 }
 0x887   :  { %v2746_v16 = vmul.f32 %v10815_v28, %v2745_v57  ;;  %v10880_v27 = vpop.eup %8663  ;;  %v2829_v57 = vmul.f32 %v10579_v30, %v2812_v29  ;;  %vm2752_vm13 = vmor %vm2750_vm12, %vm2751_vm9  ;;  %v12642_v29 = vld [vmem:[#allocation19_spill] sm:$0xff]  ;;  %vm2770_vm3 = vweird.f32 %v10854_v11 }
 0x888   :  { %v2757_v46 = vmul.f32 0.5, %v2756_v45  ;;  %v10886_v10 = vpop.eup %8665  ;;  %v2847_v59 = vadd.f32 %v10597_v52, %v2830_v12  ;;  %v2775_v56 = vmul.f32 %v10880_v27, %v10838_v20  ;;  %vm2781_vm14 = vweird.f32 %v10880_v27 }
 0x889   :  { %v2747_v62 = vmul.f32 0.5, %v2746_v16  ;;  %4253 = vmatpush.bf16.msrb.mxu0 %v7901_v14  ;;  %v2846_v38 = vadd.f32 %v10597_v52, %v2829_v57  ;;  %v2765_v26 = vmul.f32 %v10886_v10, %v10854_v11  ;;  %vm2771_vm15 = vweird.f32 %v10886_v10  ;;  %vm10951_vm2 = vmor %vm2780_vm1, %vm2781_vm14 }
 0x88a   :  { %v2758_v31 = vsub.f32 1.5, %v2757_v46  ;;  %v2776_v37 = vmul.f32 %v10880_v27, %v2775_v56  ;;  %v2623_v46 = vsub.f32 %v12641_v54, %v10717_v44  ;;  %vm2772_vm4 = vmor %vm2770_vm3, %vm2771_vm15  ;;  %v12649_v54 = vld [vmem:[#allocation48_spill] sm:$0xff] }
 0x88b   :  { %v2563_v15 = vpop.xlane.xlu0 %2562  ;;  %v2748_v22 = vsub.f32 1.5, %v2747_v62  ;;  %v2862_v62 = vadd.f32 %v2846_v38, %v12642_v29  ;;  %v2766_v3 = vmul.f32 %v10886_v10, %v2765_v26 }
 0x88c   :  { %v2579_v33 = vmul.f32 %v2563_v15, %v12590_v13  ;;  %v2759_v45 = vmul.f32 %v10808_v2, %v2758_v31  ;;  %v2777_v12 = vmul.f32 0.5, %v2776_v37 }
 0x88d   :  { %v2749_v9 = vmul.f32 %v10815_v28, %v2748_v22  ;;  %4254 = vmatpush.bf16.msrb.mxu0 %v7897_v39 }
 0x88e   :  { %v10771_v49 = vpop.f32.mrf.mxu3  ;;  %v2611_v55 = vsub.f32 %v2579_v33, %v2595_v41  ;;  %v2763_v19 = vsel %vm10901_vm11, %v10808_v2, %v2759_v45  ;;  %v12643_v2 = vld [vmem:[#allocation46_spill] sm:$0xff]  ;;  %v2778_v41 = vsub.f32 1.5, %v2777_v12 }
 0x88f   :  { %v2753_v60 = vsel %vm2752_vm13, %v10815_v28, %v2749_v9  ;;  %v2622_v48 = vsub.f32 %v12643_v2, %v10724_v18  ;;  %v2815_v44 = vmul.f32 %v2763_v19, %v2623_v46  ;;  %v2767_v28 = vmul.f32 0.5, %v2766_v3 }
 0x890   :  { %v10905_v16 = vadd.f32 1e-05, %v2611_v55  ;;  %v2779_v55 = vmul.f32 %v10880_v27, %v2778_v41 }
 0x891   :  { %4255 = vmatpush.bf16.msrb.mxu0 %v7893_v42  ;;  %v2814_v14 = vmul.f32 %v2753_v60, %v2622_v48  ;;  %v2832_v31 = vmul.f32 %v10579_v30, %v2815_v44  ;;  %v2768_v51 = vsub.f32 1.5, %v2767_v28  ;;  %v12647_v42 = vld [vmem:[#allocation49_spill] sm:$0xff] }
 0x892   :  { %8667 = vrsqrt.f32 %v10905_v16  ;;  %v2783_v38 = vsel %vm10951_vm2, %v10880_v27, %v2779_v55  ;;  %v2625_v43 = vsub.f32 %v12647_v42, %v10796_v5  ;;  %v2624_v27 = vsub.f32 %v12649_v54, %v10801_v17  ;;  %v12654_v54 = vld [vmem:[#allocation26_spill] sm:$0xff] }
 0x893   :  { %4149 = vmatmul.bf16.gmra.mxu3 %v4061_v63  ;;  %4960 = vmatmul.bf16.gmra.mxu2 %v10791_v6  ;;  %v2610_v63 = vsub.f32 %v2578_v25, %v2594_v53  ;;  %v2831_v22 = vmul.f32 %v10579_v30, %v2814_v14  ;;  %v2849_v53 = vadd.f32 %v10597_v52, %v2832_v31  ;;  %vm2800_vm7 = vweird.f32 %v10905_v16 }
 0x894   :  { %v2769_v45 = vmul.f32 %v10886_v10, %v2768_v51  ;;  %v2817_v29 = vmul.f32 %v2783_v38, %v2625_v43 }
 0x895   :  { %v10919_v15 = vadd.f32 1e-05, %v2610_v63  ;;  %v2848_v39 = vadd.f32 %v10597_v52, %v2831_v22  ;;  %v2865_v63 = vadd.f32 %v2849_v53, %v12646_v40 }
 0x896   :  { %v10806_v58 = vpop.f32.mrf.mxu3  ;;  %v2773_v37 = vsel %vm2772_vm4, %v10886_v10, %v2769_v45  ;;  %v2834_v2 = vmul.f32 %v10579_v30, %v2817_v29 }
 0x897   :  { %8669 = vrsqrt.f32 %v10919_v15  ;;  %v2816_v5 = vmul.f32 %v2773_v37, %v2624_v27  ;;  %vm2790_vm9 = vweird.f32 %v10919_v15 }
 0x898   :  { %v10935_v57 = vpop.eup %8667  ;;  %v2851_v41 = vadd.f32 %v10597_v52, %v2834_v2 }
 0x899   :  { %v2833_v17 = vmul.f32 %v10579_v30, %v2816_v5  ;;  %vm2801_vm5 = vweird.f32 %v10935_v57 }
 0x89a   :  { %vm2802_vm8 = vmor %vm2800_vm7, %vm2801_vm5 }
 0x89b   :  { %v2850_v51 = vadd.f32 %v10597_v52, %v2833_v17 }
 0x89d   :  { %v10938_v36 = vpop.eup %8669  ;;  %v2866_v40 = vadd.f32 %v2850_v51, %v12652_v61 }
 0x89e   :  { %v10846_v21 = vpop.f32.mrf.mxu3  ;;  %v2785_v56 = vmul.f32 %v10938_v36, %v10919_v15  ;;  %vm2791_vm6 = vweird.f32 %v10938_v36 }
 0x89f   :  { %vm2792_vm10 = vmor %vm2790_vm9, %vm2791_vm6 }
 0x8a0   :  { %v2786_v11 = vmul.f32 %v10938_v36, %v2785_v56 }
 0x8a2   :  { %v2787_v60 = vmul.f32 0.5, %v2786_v11 }
 0x8a3   :  { %4154 = vmatmul.bf16.gmra.mxu3 %v4062_v4  ;;  %4965 = vmatmul.bf16.gmra.mxu2 %v10864_v24  ;;  %v12640_v4 = vld [vmem:[#allocation20_spill] sm:$0xff] }
 0x8a4   :  { %v2863_v23 = vadd.f32 %v2847_v59, %v12640_v4  ;;  %v2788_v14 = vsub.f32 1.5, %v2787_v60  ;;  %v12655_v60 = vld [vmem:[#allocation25_spill] sm:$0xff] }
 0x8a6   :  { %v10878_v1 = vpop.f32.mrf.mxu3  ;;  %v10927_v33 = vpack.c.bf16 %v2863_v23, %v2862_v62  ;;  %v12648_v23 = vld [vmem:[#allocation21_spill] sm:$0xff]  ;;  %v2789_v53 = vmul.f32 %v10938_v36, %v2788_v14 }
 0x8a7   :  { %v2864_v19 = vadd.f32 %v2848_v39, %v12648_v23  ;;  %v12651_v39 = vld [vmem:[#allocation52_spill] sm:$0xff] }
 0x8a8   :  { %v2627_v45 = vsub.f32 %v12651_v39, %v10869_v32 }
 0x8a9   :  { %v10970_v46 = vpack.c.bf16 %v2865_v63, %v2864_v19  ;;  %v12653_v63 = vld [vmem:[#allocation50_spill] sm:$0xff] }
 0x8aa   :  { %v2626_v38 = vsub.f32 %v12653_v63, %v10874_v0 }
 0x8ae   :  { %v10913_v34 = vpop.f32.mrf.mxu3 }
 0x8b3   :  { %4970 = vmatmul.bf16.gmra.mxu2 %v10927_v33  ;;  %4999 = vmatmul.bf16.vlgmr.msra.gmra.mxu3 %v10632_v35  ;;  %v2795_v35 = vmul.f32 %v10935_v57, %v10905_v16  ;;  %v2793_v16 = vsel %vm2792_vm10, %v10938_v36, %v2789_v53 }
 0x8b5   :  { %v2796_v9 = vmul.f32 %v10935_v57, %v2795_v35 }
 0x8b6   :  { %v10933_v25 = vpop.f32.mrf.mxu2  ;;  %v4120_v18 = vpop.f32.mrf.mxu3 }
 0x8b7   :  { %v4121_v59 = vadd.f32 1e-06, %v4120_v18  ;;  %v2797_v62 = vmul.f32 0.5, %v2796_v9  ;;  %v2818_v9 = vmul.f32 %v2793_v16, %v2626_v38 }
 0x8b9   :  { %8671 = vrcp.f32 %v4121_v59  ;;  %v2798_v10 = vsub.f32 1.5, %v2797_v62  ;;  %v2835_v36 = vmul.f32 %v10579_v30, %v2818_v9 }
 0x8be   :  { %v10961_v26 = vpop.f32.mrf.mxu2  ;;  %v4122_v20 = vpop.f32.mrf.mxu3 }
 0x8bf   :  { %v4123_v4 = vadd.f32 1e-06, %v4122_v20  ;;  %v8672_v3 = vpop.eup %8671 }
 0x8c0   :  { %v4176_v28 = vmul.f32 %v8672_v3, %v10652_v8  ;;  %v12650_v8 = vld [vmem:[#allocation24_spill] sm:$0xff] }
 0x8c1   :  { %8673 = vrcp.f32 %v4123_v4 }
 0x8c3   :  { %4975 = vmatmul.bf16.gmra.mxu2 %v10970_v46  ;;  %5004 = vmatmul.bf16.gmra.mxu3 %v10711_v47  ;;  %v2799_v47 = vmul.f32 %v10935_v57, %v2798_v10 }
 0x8c5   :  { %v2803_v55 = vsel %vm2802_vm8, %v10935_v57, %v2799_v47 }
 0x8c6   :  { %v10975_v48 = vpop.f32.mrf.mxu2  ;;  %v4125_v44 = vpop.f32.mrf.mxu3  ;;  %v2819_v57 = vmul.f32 %v2803_v55, %v2627_v45 }
 0x8c7   :  { %v8674_v12 = vpop.eup %8673  ;;  %v4126_v22 = vadd.f32 1e-06, %v4125_v44 }
 0x8c8   :  { %v4177_v31 = vmul.f32 %v8674_v12, %v10692_v7  ;;  %v2867_v7 = vadd.f32 %v2851_v41, %v12650_v8  ;;  %v2836_v20 = vmul.f32 %v10579_v30, %v2819_v57 }
 0x8c9   :  { %8675 = vrcp.f32 %v4126_v22 }
 0x8ca   :  { %v4192_v18 = vpack.c.bf16 %v4177_v31, %v4176_v28  ;;  %v10998_v15 = vpack.c.bf16 %v2867_v7, %v2866_v40  ;;  %v2853_v19 = vadd.f32 %v10597_v52, %v2836_v20 }
 0x8cc   :  { %4256 = vmatmul.bf16.vlgmr.msrb.gmra.mxu0 %v4192_v18  ;;  %v2869_v27 = vadd.f32 %v2853_v19, %v12654_v54 }
 0x8ce   :  { %v10990_v35 = vpop.f32.mrf.mxu2  ;;  %v4127_v59 = vpop.f32.mrf.mxu3 }
 0x8cf   :  { %v4128_v56 = vadd.f32 1e-06, %v4127_v59  ;;  %v8676_v32 = vpop.eup %8675 }
 0x8d0   :  { %v4178_v0 = vmul.f32 %v8676_v32, %v10729_v50 }
 0x8d1   :  { %8677 = vrcp.f32 %v4128_v56 }
 0x8d3   :  { %4980 = vmatmul.bf16.gmra.mxu2 %v10998_v15  ;;  %5009 = vmatmul.bf16.gmra.mxu3 %v10791_v6  ;;  %v2852_v6 = vadd.f32 %v10597_v52, %v2835_v36 }
 0x8d5   :  { %v2868_v30 = vadd.f32 %v2852_v6, %v12655_v60 }
 0x8d6   :  { %v11003_v42 = vpop.f32.mrf.mxu2  ;;  %v4130_v43 = vpop.f32.mrf.mxu3 }
 0x8d7   :  { %v8678_v4 = vpop.eup %8677  ;;  %v4131_v11 = vadd.f32 1e-06, %v4130_v43  ;;  %v11014_v50 = vpack.c.bf16 %v2869_v27, %v2868_v30 }
 0x8d8   :  { %v4179_v23 = vmul.f32 %v8678_v4, %v10771_v49 }
 0x8d9   :  { %8679 = vrcp.f32 %v4131_v11 }
 0x8da   :  { %v4193_v37 = vpack.c.bf16 %v4179_v23, %v4178_v0 }
 0x8dc   :  { %4261 = vmatmul.bf16.gmra.mxu0 %v4193_v37 }
 0x8de   :  { %v11011_v29 = vpop.f32.mrf.mxu2  ;;  %v4132_v62 = vpop.f32.mrf.mxu3 }
 0x8df   :  { %v4133_v5 = vadd.f32 1e-06, %v4132_v62  ;;  %v8680_v49 = vpop.eup %8679 }
 0x8e0   :  { %v4180_v10 = vmul.f32 %v8680_v49, %v10806_v58 }
 0x8e1   :  { %8681 = vrcp.f32 %v4133_v5 }
 0x8e3   :  { %4985 = vmatmul.bf16.gmra.mxu2 %v11014_v50  ;;  %5014 = vmatmul.bf16.gmra.mxu3 %v10864_v24 }
 0x8e6   :  { %v11018_v3 = vpop.f32.mrf.mxu2  ;;  %v4135_v52 = vpop.f32.mrf.mxu3 }
 0x8e7   :  { %v8682_v2 = vpop.eup %8681  ;;  %v4136_v17 = vadd.f32 1e-06, %v4135_v52 }
 0x8e8   :  { %v4181_v44 = vmul.f32 %v8682_v2, %v10846_v21 }
 0x8e9   :  { %8683 = vrcp.f32 %v4136_v17 }
 0x8ea   :  { %v4194_v12 = vpack.c.bf16 %v4181_v44, %v4180_v10 }
 0x8ec   :  { %4266 = vmatmul.bf16.gmra.mxu0 %v4194_v12 }
 0x8ee   :  { %v11022_v14 = vpop.f32.mrf.mxu2  ;;  %v4137_v28 = vpop.f32.mrf.mxu3 }
 0x8ef   :  { %v4138_v31 = vadd.f32 1e-06, %v4137_v28  ;;  %v8684_v24 = vpop.eup %8683 }
 0x8f0   :  { %v4182_v22 = vmul.f32 %v8684_v24, %v10878_v1 }
 0x8f1   :  { %8685 = vrcp.f32 %v4138_v31 }
 0x8f3   :  { %5019 = vmatmul.bf16.gmra.mxu3 %v10927_v33 }
 0x8f6   :  { %v4140_v41 = vpop.f32.mrf.mxu3  ;;  %v4951_v47 = vpop.f32.mrf.mxu2 }
 0x8f7   :  { %v8686_v18 = vpop.eup %8685  ;;  %v4141_v51 = vadd.f32 1e-06, %v4140_v41  ;;  %v5152_v53 = vmul.f32 1.442695, %v4951_v47  ;;  %vm5120_vm11 = vcmp.gt.f32.partialorder %v4951_v47, 0.0 }
 0x8f8   :  { %v4183_v58 = vmul.f32 %v8686_v18, %v10913_v34  ;;  %v5136_v34 = vadd.f32 1.0, %v4951_v47 }
 0x8f9   :  { %8687 = vrcp.f32 %v4141_v51 }
 0x8fa   :  { %v4195_v21 = vpack.c.bf16 %v4183_v58, %v4182_v22  ;;  %8689 = vpow2.f32 %v5152_v53 }
 0x8fc   :  { %4271 = vmatmul.bf16.gmra.mxu0 %v4195_v21 }
 0x8fe   :  { %v4142_v8 = vpop.f32.mrf.mxu3  ;;  %v4953_v7 = vpop.f32.mrf.mxu2 }
 0x8ff   :  { %v4143_v55 = vadd.f32 1e-06, %v4142_v8  ;;  %v5154_v59 = vmul.f32 1.442695, %v4953_v7  ;;  %v8688_v33 = vpop.eup %8687  ;;  %v5137_v61 = vadd.f32 1.0, %v4953_v7  ;;  %vm5121_vm12 = vcmp.gt.f32.partialorder %v4953_v7, 0.0 }
 0x900   :  { %v8690_v39 = vpop.eup %8689  ;;  %v4184_v63 = vmul.f32 %v8688_v33, %v10933_v25 }
 0x901   :  { %8691 = vrcp.f32 %v4143_v55  ;;  %v11030_v57 = vsel %vm5120_vm11, %v5136_v34, %v8690_v39 }
 0x902   :  { %8693 = vpow2.f32 %v5154_v59 }
 0x903   :  { %5024 = vmatmul.bf16.gmra.mxu3 %v10970_v46 }
 0x906   :  { %v4145_v45 = vpop.f32.mrf.mxu3  ;;  %v4956_v1 = vpop.f32.mrf.mxu2 }
 0x907   :  { %v8692_v56 = vpop.eup %8691  ;;  %v5156_v40 = vmul.f32 1.442695, %v4956_v1  ;;  %v4146_v20 = vadd.f32 1e-06, %v4145_v45  ;;  %v5138_v36 = vadd.f32 1.0, %v4956_v1  ;;  %vm5122_vm13 = vcmp.gt.f32.partialorder %v4956_v1, 0.0 }
 0x908   :  { %v8694_v16 = vpop.eup %8693  ;;  %v4185_v38 = vmul.f32 %v8692_v56, %v10961_v26 }
 0x909   :  { %v11032_v9 = vsel %vm5121_vm12, %v5137_v61, %v8694_v16  ;;  %8695 = vpow2.f32 %v5156_v40 }
 0x90a   :  { %v5820_v46 = vadd.f32 %v11032_v9, %v11030_v57  ;;  %v4196_v32 = vpack.c.bf16 %v4185_v38, %v4184_v63  ;;  %8697 = vrcp.f32 %v4146_v20 }
 0x90c   :  { %4276 = vmatmul.bf16.gmra.mxu0 %v4196_v32 }
 0x90e   :  { %v4147_v43 = vpop.f32.mrf.mxu3  ;;  %v4958_v4 = vpop.f32.mrf.mxu2 }
 0x90f   :  { %v4148_v0 = vadd.f32 1e-06, %v4147_v43  ;;  %v5158_v23 = vmul.f32 1.442695, %v4958_v4  ;;  %v8696_v25 = vpop.eup %8695  ;;  %v5139_v27 = vadd.f32 1.0, %v4958_v4  ;;  %vm5123_vm14 = vcmp.gt.f32.partialorder %v4958_v4, 0.0 }
 0x910   :  { %v11036_v26 = vsel %vm5122_vm13, %v5138_v36, %v8696_v25  ;;  %v8698_v37 = vpop.eup %8697 }
 0x911   :  { %8699 = vrcp.f32 %v4148_v0  ;;  %v5821_v19 = vadd.f32 %v5820_v46, %v11036_v26  ;;  %v4186_v60 = vmul.f32 %v8698_v37, %v10975_v48 }
 0x912   :  { %8701 = vpow2.f32 %v5158_v23 }
 0x913   :  { %5029 = vmatmul.bf16.gmra.mxu3 %v10998_v15 }
 0x916   :  { %v4150_v11 = vpop.f32.mrf.mxu3  ;;  %v4961_v6 = vpop.f32.mrf.mxu2 }
 0x917   :  { %v8700_v54 = vpop.eup %8699  ;;  %v5160_v62 = vmul.f32 1.442695, %v4961_v6  ;;  %v4151_v10 = vadd.f32 1e-06, %v4150_v11  ;;  %v5140_v12 = vadd.f32 1.0, %v4961_v6  ;;  %vm5124_vm15 = vcmp.gt.f32.partialorder %v4961_v6, 0.0 }
 0x918   :  { %v8702_v5 = vpop.eup %8701  ;;  %v4187_v30 = vmul.f32 %v8700_v54, %v10990_v35 }
 0x919   :  { %v11042_v49 = vsel %vm5123_vm14, %v5139_v27, %v8702_v5  ;;  %8703 = vpow2.f32 %v5160_v62 }
 0x91a   :  { %v5822_v52 = vadd.f32 %v5821_v19, %v11042_v49  ;;  %v4197_v2 = vpack.c.bf16 %v4187_v30, %v4186_v60  ;;  %8705 = vrcp.f32 %v4151_v10 }
 0x91c   :  { %4281 = vmatmul.bf16.gmra.mxu0 %v4197_v2 }
 0x91e   :  { %v4152_v15 = vpop.f32.mrf.mxu3  ;;  %v4963_v44 = vpop.f32.mrf.mxu2 }
 0x91f   :  { %v4153_v17 = vadd.f32 1e-06, %v4152_v15  ;;  %v5162_v28 = vmul.f32 1.442695, %v4963_v44  ;;  %v8704_v31 = vpop.eup %8703  ;;  %v5141_v22 = vadd.f32 1.0, %v4963_v44  ;;  %vm5125_vm1 = vcmp.gt.f32.partialorder %v4963_v44, 0.0 }
 0x920   :  { %v11045_v24 = vsel %vm5124_vm15, %v5140_v12, %v8704_v31  ;;  %v8706_v35 = vpop.eup %8705 }
 0x921   :  { %8707 = vrcp.f32 %v4153_v17  ;;  %v5823_v48 = vadd.f32 %v5822_v52, %v11045_v24  ;;  %v4188_v51 = vmul.f32 %v8706_v35, %v11003_v42 }
 0x922   :  { %8709 = vpow2.f32 %v5162_v28 }
 0x923   :  { %5034 = vmatmul.bf16.gmra.mxu3 %v11014_v50 }
 0x926   :  { %v4155_v41 = vpop.f32.mrf.mxu3  ;;  %v4966_v47 = vpop.f32.mrf.mxu2 }
 0x927   :  { %v8708_v18 = vpop.eup %8707  ;;  %v5164_v58 = vmul.f32 1.442695, %v4966_v47  ;;  %v4156_v59 = vadd.f32 1e-06, %v4155_v41  ;;  %v5142_v39 = vadd.f32 1.0, %v4966_v47  ;;  %vm5126_vm2 = vcmp.gt.f32.partialorder %v4966_v47, 0.0 }
 0x928   :  { %v8710_v21 = vpop.eup %8709  ;;  %v4189_v53 = vmul.f32 %v8708_v18, %v11011_v29 }
 0x929   :  { %v11051_v8 = vsel %vm5125_vm1, %v5141_v22, %v8710_v21  ;;  %8711 = vpow2.f32 %v5164_v58 }
 0x92a   :  { %v5824_v7 = vadd.f32 %v5823_v48, %v11051_v8  ;;  %v4198_v55 = vpack.c.bf16 %v4189_v53, %v4188_v51  ;;  %8713 = vrcp.f32 %v4156_v59 }
 0x92c   :  { %4286 = vmatmul.bf16.gmra.mxu0 %v4198_v55 }
 0x92e   :  { %v4157_v50 = vpop.f32.mrf.mxu3  ;;  %v4968_v33 = vpop.f32.mrf.mxu2 }
 0x92f   :  { %v4158_v45 = vadd.f32 1e-06, %v4157_v50  ;;  %v5166_v1 = vmul.f32 1.442695, %v4968_v33  ;;  %v8712_v56 = vpop.eup %8711  ;;  %v5143_v63 = vadd.f32 1.0, %v4968_v33  ;;  %vm5127_vm3 = vcmp.gt.f32.partialorder %v4968_v33, 0.0 }
 0x930   :  { %v11054_v34 = vsel %vm5126_vm2, %v5142_v39, %v8712_v56  ;;  %v8714_v29 = vpop.eup %8713 }
 0x931   :  { %8715 = vrcp.f32 %v4158_v45  ;;  %v5825_v42 = vadd.f32 %v5824_v7, %v11054_v34  ;;  %v4190_v46 = vmul.f32 %v8714_v29, %v11018_v3 }
 0x932   :  { %8717 = vpow2.f32 %v5166_v1 }
 0x936   :  { %v4971_v61 = vpop.f32.mrf.mxu2  ;;  %v11057_v40 = vpop.f32.mrf.mxu3 }
 0x937   :  { %v8716_v16 = vpop.eup %8715  ;;  %v5168_v36 = vmul.f32 1.442695, %v4971_v61  ;;  %v5144_v37 = vadd.f32 1.0, %v4971_v61  ;;  %vm5128_vm4 = vcmp.gt.f32.partialorder %v4971_v61, 0.0 }
 0x938   :  { %v8718_v38 = vpop.eup %8717  ;;  %v4191_v32 = vmul.f32 %v8716_v16, %v11022_v14 }
 0x939   :  { %v11061_v20 = vsel %vm5127_vm3, %v5143_v63, %v8718_v38  ;;  %8719 = vpow2.f32 %v5168_v36 }
 0x93a   :  { %v11064_v43 = vadd.f32 %v5825_v42, %v11061_v20  ;;  %v4199_v4 = vpack.c.bf16 %v4191_v32, %v4190_v46 }
 0x93c   :  { %4291 = vmatmul.bf16.gmra.mxu0 %v4199_v4 }
 0x93e   :  { %v4973_v0 = vpop.f32.mrf.mxu2  ;;  %v11066_v23 = vpop.f32.mrf.mxu3 }
 0x93f   :  { %v5170_v25 = vmul.f32 1.442695, %v4973_v0  ;;  %v8720_v19 = vpop.eup %8719  ;;  %v5145_v11 = vadd.f32 1.0, %v4973_v0  ;;  %vm5129_vm5 = vcmp.gt.f32.partialorder %v4973_v0, 0.0 }
 0x940   :  { %v11070_v27 = vsel %vm5128_vm4, %v5144_v37, %v8720_v19 }
 0x941   :  { %8721 = vpow2.f32 %v5170_v25 }
 0x946   :  { %v4976_v3 = vpop.f32.mrf.mxu2  ;;  %v11068_v6 = vpop.f32.mrf.mxu3 }
 0x947   :  { %v8722_v14 = vpop.eup %8721  ;;  %v5172_v54 = vmul.f32 1.442695, %v4976_v3  ;;  %v5146_v30 = vadd.f32 1.0, %v4976_v3  ;;  %vm5130_vm6 = vcmp.gt.f32.partialorder %v4976_v3, 0.0 }
 0x948   :  { %v11072_v62 = vsel %vm5129_vm5, %v5145_v11, %v8722_v14 }
 0x949   :  { %8723 = vpow2.f32 %v5172_v54  ;;  %v5833_v5 = vadd.f32 %v11072_v62, %v11070_v27  ;;  %v11076_v60 = vpop.f32.mrf.mxu0 }
 0x94a   :  { %4299 = vadd.xlane.f32.xlu0 %v11076_v60  ;;  %v4347_v22 = vmul.f32 %v11076_v60, %v11076_v60 }
 0x94e   :  { %v4978_v52 = vpop.f32.mrf.mxu2  ;;  %v11079_v2 = vpop.f32.mrf.mxu3 }
 0x94f   :  { %v8724_v10 = vpop.eup %8723  ;;  %v5174_v15 = vmul.f32 1.442695, %v4978_v52  ;;  %v5147_v31 = vadd.f32 1.0, %v4978_v52  ;;  %vm5131_vm7 = vcmp.gt.f32.partialorder %v4978_v52, 0.0 }
 0x950   :  { %v11081_v44 = vsel %vm5130_vm6, %v5146_v30, %v8724_v10 }
 0x951   :  { %v5834_v12 = vadd.f32 %v5833_v5, %v11081_v44  ;;  %8725 = vpow2.f32 %v5174_v15  ;;  %v11084_v17 = vpop.f32.mrf.mxu0 }
 0x952   :  { %4301 = vadd.xlane.f32.xlu0 %v11084_v17  ;;  %v4348_v28 = vmul.f32 %v11084_v17, %v11084_v17 }
 0x954   :  { %4365 = vadd.xlane.f32.xlu2 %v4348_v28 }
 0x956   :  { %v4981_v48 = vpop.f32.mrf.mxu2  ;;  %v5010_v35 = vpop.f32.mrf.mxu3 }
 0x957   :  { %v8726_v41 = vpop.eup %8725  ;;  %v5176_v47 = vmul.f32 1.442695, %v4981_v48  ;;  %v5148_v53 = vadd.f32 1.0, %v4981_v48  ;;  %vm5132_vm8 = vcmp.gt.f32.partialorder %v4981_v48, 0.0  ;;  %v5220_v3 = vpack.c.bf16 %v5010_v35, %v5010_v35 }
 0x958   :  { %v11089_v18 = vsel %vm5131_vm7, %v5147_v31, %v8726_v41  ;;  %v5218_v48 = vpack.c.bf16 %v11068_v6, %v11068_v6 }
 0x959   :  { %8727 = vpow2.f32 %v5176_v47  ;;  %v5835_v58 = vadd.f32 %v5834_v12, %v11089_v18  ;;  %v11094_v21 = vpop.f32.mrf.mxu0  ;;  %v5219_v12 = vpack.c.bf16 %v11079_v2, %v11079_v2  ;;  %v5284_v35 = vunpack.c.l.b16 %v5220_v3 }
 0x95a   :  { %4363 = vadd.xlane.f32.xlu0 %v4347_v22  ;;  %v4349_v51 = vmul.f32 %v11094_v21, %v11094_v21  ;;  %v5216_v2 = vpack.c.bf16 %v11057_v40, %v11057_v40 }
 0x95c   :  { %4367 = vadd.xlane.f32.xlu2 %v4349_v51  ;;  %v5283_v51 = vunpack.c.l.b16 %v5219_v12 }
 0x95e   :  { %v4983_v7 = vpop.f32.mrf.mxu2  ;;  %v5012_v55 = vpop.f32.mrf.mxu3 }
 0x95f   :  { %v8728_v59 = vpop.eup %8727  ;;  %v5178_v50 = vmul.f32 1.442695, %v4983_v7  ;;  %v5149_v1 = vadd.f32 1.0, %v4983_v7  ;;  %vm5133_vm9 = vcmp.gt.f32.partialorder %v4983_v7, 0.0  ;;  %v5221_v19 = vpack.c.bf16 %v5012_v55, %v5012_v55 }
 0x960   :  { %v11098_v33 = vsel %vm5132_vm8, %v5148_v53, %v8728_v59  ;;  %v5282_v55 = vunpack.c.l.b16 %v5218_v48 }
 0x961   :  { %v5836_v39 = vadd.f32 %v5835_v58, %v11098_v33  ;;  %8729 = vpow2.f32 %v5178_v50  ;;  %v11101_v45 = vpop.f32.mrf.mxu0  ;;  %v5285_v28 = vunpack.c.l.b16 %v5221_v19  ;;  %v5217_v58 = vpack.c.bf16 %v11066_v23, %v11066_v23  ;;  %v7952_v50 = vld [vmem:[#allocation8 + $0x3e4] sm:$0xf] }
 0x962   :  { %4305 = vadd.xlane.f32.xlu1 %v11101_v45  ;;  %4303 = vadd.xlane.f32.xlu0 %v11094_v21  ;;  %v4350_v63 = vmul.f32 %v11101_v45, %v11101_v45 }
 0x963   :  { %v5290_v53 = vpack.c.b16 %v5285_v28, %v5284_v35  ;;  %v7932_v28 = vld [vmem:[#allocation8 + $0x13c] sm:$0xf] }
 0x966   :  { %v4986_v56 = vpop.f32.mrf.mxu2  ;;  %v5015_v42 = vpop.f32.mrf.mxu3 }
 0x967   :  { %v8730_v29 = vpop.eup %8729  ;;  %v5180_v61 = vmul.f32 1.442695, %v4986_v56  ;;  %v5222_v32 = vpack.c.bf16 %v5015_v42, %v5015_v42  ;;  %v5150_v4 = vadd.f32 1.0, %v4986_v56  ;;  %vm5134_vm10 = vcmp.gt.f32.partialorder %v4986_v56, 0.0  ;;  %v7948_v56 = vld [vmem:[#allocation8 + $0x35c] sm:$0xf] }
 0x968   :  { %v11105_v16 = vsel %vm5133_vm9, %v5149_v1, %v8730_v29  ;;  %v8344_v42 = vld [vmem:[#allocation8 + $0x39c] sm:$0xf0]  ;;  %v5281_v29 = vunpack.c.l.b16 %v5217_v58  ;;  %v7928_v58 = vld [vmem:[#allocation8 + $0xb4] sm:$0xf] }
 0x969   :  { %8731 = vpow2.f32 %v5180_v61  ;;  %v5837_v38 = vadd.f32 %v5836_v39, %v11105_v16  ;;  %v11110_v46 = vpop.f32.mrf.mxu0  ;;  %v5286_v30 = vunpack.c.l.b16 %v5222_v32  ;;  %v8345_v39 = vld [vmem:[#allocation8 + $0x424] sm:$0xf0]  ;;  %v5289_v61 = vpack.c.b16 %v5283_v51, %v5282_v55  ;;  %v8339_v51 = vld [vmem:[#allocation8 + $0xf4] sm:$0xf0]  ;;  %v8338_v55 = vld [vmem:[#allocation8 + $0x6c] sm:$0xf0] }
 0x96a   :  { %4307 = vadd.xlane.f32.xlu1 %v11110_v46  ;;  %4369 = vadd.xlane.f32.xlu0 %v4350_v63  ;;  %v4351_v54 = vmul.f32 %v11110_v46, %v11110_v46  ;;  %v7953_v1 = vor.u32 %v8345_v39, %v7952_v50  ;;  %v7949_v40 = vor.u32 %v8344_v42, %v7948_v56  ;;  %v5280_v63 = vunpack.c.l.b16 %v5216_v2 }
 0x96b   :  { %v7929_v2 = vor.u32 %v8339_v51, %v7928_v58 }
 0x96c   :  { %4805 = vmatpush.bf16.msra.mxu1 %v7953_v1  ;;  %v5288_v32 = vpack.c.b16 %v5281_v29, %v5280_v63 }
 0x96e   :  { %v4988_v36 = vpop.f32.mrf.mxu2  ;;  %v5017_v0 = vpop.f32.mrf.mxu3 }
 0x96f   :  { %v8732_v25 = vpop.eup %8731  ;;  %v5182_v37 = vmul.f32 1.442695, %v4988_v36  ;;  %v5223_v11 = vpack.c.bf16 %v5017_v0, %v5017_v0  ;;  %v5151_v41 = vadd.f32 1.0, %v4988_v36  ;;  %vm5135_vm11 = vcmp.gt.f32.partialorder %v4988_v36, 0.0  ;;  %v7944_v36 = vld [vmem:[#allocation8 + $0x2d4] sm:$0xf] }
 0x970   :  { %v11113_v14 = vsel %vm5134_vm10, %v5150_v4, %v8732_v25  ;;  %4806 = vmatpush.bf16.msra.mxu1 %v7949_v40  ;;  %v8343_v0 = vld [vmem:[#allocation8 + $0x314] sm:$0xf0] }
 0x971   :  { %v5838_v5 = vadd.f32 %v5837_v38, %v11113_v14  ;;  %8733 = vpow2.f32 %v5182_v37  ;;  %v5287_v52 = vunpack.c.l.b16 %v5223_v11  ;;  %v11118_v10 = vpop.f32.mrf.mxu0  ;;  %v7945_v19 = vor.u32 %v8343_v0, %v7944_v36  ;;  %v7940_v37 = vld [vmem:[#allocation8 + $0x24c] sm:$0xf]  ;;  %v8342_v11 = vld [vmem:[#allocation8 + $0x28c] sm:$0xf0] }
 0x972   :  { %4309 = vadd.xlane.f32.xlu2 %v11118_v10  ;;  %4371 = vadd.xlane.f32.xlu0 %v4351_v54  ;;  %v4352_v15 = vmul.f32 %v11118_v10, %v11118_v10  ;;  %v7941_v3 = vor.u32 %v8342_v11, %v7940_v37 }
 0x973   :  { %v5291_v31 = vpack.c.b16 %v5287_v52, %v5286_v30  ;;  %v7936_v30 = vld [vmem:[#allocation8 + $0x1c4] sm:$0xf]  ;;  %v8341_v52 = vld [vmem:[#allocation8 + $0x204] sm:$0xf0] }
 0x974   :  { %4373 = vadd.xlane.f32.xlu1 %v4352_v15  ;;  %4807 = vmatpush.bf16.msra.mxu1 %v7945_v19  ;;  %v7937_v12 = vor.u32 %v8341_v52, %v7936_v30 }
 0x975   :  { %5324 = vmatpush.bf16.msra.mxu0 %v5291_v31  ;;  %v8340_v31 = vld [vmem:[#allocation8 + $0x17c] sm:$0xf0] }
 0x976   :  { %v11127_v47 = vpop.f32.mrf.mxu3  ;;  %v7933_v48 = vor.u32 %v8340_v31, %v7932_v28 }
 0x977   :  { %v8734_v22 = vpop.eup %8733  ;;  %v5224_v51 = vpack.c.bf16 %v11127_v47, %v11127_v47 }
 0x978   :  { %v11131_v7 = vsel %vm5135_vm11, %v5151_v41, %v8734_v22  ;;  %4808 = vmatpush.bf16.msra.mxu1 %v7941_v3 }
 0x979   :  { %v11136_v6 = vadd.f32 %v5838_v5, %v11131_v7  ;;  %v11138_v59 = vpop.f32.mrf.mxu0  ;;  %5325 = vmatpush.bf16.msra.mxu0 %v5290_v53  ;;  %v7924_v53 = vld [vmem:[#allocation8 + $0x2c] sm:$0xf] }
 0x97a   :  { %4311 = vadd.xlane.f32.xlu2 %v11138_v59  ;;  %v4353_v23 = vmul.f32 %v11138_v59, %v11138_v59  ;;  %v7925_v39 = vor.u32 %v8338_v55, %v7924_v53 }
 0x97c   :  { %4375 = vadd.xlane.f32.xlu1 %v4353_v23  ;;  %4809 = vmatpush.bf16.msra.mxu1 %v7937_v12 }
 0x97d   :  { %5326 = vmatpush.bf16.msra.mxu0 %v5289_v61 }
 0x97e   :  { %v11143_v38 = vpop.f32.mrf.mxu3 }
 0x980   :  { %4810 = vmatpush.bf16.msra.mxu1 %v7933_v48  ;;  %v5225_v48 = vpack.c.bf16 %v11143_v38, %v11143_v38 }
 0x981   :  { %v11145_v4 = vpop.f32.mrf.mxu0  ;;  %5327 = vmatpush.bf16.msra.mxu0 %v5288_v32 }
 0x982   :  { %4313 = vadd.xlane.f32.xlu0 %v11145_v4  ;;  %v4354_v25 = vmul.f32 %v11145_v4, %v11145_v4 }
 0x984   :  { %4377 = vadd.xlane.f32.xlu2 %v4354_v25  ;;  %4811 = vmatpush.bf16.msra.mxu1 %v7929_v2 }
 0x986   :  { %v11150_v54 = vpop.f32.mrf.mxu3 }
 0x987   :  { %v5226_v28 = vpack.c.bf16 %v11150_v54, %v11150_v54  ;;  %v5418_v54 = vunpack.c.l.b16 %v5225_v48 }
 0x988   :  { %4812 = vmatpush.bf16.msra.mxu1 %v7925_v39 }
 0x989   :  { %v11152_v5 = vpop.f32.mrf.mxu0  ;;  %v5419_v53 = vunpack.c.l.b16 %v5226_v28 }
 0x98a   :  { %4315 = vadd.xlane.f32.xlu0 %v11152_v5  ;;  %v4355_v15 = vmul.f32 %v11152_v5, %v11152_v5 }
 0x98c   :  { %4379 = vadd.xlane.f32.xlu2 %v4355_v15 }
 0x98e   :  { %v5027_v35 = vpop.f32.mrf.mxu3 }
 0x98f   :  { %v5227_v52 = vpack.c.bf16 %v5027_v35, %v5027_v35 }
 0x991   :  { %v11157_v41 = vpop.f32.mrf.mxu0 }
 0x992   :  { %4317 = vadd.xlane.f32.xlu1 %v11157_v41  ;;  %v4356_v22 = vmul.f32 %v11157_v41, %v11157_v41 }
 0x994   :  { %4381 = vadd.xlane.f32.xlu0 %v4356_v22  ;;  %v5420_v22 = vunpack.c.l.b16 %v5227_v52 }
 0x996   :  { %v5030_v50 = vpop.f32.mrf.mxu3  ;;  %v5426_v55 = vpack.c.b16 %v5420_v22, %v5419_v53 }
 0x997   :  { %v5228_v19 = vpack.c.bf16 %v5030_v50, %v5030_v50  ;;  %v5417_v50 = vunpack.c.l.b16 %v5224_v51 }
 0x999   :  { %v11162_v23 = vpop.f32.mrf.mxu0  ;;  %v5421_v31 = vunpack.c.l.b16 %v5228_v19  ;;  %v5425_v39 = vpack.c.b16 %v5418_v54, %v5417_v50 }
 0x99a   :  { %4319 = vadd.xlane.f32.xlu1 %v11162_v23  ;;  %v4357_v1 = vmul.f32 %v11162_v23, %v11162_v23 }
 0x99c   :  { %4383 = vadd.xlane.f32.xlu0 %v4357_v1 }
 0x99e   :  { %v5032_v56 = vpop.f32.mrf.mxu3 }
 0x99f   :  { %v5229_v0 = vpack.c.bf16 %v5032_v56, %v5032_v56 }
 0x9a1   :  { %v11167_v42 = vpop.f32.mrf.mxu0  ;;  %v5422_v15 = vunpack.c.l.b16 %v5229_v0 }
 0x9a2   :  { %4321 = vadd.xlane.f32.xlu2 %v11167_v42  ;;  %v4358_v29 = vmul.f32 %v11167_v42, %v11167_v42 }
 0x9a3   :  { %v5427_v58 = vpack.c.b16 %v5422_v15, %v5421_v31 }
 0x9a4   :  { %4385 = vadd.xlane.f32.xlu1 %v4358_v29 }
 0x9a6   :  { %v5035_v61 = vpop.f32.mrf.mxu3 }
 0x9a7   :  { %v5230_v32 = vpack.c.bf16 %v5035_v61, %v5035_v61 }
 0x9a9   :  { %v11172_v40 = vpop.f32.mrf.mxu0  ;;  %v5423_v37 = vunpack.c.l.b16 %v5230_v32 }
 0x9aa   :  { %4323 = vadd.xlane.f32.xlu2 %v11172_v40  ;;  %v4359_v63 = vmul.f32 %v11172_v40, %v11172_v40 }
 0x9ac   :  { %4387 = vadd.xlane.f32.xlu1 %v4359_v63 }
 0x9ae   :  { %v5037_v36 = vpop.f32.mrf.mxu3 }
 0x9af   :  { %v5231_v25 = vpack.c.bf16 %v5037_v36, %v5037_v36 }
 0x9b1   :  { %v5424_v11 = vunpack.c.l.b16 %v5231_v25  ;;  %v11177_v3 = vpop.f32.mrf.mxu0 }
 0x9b2   :  { %4325 = vadd.xlane.f32.xlu0 %v11177_v3  ;;  %v4360_v30 = vmul.f32 %v11177_v3, %v11177_v3 }
 0x9b3   :  { %v5428_v12 = vpack.c.b16 %v5424_v11, %v5423_v37 }
 0x9b4   :  { %4389 = vadd.xlane.f32.xlu2 %v4360_v30 }
 0x9b5   :  { %5461 = vmatpush.bf16.msrb.mxu1 %v5428_v12 }
 0x9b9   :  { %v11188_v2 = vpop.f32.mrf.mxu0  ;;  %5462 = vmatpush.bf16.msrb.mxu1 %v5427_v58 }
 0x9ba   :  { %4327 = vadd.xlane.f32.xlu0 %v11188_v2  ;;  %v4361_v35 = vmul.f32 %v11188_v2, %v11188_v2 }
 0x9bc   :  { %4391 = vadd.xlane.f32.xlu2 %v4361_v35 }
 0x9bd   :  { %5463 = vmatpush.bf16.msrb.mxu1 %v5426_v55  ;;  %v4300_v38 = vpop.xlane.xlu0 %4299 }
 0x9be   :  { %v11201_v36 = vmul.f32 %v4300_v38, %v12590_v13  ;;  %v5209_v38 = vpack.c.bf16 %v11072_v62, %v11072_v62 }
 0x9c0   :  { %v4411_v37 = vmul.f32 %v11201_v36, %v11201_v36 }
 0x9c1   :  { %v11193_v1 = vpop.f32.mrf.mxu0  ;;  %5464 = vmatpush.bf16.msrb.mxu1 %v5425_v39 }
 0x9c2   :  { %4329 = vadd.xlane.f32.xlu1 %v11193_v1  ;;  %v4362_v47 = vmul.f32 %v11193_v1, %v11193_v1 }
 0x9c4   :  { %4393 = vadd.xlane.f32.xlu0 %v4362_v47 }
 0x9c5   :  { %v4302_v56 = vpop.xlane.xlu0 %4301 }
 0x9c6   :  { %v4332_v29 = vmul.f32 %v4302_v56, %v12590_v13 }
 0x9c7   :  { %v4366_v61 = vpop.xlane.xlu2 %4365 }
 0x9c8   :  { %v4412_v63 = vmul.f32 %v4332_v29, %v4332_v29  ;;  %v4396_v32 = vmul.f32 %v4366_v61, %v12590_v13  ;;  %v5208_v61 = vpack.c.bf16 %v11070_v27, %v11070_v27 }
 0x9ca   :  { %v4428_v0 = vsub.f32 %v4396_v32, %v4412_v63 }
 0x9cc   :  { %v4460_v25 = vadd.f32 1e-05, %v4428_v0 }
 0x9cd   :  { %v4364_v19 = vpop.xlane.xlu0 %4363 }
 0x9ce   :  { %8735 = vrsqrt.f32 %v4460_v25  ;;  %v4395_v11 = vmul.f32 %v4364_v19, %v12590_v13  ;;  %vm4491_vm13 = vweird.f32 %v4460_v25  ;;  %v4444_v19 = vsub.f32 %v11084_v17, %v4332_v29 }
 0x9cf   :  { %v4368_v12 = vpop.xlane.xlu2 %4367 }
 0x9d0   :  { %v4427_v30 = vsub.f32 %v4395_v11, %v4411_v37  ;;  %v4397_v51 = vmul.f32 %v4368_v12, %v12590_v13 }
 0x9d2   :  { %v4459_v52 = vadd.f32 1e-05, %v4427_v30 }
 0x9d4   :  { %v8736_v15 = vpop.eup %8735  ;;  %8737 = vrsqrt.f32 %v4459_v52  ;;  %vm4481_vm1 = vweird.f32 %v4459_v52 }
 0x9d5   :  { %v4486_v28 = vmul.f32 %v8736_v15, %v4460_v25  ;;  %v4306_v31 = vpop.xlane.xlu1 %4305  ;;  %v4304_v48 = vpop.xlane.xlu0 %4303  ;;  %vm4492_vm12 = vweird.f32 %v8736_v15 }
 0x9d6   :  { %v11207_v22 = vmul.f32 %v4304_v48, %v12590_v13  ;;  %v11213_v55 = vmul.f32 %v4306_v31, %v12590_v13  ;;  %vm4493_vm14 = vmor %vm4491_vm13, %vm4492_vm12  ;;  %v11226_v31 = vld [vmem:[#allocation11 + $0x4] ss:$0 sm:$0xff]  ;;  %v5377_v48 = vunpack.c.l.b16 %v5208_v61 }
 0x9d7   :  { %v4487_v58 = vmul.f32 %v8736_v15, %v4486_v28  ;;  %v5378_v28 = vunpack.c.l.b16 %v5209_v38 }
 0x9d8   :  { %v4413_v53 = vmul.f32 %v11207_v22, %v11207_v22  ;;  %v4414_v37 = vmul.f32 %v11213_v55, %v11213_v55 }
 0x9d9   :  { %v4488_v35 = vmul.f32 0.5, %v4487_v58 }
 0x9da   :  { %v8738_v54 = vpop.eup %8737  ;;  %v4429_v50 = vsub.f32 %v4397_v51, %v4413_v53  ;;  %v5385_v53 = vpack.c.b16 %v5378_v28, %v5377_v48 }
 0x9db   :  { %v4489_v39 = vsub.f32 1.5, %v4488_v35  ;;  %v4476_v47 = vmul.f32 %v8738_v54, %v4459_v52  ;;  %vm4482_vm15 = vweird.f32 %v8738_v54 }
 0x9dc   :  { %v11217_v56 = vadd.f32 1e-05, %v4429_v50  ;;  %v11235_v50 = vld [vmem:[#allocation11 + $0x5] ss:$0 sm:$0xff]  ;;  %vm4483_vm2 = vmor %vm4481_vm1, %vm4482_vm15 }
 0x9dd   :  { %v4490_v63 = vmul.f32 %v8736_v15, %v4489_v39  ;;  %v4477_v32 = vmul.f32 %v8738_v54, %v4476_v47  ;;  %v4370_v0 = vpop.xlane.xlu0 %4369  ;;  %v4308_v12 = vpop.xlane.xlu1 %4307 }
 0x9de   :  { %8739 = vrsqrt.f32 %v11217_v56  ;;  %v4398_v62 = vmul.f32 %v4370_v0, %v12590_v13  ;;  %v11229_v17 = vmul.f32 %v4308_v12, %v12590_v13  ;;  %vm4501_vm4 = vweird.f32 %v11217_v56 }
 0x9df   :  { %v4494_v11 = vsel %vm4493_vm14, %v8736_v15, %v4490_v63  ;;  %v4478_v30 = vmul.f32 0.5, %v4477_v32  ;;  %v4443_v15 = vsub.f32 %v11076_v60, %v11201_v36 }
 0x9e0   :  { %v4636_v27 = vmul.f32 %v4494_v11, %v4444_v19  ;;  %v4430_v25 = vsub.f32 %v4398_v62, %v4414_v37  ;;  %v4415_v52 = vmul.f32 %v11229_v17, %v11229_v17 }
 0x9e1   :  { %v4479_v58 = vsub.f32 1.5, %v4478_v30 }
 0x9e2   :  { %v11231_v29 = vadd.f32 1e-05, %v4430_v25  ;;  %v4653_v38 = vmul.f32 %v11226_v31, %v4636_v27  ;;  %v5211_v27 = vpack.c.bf16 %v11089_v18, %v11089_v18 }
 0x9e3   :  { %v4480_v51 = vmul.f32 %v8738_v54, %v4479_v58  ;;  %v5210_v58 = vpack.c.bf16 %v11081_v44, %v11081_v44 }
 0x9e4   :  { %v8740_v35 = vpop.eup %8739  ;;  %8741 = vrsqrt.f32 %v11231_v29  ;;  %v4670_v37 = vadd.f32 %v11235_v50, %v4653_v38  ;;  %v8897_v38 = vld [vmem:[#allocation2] sm:$0xff]  ;;  %vm4511_vm7 = vweird.f32 %v11231_v29 }
 0x9e5   :  { %v4484_v39 = vsel %vm4483_vm2, %v8738_v54, %v4480_v51  ;;  %v4496_v47 = vmul.f32 %v8740_v35, %v11217_v56  ;;  %v4310_v61 = vpop.xlane.xlu2 %4309  ;;  %5393 = vxpose.xlu2.c.b16.start [1/4] (short) %v5385_v53, 128  ;;  %v4372_v63 = vpop.xlane.xlu0 %4371  ;;  %vm4502_vm3 = vweird.f32 %v8740_v35 }
 0x9e6   :  { %v4635_v32 = vmul.f32 %v4484_v39, %v4443_v15  ;;  %v11243_v0 = vmul.f32 %v4310_v61, %v12590_v13  ;;  %v4399_v60 = vmul.f32 %v4372_v63, %v12590_v13  ;;  %vm11272_vm5 = vmor %vm4501_vm4, %vm4502_vm3 }
 0x9e7   :  { %v4497_v36 = vmul.f32 %v8740_v35, %v4496_v47  ;;  %v4374_v19 = vpop.xlane.xlu1 %4373  ;;  %v8898_v47 = vld [vmem:[#allocation2 + $0x8] sm:$0xff] }
 0x9e8   :  { %v4652_v54 = vmul.f32 %v11226_v31, %v4635_v32  ;;  %v4416_v62 = vmul.f32 %v11243_v0, %v11243_v0  ;;  %v4431_v11 = vsub.f32 %v4399_v60, %v4415_v52  ;;  %v4400_v12 = vmul.f32 %v4374_v19, %v12590_v13 }
 0x9e9   :  { %v4498_v30 = vmul.f32 0.5, %v4497_v36  ;;  %v11262_v61 = vadd.f32 %v8898_v47, %v4670_v37  ;;  %v5380_v36 = vunpack.c.l.b16 %v5211_v27 }
 0x9ea   :  { %v8742_v28 = vpop.eup %8741  ;;  %v11253_v25 = vadd.f32 1e-05, %v4431_v11  ;;  %v4669_v48 = vadd.f32 %v11235_v50, %v4652_v54  ;;  %v4432_v15 = vsub.f32 %v4400_v12, %v4416_v62  ;;  %v5379_v62 = vunpack.c.l.b16 %v5210_v58 }
 0x9eb   :  { %v4499_v51 = vsub.f32 1.5, %v4498_v30  ;;  %v4506_v53 = vmul.f32 %v8742_v28, %v11231_v29  ;;  %12657 = vst [vmem:[#allocation68_spill] sm:$0xff] %v11262_v61  ;;  %v4445_v12 = vsub.f32 %v11094_v21, %v11207_v22  ;;  %vm4512_vm6 = vweird.f32 %v8742_v28 }
 0x9ec   :  { %8743 = vrsqrt.f32 %v11253_v25  ;;  %v11260_v39 = vadd.f32 %v8897_v38, %v4669_v48  ;;  %v11264_v32 = vadd.f32 1e-05, %v4432_v15  ;;  %v5201_v58 = vpack.c.bf16 %v11032_v9, %v11032_v9  ;;  %vm11291_vm8 = vmor %vm4511_vm7, %vm4512_vm6 }
 0x9ed   :  { %v4500_v18 = vmul.f32 %v8740_v35, %v4499_v51  ;;  %v4507_v63 = vmul.f32 %v8742_v28, %v4506_v53  ;;  %v4312_v52 = vpop.xlane.xlu2 %4311  ;;  %v5386_v53 = vpack.c.b16 %v5380_v36, %v5379_v62  ;;  %v5200_v22 = vpack.c.bf16 %v11030_v57, %v11030_v57 }
 0x9ee   :  { %12656 = vst [vmem:[#allocation55_spill] sm:$0xff] %v11260_v39  ;;  %v11268_v44 = vmul.f32 %v4312_v52, %v12590_v13  ;;  %v4749_v60 = vpack.c.bf16 %v11262_v61, %v11260_v39  ;;  %8745 = vrsqrt.f32 %v11264_v32  ;;  %v4446_v9 = vsub.f32 %v11101_v45, %v11213_v55 }
 0x9ef   :  { %v4508_v37 = vmul.f32 0.5, %v4507_v63  ;;  %v4376_v54 = vpop.xlane.xlu1 %4375  ;;  %v4504_v11 = vsel %vm11272_vm5, %v8740_v35, %v4500_v18  ;;  %v5241_v36 = vunpack.c.l.b16 %v5201_v58  ;;  %v5240_v62 = vunpack.c.l.b16 %v5200_v22 }
 0x9f0   :  { %v4417_v56 = vmul.f32 %v11268_v44, %v11268_v44  ;;  %v4401_v30 = vmul.f32 %v4376_v54, %v12590_v13  ;;  %4813 = vmatmul.bf16.vlgmr.msra.gmra.mxu1 %v4749_v60  ;;  %v4637_v15 = vmul.f32 %v4504_v11, %v4445_v12  ;;  %v5213_v11 = vpack.c.bf16 %v11105_v16, %v11105_v16 }
 0x9f1   :  { %v4509_v27 = vsub.f32 1.5, %v4508_v37  ;;  %v5212_v16 = vpack.c.bf16 %v11098_v33, %v11098_v33  ;;  %vm4521_vm11 = vweird.f32 %v11253_v25  ;;  %vm4531_vm13 = vweird.f32 %v11264_v32 }
 0x9f2   :  { %v11284_v48 = vpop.eup %8743  ;;  %v4433_v51 = vsub.f32 %v4401_v30, %v4417_v56  ;;  %v4654_v19 = vmul.f32 %v11226_v31, %v4637_v15 }
 0x9f3   :  { %v4510_v35 = vmul.f32 %v8742_v28, %v4509_v27  ;;  %v4516_v38 = vmul.f32 %v11284_v48, %v11253_v25  ;;  %vm4522_vm9 = vweird.f32 %v11284_v48  ;;  %v8899_v25 = vld [vmem:[#allocation2 + $0x18] sm:$0xff] }
 0x9f4   :  { %v11295_v21 = vadd.f32 1e-05, %v4433_v51  ;;  %v8746_v18 = vpop.eup %8745  ;;  %v5248_v51 = vpack.c.b16 %v5241_v36, %v5240_v62  ;;  %v4671_v58 = vadd.f32 %v11235_v50, %v4654_v19  ;;  %vm11331_vm12 = vmor %vm4521_vm11, %vm4522_vm9  ;;  %v4448_v19 = vsub.f32 %v11118_v10, %v11243_v0 }
 0x9f5   :  { %v4514_v63 = vsel %vm11291_vm8, %v8742_v28, %v4510_v35  ;;  %v4517_v29 = vmul.f32 %v11284_v48, %v4516_v38  ;;  %5394 = vxpose.xlu2.c.b16.cont [2/4] (short) %v5386_v53, 128  ;;  %v4314_v52 = vpop.xlane.xlu0 %4313  ;;  %v4526_v60 = vmul.f32 %v8746_v18, %v11264_v32  ;;  %vm4532_vm10 = vweird.f32 %v8746_v18 }
 0x9f6   :  { %8747 = vrsqrt.f32 %v11295_v21  ;;  %v11308_v57 = vmul.f32 %v4314_v52, %v12590_v13  ;;  %v4638_v45 = vmul.f32 %v4514_v63, %v4446_v9  ;;  %vm4533_vm14 = vmor %vm4531_vm13, %vm4532_vm10  ;;  %v5381_v10 = vunpack.c.l.b16 %v5212_v16 }
 0x9f7   :  { %v4518_v37 = vmul.f32 0.5, %v4517_v29  ;;  %v4378_v54 = vpop.xlane.xlu2 %4377  ;;  %v4527_v55 = vmul.f32 %v8746_v18, %v4526_v60  ;;  %v5382_v29 = vunpack.c.l.b16 %v5213_v11  ;;  %v4447_v0 = vsub.f32 %v11110_v46, %v11229_v17 }
 0x9f8   :  { %v4402_v28 = vmul.f32 %v4378_v54, %v12590_v13  ;;  %v4418_v30 = vmul.f32 %v11308_v57, %v11308_v57  ;;  %v4655_v12 = vmul.f32 %v11226_v31, %v4638_v45  ;;  %v8900_v45 = vld [vmem:[#allocation2 + $0x10] sm:$0xff]  ;;  %vm4541_vm2 = vweird.f32 %v11295_v21 }
 0x9f9   :  { %v4519_v56 = vsub.f32 1.5, %v4518_v37  ;;  %v4528_v27 = vmul.f32 0.5, %v4527_v55  ;;  %v11345_v55 = vadd.f32 %v8900_v45, %v4671_v58 }
 0x9fa   :  { %v4434_v53 = vsub.f32 %v4402_v28, %v4418_v30  ;;  %v4672_v15 = vadd.f32 %v11235_v50, %v4655_v12  ;;  %v5203_v12 = vpack.c.bf16 %v11042_v49, %v11042_v49 }
 0x9fb   :  { %v4520_v38 = vmul.f32 %v11284_v48, %v4519_v56  ;;  %v4529_v47 = vsub.f32 1.5, %v4528_v27  ;;  %12665 = vst [vmem:[#allocation61_spill] sm:$0xff] %v11345_v55 }
 0x9fc   :  { %v11319_v35 = vpop.eup %8747  ;;  %5256 = vxpose.xlu1.c.b16.start [1/4] (short) %v5248_v51, 128  ;;  %v11327_v9 = vadd.f32 1e-05, %v4434_v53  ;;  %v11339_v36 = vadd.f32 %v8899_v25, %v4672_v15  ;;  %v5202_v53 = vpack.c.bf16 %v11036_v26, %v11036_v26  ;;  %v5243_v49 = vunpack.c.l.b16 %v5203_v12 }
 0x9fd   :  { %v4536_v22 = vmul.f32 %v11319_v35, %v11295_v21  ;;  %v4316_v63 = vpop.xlane.xlu0 %4315  ;;  %v4530_v33 = vmul.f32 %v8746_v18, %v4529_v47  ;;  %v4524_v32 = vsel %vm11331_vm12, %v11284_v48, %v4520_v38  ;;  %v5387_v48 = vpack.c.b16 %v5382_v29, %v5381_v10 }
 0x9fe   :  { %v11337_v60 = vmul.f32 %v4316_v63, %v12590_v13  ;;  %12664 = vst [vmem:[#allocation67_spill] sm:$0xff] %v11339_v36  ;;  %8749 = vrsqrt.f32 %v11327_v9  ;;  %v4750_v30 = vpack.c.bf16 %v11339_v36, %v11345_v55  ;;  %v5242_v26 = vunpack.c.l.b16 %v5202_v53  ;;  %v11731_v55 = vld [vmem:[#allocation8 + $0x220] sm:$0xf] }
 0x9ff   :  { %v4537_v37 = vmul.f32 %v11319_v35, %v4536_v22  ;;  %v4380_v54 = vpop.xlane.xlu2 %4379  ;;  %v4534_v28 = vsel %vm4533_vm14, %v8746_v18, %v4530_v33  ;;  %v4639_v18 = vmul.f32 %v4524_v32, %v4447_v0  ;;  %vm4542_vm15 = vweird.f32 %v11319_v35 }
 0xa00   :  { %v4419_v62 = vmul.f32 %v11337_v60, %v11337_v60  ;;  %v4403_v11 = vmul.f32 %v4380_v54, %v12590_v13  ;;  %v4640_v56 = vmul.f32 %v4534_v28, %v4448_v19  ;;  %4818 = vmatmul.bf16.gmra.mxu1 %v4750_v30  ;;  %v5215_v19 = vpack.c.bf16 %v11131_v7, %v11131_v7  ;;  %v8901_v30 = vld [vmem:[#allocation2 + $0x28] sm:$0xff]  ;;  %vm11390_vm3 = vmor %vm4541_vm2, %vm4542_vm15 }
 0xa01   :  { %v4538_v51 = vmul.f32 0.5, %v4537_v37  ;;  %v4656_v63 = vmul.f32 %v11226_v31, %v4639_v18  ;;  %v5249_v54 = vpack.c.b16 %v5243_v49, %v5242_v26  ;;  %vm4551_vm4 = vweird.f32 %v11327_v9 }
 0xa02   :  { %v4435_v27 = vsub.f32 %v4403_v11, %v4419_v62  ;;  %v4657_v46 = vmul.f32 %v11226_v31, %v4640_v56  ;;  %v5214_v11 = vpack.c.bf16 %v11113_v14, %v11113_v14  ;;  %v5384_v21 = vunpack.c.l.b16 %v5215_v19 }
 0xa03   :  { %v4539_v38 = vsub.f32 1.5, %v4538_v51  ;;  %v4673_v28 = vadd.f32 %v11235_v50, %v4656_v63  ;;  %v4450_v18 = vsub.f32 %v11145_v4, %v11308_v57  ;;  %v4449_v4 = vsub.f32 %v11138_v59, %v11268_v44 }
 0xa04   :  { %v11361_v58 = vadd.f32 1e-05, %v4435_v27  ;;  %v8750_v15 = vpop.eup %8749  ;;  %v4674_v25 = vadd.f32 %v11235_v50, %v4657_v46  ;;  %v5205_v63 = vpack.c.bf16 %v11051_v8, %v11051_v8 }
 0xa05   :  { %v4318_v16 = vpop.xlane.xlu1 %4317  ;;  %5395 = vxpose.xlu2.c.b16.cont [3/4] (short) %v5387_v48, 128  ;;  %v4546_v17 = vmul.f32 %v8750_v15, %v11327_v9  ;;  %v4540_v45 = vmul.f32 %v11319_v35, %v4539_v38  ;;  %vm4552_vm1 = vweird.f32 %v8750_v15 }
 0xa06   :  { %8751 = vrsqrt.f32 %v11361_v58  ;;  %v11367_v47 = vmul.f32 %v4318_v16, %v12590_v13  ;;  %v11388_v12 = vadd.f32 %v8901_v30, %v4674_v25  ;;  %vm4553_vm5 = vmor %vm4551_vm4, %vm4552_vm1  ;;  %v8902_v16 = vld [vmem:[#allocation2 + $0x20] sm:$0xff]  ;;  %v5245_v8 = vunpack.c.l.b16 %v5205_v63 }
 0xa07   :  { %v4382_v22 = vpop.xlane.xlu0 %4381  ;;  %v4547_v29 = vmul.f32 %v8750_v15, %v4546_v17  ;;  %v4544_v48 = vsel %vm11390_vm3, %v11319_v35, %v4540_v45  ;;  %v11405_v46 = vadd.f32 %v8902_v16, %v4673_v28  ;;  %v5383_v35 = vunpack.c.l.b16 %v5214_v11 }
 0xa08   :  { %v4404_v52 = vmul.f32 %v4382_v22, %v12590_v13  ;;  %v4420_v33 = vmul.f32 %v11367_v47, %v11367_v47  ;;  %12666 = vst [vmem:[#allocation63_spill] sm:$0xff] %v11388_v12  ;;  %vm4561_vm8 = vweird.f32 %v11361_v58 }
 0xa09   :  { %v4548_v37 = vmul.f32 0.5, %v4547_v29  ;;  %12669 = vst [vmem:[#allocation59_spill] sm:$0xff] %v11405_v46  ;;  %v4751_v22 = vpack.c.bf16 %v11388_v12, %v11405_v46  ;;  %v5388_v29 = vpack.c.b16 %v5384_v21, %v5383_v35  ;;  %v11729_v46 = vld [vmem:[#allocation8 + $0x264] sm:$0xf] }
 0xa0a   :  { %v4436_v32 = vsub.f32 %v4404_v52, %v4420_v33  ;;  %v5204_v52 = vpack.c.bf16 %v11045_v24, %v11045_v24 }
 0xa0b   :  { %v4549_v10 = vsub.f32 1.5, %v4548_v37 }
 0xa0c   :  { %v11379_v62 = vpop.eup %8751  ;;  %5257 = vxpose.xlu1.c.b16.cont [2/4] (short) %v5249_v54, 128  ;;  %v11386_v0 = vadd.f32 1e-05, %v4436_v32  ;;  %v5244_v24 = vunpack.c.l.b16 %v5204_v52 }
 0xa0d   :  { %v4556_v7 = vmul.f32 %v11379_v62, %v11361_v58  ;;  %v4320_v56 = vpop.xlane.xlu1 %4319  ;;  %v4550_v51 = vmul.f32 %v8750_v15, %v4549_v10  ;;  %vm4562_vm6 = vweird.f32 %v11379_v62  ;;  %v4452_v58 = vsub.f32 %v11157_v41, %v11367_v47 }
 0xa0e   :  { %v11396_v14 = vmul.f32 %v4320_v56, %v12590_v13  ;;  %8753 = vrsqrt.f32 %v11386_v0  ;;  %v5250_v27 = vpack.c.b16 %v5245_v8, %v5244_v24  ;;  %vm11444_vm9 = vmor %vm4561_vm8, %vm4562_vm6  ;;  %vm4571_vm10 = vweird.f32 %v11386_v0 }
 0xa0f   :  { %v4384_v53 = vpop.xlane.xlu0 %4383  ;;  %v4554_v9 = vsel %vm4553_vm5, %v8750_v15, %v4550_v51  ;;  %v4557_v17 = vmul.f32 %v11379_v62, %v4556_v7  ;;  %v4641_v15 = vmul.f32 %v4544_v48, %v4449_v4  ;;  %v4451_v41 = vsub.f32 %v11152_v5, %v11337_v60 }
 0xa10   :  { %v4421_v49 = vmul.f32 %v11396_v14, %v11396_v14  ;;  %v4405_v38 = vmul.f32 %v4384_v53, %v12590_v13  ;;  %v4642_v57 = vmul.f32 %v4554_v9, %v4450_v18  ;;  %4823 = vmatmul.bf16.gmra.mxu1 %v4751_v22 }
 0xa11   :  { %v4558_v33 = vmul.f32 0.5, %v4557_v17  ;;  %v4658_v32 = vmul.f32 %v11226_v31, %v4641_v15 }
 0xa12   :  { %v4437_v26 = vsub.f32 %v4405_v38, %v4421_v49  ;;  %v4659_v59 = vmul.f32 %v11226_v31, %v4642_v57  ;;  %v8903_v49 = vld [vmem:[#allocation2 + $0x38] sm:$0xff] }
 0xa13   :  { %v4559_v28 = vsub.f32 1.5, %v4558_v33  ;;  %v4675_v21 = vadd.f32 %v11235_v50, %v4658_v32 }
 0xa14   :  { %v11419_v25 = vadd.f32 1e-05, %v4437_v26  ;;  %v8754_v19 = vpop.eup %8753  ;;  %v4676_v56 = vadd.f32 %v11235_v50, %v4659_v59  ;;  %v8904_v26 = vld [vmem:[#allocation2 + $0x30] sm:$0xff]  ;;  %v5207_v59 = vpack.c.bf16 %v11061_v20, %v11061_v20 }
 0xa15   :  { %v4322_v37 = vpop.xlane.xlu2 %4321  ;;  %5396 = vxpose.xlu2.c.b16.end [4/4] (short) %v5388_v29, 128  ;;  %v4566_v44 = vmul.f32 %v8754_v19, %v11386_v0  ;;  %v4560_v18 = vmul.f32 %v11379_v62, %v4559_v28  ;;  %vm4572_vm7 = vweird.f32 %v8754_v19  ;;  %v11456_v15 = vadd.f32 %v8904_v26, %v4675_v21 }
 0xa16   :  { %8755 = vrsqrt.f32 %v11419_v25  ;;  %v11425_v54 = vmul.f32 %v4322_v37, %v12590_v13  ;;  %v11442_v38 = vadd.f32 %v8903_v49, %v4676_v56  ;;  %vm4573_vm11 = vmor %vm4571_vm10, %vm4572_vm7  ;;  %v5247_v28 = vunpack.c.l.b16 %v5207_v59 }
 0xa17   :  { %v4386_v45 = vpop.xlane.xlu1 %4385  ;;  %v4567_v11 = vmul.f32 %v8754_v19, %v4566_v44  ;;  %12673 = vst [vmem:[#allocation56_spill] sm:$0xff] %v11456_v15  ;;  %v4564_v29 = vsel %vm11444_vm9, %v11379_v62, %v4560_v18  ;;  %v5206_v62 = vpack.c.bf16 %v11054_v34, %v11054_v34  ;;  %vm4581_vm14 = vweird.f32 %v11419_v25 }
 0xa18   :  { %v4406_v10 = vmul.f32 %v4386_v45, %v12590_v13  ;;  %v4422_v7 = vmul.f32 %v11425_v54, %v11425_v54  ;;  %12670 = vst [vmem:[#allocation62_spill] sm:$0xff] %v11442_v38  ;;  %v4752_v37 = vpack.c.bf16 %v11442_v38, %v11456_v15  ;;  %v4643_v8 = vmul.f32 %v4564_v29, %v4451_v41  ;;  %v11738_v38 = vld [vmem:[#allocation8 + $0x1dc] sm:$0xf] }
 0xa19   :  { %v4568_v30 = vmul.f32 0.5, %v4567_v11  ;;  %v5246_v56 = vunpack.c.l.b16 %v5206_v62 }
 0xa1a   :  { %v4438_v51 = vsub.f32 %v4406_v10, %v4422_v7  ;;  %v4660_v7 = vmul.f32 %v11226_v31, %v4643_v8 }
 0xa1b   :  { %v4569_v53 = vsub.f32 1.5, %v4568_v30  ;;  %v5251_v18 = vpack.c.b16 %v5247_v28, %v5246_v56 }
 0xa1c   :  { %v11434_v48 = vpop.eup %8755  ;;  %5258 = vxpose.xlu1.c.b16.cont [3/4] (short) %v5250_v27, 128  ;;  %v11440_v9 = vadd.f32 1e-05, %v4438_v51 }
 0xa1d   :  { %v4576_v16 = vmul.f32 %v11434_v48, %v11419_v25  ;;  %v4324_v17 = vpop.xlane.xlu2 %4323  ;;  %v4570_v4 = vmul.f32 %v8754_v19, %v4569_v53  ;;  %vm4582_vm12 = vweird.f32 %v11434_v48 }
 0xa1e   :  { %v11450_v57 = vmul.f32 %v4324_v17, %v12590_v13  ;;  %8757 = vrsqrt.f32 %v11440_v9  ;;  %v4677_v17 = vadd.f32 %v11235_v50, %v4660_v7  ;;  %vm11495_vm15 = vmor %vm4581_vm14, %vm4582_vm12  ;;  %vm4591_vm1 = vweird.f32 %v11440_v9 }
 0xa1f   :  { %v4577_v22 = vmul.f32 %v11434_v48, %v4576_v16  ;;  %v4388_v63 = vpop.xlane.xlu1 %4387  ;;  %v4574_v0 = vsel %vm4573_vm11, %v8754_v19, %v4570_v4 }
 0xa20   :  { %v4423_v52 = vmul.f32 %v11450_v57, %v11450_v57  ;;  %v4407_v33 = vmul.f32 %v4388_v63, %v12590_v13  ;;  %v4644_v47 = vmul.f32 %v4574_v0, %v4452_v58  ;;  %4828 = vmatmul.bf16.gmra.mxu1 %v4752_v37  ;;  %v8905_v63 = vld [vmem:[#allocation2 + $0x48] sm:$0xff] }
 0xa21   :  { %v4578_v45 = vmul.f32 0.5, %v4577_v22 }
 0xa22   :  { %v4439_v44 = vsub.f32 %v4407_v33, %v4423_v52  ;;  %v4661_v5 = vmul.f32 %v11226_v31, %v4644_v47  ;;  %v4454_v33 = vsub.f32 %v11167_v42, %v11425_v54  ;;  %v8906_v47 = vld [vmem:[#allocation2 + $0x40] sm:$0xff] }
 0xa23   :  { %v4579_v11 = vsub.f32 1.5, %v4578_v45  ;;  %v11508_v37 = vadd.f32 %v8906_v47, %v4677_v17 }
 0xa24   :  { %v11472_v19 = vadd.f32 1e-05, %v4439_v44  ;;  %v8758_v32 = vpop.eup %8757  ;;  %v4678_v51 = vadd.f32 %v11235_v50, %v4661_v5 }
 0xa25   :  { %v4326_v24 = vpop.xlane.xlu0 %4325  ;;  %v4586_v60 = vmul.f32 %v8758_v32, %v11440_v9  ;;  %v4580_v53 = vmul.f32 %v11434_v48, %v4579_v11  ;;  %vm4592_vm13 = vweird.f32 %v8758_v32  ;;  %12677 = vst [vmem:[#allocation65_spill] sm:$0xff] %v11508_v37 }
 0xa26   :  { %8759 = vrsqrt.f32 %v11472_v19  ;;  %v11478_v20 = vmul.f32 %v4326_v24, %v12590_v13  ;;  %v11493_v26 = vadd.f32 %v8905_v63, %v4678_v51  ;;  %vm4593_vm2 = vmor %vm4591_vm1, %vm4592_vm13  ;;  %vm4601_vm5 = vweird.f32 %v11472_v19 }
 0xa27   :  { %v4390_v10 = vpop.xlane.xlu2 %4389  ;;  %v4587_v34 = vmul.f32 %v8758_v32, %v4586_v60  ;;  %v4584_v25 = vsel %vm11495_vm15, %v11434_v48, %v4580_v53  ;;  %v4453_v48 = vsub.f32 %v11162_v23, %v11396_v14 }
 0xa28   :  { %v4408_v30 = vmul.f32 %v4390_v10, %v12590_v13  ;;  %v4424_v27 = vmul.f32 %v11478_v20, %v11478_v20  ;;  %12674 = vst [vmem:[#allocation57_spill] sm:$0xff] %v11493_v26  ;;  %v4753_v42 = vpack.c.bf16 %v11493_v26, %v11508_v37  ;;  %v11722_v37 = vld [vmem:[#allocation8 + $0x2a8] sm:$0xf] }
 0xa29   :  { %v4588_v21 = vmul.f32 0.5, %v4587_v34  ;;  %v4645_v62 = vmul.f32 %v4584_v25, %v4453_v48  ;;  %v8908_v25 = vld [vmem:[#allocation2 + $0x50] sm:$0xff] }
 0xa2a   :  { %v4440_v16 = vsub.f32 %v4408_v30, %v4424_v27 }
 0xa2b   :  { %v4589_v35 = vsub.f32 1.5, %v4588_v21  ;;  %v4662_v14 = vmul.f32 %v11226_v31, %v4645_v62 }
 0xa2c   :  { %v11488_v49 = vpop.eup %8759  ;;  %5259 = vxpose.xlu1.c.b16.end [4/4] (short) %v5251_v18, 128  ;;  %v4472_v58 = vadd.f32 1e-05, %v4440_v16 }
 0xa2d   :  { %v4596_v4 = vmul.f32 %v11488_v49, %v11472_v19  ;;  %v4328_v22 = vpop.xlane.xlu0 %4327  ;;  %v4590_v0 = vmul.f32 %v8758_v32, %v4589_v35  ;;  %vm4602_vm3 = vweird.f32 %v11488_v49  ;;  %v4679_v18 = vadd.f32 %v11235_v50, %v4662_v14 }
 0xa2e   :  { %v11501_v52 = vmul.f32 %v4328_v22, %v12590_v13  ;;  %8761 = vrsqrt.f32 %v4472_v58  ;;  %v8907_v22 = vld [vmem:[#allocation2 + $0x58] sm:$0xff]  ;;  %vm4603_vm6 = vmor %vm4601_vm5, %vm4602_vm3  ;;  %vm4611_vm7 = vweird.f32 %v4472_v58 }
 0xa2f   :  { %v4392_v41 = vpop.xlane.xlu2 %4391  ;;  %v4594_v59 = vsel %vm4593_vm2, %v8758_v32, %v4590_v0  ;;  %v4597_v44 = vmul.f32 %v11488_v49, %v4596_v4  ;;  %v4456_v0 = vsub.f32 %v11177_v3, %v11478_v20  ;;  %v8064_v3 = vld [vmem:[#allocation8 + $0x3b8] sm:$0xf]  ;;  %v8377_v20 = vld [vmem:[#allocation8 + $0x3f8] sm:$0xf0] }
 0xa30   :  { %v4425_v9 = vmul.f32 %v11501_v52, %v11501_v52  ;;  %v4409_v8 = vmul.f32 %v4392_v41, %v12590_v13  ;;  %v4646_v45 = vmul.f32 %v4594_v59, %v4454_v33  ;;  %4833 = vmatmul.bf16.gmra.mxu1 %v4753_v42  ;;  %v11542_v33 = vadd.f32 %v8908_v25, %v4679_v18  ;;  %v8376_v42 = vld [vmem:[#allocation8 + $0x370] sm:$0xf0] }
 0xa31   :  { %v4598_v24 = vmul.f32 0.5, %v4597_v44  ;;  %v4455_v59 = vsub.f32 %v11172_v40, %v11450_v57  ;;  %v8065_v48 = vor.u32 %v8377_v20, %v8064_v3  ;;  %v8912_v20 = vld [vmem:[#allocation2 + $0x70] sm:$0xff] }
 0xa32   :  { %v4441_v54 = vsub.f32 %v4409_v8, %v4425_v9  ;;  %v4663_v28 = vmul.f32 %v11226_v31, %v4646_v45  ;;  %12679 = vst [vmem:[#allocation64_spill] sm:$0xff] %v11542_v33  ;;  %v8060_v45 = vld [vmem:[#allocation8 + $0x330] sm:$0xf] }
 0xa33   :  { %v4599_v7 = vsub.f32 1.5, %v4598_v24  ;;  %5934 = vmatpush.bf16.msrb.mxu3 %v8065_v48  ;;  %v8061_v24 = vor.u32 %v8376_v42, %v8060_v45  ;;  %v8371_v48 = vld [vmem:[#allocation8 + $0xc8] sm:$0xf0] }
 0xa34   :  { %v11518_v5 = vadd.f32 1e-05, %v4441_v54  ;;  %v8762_v32 = vpop.eup %8761  ;;  %v4680_v27 = vadd.f32 %v11235_v50, %v4663_v28 }
 0xa35   :  { %v4330_v60 = vpop.xlane.xlu1 %4329  ;;  %v4606_v11 = vmul.f32 %v8762_v32, %v4472_v58  ;;  %v4600_v16 = vmul.f32 %v11488_v49, %v4599_v7  ;;  %vm4612_vm4 = vweird.f32 %v8762_v32  ;;  %v8909_v7 = vld [vmem:[#allocation2 + $0x68] sm:$0xff] }
 0xa36   :  { %8763 = vrsqrt.f32 %v11518_v5  ;;  %v11523_v10 = vmul.f32 %v4330_v60, %v12590_v13  ;;  %v11538_v63 = vadd.f32 %v8907_v22, %v4680_v27  ;;  %vm4613_vm8 = vmor %vm4611_vm7, %vm4612_vm4  ;;  %vm4621_vm11 = vweird.f32 %v11518_v5  ;;  %v8910_v27 = vld [vmem:[#allocation2 + $0x60] sm:$0xff] }
 0xa37   :  { %v4394_v23 = vpop.xlane.xlu0 %4393  ;;  %v4607_v56 = vmul.f32 %v8762_v32, %v4606_v11  ;;  %v4604_v19 = vsel %vm4603_vm6, %v11488_v49, %v4600_v16  ;;  %5935 = vmatpush.bf16.msrb.mxu3 %v8061_v24  ;;  %v8056_v16 = vld [vmem:[#allocation8 + $0x2a8] sm:$0xf] }
 0xa38   :  { %v4410_v34 = vmul.f32 %v4394_v23, %v12590_v13  ;;  %v4426_v30 = vmul.f32 %v11523_v10, %v11523_v10  ;;  %12678 = vst [vmem:[#allocation69_spill] sm:$0xff] %v11538_v63  ;;  %v4754_v58 = vpack.c.bf16 %v11538_v63, %v11542_v33  ;;  %v4647_v9 = vmul.f32 %v4604_v19, %v4455_v59  ;;  %v8048_v19 = vld [vmem:[#allocation8 + $0x198] sm:$0xf]  ;;  %v8044_v59 = vld [vmem:[#allocation8 + $0x110] sm:$0xf] }
 0xa39   :  { %v4608_v51 = vmul.f32 0.5, %v4607_v56  ;;  %v12472_v63 = vunpack.c.l.bf16 %v11722_v37 }
 0xa3a   :  { %v4442_v21 = vsub.f32 %v4410_v34, %v4426_v30  ;;  %v4664_v40 = vmul.f32 %v11226_v31, %v4647_v9  ;;  %v4458_v30 = vsub.f32 %v11193_v1, %v11523_v10  ;;  %v8052_v1 = vld [vmem:[#allocation8 + $0x220] sm:$0xf]  ;;  %v8374_v10 = vld [vmem:[#allocation8 + $0x260] sm:$0xf0] }
 0xa3b   :  { %v4609_v17 = vsub.f32 1.5, %v4608_v51  ;;  %v8053_v25 = vor.u32 %v8374_v10, %v8052_v1 }
 0xa3c   :  { %v11532_v53 = vpop.eup %8763  ;;  %v4474_v4 = vadd.f32 1e-05, %v4442_v21  ;;  %v4681_v11 = vadd.f32 %v11235_v50, %v4664_v40 }
 0xa3d   :  { %v4616_v35 = vmul.f32 %v11532_v53, %v11518_v5  ;;  %v4610_v29 = vmul.f32 %v8762_v32, %v4609_v17  ;;  %vm4622_vm9 = vweird.f32 %v11532_v53  ;;  %v8375_v17 = vld [vmem:[#allocation8 + $0x2e8] sm:$0xf0]  ;;  %v4457_v5 = vsub.f32 %v11188_v2, %v11501_v52 }
 0xa3e   :  { %8765 = vrsqrt.f32 %v4474_v4  ;;  %vm4623_vm12 = vmor %vm4621_vm11, %vm4622_vm9  ;;  %vm4631_vm13 = vweird.f32 %v4474_v4  ;;  %v11561_v51 = vadd.f32 %v8910_v27, %v4681_v11 }
 0xa3f   :  { %v4614_v41 = vsel %vm4613_vm8, %v8762_v32, %v4610_v29  ;;  %v4617_v47 = vmul.f32 %v11532_v53, %v4616_v35 }
 0xa40   :  { %v4648_v44 = vmul.f32 %v4614_v41, %v4456_v0  ;;  %4838 = vmatmul.bf16.gmra.mxu1 %v4754_v58  ;;  %12681 = vst [vmem:[#allocation58_spill] sm:$0xff] %v11561_v51  ;;  %v8373_v41 = vld [vmem:[#allocation8 + $0x1d8] sm:$0xf0] }
 0xa41   :  { %v4618_v8 = vmul.f32 0.5, %v4617_v47  ;;  %v8049_v52 = vor.u32 %v8373_v41, %v8048_v19  ;;  %v8911_v58 = vld [vmem:[#allocation2 + $0x78] sm:$0xff] }
 0xa42   :  { %v4665_v49 = vmul.f32 %v11226_v31, %v4648_v44  ;;  %v8372_v44 = vld [vmem:[#allocation8 + $0x150] sm:$0xf0] }
 0xa43   :  { %v4619_v57 = vsub.f32 1.5, %v4618_v8  ;;  %v8045_v3 = vor.u32 %v8372_v44, %v8044_v59 }
 0xa44   :  { %v8766_v54 = vpop.eup %8765  ;;  %v4682_v60 = vadd.f32 %v11235_v50, %v4665_v49 }
 0xa45   :  { %v4626_v62 = vmul.f32 %v8766_v54, %v4474_v4  ;;  %v4620_v23 = vmul.f32 %v11532_v53, %v4619_v57  ;;  %vm4632_vm10 = vweird.f32 %v8766_v54  ;;  %v8057_v4 = vor.u32 %v8375_v17, %v8056_v16 }
 0xa46   :  { %v11557_v56 = vadd.f32 %v8909_v7, %v4682_v60  ;;  %vm4633_vm14 = vmor %vm4631_vm13, %vm4632_vm10 }
 0xa47   :  { %v4627_v32 = vmul.f32 %v8766_v54, %v4626_v62  ;;  %v4624_v21 = vsel %vm4623_vm12, %v11532_v53, %v4620_v23  ;;  %5936 = vmatpush.bf16.msrb.mxu3 %v8057_v4  ;;  %v5827_v62 = vrot.slane %v11064_v43, 4 }
 0xa48   :  { %12680 = vst [vmem:[#allocation66_spill] sm:$0xff] %v11557_v56  ;;  %v4755_v22 = vpack.c.bf16 %v11557_v56, %v11561_v51  ;;  %v4649_v29 = vmul.f32 %v4624_v21, %v4457_v5  ;;  %v11716_v51 = vld [vmem:[#allocation8 + $0x2ec] sm:$0xf] }
 0xa49   :  { %v4628_v28 = vmul.f32 0.5, %v4627_v32  ;;  %v5828_v40 = vadd.f32 %v5827_v62, %v11064_v43 }
 0xa4a   :  { %v4666_v53 = vmul.f32 %v11226_v31, %v4649_v29 }
 0xa4b   :  { %v4629_v14 = vsub.f32 1.5, %v4628_v28  ;;  %5937 = vmatpush.bf16.msrb.mxu3 %v8053_v25  ;;  %v5829_v32 = vrot.slane %v5828_v40, 2 }
 0xa4c   :  { %v4683_v47 = vadd.f32 %v11235_v50, %v4666_v53 }
 0xa4d   :  { %v4630_v34 = vmul.f32 %v8766_v54, %v4629_v14  ;;  %v5830_v28 = vadd.f32 %v5829_v32, %v5828_v40 }
 0xa4e   :  { %v11574_v8 = vadd.f32 %v8912_v20, %v4683_v47 }
 0xa4f   :  { %v4634_v18 = vsel %vm4633_vm14, %v8766_v54, %v4630_v34  ;;  %5938 = vmatpush.bf16.msrb.mxu3 %v8049_v52  ;;  %v8370_v54 = vld [vmem:[#allocation8 + $0x40] sm:$0xf0]  ;;  %v5831_v7 = vrot.slane %v5830_v28, 1 }
 0xa50   :  { %v4650_v35 = vmul.f32 %v4634_v18, %v4458_v30  ;;  %4843 = vmatmul.bf16.gmra.mxu1 %v4755_v22  ;;  %12683 = vst [vmem:[#allocation70_spill] sm:$0xff] %v11574_v8 }
 0xa51   :  { %v11580_v21 = vadd.f32 %v5831_v7, %v5830_v28 }
 0xa52   :  { %v4667_v0 = vmul.f32 %v11226_v31, %v4650_v35  ;;  %v8040_v31 = vld [vmem:[#allocation8 + $0x88] sm:$0xf] }
 0xa53   :  { %5939 = vmatpush.bf16.msrb.mxu3 %v8045_v3  ;;  %v8041_v42 = vor.u32 %v8371_v48, %v8040_v31 }
 0xa54   :  { %v4684_v2 = vadd.f32 %v11235_v50, %v4667_v0  ;;  %v8036_v50 = vld [vmem:[#allocation8] sm:$0xf] }
 0xa55   :  { %v8037_v49 = vor.u32 %v8370_v54, %v8036_v50 }
 0xa56   :  { %v11572_v9 = vadd.f32 %v8911_v58, %v4684_v2 }
 0xa57   :  { %5940 = vmatpush.bf16.msrb.mxu3 %v8041_v42 }
 0xa58   :  { %12682 = vst [vmem:[#allocation60_spill] sm:$0xff] %v11572_v9  ;;  %v4756_v45 = vpack.c.bf16 %v11572_v9, %v11574_v8  ;;  %v11711_v9 = vld [vmem:[#allocation8 + $0x330] sm:$0xf]  ;;  %v11713_v8 = vld [vmem:[#allocation8 + $0x3fc] sm:$0xf] }
 0xa59   :  { %v12693_v61 = vunpack.c.l.bf16 %v11713_v8 }
 0xa5b   :  { %5941 = vmatpush.bf16.msrb.mxu3 %v8037_v49 }
 0xa60   :  { %4848 = vmatmul.bf16.gmra.mxu1 %v4756_v45 }
 0xa6d   :  { %v4814_v24 = vpop.f32.mrf.mxu1 }
 0xa6e   :  { %v5072_v57 = vmul.f32 1.442695, %v4814_v24  ;;  %v5056_v14 = vadd.f32 1.0, %v4814_v24  ;;  %vm5040_vm15 = vcmp.gt.f32.partialorder %v4814_v24, 0.0 }
 0xa70   :  { %8767 = vpow2.f32 %v5072_v57 }
 0xa75   :  { %v4816_v60 = vpop.f32.mrf.mxu1 }
 0xa76   :  { %v5074_v11 = vmul.f32 1.442695, %v4816_v60  ;;  %v8768_v23 = vpop.eup %8767  ;;  %v5057_v30 = vadd.f32 1.0, %v4816_v60  ;;  %vm5041_vm1 = vcmp.gt.f32.partialorder %v4816_v60, 0.0 }
 0xa77   :  { %v5104_v34 = vsel %vm5040_vm15, %v5056_v14, %v8768_v23 }
 0xa78   :  { %8769 = vpow2.f32 %v5074_v11  ;;  %v5570_v18 = vpack.c.bf16 %v5104_v34, %v5104_v34  ;;  %v5846_v43 = vmul.f32 %v11580_v21, %v5104_v34 }
 0xa7a   :  { %v11584_v4 = vunpack.c.l.b16 %v5570_v18 }
 0xa7d   :  { %v4819_v35 = vpop.f32.mrf.mxu1 }
 0xa7e   :  { %v8770_v27 = vpop.eup %8769  ;;  %v5076_v22 = vmul.f32 1.442695, %v4819_v35  ;;  %v5058_v19 = vadd.f32 1.0, %v4819_v35  ;;  %vm5042_vm2 = vcmp.gt.f32.partialorder %v4819_v35, 0.0 }
 0xa7f   :  { %v5105_v16 = vsel %vm5041_vm1, %v5057_v30, %v8770_v27 }
 0xa80   :  { %v5571_v17 = vpack.c.bf16 %v5105_v16, %v5105_v16  ;;  %v5847_v5 = vmul.f32 %v11580_v21, %v5105_v16  ;;  %8771 = vpow2.f32 %v5076_v22  ;;  %v11708_v16 = vld [vmem:[#allocation8 + $0x374] sm:$0xf] }
 0xa81   :  { %v12464_v56 = vunpack.c.l.bf16 %v11708_v16 }
 0xa82   :  { %v11586_v29 = vunpack.c.l.b16 %v5571_v17  ;;  %v5878_v1 = vpack.c.bf16 %v5847_v5, %v5846_v43 }
 0xa84   :  { %5942 = vmatmul.bf16.vlgmr.msrb.gmra.mxu3 %v5878_v1  ;;  %v5840_v1 = vrot.slane %v11136_v6, 4 }
 0xa85   :  { %v4821_v0 = vpop.f32.mrf.mxu1 }
 0xa86   :  { %v5078_v25 = vmul.f32 1.442695, %v4821_v0  ;;  %v8772_v53 = vpop.eup %8771  ;;  %v5059_v2 = vadd.f32 1.0, %v4821_v0  ;;  %vm5043_vm3 = vcmp.gt.f32.partialorder %v4821_v0, 0.0  ;;  %v5401_v22 = vpop.trf.xlu2 }
 0xa87   :  { %v5106_v41 = vsel %vm5042_vm2, %v5058_v19, %v8772_v53  ;;  %8026 = vmatmul.msk.bf16.vlgmr.msrb.gmra.mxu1 %vm754_vm0, %v5401_v22  ;;  %v5841_v53 = vadd.f32 %v5840_v1, %v11136_v6  ;;  %v11706_v6 = vld [vmem:[#allocation8 + $0x3b8] sm:$0xf] }
 0xa88   :  { %8773 = vpow2.f32 %v5078_v25  ;;  %v5572_v44 = vpack.c.bf16 %v5106_v41, %v5106_v41  ;;  %v5848_v3 = vmul.f32 %v11580_v21, %v5106_v41  ;;  %v12461_v10 = vunpack.c.l.bf16 %v11706_v6 }
 0xa8a   :  { %v11592_v45 = vunpack.c.l.b16 %v5572_v44 }
 0xa8d   :  { %v4824_v52 = vpop.f32.mrf.mxu1 }
 0xa8e   :  { %v8774_v47 = vpop.eup %8773  ;;  %v5080_v59 = vmul.f32 1.442695, %v4824_v52  ;;  %v5060_v24 = vadd.f32 1.0, %v4824_v52  ;;  %vm5044_vm4 = vcmp.gt.f32.partialorder %v4824_v52, 0.0 }
 0xa8f   :  { %v5107_v58 = vsel %vm5043_vm3, %v5059_v2, %v8774_v47 }
 0xa90   :  { %v5849_v20 = vmul.f32 %v11580_v21, %v5107_v58  ;;  %v5573_v31 = vpack.c.bf16 %v5107_v58, %v5107_v58  ;;  %8775 = vpow2.f32 %v5080_v59 }
 0xa92   :  { %v5879_v48 = vpack.c.bf16 %v5849_v20, %v5848_v3  ;;  %v11594_v42 = vunpack.c.l.b16 %v5573_v31  ;;  %v5842_v20 = vrot.slane %v5841_v53, 2 }
 0xa94   :  { %5947 = vmatmul.bf16.gmra.mxu3 %v5879_v48 }
 0xa95   :  { %v4826_v54 = vpop.f32.mrf.mxu1 }
 0xa96   :  { %v5082_v49 = vmul.f32 1.442695, %v4826_v54  ;;  %v8776_v62 = vpop.eup %8775  ;;  %v5061_v57 = vadd.f32 1.0, %v4826_v54  ;;  %vm5045_vm5 = vcmp.gt.f32.partialorder %v4826_v54, 0.0 }
 0xa97   :  { %v5108_v40 = vsel %vm5044_vm4, %v5060_v24, %v8776_v62  ;;  %v5843_v24 = vadd.f32 %v5842_v20, %v5841_v53 }
 0xa98   :  { %8777 = vpow2.f32 %v5082_v49  ;;  %v5574_v11 = vpack.c.bf16 %v5108_v40, %v5108_v40  ;;  %v5850_v14 = vmul.f32 %v11580_v21, %v5108_v40 }
 0xa9a   :  { %v11600_v27 = vunpack.c.l.b16 %v5574_v11 }
 0xa9d   :  { %v4829_v32 = vpop.f32.mrf.mxu1 }
 0xa9e   :  { %v8778_v60 = vpop.eup %8777  ;;  %v5084_v28 = vmul.f32 1.442695, %v4829_v32  ;;  %v5062_v0 = vadd.f32 1.0, %v4829_v32  ;;  %vm5046_vm6 = vcmp.gt.f32.partialorder %v4829_v32, 0.0 }
 0xa9f   :  { %v5109_v23 = vsel %vm5045_vm5, %v5061_v57, %v8778_v60  ;;  %v5844_v60 = vrot.slane %v5843_v24, 1 }
 0xaa0   :  { %v5851_v7 = vmul.f32 %v11580_v21, %v5109_v23  ;;  %v5575_v34 = vpack.c.bf16 %v5109_v23, %v5109_v23  ;;  %8779 = vpow2.f32 %v5084_v28 }
 0xaa2   :  { %v5880_v30 = vpack.c.bf16 %v5851_v7, %v5850_v14  ;;  %v11602_v18 = vunpack.c.l.b16 %v5575_v34  ;;  %v11620_v7 = vadd.f32 %v5844_v60, %v5843_v24 }
 0xaa4   :  { %5952 = vmatmul.bf16.gmra.mxu3 %v5880_v30 }
 0xaa5   :  { %v4831_v43 = vpop.f32.mrf.mxu1 }
 0xaa6   :  { %v5086_v5 = vmul.f32 1.442695, %v4831_v43  ;;  %v8780_v35 = vpop.eup %8779  ;;  %v5063_v19 = vadd.f32 1.0, %v4831_v43  ;;  %vm5047_vm7 = vcmp.gt.f32.partialorder %v4831_v43, 0.0 }
 0xaa7   :  { %v5110_v25 = vsel %vm5046_vm6, %v5062_v0, %v8780_v35 }
 0xaa8   :  { %v5264_v17 = vpop.trf.xlu1  ;;  %8781 = vpow2.f32 %v5086_v5  ;;  %v5576_v47 = vpack.c.bf16 %v5110_v25, %v5110_v25  ;;  %v5852_v44 = vmul.f32 %v11580_v21, %v5110_v25 }
 0xaa9   :  { %8018 = vmatmul.msk.bf16.vlgmr.msra.gmra.mxu0 %vm754_vm0, %v5264_v17 }
 0xaaa   :  { %v11612_v48 = vunpack.c.l.b16 %v5576_v47 }
 0xaad   :  { %v4834_v41 = vpop.f32.mrf.mxu1 }
 0xaae   :  { %v8782_v2 = vpop.eup %8781  ;;  %v5088_v52 = vmul.f32 1.442695, %v4834_v41  ;;  %v5064_v32 = vadd.f32 1.0, %v4834_v41  ;;  %vm5048_vm8 = vcmp.gt.f32.partialorder %v4834_v41, 0.0 }
 0xaaf   :  { %v5111_v59 = vsel %vm5047_vm7, %v5063_v19, %v8782_v2 }
 0xab0   :  { %v5853_v58 = vmul.f32 %v11580_v21, %v5111_v59  ;;  %v5577_v3 = vpack.c.bf16 %v5111_v59, %v5111_v59  ;;  %8783 = vpow2.f32 %v5088_v52  ;;  %v5402_v21 = vpop.trf.xlu2 }
 0xab1   :  { %8027 = vmatmul.msk.bf16.gmra.mxu1 %vm754_vm0, %v5402_v21 }
 0xab2   :  { %v5881_v31 = vpack.c.bf16 %v5853_v58, %v5852_v44  ;;  %v11614_v54 = vunpack.c.l.b16 %v5577_v3 }
 0xab4   :  { %5957 = vmatmul.bf16.gmra.mxu3 %v5881_v31 }
 0xab5   :  { %v4836_v49 = vpop.f32.mrf.mxu1 }
 0xab6   :  { %v5090_v40 = vmul.f32 1.442695, %v4836_v49  ;;  %v8784_v57 = vpop.eup %8783  ;;  %v5065_v11 = vadd.f32 1.0, %v4836_v49  ;;  %vm5049_vm9 = vcmp.gt.f32.partialorder %v4836_v49, 0.0 }
 0xab7   :  { %v5112_v28 = vsel %vm5048_vm8, %v5064_v32, %v8784_v57 }
 0xab8   :  { %v5265_v62 = vpop.trf.xlu1  ;;  %8785 = vpow2.f32 %v5090_v40  ;;  %v5578_v34 = vpack.c.bf16 %v5112_v28, %v5112_v28  ;;  %v5854_v5 = vmul.f32 %v11620_v7, %v5112_v28  ;;  %v5403_v52 = vpop.trf.xlu2 }
 0xab9   :  { %8019 = vmatmul.msk.bf16.gmra.mxu0 %vm754_vm0, %v5265_v62 }
 0xaba   :  { %v11624_v22 = vunpack.c.l.b16 %v5578_v34 }
 0xabc   :  { %12684 = vst [vmem:[#allocation37_spill] sm:$0xff] %v11624_v22  ;;  %v11759_v22 = vld [vmem:[#allocation8 + $0xcc] sm:$0xf] }
 0xabd   :  { %v4839_v23 = vpop.f32.mrf.mxu1 }
 0xabe   :  { %v8786_v14 = vpop.eup %8785  ;;  %v5092_v30 = vmul.f32 1.442695, %v4839_v23  ;;  %v5066_v47 = vadd.f32 1.0, %v4839_v23  ;;  %vm5050_vm10 = vcmp.gt.f32.partialorder %v4839_v23, 0.0 }
 0xabf   :  { %v5113_v43 = vsel %vm5049_vm9, %v5065_v11, %v8786_v14 }
 0xac0   :  { %v5579_v17 = vpack.c.bf16 %v5113_v43, %v5113_v43  ;;  %v5855_v35 = vmul.f32 %v11620_v7, %v5113_v43  ;;  %8787 = vpow2.f32 %v5092_v30  ;;  %v5404_v14 = vpop.trf.xlu2 }
 0xac1   :  { %8028 = vmatmul.msk.bf16.gmra.mxu1 %vm754_vm0, %v5403_v52 }
 0xac2   :  { %v11626_v1 = vunpack.c.l.b16 %v5579_v17  ;;  %v5882_v0 = vpack.c.bf16 %v5855_v35, %v5854_v5 }
 0xac4   :  { %12685 = vst [vmem:[#allocation36_spill] sm:$0xff] %v11626_v1  ;;  %5962 = vmatmul.bf16.gmra.mxu3 %v5882_v0 }
 0xac5   :  { %v4841_v53 = vpop.f32.mrf.mxu1 }
 0xac6   :  { %v5094_v41 = vmul.f32 1.442695, %v4841_v53  ;;  %v8788_v2 = vpop.eup %8787  ;;  %v5067_v44 = vadd.f32 1.0, %v4841_v53  ;;  %vm5051_vm11 = vcmp.gt.f32.partialorder %v4841_v53, 0.0 }
 0xac7   :  { %v5114_v59 = vsel %vm5050_vm10, %v5066_v47, %v8788_v2 }
 0xac8   :  { %v5266_v19 = vpop.trf.xlu1  ;;  %8789 = vpow2.f32 %v5094_v41  ;;  %v5580_v31 = vpack.c.bf16 %v5114_v59, %v5114_v59  ;;  %v5856_v62 = vmul.f32 %v11620_v7, %v5114_v59 }
 0xac9   :  { %8020 = vmatmul.msk.bf16.gmra.mxu0 %vm754_vm0, %v5266_v19 }
 0xaca   :  { %v11634_v21 = vunpack.c.l.b16 %v5580_v31 }
 0xacc   :  { %12686 = vst [vmem:[#allocation39_spill] sm:$0xff] %v11634_v21 }
 0xacd   :  { %v4844_v58 = vpop.f32.mrf.mxu1 }
 0xace   :  { %v8790_v3 = vpop.eup %8789  ;;  %v5096_v20 = vmul.f32 1.442695, %v4844_v58  ;;  %v5068_v30 = vadd.f32 1.0, %v4844_v58  ;;  %vm5052_vm12 = vcmp.gt.f32.partialorder %v4844_v58, 0.0 }
 0xacf   :  { %v5115_v49 = vsel %vm5051_vm11, %v5067_v44, %v8790_v3 }
 0xad0   :  { %v5857_v24 = vmul.f32 %v11620_v7, %v5115_v49  ;;  %v5581_v40 = vpack.c.bf16 %v5115_v49, %v5115_v49  ;;  %8791 = vpow2.f32 %v5096_v20 }
 0xad1   :  { %8029 = vmatmul.msk.bf16.gmra.mxu1 %vm754_vm0, %v5404_v14 }
 0xad2   :  { %v5883_v57 = vpack.c.bf16 %v5857_v24, %v5856_v62  ;;  %v11636_v32 = vunpack.c.l.b16 %v5581_v40  ;;  %v5405_v62 = vpop.trf.xlu2 }
 0xad4   :  { %12687 = vst [vmem:[#allocation31_spill] sm:$0xff] %v11636_v32  ;;  %5967 = vmatmul.bf16.gmra.mxu3 %v5883_v57 }
 0xad5   :  { %v4846_v28 = vpop.f32.mrf.mxu1 }
 0xad6   :  { %v5098_v23 = vmul.f32 1.442695, %v4846_v28  ;;  %v8792_v34 = vpop.eup %8791  ;;  %v5069_v17 = vadd.f32 1.0, %v4846_v28  ;;  %vm5053_vm13 = vcmp.gt.f32.partialorder %v4846_v28, 0.0 }
 0xad7   :  { %v5116_v43 = vsel %vm5052_vm12, %v5068_v30, %v8792_v34 }
 0xad8   :  { %v5267_v11 = vpop.trf.xlu1  ;;  %8793 = vpow2.f32 %v5098_v23  ;;  %v5582_v53 = vpack.c.bf16 %v5116_v43, %v5116_v43  ;;  %v5858_v41 = vmul.f32 %v11620_v7, %v5116_v43 }
 0xad9   :  { %8021 = vmatmul.msk.bf16.gmra.mxu0 %vm754_vm0, %v5267_v11 }
 0xada   :  { %v11644_v59 = vunpack.c.l.b16 %v5582_v53  ;;  %v5406_v53 = vpop.trf.xlu2 }
 0xadc   :  { %12688 = vst [vmem:[#allocation30_spill] sm:$0xff] %v11644_v59  ;;  %v12475_v59 = vunpack.c.l.bf16 %v11731_v55 }
 0xadd   :  { %v4849_v5 = vpop.f32.mrf.mxu1 }
 0xade   :  { %v8794_v35 = vpop.eup %8793  ;;  %v5100_v0 = vmul.f32 1.442695, %v4849_v5  ;;  %v5070_v24 = vadd.f32 1.0, %v4849_v5  ;;  %vm5054_vm14 = vcmp.gt.f32.partialorder %v4849_v5, 0.0 }
 0xadf   :  { %v5117_v19 = vsel %vm5053_vm13, %v5069_v17, %v8794_v35 }
 0xae0   :  { %v5859_v2 = vmul.f32 %v11620_v7, %v5117_v19  ;;  %v5583_v52 = vpack.c.bf16 %v5117_v19, %v5117_v19  ;;  %8795 = vpow2.f32 %v5100_v0 }
 0xae1   :  { %8030 = vmatmul.msk.bf16.gmra.mxu1 %vm754_vm0, %v5405_v62 }
 0xae2   :  { %v5884_v47 = vpack.c.bf16 %v5859_v2, %v5858_v41  ;;  %v11646_v44 = vunpack.c.l.b16 %v5583_v52 }
 0xae4   :  { %12689 = vst [vmem:[#allocation38_spill] sm:$0xff] %v11646_v44  ;;  %5972 = vmatmul.bf16.gmra.mxu3 %v5884_v47 }
 0xae5   :  { %v4851_v3 = vpop.f32.mrf.mxu1 }
 0xae6   :  { %v5102_v31 = vmul.f32 1.442695, %v4851_v3  ;;  %v8796_v49 = vpop.eup %8795  ;;  %v5071_v57 = vadd.f32 1.0, %v4851_v3  ;;  %vm5055_vm15 = vcmp.gt.f32.partialorder %v4851_v3, 0.0 }
 0xae7   :  { %v5118_v40 = vsel %vm5054_vm14, %v5070_v24, %v8796_v49 }
 0xae8   :  { %v5268_v20 = vpop.trf.xlu1  ;;  %8797 = vpow2.f32 %v5102_v31  ;;  %v5584_v11 = vpack.c.bf16 %v5118_v40, %v5118_v40  ;;  %v5860_v14 = vmul.f32 %v11620_v7, %v5118_v40 }
 0xae9   :  { %8022 = vmatmul.msk.bf16.gmra.mxu0 %vm754_vm0, %v5268_v20 }
 0xaea   :  { %v11654_v17 = vunpack.c.l.b16 %v5584_v11 }
 0xaec   :  { %12690 = vst [vmem:[#allocation54_spill] sm:$0xff] %v11654_v17 }
 0xaee   :  { %v8798_v28 = vpop.eup %8797 }
 0xaef   :  { %v5119_v23 = vsel %vm5055_vm15, %v5071_v57, %v8798_v28 }
 0xaf0   :  { %v5861_v34 = vmul.f32 %v11620_v7, %v5119_v23  ;;  %v5585_v30 = vpack.c.bf16 %v5119_v23, %v5119_v23  ;;  %v5407_v7 = vpop.trf.xlu2 }
 0xaf1   :  { %8031 = vmatmul.msk.bf16.gmra.mxu1 %vm754_vm0, %v5406_v53 }
 0xaf2   :  { %v5885_v43 = vpack.c.bf16 %v5861_v34, %v5860_v14  ;;  %v11656_v35 = vunpack.c.l.b16 %v5585_v30 }
 0xaf4   :  { %12691 = vst [vmem:[#allocation53_spill] sm:$0xff] %v11656_v35  ;;  %5977 = vmatmul.bf16.gmra.mxu3 %v5885_v43 }
 0xaf8   :  { %v5269_v0 = vpop.trf.xlu1  ;;  %v5408_v2 = vpop.trf.xlu2 }
 0xaf9   :  { %8023 = vmatmul.msk.bf16.gmra.mxu0 %vm754_vm0, %v5269_v0 }
 0xb01   :  { %8032 = vmatmul.msk.bf16.gmra.mxu1 %vm754_vm0, %v5407_v7 }
 0xb04   :  { %v11668_v47 = vpop.f32.mrf.mxu1 }
 0xb08   :  { %v5270_v19 = vpop.trf.xlu1 }
 0xb09   :  { %8024 = vmatmul.msk.bf16.gmra.mxu0 %vm754_vm0, %v5270_v19 }
 0xb0c   :  { %v11672_v20 = vpop.f32.mrf.mxu1 }
 0xb11   :  { %8033 = vmatmul.msk.bf16.gmra.mxu1 %vm754_vm0, %v5408_v2 }
 0xb18   :  { %v5271_v41 = vpop.trf.xlu1 }
 0xb19   :  { %8025 = vmatmul.msk.bf16.gmra.mxu0 %vm754_vm0, %v5271_v41 }
 0xb26   :  { %v11666_v52 = vpop.f32.mrf.mxu0 }
 0xb2e   :  { %v11670_v3 = vpop.f32.mrf.mxu0  ;;  %v11676_v49 = vpop.f32.mrf.mxu1 }
 0xb36   :  { %v11674_v31 = vpop.f32.mrf.mxu0  ;;  %v11680_v24 = vpop.f32.mrf.mxu1 }
 0xb3e   :  { %v11678_v62 = vpop.f32.mrf.mxu0  ;;  %v11684_v57 = vpop.f32.mrf.mxu1 }
 0xb46   :  { %v11682_v40 = vpop.f32.mrf.mxu0  ;;  %v11688_v11 = vpop.f32.mrf.mxu1 }
 0xb4e   :  { %v11686_v28 = vpop.f32.mrf.mxu0  ;;  %v11692_v14 = vpop.f32.mrf.mxu1 }
 0xb56   :  { %v11690_v23 = vpop.f32.mrf.mxu0  ;;  %v11694_v30 = vpop.f32.mrf.mxu1 }
 0xb5e   :  { %v5346_v34 = vpop.f32.mrf.mxu0  ;;  %v11696_v0 = vpop.f32.mrf.mxu1 }
 0xb66   :  { %v5349_v43 = vpop.f32.mrf.mxu0  ;;  %v11698_v19 = vpop.f32.mrf.mxu1 }
 0xb6e   :  { %v5351_v53 = vpop.f32.mrf.mxu0  ;;  %v11700_v2 = vpop.f32.mrf.mxu1 }
 0xb76   :  { %v5354_v7 = vpop.f32.mrf.mxu0  ;;  %v11702_v58 = vpop.f32.mrf.mxu1 }
 0xb77   :  { %v5548_v44 = vmul.f32 %v12472_v63, %v5354_v7  ;;  %v5546_v7 = vmul.f32 %v12475_v59, %v5349_v43  ;;  %v11756_v63 = vld [vmem:[#allocation8 + $0x110] sm:$0xf]  ;;  %v5525_v59 = vunpack.c.l.bf16 %v11759_v22 }
 0xb7e   :  { %v5356_v41 = vpop.f32.mrf.mxu0  ;;  %v11704_v25 = vpop.f32.mrf.mxu1 }
 0xb86   :  { %v5359_v5 = vpop.f32.mrf.mxu0  ;;  %v11727_v12 = vpop.f32.mrf.mxu1 }
 0xb8e   :  { %v5361_v60 = vpop.f32.mrf.mxu0 }
 0xb8f   :  { %v5551_v15 = vmul.f32 %v12464_v56, %v5361_v60  ;;  %v12474_v60 = vunpack.c.l.bf16 %v11729_v46  ;;  %v12694_v56 = vunpack.c.l.bf16 %v11716_v51 }
 0xb91   :  { %v5549_v13 = vmul.f32 %v12694_v56, %v5356_v41  ;;  %v5599_v17 = vpack.c.bf16 %v5551_v15, %v5551_v15  ;;  %v5547_v32 = vmul.f32 %v12474_v60, %v5351_v53  ;;  %v12695_v53 = vunpack.c.l.bf16 %v11738_v38 }
 0xb92   :  { %v12477_v60 = vunpack.c.l.bf16 %v11756_v63 }
 0xb93   :  { %v5597_v56 = vpack.c.bf16 %v5549_v13, %v5549_v13  ;;  %v5671_v15 = vunpack.c.l.b16 %v5599_v17  ;;  %v5545_v13 = vmul.f32 %v12695_v53, %v5346_v34  ;;  %v5595_v17 = vpack.c.bf16 %v5547_v32, %v5547_v32 }
 0xb96   :  { %v5364_v50 = vpop.f32.mrf.mxu0 }
 0xb97   :  { %v5552_v33 = vmul.f32 %v12461_v10, %v5364_v50  ;;  %v12692_v50 = vunpack.c.l.bf16 %v11711_v9 }
 0xb99   :  { %v5550_v10 = vmul.f32 %v12692_v50, %v5359_v5  ;;  %v5600_v26 = vpack.c.bf16 %v5552_v33, %v5552_v33  ;;  %v11746_v50 = vld [vmem:[#allocation8 + $0x198] sm:$0xf] }
 0xb9a   :  { %v12476_v41 = vunpack.c.l.bf16 %v11746_v50 }
 0xb9b   :  { %v5598_v21 = vpack.c.bf16 %v5550_v10, %v5550_v10  ;;  %v5672_v5 = vunpack.c.l.b16 %v5600_v26  ;;  %v5596_v10 = vpack.c.bf16 %v5548_v44, %v5548_v44  ;;  %v5594_v44 = vpack.c.bf16 %v5546_v7, %v5546_v7 }
 0xb9d   :  { %v5670_v26 = vunpack.c.l.b16 %v5598_v21  ;;  %v5544_v21 = vmul.f32 %v12476_v41, %v11690_v23  ;;  %v5668_v43 = vunpack.c.l.b16 %v5596_v10  ;;  %v5542_v23 = vmul.f32 %v12477_v60, %v11682_v40 }
 0xb9e   :  { %v5366_v36 = vpop.f32.mrf.mxu0  ;;  %v5666_v10 = vunpack.c.l.b16 %v5594_v44  ;;  %v12698_v41 = vunpack.c.l.bf16 %v11713_v8  ;;  %v12701_v8 = vunpack.c.l.bf16 %v11708_v16 }
 0xb9f   :  { %v5553_v39 = vmul.f32 %v12693_v61, %v5366_v36  ;;  %v11749_v36 = vld [vmem:[#allocation8 + $0x154] sm:$0xf]  ;;  %v11770_v61 = vld [vmem:[#allocation8 + $0x44] sm:$0xf]  ;;  %v5592_v7 = vpack.c.bf16 %v5544_v21, %v5544_v21  ;;  %v5590_v21 = vpack.c.bf16 %v5542_v23, %v5542_v23 }
 0xba0   :  { %v12696_v32 = vunpack.c.l.bf16 %v11749_v36 }
 0xba1   :  { %v5601_v35 = vpack.c.bf16 %v5553_v39, %v5553_v39  ;;  %v5664_v44 = vunpack.c.l.b16 %v5592_v7  ;;  %v5662_v7 = vunpack.c.l.b16 %v5590_v21  ;;  %v12703_v21 = vunpack.c.l.bf16 %v11716_v51 }
 0xba2   :  { %v5543_v34 = vmul.f32 %v12696_v32, %v11686_v28  ;;  %v5541_v28 = vmul.f32 %v5525_v59, %v11678_v62  ;;  %v12699_v62 = vunpack.c.l.bf16 %v11770_v61 }
 0xba3   :  { %v5673_v33 = vunpack.c.l.b16 %v5601_v35  ;;  %v5501_v35 = vpop.f32.mrf.mxu1 }
 0xba5   :  { %v5681_v39 = vpack.c.b16 %v5673_v33, %v5672_v5  ;;  %v5669_v5 = vunpack.c.l.b16 %v5597_v56  ;;  %v5680_v33 = vpack.c.b16 %v5671_v15, %v5670_v26  ;;  %v5593_v56 = vpack.c.bf16 %v5545_v13, %v5545_v13 }
 0xba6   :  { %v5667_v15 = vunpack.c.l.b16 %v5595_v17  ;;  %v5591_v13 = vpack.c.bf16 %v5543_v34, %v5543_v34  ;;  %v5539_v34 = vmul.f32 %v12699_v62, %v11670_v3 }
 0xba7   :  { %5690 = vmatpush.bf16.msrb.mxu2 %v5681_v39  ;;  %v11767_v39 = vld [vmem:[#allocation8 + $0x88] sm:$0xf]  ;;  %v5679_v26 = vpack.c.b16 %v5669_v5, %v5668_v43  ;;  %v5665_v17 = vunpack.c.l.b16 %v5593_v56  ;;  %v5589_v56 = vpack.c.bf16 %v5541_v28, %v5541_v28 }
 0xba8   :  { %v5524_v53 = vunpack.c.l.bf16 %v11767_v39  ;;  %v5678_v5 = vpack.c.b16 %v5667_v15, %v5666_v10  ;;  %v5663_v15 = vunpack.c.l.b16 %v5591_v13  ;;  %v5587_v28 = vpack.c.bf16 %v5539_v34, %v5539_v34 }
 0xba9   :  { %v5677_v10 = vpack.c.b16 %v5665_v17, %v5664_v44  ;;  %v5661_v13 = vunpack.c.l.b16 %v5589_v56  ;;  %v12704_v34 = vunpack.c.l.bf16 %v11731_v55  ;;  %v12706_v55 = vunpack.c.l.bf16 %v11746_v50 }
 0xbaa   :  { %v5540_v40 = vmul.f32 %v5524_v53, %v11674_v31  ;;  %v5676_v17 = vpack.c.b16 %v5663_v15, %v5662_v7  ;;  %v12710_v50 = vunpack.c.l.bf16 %v11749_v36  ;;  %v12711_v36 = vunpack.c.l.bf16 %v11770_v61 }
 0xbab   :  { %5691 = vmatpush.bf16.msrb.mxu2 %v5680_v33  ;;  %v11779_v33 = vld [vmem:[#allocation8] sm:$0xf]  ;;  %v5503_v43 = vpop.f32.mrf.mxu1  ;;  %v5562_v56 = vmul.f32 %v12704_v34, %v11696_v0  ;;  %v5560_v0 = vmul.f32 %v12706_v55, %v11692_v14  ;;  %v12719_v34 = vld [vmem:[#allocation39_spill] sm:$0xff]  ;;  %v12722_v55 = vld [vmem:[#allocation30_spill] sm:$0xff] }
 0xbac   :  { %v5522_v32 = vunpack.c.l.bf16 %v11779_v33  ;;  %v5569_v1 = vmul.f32 %v12698_v41, %v5503_v43  ;;  %v5588_v23 = vpack.c.bf16 %v5540_v40, %v5540_v40  ;;  %v5567_v41 = vmul.f32 %v12701_v8, %v11727_v12 }
 0xbad   :  { %v5610_v7 = vpack.c.bf16 %v5562_v56, %v5562_v56  ;;  %v5559_v14 = vmul.f32 %v12710_v50, %v11688_v11  ;;  %v8068_v50 = vld [vmem:[#allocation8 + $0x38] sm:$0xf] }
 0xbae   :  { %v5538_v31 = vmul.f32 %v5522_v32, %v11666_v52  ;;  %v5617_v3 = vpack.c.bf16 %v5569_v1, %v5569_v1  ;;  %v5660_v44 = vunpack.c.l.b16 %v5588_v23  ;;  %v12702_v52 = vunpack.c.l.bf16 %v11722_v37 }
 0xbaf   :  { %5692 = vmatpush.bf16.msrb.mxu2 %v5679_v26  ;;  %v12697_v26 = vunpack.c.l.bf16 %v11706_v6  ;;  %v12700_v6 = vunpack.c.l.bf16 %v11711_v9  ;;  %v5565_v9 = vmul.f32 %v12703_v21, %v11702_v58  ;;  %v12705_v37 = vunpack.c.l.bf16 %v11729_v46 }
 0xbb0   :  { %v5586_v43 = vpack.c.bf16 %v5538_v31, %v5538_v31  ;;  %v5564_v40 = vmul.f32 %v12702_v52, %v11700_v2  ;;  %v5774_v12 = vunpack.c.l.b16 %v5617_v3  ;;  %v5675_v1 = vpack.c.b16 %v5661_v13, %v5660_v44 }
 0xbb1   :  { %v5568_v60 = vmul.f32 %v12697_v26, %v5501_v35  ;;  %v5566_v35 = vmul.f32 %v12700_v6, %v11704_v25  ;;  %v5615_v26 = vpack.c.bf16 %v5567_v41, %v5567_v41  ;;  %v5563_v2 = vmul.f32 %v12705_v37, %v11698_v19  ;;  %v8096_v37 = vld [vmem:[#allocation8 + $0x3f0] sm:$0xf] }
 0xbb2   :  { %v5658_v62 = vunpack.c.l.b16 %v5586_v43  ;;  %v5612_v15 = vpack.c.bf16 %v5564_v40, %v5564_v40  ;;  %v5613_v51 = vpack.c.bf16 %v5565_v9, %v5565_v9  ;;  %v12707_v46 = vunpack.c.l.bf16 %v11738_v38 }
 0xbb3   :  { %5693 = vmatpush.bf16.msrb.mxu2 %v5678_v5  ;;  %v5616_v5 = vpack.c.bf16 %v5568_v60, %v5568_v60  ;;  %v5614_v25 = vpack.c.bf16 %v5566_v35, %v5566_v35  ;;  %v5659_v60 = vunpack.c.l.b16 %v5587_v28  ;;  %v5611_v6 = vpack.c.bf16 %v5563_v2, %v5563_v2  ;;  %v8369_v2 = vld [vmem:[#allocation8 + $0x430] sm:$0xf0] }
 0xbb4   :  { %v5769_v35 = vunpack.c.l.b16 %v5612_v15  ;;  %v5770_v8 = vunpack.c.l.b16 %v5613_v51  ;;  %v5561_v19 = vmul.f32 %v12707_v46, %v11694_v30  ;;  %v5767_v3 = vunpack.c.l.b16 %v5610_v7  ;;  %v8092_v15 = vld [vmem:[#allocation8 + $0x368] sm:$0xf] }
 0xbb5   :  { %v5773_v16 = vunpack.c.l.b16 %v5616_v5  ;;  %v5771_v58 = vunpack.c.l.b16 %v5614_v25  ;;  %v5674_v23 = vpack.c.b16 %v5659_v60, %v5658_v62  ;;  %v12708_v5 = vpack.c.b16 %v11586_v29, %v11584_v4  ;;  %v12716_v62 = vld [vmem:[#allocation37_spill] sm:$0xff] }
 0xbb6   :  { %v5768_v28 = vunpack.c.l.b16 %v5611_v6  ;;  %v5780_v13 = vpack.c.b16 %v5770_v8, %v5769_v35  ;;  %v5608_v44 = vpack.c.bf16 %v5560_v0, %v5560_v0  ;;  %v5609_v52 = vpack.c.bf16 %v5561_v19, %v5561_v19  ;;  %v8080_v6 = vld [vmem:[#allocation8 + $0x1d0] sm:$0xf]  ;;  %v8365_v35 = vld [vmem:[#allocation8 + $0x210] sm:$0xf0]  ;;  %v8076_v19 = vld [vmem:[#allocation8 + $0x148] sm:$0xf] }
 0xbb7   :  { %5694 = vmatpush.bf16.msrb.mxu2 %v5677_v10  ;;  %v5772_v10 = vunpack.c.l.b16 %v5615_v26  ;;  %v5782_v31 = vpack.c.b16 %v5774_v12, %v5773_v16  ;;  %v5556_v4 = vmul.f32 %v5524_v53, %v11676_v49  ;;  %v5557_v29 = vmul.f32 %v5525_v59, %v11680_v24 }
 0xbb8   :  { %v5779_v38 = vpack.c.b16 %v5768_v28, %v5767_v3  ;;  %v5607_v40 = vpack.c.bf16 %v5559_v14, %v5559_v14  ;;  %v5554_v11 = vmul.f32 %v5522_v32, %v11668_v47  ;;  %v5555_v21 = vmul.f32 %v12711_v36, %v11672_v20  ;;  %v8072_v3 = vld [vmem:[#allocation8 + $0xc0] sm:$0xf]  ;;  %v8362_v14 = vld [vmem:[#allocation8 + $0x78] sm:$0xf0] }
 0xbb9   :  { %v5781_v41 = vpack.c.b16 %v5772_v10, %v5771_v58  ;;  %v5604_v9 = vpack.c.bf16 %v5556_v4, %v5556_v4  ;;  %v5605_v39 = vpack.c.bf16 %v5557_v29, %v5557_v29  ;;  %v12712_v16 = vpack.c.b16 %v11594_v42, %v11592_v45  ;;  %v12718_v42 = vld [vmem:[#allocation31_spill] sm:$0xff]  ;;  %v8368_v58 = vld [vmem:[#allocation8 + $0x3a8] sm:$0xf0]  ;;  %v8367_v10 = vld [vmem:[#allocation8 + $0x320] sm:$0xf0] }
 0xbba   :  { %v5764_v53 = vunpack.c.l.b16 %v5607_v40  ;;  %v5602_v22 = vpack.c.bf16 %v5554_v11, %v5554_v11  ;;  %v5603_v59 = vpack.c.bf16 %v5555_v21, %v5555_v21  ;;  %v12713_v12 = vpack.c.b16 %v11602_v18, %v11600_v27  ;;  %v8088_v18 = vld [vmem:[#allocation8 + $0x2e0] sm:$0xf] }
 0xbbb   :  { %5695 = vmatpush.bf16.msrb.mxu2 %v5676_v17  ;;  %v12709_v17 = vunpack.c.l.bf16 %v11756_v63  ;;  %v5765_v63 = vunpack.c.l.b16 %v5608_v44  ;;  %v5761_v24 = vunpack.c.l.b16 %v5604_v9  ;;  %v5762_v26 = vunpack.c.l.b16 %v5605_v39 }
 0xbbc   :  { %v5759_v47 = vunpack.c.l.b16 %v5602_v22  ;;  %v5760_v32 = vunpack.c.l.b16 %v5603_v59  ;;  %v12714_v60 = vpack.c.b16 %v11614_v54, %v11612_v48  ;;  %v12720_v56 = vpack.c.b16 %v12718_v42, %v12719_v34  ;;  %v5943_v54 = vpop.f32.mrf.mxu3 }
 0xbbd   :  { %v5558_v43 = vmul.f32 %v12709_v17, %v11684_v57  ;;  %v5766_v57 = vunpack.c.l.b16 %v5609_v52  ;;  %v5776_v61 = vpack.c.b16 %v5762_v26, %v5761_v24  ;;  %v8097_v51 = vor.u32 %v8369_v2, %v8096_v37  ;;  %v12724_v52 = vld [vmem:[#allocation53_spill] sm:$0xff] }
 0xbbe   :  { %v5775_v20 = vpack.c.b16 %v5760_v32, %v5759_v47  ;;  %v8093_v27 = vor.u32 %v8368_v58, %v8092_v15  ;;  %v8089_v48 = vor.u32 %v8367_v10, %v8088_v18  ;;  %v8081_v8 = vor.u32 %v8365_v35, %v8080_v6 }
 0xbbf   :  { %5696 = vmatpush.bf16.msrb.mxu2 %v5675_v1  ;;  %v5606_v30 = vpack.c.bf16 %v5558_v43, %v5558_v43  ;;  %v5778_v25 = vpack.c.b16 %v5766_v57, %v5765_v63  ;;  %v12715_v1 = vld [vmem:[#allocation36_spill] sm:$0xff]  ;;  %6071 = vmatpush.bf16.msrb.mxu0 %v8097_v51  ;;  %v8069_v44 = vor.u32 %v8362_v14, %v8068_v50 }
 0xbc0   :  { %v12717_v45 = vpack.c.b16 %v12715_v1, %v12716_v62 }
 0xbc1   :  { %v5763_v49 = vunpack.c.l.b16 %v5606_v30  ;;  %v5944_v30 = vadd.f32 1e-06, %v5943_v54 }
 0xbc3   :  { %5697 = vmatpush.bf16.msrb.mxu2 %v5674_v23  ;;  %v5777_v33 = vpack.c.b16 %v5764_v53, %v5763_v49  ;;  %6072 = vmatpush.bf16.msrb.mxu0 %v8093_v27  ;;  %v8366_v23 = vld [vmem:[#allocation8 + $0x298] sm:$0xf0]  ;;  %8799 = vrcp.f32 %v5944_v30 }
 0xbc4   :  { %v5945_v46 = vpop.f32.mrf.mxu3 }
 0xbc5   :  { %v5946_v63 = vadd.f32 1e-06, %v5945_v46 }
 0xbc6   :  { %5698 = vmatmul.bf16.vlgmr.msrb.gmra.mxu2 %v12708_v5  ;;  %v8364_v5 = vld [vmem:[#allocation8 + $0x188] sm:$0xf0] }
 0xbc7   :  { %5791 = vmatpush.bf16.msra.mxu2 %v5782_v31  ;;  %v8084_v31 = vld [vmem:[#allocation8 + $0x258] sm:$0xf]  ;;  %6073 = vmatpush.bf16.msrb.mxu0 %v8089_v48  ;;  %v8077_v28 = vor.u32 %v8364_v5, %v8076_v19  ;;  %8801 = vrcp.f32 %v5946_v63 }
 0xbc8   :  { %v8085_v7 = vor.u32 %v8366_v23, %v8084_v31 }
 0xbc9   :  { %v8800_v11 = vpop.eup %8799 }
 0xbcb   :  { %5792 = vmatpush.bf16.msra.mxu2 %v5781_v41  ;;  %6074 = vmatpush.bf16.msrb.mxu0 %v8085_v7  ;;  %v12721_v41 = vld [vmem:[#allocation38_spill] sm:$0xff] }
 0xbcc   :  { %v12723_v0 = vpack.c.b16 %v12721_v41, %v12722_v55  ;;  %v5948_v43 = vpop.f32.mrf.mxu3 }
 0xbcd   :  { %v8802_v21 = vpop.eup %8801 }
 0xbcf   :  { %5793 = vmatpush.bf16.msra.mxu2 %v5780_v13  ;;  %6075 = vmatpush.bf16.msrb.mxu0 %v8081_v8  ;;  %v8363_v13 = vld [vmem:[#allocation8 + $0x100] sm:$0xf0] }
 0xbd0   :  { %v8073_v17 = vor.u32 %v8363_v13, %v8072_v3 }
 0xbd3   :  { %5794 = vmatpush.bf16.msra.mxu2 %v5779_v38  ;;  %6076 = vmatpush.bf16.msrb.mxu0 %v8077_v28  ;;  %v12725_v38 = vld [vmem:[#allocation54_spill] sm:$0xff] }
 0xbd4   :  { %v12726_v4 = vpack.c.b16 %v12724_v52, %v12725_v38  ;;  %v5950_v29 = vpop.f32.mrf.mxu3 }
 0xbd5   :  { %v5951_v22 = vadd.f32 1e-06, %v5950_v29 }
 0xbd6   :  { %5703 = vmatmul.bf16.gmra.mxu2 %v12712_v16 }
 0xbd7   :  { %5795 = vmatpush.bf16.msra.mxu2 %v5778_v25  ;;  %6077 = vmatpush.bf16.msrb.mxu0 %v8073_v17  ;;  %v5949_v25 = vadd.f32 1e-06, %v5948_v43 }
 0xbd9   :  { %8803 = vrcp.f32 %v5949_v25 }
 0xbda   :  { %8805 = vrcp.f32 %v5951_v22 }
 0xbdb   :  { %5796 = vmatpush.bf16.msra.mxu2 %v5777_v33  ;;  %6078 = vmatpush.bf16.msrb.mxu0 %v8069_v44 }
 0xbdc   :  { %v5953_v40 = vpop.f32.mrf.mxu3 }
 0xbdf   :  { %5797 = vmatpush.bf16.msra.mxu2 %v5776_v61  ;;  %v8804_v26 = vpop.eup %8803 }
 0xbe0   :  { %v8806_v16 = vpop.eup %8805 }
 0xbe3   :  { %5798 = vmatpush.bf16.msra.mxu2 %v5775_v20 }
 0xbe4   :  { %v5955_v36 = vpop.f32.mrf.mxu3 }
 0xbe6   :  { %5708 = vmatmul.bf16.gmra.mxu2 %v12713_v12  ;;  %v5954_v12 = vadd.f32 1e-06, %v5953_v40 }
 0xbe8   :  { %8807 = vrcp.f32 %v5954_v12 }
 0xbec   :  { %v5958_v24 = vpop.f32.mrf.mxu3 }
 0xbed   :  { %v5959_v15 = vadd.f32 1e-06, %v5958_v24 }
 0xbf4   :  { %v5960_v61 = vpop.f32.mrf.mxu3 }
 0xbf5   :  { %v5961_v51 = vadd.f32 1e-06, %v5960_v61 }
 0xbf6   :  { %5713 = vmatmul.bf16.gmra.mxu2 %v12714_v60  ;;  %v5956_v60 = vadd.f32 1e-06, %v5955_v36 }
 0xbf8   :  { %8809 = vrcp.f32 %v5956_v60 }
 0xbf9   :  { %8811 = vrcp.f32 %v5959_v15 }
 0xbfa   :  { %8813 = vrcp.f32 %v5961_v51 }
 0xbfc   :  { %v5963_v62 = vpop.f32.mrf.mxu3 }
 0xbfd   :  { %v5964_v6 = vadd.f32 1e-06, %v5963_v62 }
 0xbff   :  { %8815 = vrcp.f32 %v5964_v6 }
 0xc04   :  { %v5965_v58 = vpop.f32.mrf.mxu3 }
 0xc05   :  { %v5966_v35 = vadd.f32 1e-06, %v5965_v58 }
 0xc06   :  { %5799 = vmatmul.bf16.vlgmr.msra.gmra.mxu2 %v12717_v45  ;;  %v8808_v45 = vpop.eup %8807 }
 0xc07   :  { %v8810_v42 = vpop.eup %8809  ;;  %8817 = vrcp.f32 %v5966_v35 }
 0xc08   :  { %v8812_v18 = vpop.eup %8811 }
 0xc09   :  { %v8814_v10 = vpop.eup %8813 }
 0xc0a   :  { %v8816_v55 = vpop.eup %8815 }
 0xc0c   :  { %v5968_v54 = vpop.f32.mrf.mxu3 }
 0xc0d   :  { %v5969_v28 = vadd.f32 1e-06, %v5968_v54  ;;  %v8392_v54 = vld [vmem:[#allocation8 + $0x3f8] sm:$0xf] }
 0xc0f   :  { %8819 = vrcp.f32 %v5969_v28  ;;  %v8140_v28 = vld [vmem:[#allocation8 + $0x2e4] sm:$0xf] }
 0xc14   :  { %v5970_v41 = vpop.f32.mrf.mxu3 }
 0xc15   :  { %v5971_v17 = vadd.f32 1e-06, %v5970_v41  ;;  %v8391_v41 = vld [vmem:[#allocation8 + $0x3ac] sm:$0xf0] }
 0xc16   :  { %5804 = vmatmul.bf16.gmra.mxu2 %v12720_v56 }
 0xc17   :  { %8821 = vrcp.f32 %v5971_v17  ;;  %v8388_v17 = vld [vmem:[#allocation8 + $0x2e8] sm:$0xf] }
 0xc1c   :  { %v5973_v13 = vpop.f32.mrf.mxu3 }
 0xc1d   :  { %v5974_v30 = vadd.f32 1e-06, %v5973_v13  ;;  %v8389_v13 = vld [vmem:[#allocation8 + $0x324] sm:$0xf0] }
 0xc1f   :  { %8823 = vrcp.f32 %v5974_v30  ;;  %v8387_v30 = vld [vmem:[#allocation8 + $0x29c] sm:$0xf0] }
 0xc24   :  { %v5975_v14 = vpop.f32.mrf.mxu3 }
 0xc25   :  { %v5976_v40 = vadd.f32 1e-06, %v5975_v14  ;;  %v8142_v14 = vld [vmem:[#allocation8 + $0x328] sm:$0xf0] }
 0xc26   :  { %5809 = vmatmul.bf16.gmra.mxu2 %v12723_v0  ;;  %v8818_v0 = vpop.eup %8817 }
 0xc27   :  { %v8820_v50 = vpop.eup %8819  ;;  %8825 = vrcp.f32 %v5976_v40  ;;  %v8386_v40 = vld [vmem:[#allocation8 + $0x260] sm:$0xf] }
 0xc28   :  { %v8822_v44 = vpop.eup %8821 }
 0xc36   :  { %5814 = vmatmul.bf16.gmra.mxu2 %v12726_v4 }
 0xc49   :  { %v5699_v57 = vpop.f32.mrf.mxu2 }
 0xc4a   :  { %v5999_v39 = vmul.f32 %v8800_v11, %v5699_v57  ;;  %v5978_v57 = vpop.f32.mrf.mxu3  ;;  %v8824_v11 = vpop.eup %8823 }
 0xc4b   :  { %v8826_v36 = vpop.eup %8825  ;;  %v5979_v25 = vadd.f32 1e-06, %v5978_v57 }
 0xc4d   :  { %8827 = vrcp.f32 %v5979_v25 }
 0xc51   :  { %v5701_v9 = vpop.f32.mrf.mxu2 }
 0xc52   :  { %v6000_v49 = vmul.f32 %v8802_v21, %v5701_v9 }
 0xc53   :  { %v8828_v24 = vpop.eup %8827 }
 0xc54   :  { %v6015_v53 = vpack.c.bf16 %v6000_v49, %v5999_v39  ;;  %v5980_v49 = vpop.f32.mrf.mxu3 }
 0xc55   :  { %v5981_v22 = vadd.f32 1e-06, %v5980_v49  ;;  %v8384_v49 = vld [vmem:[#allocation8 + $0x1d8] sm:$0xf] }
 0xc56   :  { %6079 = vmatmul.bf16.vlgmr.msrb.gmra.mxu0 %v6015_v53 }
 0xc57   :  { %8829 = vrcp.f32 %v5981_v22  ;;  %v8126_v22 = vld [vmem:[#allocation8 + $0x218] sm:$0xf0] }
 0xc59   :  { %v5704_v59 = vpop.f32.mrf.mxu2 }
 0xc5a   :  { %v6001_v47 = vmul.f32 %v8804_v26, %v5704_v59 }
 0xc5d   :  { %v8830_v26 = vpop.eup %8829 }
 0xc61   :  { %v5706_v33 = vpop.f32.mrf.mxu2 }
 0xc62   :  { %v6002_v32 = vmul.f32 %v8806_v16, %v5706_v33 }
 0xc64   :  { %v6016_v20 = vpack.c.bf16 %v6002_v32, %v6001_v47 }
 0xc66   :  { %6084 = vmatmul.bf16.gmra.mxu0 %v6016_v20 }
 0xc69   :  { %v5709_v1 = vpop.f32.mrf.mxu2 }
 0xc6a   :  { %v6003_v56 = vmul.f32 %v8808_v45, %v5709_v1 }
 0xc71   :  { %v5711_v34 = vpop.f32.mrf.mxu2 }
 0xc72   :  { %v6004_v37 = vmul.f32 %v8810_v42, %v5711_v34 }
 0xc74   :  { %v6017_v2 = vpack.c.bf16 %v6004_v37, %v6003_v56 }
 0xc76   :  { %6089 = vmatmul.bf16.gmra.mxu0 %v6017_v2 }
 0xc79   :  { %v5714_v27 = vpop.f32.mrf.mxu2 }
 0xc7a   :  { %v6005_v31 = vmul.f32 %v8812_v18, %v5714_v27 }
 0xc81   :  { %v5716_v48 = vpop.f32.mrf.mxu2 }
 0xc82   :  { %v6006_v23 = vmul.f32 %v8814_v10, %v5716_v48  ;;  %v8156_v10 = vld [vmem:[#allocation8 + $0x3f4] sm:$0xf]  ;;  %v8393_v48 = vld [vmem:[#allocation8 + $0x434] sm:$0xf0] }
 0xc84   :  { %v6018_v7 = vpack.c.bf16 %v6006_v23, %v6005_v31  ;;  %v8157_v23 = vor.u32 %v8393_v48, %v8156_v10  ;;  %v8380_v48 = vld [vmem:[#allocation8 + $0xc8] sm:$0xf] }
 0xc86   :  { %6094 = vmatmul.bf16.gmra.mxu0 %v6018_v7  ;;  %v8158_v7 = vld [vmem:[#allocation8 + $0x438] sm:$0xf0]  ;;  %6660 = vmatpush.bf16.msra.mxu1 %v8157_v23 }
 0xc87   :  { %v8161_v6 = vor.u32 %v8392_v54, %v8158_v7  ;;  %v8110_v54 = vld [vmem:[#allocation8 + $0x108] sm:$0xf0] }
 0xc88   :  { %v8113_v7 = vor.u32 %v8380_v48, %v8110_v54 }
 0xc89   :  { %v5800_v8 = vpop.f32.mrf.mxu2  ;;  %6709 = vmatpush.bf16.msrb.mxu2 %v8161_v6 }
 0xc8a   :  { %v6007_v19 = vmul.f32 %v8816_v55, %v5800_v8  ;;  %v8148_v8 = vld [vmem:[#allocation8 + $0x36c] sm:$0xf]  ;;  %v8390_v55 = vld [vmem:[#allocation8 + $0x370] sm:$0xf] }
 0xc91   :  { %v5802_v46 = vpop.f32.mrf.mxu2 }
 0xc92   :  { %v6008_v5 = vmul.f32 %v8818_v0, %v5802_v46  ;;  %v8149_v0 = vor.u32 %v8391_v41, %v8148_v8  ;;  %v8150_v46 = vld [vmem:[#allocation8 + $0x3b0] sm:$0xf0]  ;;  %v8379_v8 = vld [vmem:[#allocation8 + $0x7c] sm:$0xf0] }
 0xc93   :  { %v8378_v41 = vld [vmem:[#allocation8 + $0x40] sm:$0xf] }
 0xc94   :  { %v6019_v3 = vpack.c.bf16 %v6008_v5, %v6007_v19  ;;  %v12727_v19 = vld [vmem:[#allocation29_spill] sm:$0xff]  ;;  %6661 = vmatpush.bf16.msra.mxu1 %v8149_v0 }
 0xc96   :  { %6099 = vmatmul.bf16.gmra.mxu0 %v6019_v3  ;;  %v8153_v3 = vor.u32 %v8390_v55, %v8150_v46 }
 0xc98   :  { %6710 = vmatpush.bf16.msrb.mxu2 %v8153_v3  ;;  %v8102_v3 = vld [vmem:[#allocation8 + $0x80] sm:$0xf0] }
 0xc99   :  { %v5805_v43 = vpop.f32.mrf.mxu2 }
 0xc9a   :  { %v6009_v38 = vmul.f32 %v8820_v50, %v5805_v43  ;;  %v8141_v50 = vor.u32 %v8389_v13, %v8140_v28  ;;  %v8105_v13 = vor.u32 %v8378_v41, %v8102_v3 }
 0xc9c   :  { %6662 = vmatpush.bf16.msra.mxu1 %v8141_v50 }
 0xca1   :  { %v5807_v52 = vpop.f32.mrf.mxu2 }
 0xca2   :  { %v6010_v4 = vmul.f32 %v8822_v44, %v5807_v52 }
 0xca4   :  { %v6020_v29 = vpack.c.bf16 %v6010_v4, %v6009_v38  ;;  %v8145_v38 = vor.u32 %v8388_v17, %v8142_v14 }
 0xca6   :  { %6104 = vmatmul.bf16.gmra.mxu0 %v6020_v29  ;;  %6711 = vmatpush.bf16.msrb.mxu2 %v8145_v38  ;;  %v8132_v29 = vld [vmem:[#allocation8 + $0x25c] sm:$0xf] }
 0xca7   :  { %v8133_v57 = vor.u32 %v8387_v30, %v8132_v29 }
 0xca9   :  { %v5810_v63 = vpop.f32.mrf.mxu2  ;;  %6663 = vmatpush.bf16.msra.mxu1 %v8133_v57 }
 0xcaa   :  { %v6011_v9 = vmul.f32 %v8824_v11, %v5810_v63  ;;  %v8134_v11 = vld [vmem:[#allocation8 + $0x2a0] sm:$0xf0] }
 0xcb1   :  { %v5812_v21 = vpop.f32.mrf.mxu2 }
 0xcb2   :  { %v6012_v39 = vmul.f32 %v8826_v36, %v5812_v21  ;;  %v8137_v21 = vor.u32 %v8386_v40, %v8134_v11 }
 0xcb4   :  { %v6021_v53 = vpack.c.bf16 %v6012_v39, %v6011_v9  ;;  %6712 = vmatpush.bf16.msrb.mxu2 %v8137_v21  ;;  %v8124_v9 = vld [vmem:[#allocation8 + $0x1d4] sm:$0xf]  ;;  %v8385_v39 = vld [vmem:[#allocation8 + $0x214] sm:$0xf0] }
 0xcb5   :  { %v8125_v25 = vor.u32 %v8385_v39, %v8124_v9  ;;  %v11945_v9 = vld [vmem:[#allocation11 + $0x6] ss:$0 sm:$0xff] }
 0xcb6   :  { %6109 = vmatmul.bf16.gmra.mxu0 %v6021_v53 }
 0xcb7   :  { %6664 = vmatpush.bf16.msra.mxu1 %v8125_v25 }
 0xcb9   :  { %v5815_v59 = vpop.f32.mrf.mxu2 }
 0xcba   :  { %v6013_v33 = vmul.f32 %v8828_v24, %v5815_v59  ;;  %v8129_v59 = vor.u32 %v8384_v49, %v8126_v22 }
 0xcbc   :  { %6713 = vmatpush.bf16.msrb.mxu2 %v8129_v59 }
 0xcc1   :  { %v5817_v16 = vpop.f32.mrf.mxu2 }
 0xcc2   :  { %v6014_v47 = vmul.f32 %v8830_v26, %v5817_v16  ;;  %v8116_v26 = vld [vmem:[#allocation8 + $0x14c] sm:$0xf]  ;;  %v8383_v16 = vld [vmem:[#allocation8 + $0x18c] sm:$0xf0] }
 0xcc4   :  { %v6022_v32 = vpack.c.bf16 %v6014_v47, %v6013_v33  ;;  %v8382_v33 = vld [vmem:[#allocation8 + $0x150] sm:$0xf]  ;;  %v8117_v47 = vor.u32 %v8383_v16, %v8116_v26 }
 0xcc6   :  { %6114 = vmatmul.bf16.gmra.mxu0 %v6022_v32  ;;  %v8118_v32 = vld [vmem:[#allocation8 + $0x190] sm:$0xf0]  ;;  %6665 = vmatpush.bf16.msra.mxu1 %v8117_v47 }
 0xcd3   :  { %v11865_v61 = vpop.f32.mrf.mxu0 }
 0xcd4   :  { %6122 = vadd.xlane.f32.xlu0 %v11865_v61  ;;  %v6170_v20 = vmul.f32 %v11865_v61, %v11865_v61 }
 0xcdb   :  { %v11870_v12 = vpop.f32.mrf.mxu0 }
 0xcdc   :  { %6186 = vadd.xlane.f32.xlu0 %v6170_v20  ;;  %v6171_v1 = vmul.f32 %v11870_v12, %v11870_v12 }
 0xce3   :  { %v11872_v60 = vpop.f32.mrf.mxu0 }
 0xce4   :  { %6124 = vadd.xlane.f32.xlu0 %v11870_v12  ;;  %v6172_v42 = vmul.f32 %v11872_v60, %v11872_v60 }
 0xceb   :  { %v11877_v62 = vpop.f32.mrf.mxu0 }
 0xcec   :  { %6188 = vadd.xlane.f32.xlu0 %v6171_v1  ;;  %v6173_v15 = vmul.f32 %v11877_v62, %v11877_v62 }
 0xcf3   :  { %v11879_v45 = vpop.f32.mrf.mxu0 }
 0xcf4   :  { %6126 = vadd.xlane.f32.xlu0 %v11872_v60  ;;  %v6174_v51 = vmul.f32 %v11879_v45, %v11879_v45 }
 0xcfb   :  { %v11884_v34 = vpop.f32.mrf.mxu0 }
 0xcfc   :  { %6190 = vadd.xlane.f32.xlu0 %v6172_v42  ;;  %v6175_v56 = vmul.f32 %v11884_v34, %v11884_v34  ;;  %v8121_v42 = vor.u32 %v8382_v33, %v8118_v32 }
 0xcfe   :  { %6196 = vadd.xlane.f32.xlu2 %v6175_v56  ;;  %6714 = vmatpush.bf16.msrb.mxu2 %v8121_v42 }
 0xd02   :  { %6715 = vmatpush.bf16.msrb.mxu2 %v8113_v7 }
 0xd03   :  { %v11888_v37 = vpop.f32.mrf.mxu0 }
 0xd04   :  { %6128 = vadd.xlane.f32.xlu0 %v11877_v62  ;;  %v6176_v2 = vmul.f32 %v11888_v37, %v11888_v37 }
 0xd06   :  { %6198 = vadd.xlane.f32.xlu1 %v6176_v2  ;;  %v8108_v2 = vld [vmem:[#allocation8 + $0xc4] sm:$0xf]  ;;  %6716 = vmatpush.bf16.msrb.mxu2 %v8105_v13 }
 0xd0b   :  { %v11900_v58 = vpop.f32.mrf.mxu0 }
 0xd0c   :  { %6192 = vadd.xlane.f32.xlu0 %v6173_v15  ;;  %v6177_v27 = vmul.f32 %v11900_v58, %v11900_v58  ;;  %v8381_v15 = vld [vmem:[#allocation8 + $0x104] sm:$0xf0] }
 0xd0d   :  { %v8109_v10 = vor.u32 %v8381_v15, %v8108_v2  ;;  %v12729_v15 = vld [vmem:[#allocation68_spill] sm:$0xff] }
 0xd0f   :  { %6666 = vmatpush.bf16.msra.mxu1 %v8109_v10 }
 0xd13   :  { %v11905_v18 = vpop.f32.mrf.mxu0 }
 0xd14   :  { %6130 = vadd.xlane.f32.xlu0 %v11879_v45  ;;  %v6178_v35 = vmul.f32 %v11905_v18, %v11905_v18 }
 0xd1b   :  { %v11916_v63 = vpop.f32.mrf.mxu0 }
 0xd1c   :  { %6194 = vadd.xlane.f32.xlu0 %v6174_v51  ;;  %v6179_v24 = vmul.f32 %v11916_v63, %v11916_v63 }
 0xd23   :  { %v11931_v55 = vpop.f32.mrf.mxu0 }
 0xd24   :  { %6132 = vadd.xlane.f32.xlu0 %v11884_v34  ;;  %v6180_v50 = vmul.f32 %v11931_v55, %v11931_v55 }
 0xd2c   :  { %6134 = vadd.xlane.f32.xlu0 %v11888_v37 }
 0xd34   :  { %6136 = vadd.xlane.f32.xlu0 %v11900_v58 }
 0xd3c   :  { %6200 = vadd.xlane.f32.xlu0 %v6177_v27 }
 0xd44   :  { %6138 = vadd.xlane.f32.xlu0 %v11905_v18 }
 0xd47   :  { %v6123_v31 = vpop.xlane.xlu0 %6122 }
 0xd48   :  { %v11911_v5 = vmul.f32 %v6123_v31, %v12727_v19 }
 0xd4a   :  { %v6234_v44 = vmul.f32 %v11911_v5, %v11911_v5  ;;  %v6266_v40 = vsub.f32 %v11865_v61, %v11911_v5  ;;  %v11950_v61 = vld [vmem:[#allocation11 + $0x7] ss:$0 sm:$0xff] }
 0xd4c   :  { %6202 = vadd.xlane.f32.xlu0 %v6178_v35  ;;  %v8100_v35 = vld [vmem:[#allocation8 + $0x3c] sm:$0xf] }
 0xd4d   :  { %v8101_v46 = vor.u32 %v8379_v8, %v8100_v35 }
 0xd4f   :  { %v6187_v43 = vpop.xlane.xlu0 %6186  ;;  %6667 = vmatpush.bf16.msra.mxu1 %v8101_v46 }
 0xd50   :  { %v6218_v52 = vmul.f32 %v6187_v43, %v12727_v19 }
 0xd52   :  { %v6250_v4 = vsub.f32 %v6218_v52, %v6234_v44 }
 0xd54   :  { %v11918_v36 = vadd.f32 1e-05, %v6250_v4  ;;  %6140 = vadd.xlane.f32.xlu0 %v11916_v63 }
 0xd56   :  { %8831 = vrsqrt.f32 %v11918_v36  ;;  %vm6304_vm1 = vweird.f32 %v11918_v36 }
 0xd57   :  { %v6125_v53 = vpop.xlane.xlu0 %6124 }
 0xd58   :  { %v11925_v1 = vmul.f32 %v6125_v53, %v12727_v19  ;;  %v11947_v53 = vpop.f32.mrf.mxu0 }
 0xd59   :  { %v6181_v33 = vmul.f32 %v11947_v53, %v11947_v53 }
 0xd5a   :  { %v6235_v31 = vmul.f32 %v11925_v1, %v11925_v1  ;;  %v6267_v59 = vsub.f32 %v11870_v12, %v11925_v1  ;;  %v12728_v12 = vld [vmem:[#allocation55_spill] sm:$0xff] }
 0xd5c   :  { %v8832_v20 = vpop.eup %8831  ;;  %6204 = vadd.xlane.f32.xlu0 %v6179_v24 }
 0xd5d   :  { %v6299_v56 = vmul.f32 %v8832_v20, %v11918_v36  ;;  %vm6305_vm0 = vweird.f32 %v8832_v20 }
 0xd5e   :  { %vm6306_vm2 = vmor %vm6304_vm1, %vm6305_vm0 }
 0xd5f   :  { %v6300_v51 = vmul.f32 %v8832_v20, %v6299_v56  ;;  %v6189_v27 = vpop.xlane.xlu0 %6188 }
 0xd60   :  { %v6219_v23 = vmul.f32 %v6189_v27, %v12727_v19  ;;  %v11970_v7 = vpop.f32.mrf.mxu0 }
 0xd61   :  { %v6301_v0 = vmul.f32 0.5, %v6300_v51 }
 0xd62   :  { %v6251_v6 = vsub.f32 %v6219_v23, %v6235_v31 }
 0xd63   :  { %v6302_v17 = vsub.f32 1.5, %v6301_v0  ;;  %v6182_v0 = vmul.f32 %v11970_v7, %v11970_v7 }
 0xd64   :  { %v6283_v28 = vadd.f32 1e-05, %v6251_v6  ;;  %6142 = vadd.xlane.f32.xlu0 %v11931_v55 }
 0xd65   :  { %v6303_v14 = vmul.f32 %v8832_v20, %v6302_v17 }
 0xd66   :  { %8833 = vrsqrt.f32 %v6283_v28  ;;  %vm6314_vm4 = vweird.f32 %v6283_v28 }
 0xd67   :  { %v6127_v43 = vpop.xlane.xlu0 %6126  ;;  %v6307_v4 = vsel %vm6306_vm2, %v8832_v20, %v6303_v14 }
 0xd68   :  { %v11937_v52 = vmul.f32 %v6127_v43, %v12727_v19  ;;  %v6458_v39 = vmul.f32 %v6307_v4, %v6266_v40  ;;  %v11983_v40 = vpop.f32.mrf.mxu0 }
 0xd6a   :  { %v6236_v57 = vmul.f32 %v11937_v52, %v11937_v52  ;;  %v6475_v5 = vmul.f32 %v11945_v9, %v6458_v39  ;;  %v6268_v14 = vsub.f32 %v11872_v60, %v11937_v52 }
 0xd6c   :  { %v8834_v44 = vpop.eup %8833  ;;  %6206 = vadd.xlane.f32.xlu0 %v6180_v50  ;;  %v6492_v47 = vadd.f32 %v11950_v61, %v6475_v5  ;;  %v6183_v5 = vmul.f32 %v11983_v40, %v11983_v40 }
 0xd6d   :  { %v6309_v38 = vmul.f32 %v8834_v44, %v6283_v28  ;;  %vm6315_vm3 = vweird.f32 %v8834_v44 }
 0xd6e   :  { %vm6316_vm5 = vmor %vm6314_vm4, %vm6315_vm3  ;;  %v11962_v1 = vadd.f32 %v6492_v47, %v12728_v12 }
 0xd6f   :  { %v6310_v29 = vmul.f32 %v8834_v44, %v6309_v38  ;;  %v6191_v30 = vpop.xlane.xlu0 %6190 }
 0xd70   :  { %v6220_v11 = vmul.f32 %v6191_v30, %v12727_v19 }
 0xd71   :  { %v6311_v21 = vmul.f32 0.5, %v6310_v29  ;;  %v6197_v52 = vpop.xlane.xlu2 %6196 }
 0xd72   :  { %v6252_v49 = vsub.f32 %v6220_v11, %v6236_v57 }
 0xd73   :  { %v6312_v36 = vsub.f32 1.5, %v6311_v21 }
 0xd74   :  { %v6284_v25 = vadd.f32 1e-05, %v6252_v49  ;;  %6144 = vadd.xlane.f32.xlu0 %v11947_v53 }
 0xd75   :  { %v6313_v22 = vmul.f32 %v8834_v44, %v6312_v36 }
 0xd76   :  { %8835 = vrsqrt.f32 %v6284_v25  ;;  %vm6324_vm7 = vweird.f32 %v6284_v25 }
 0xd77   :  { %v6317_v24 = vsel %vm6316_vm5, %v8834_v44, %v6313_v22  ;;  %v6129_v26 = vpop.xlane.xlu0 %6128 }
 0xd78   :  { %v6459_v16 = vmul.f32 %v6317_v24, %v6267_v59  ;;  %v6157_v56 = vmul.f32 %v6129_v26, %v12727_v19  ;;  %v6223_v59 = vmul.f32 %v6197_v52, %v12727_v19 }
 0xd7a   :  { %v6476_v32 = vmul.f32 %v11945_v9, %v6459_v16  ;;  %v6237_v48 = vmul.f32 %v6157_v56, %v6157_v56  ;;  %v6269_v39 = vsub.f32 %v11877_v62, %v6157_v56 }
 0xd7c   :  { %v8836_v20 = vpop.eup %8835  ;;  %v6493_v42 = vadd.f32 %v11950_v61, %v6476_v32  ;;  %6208 = vadd.xlane.f32.xlu0 %v6181_v33 }
 0xd7d   :  { %v6319_v2 = vmul.f32 %v8836_v20, %v6284_v25  ;;  %vm6325_vm6 = vweird.f32 %v8836_v20 }
 0xd7e   :  { %v11965_v51 = vadd.f32 %v6493_v42, %v12729_v15  ;;  %vm6326_vm8 = vmor %vm6324_vm7, %vm6325_vm6  ;;  %v12730_v42 = vld [vmem:[#allocation61_spill] sm:$0xff]  ;;  %v6199_v15 = vpop.xlane.xlu1 %6198 }
 0xd7f   :  { %v6320_v27 = vmul.f32 %v8836_v20, %v6319_v2  ;;  %v6193_v10 = vpop.xlane.xlu0 %6192  ;;  %v12731_v2 = vld [vmem:[#allocation67_spill] sm:$0xff] }
 0xd80   :  { %v6221_v54 = vmul.f32 %v6193_v10, %v12727_v19  ;;  %v6572_v31 = vpack.c.bf16 %v11965_v51, %v11962_v1 }
 0xd81   :  { %v6321_v6 = vmul.f32 0.5, %v6320_v27 }
 0xd82   :  { %v6253_v23 = vsub.f32 %v6221_v54, %v6237_v48  ;;  %6668 = vmatmul.bf16.vlgmr.msra.gmra.mxu1 %v6572_v31  ;;  %6717 = vmatmul.bf16.vlgmr.msrb.gmra.mxu2 %v6572_v31 }
 0xd83   :  { %v6322_v8 = vsub.f32 1.5, %v6321_v6 }
 0xd84   :  { %v6285_v35 = vadd.f32 1e-05, %v6253_v23  ;;  %6146 = vadd.xlane.f32.xlu0 %v11970_v7  ;;  %v6224_v23 = vmul.f32 %v6199_v15, %v12727_v19 }
 0xd85   :  { %v6323_v46 = vmul.f32 %v8836_v20, %v6322_v8 }
 0xd86   :  { %8837 = vrsqrt.f32 %v6285_v35  ;;  %vm6334_vm10 = vweird.f32 %v6285_v35 }
 0xd87   :  { %v6131_v41 = vpop.xlane.xlu0 %6130  ;;  %v6327_v17 = vsel %vm6326_vm8, %v8836_v20, %v6323_v46 }
 0xd88   :  { %v11976_v28 = vmul.f32 %v6131_v41, %v12727_v19  ;;  %v6460_v29 = vmul.f32 %v6327_v17, %v6268_v14 }
 0xd8a   :  { %v6238_v44 = vmul.f32 %v11976_v28, %v11976_v28  ;;  %v6477_v60 = vmul.f32 %v11945_v9, %v6460_v29 }
 0xd8c   :  { %v8838_v3 = vpop.eup %8837  ;;  %6210 = vadd.xlane.f32.xlu0 %v6182_v0  ;;  %v6494_v62 = vadd.f32 %v11950_v61, %v6477_v60 }
 0xd8d   :  { %v6329_v13 = vmul.f32 %v8838_v3, %v6285_v35  ;;  %vm6335_vm9 = vweird.f32 %v8838_v3  ;;  %v12009_v35 = vpop.f32.mrf.mxu0 }
 0xd8e   :  { %vm6336_vm11 = vmor %vm6334_vm10, %vm6335_vm9  ;;  %v11996_v56 = vadd.f32 %v6494_v62, %v12730_v42  ;;  %v6184_v14 = vmul.f32 %v12009_v35, %v12009_v35 }
 0xd8f   :  { %v6330_v43 = vmul.f32 %v8838_v3, %v6329_v13  ;;  %v6195_v50 = vpop.xlane.xlu0 %6194 }
 0xd90   :  { %v6222_v38 = vmul.f32 %v6195_v50, %v12727_v19 }
 0xd91   :  { %v6331_v4 = vmul.f32 0.5, %v6330_v43 }
 0xd92   :  { %v6254_v30 = vsub.f32 %v6222_v38, %v6238_v44  ;;  %v6270_v44 = vsub.f32 %v11879_v45, %v11976_v28 }
 0xd93   :  { %v6332_v57 = vsub.f32 1.5, %v6331_v4 }
 0xd94   :  { %v6286_v11 = vadd.f32 1e-05, %v6254_v30  ;;  %6148 = vadd.xlane.f32.xlu0 %v11983_v40 }
 0xd95   :  { %v6333_v21 = vmul.f32 %v8838_v3, %v6332_v57 }
 0xd96   :  { %8839 = vrsqrt.f32 %v6286_v11  ;;  %vm6344_vm13 = vweird.f32 %v6286_v11 }
 0xd97   :  { %v6337_v49 = vsel %vm6336_vm11, %v8838_v3, %v6333_v21  ;;  %v6133_v36 = vpop.xlane.xlu0 %6132 }
 0xd98   :  { %v6461_v25 = vmul.f32 %v6337_v49, %v6269_v39  ;;  %v6159_v22 = vmul.f32 %v6133_v36, %v12727_v19 }
 0xd9a   :  { %v6239_v24 = vmul.f32 %v6159_v22, %v6159_v22  ;;  %v6478_v26 = vmul.f32 %v11945_v9, %v6461_v25  ;;  %v6271_v60 = vsub.f32 %v11884_v34, %v6159_v22 }
 0xd9c   :  { %v8840_v16 = vpop.eup %8839  ;;  %v6255_v33 = vsub.f32 %v6223_v59, %v6239_v24  ;;  %6212 = vadd.xlane.f32.xlu0 %v6183_v5  ;;  %v6495_v47 = vadd.f32 %v11950_v61, %v6478_v26  ;;  %v12024_v59 = vpop.f32.mrf.mxu0 }
 0xd9d   :  { %v6339_v32 = vmul.f32 %v8840_v16, %v6286_v11  ;;  %vm6345_vm12 = vweird.f32 %v8840_v16 }
 0xd9e   :  { %v6287_v20 = vadd.f32 1e-05, %v6255_v33  ;;  %v11999_v12 = vadd.f32 %v6495_v47, %v12731_v2  ;;  %vm6346_vm14 = vmor %vm6344_vm13, %vm6345_vm12  ;;  %v12732_v47 = vld [vmem:[#allocation59_spill] sm:$0xff]  ;;  %v6185_v2 = vmul.f32 %v12024_v59, %v12024_v59 }
 0xd9f   :  { %v6340_v27 = vmul.f32 %v8840_v16, %v6339_v32  ;;  %v6135_v10 = vpop.xlane.xlu0 %6134 }
 0xda0   :  { %8841 = vrsqrt.f32 %v6287_v20  ;;  %v12002_v48 = vmul.f32 %v6135_v10, %v12727_v19  ;;  %v6573_v54 = vpack.c.bf16 %v11999_v12, %v11996_v56  ;;  %vm6354_vm0 = vweird.f32 %v6287_v20 }
 0xda1   :  { %v6341_v31 = vmul.f32 0.5, %v6340_v27 }
 0xda2   :  { %v6240_v6 = vmul.f32 %v12002_v48, %v12002_v48  ;;  %6673 = vmatmul.bf16.gmra.mxu1 %v6573_v54  ;;  %6722 = vmatmul.bf16.gmra.mxu2 %v6573_v54 }
 0xda3   :  { %v6342_v8 = vsub.f32 1.5, %v6341_v31 }
 0xda4   :  { %v6256_v41 = vsub.f32 %v6224_v23, %v6240_v6  ;;  %6150 = vadd.xlane.f32.xlu0 %v12009_v35 }
 0xda5   :  { %v6343_v0 = vmul.f32 %v8840_v16, %v6342_v8 }
 0xda6   :  { %v8842_v46 = vpop.eup %8841  ;;  %v6288_v3 = vadd.f32 1e-05, %v6256_v41  ;;  %v6272_v41 = vsub.f32 %v11888_v37, %v12002_v48 }
 0xda7   :  { %v6349_v13 = vmul.f32 %v8842_v46, %v6287_v20  ;;  %v6137_v17 = vpop.xlane.xlu0 %6136  ;;  %v6347_v43 = vsel %vm6346_vm14, %v8840_v16, %v6343_v0  ;;  %vm6355_vm15 = vweird.f32 %v8842_v46  ;;  %v12733_v20 = vld [vmem:[#allocation63_spill] sm:$0xff] }
 0xda8   :  { %8843 = vrsqrt.f32 %v6288_v3  ;;  %v6462_v4 = vmul.f32 %v6347_v43, %v6270_v44  ;;  %v12017_v29 = vmul.f32 %v6137_v17, %v12727_v19  ;;  %vm6356_vm1 = vmor %vm6354_vm0, %vm6355_vm15  ;;  %vm6364_vm3 = vweird.f32 %v6288_v3 }
 0xda9   :  { %v6350_v50 = vmul.f32 %v8842_v46, %v6349_v13 }
 0xdaa   :  { %v6241_v52 = vmul.f32 %v12017_v29, %v12017_v29  ;;  %v6479_v28 = vmul.f32 %v11945_v9, %v6462_v4 }
 0xdab   :  { %v6351_v38 = vmul.f32 0.5, %v6350_v50 }
 0xdac   :  { %6214 = vadd.xlane.f32.xlu0 %v6184_v14  ;;  %v6496_v34 = vadd.f32 %v11950_v61, %v6479_v28 }
 0xdad   :  { %v6352_v30 = vsub.f32 1.5, %v6351_v38  ;;  %v6273_v38 = vsub.f32 %v11900_v58, %v12017_v29  ;;  %v12735_v29 = vld [vmem:[#allocation62_spill] sm:$0xff] }
 0xdae   :  { %v8844_v57 = vpop.eup %8843  ;;  %v12031_v32 = vadd.f32 %v6496_v34, %v12732_v47  ;;  %v8400_v47 = vld [vmem:[#allocation10 + $0x68] sm:$0xf0] }
 0xdaf   :  { %v6353_v11 = vmul.f32 %v8842_v46, %v6352_v30  ;;  %v6359_v21 = vmul.f32 %v8844_v57, %v6288_v3  ;;  %v6201_v39 = vpop.xlane.xlu0 %6200  ;;  %vm6365_vm2 = vweird.f32 %v8844_v57 }
 0xdb0   :  { %v6225_v45 = vmul.f32 %v6201_v39, %v12727_v19  ;;  %vm6366_vm4 = vmor %vm6364_vm3, %vm6365_vm2 }
 0xdb1   :  { %v6357_v49 = vsel %vm6356_vm1, %v8842_v46, %v6353_v11  ;;  %v6360_v36 = vmul.f32 %v8844_v57, %v6359_v21 }
 0xdb2   :  { %v6463_v25 = vmul.f32 %v6357_v49, %v6271_v60  ;;  %v6257_v5 = vsub.f32 %v6225_v45, %v6241_v52  ;;  %v12734_v52 = vld [vmem:[#allocation56_spill] sm:$0xff] }
 0xdb3   :  { %v6361_v24 = vmul.f32 0.5, %v6360_v36 }
 0xdb4   :  { %v6480_v26 = vmul.f32 %v11945_v9, %v6463_v25  ;;  %v6289_v62 = vadd.f32 1e-05, %v6257_v5  ;;  %6152 = vadd.xlane.f32.xlu0 %v12024_v59 }
 0xdb5   :  { %v6362_v16 = vsub.f32 1.5, %v6361_v24  ;;  %v8192_v24 = vld [vmem:[#allocation10 + $0x74] sm:$0xf] }
 0xdb6   :  { %8845 = vrsqrt.f32 %v6289_v62  ;;  %v6497_v22 = vadd.f32 %v11950_v61, %v6480_v26  ;;  %vm6374_vm6 = vweird.f32 %v6289_v62  ;;  %v8401_v26 = vld [vmem:[#allocation10 + $0x78] sm:$0xf0] }
 0xdb7   :  { %v6139_v33 = vpop.xlane.xlu0 %6138  ;;  %v6363_v27 = vmul.f32 %v8844_v57, %v6362_v16 }
 0xdb8   :  { %v12034_v42 = vadd.f32 %v6497_v22, %v12733_v20  ;;  %v12041_v54 = vmul.f32 %v6139_v33, %v12727_v19  ;;  %v8188_v33 = vld [vmem:[#allocation10 + $0x64] sm:$0xf] }
 0xdb9   :  { %v6367_v23 = vsel %vm6366_vm4, %v8844_v57, %v6363_v27  ;;  %v8189_v20 = vor.u32 %v8400_v47, %v8188_v33 }
 0xdba   :  { %v6574_v15 = vpack.c.bf16 %v12034_v42, %v12031_v32  ;;  %v6242_v0 = vmul.f32 %v12041_v54, %v12041_v54  ;;  %v6464_v17 = vmul.f32 %v6367_v23, %v6272_v41  ;;  %v8184_v23 = vld [vmem:[#allocation10 + $0x54] sm:$0xf]  ;;  %v8220_v41 = vld [vmem:[#allocation10 + $0xe4] sm:$0xf] }
 0xdbc   :  { %v8846_v10 = vpop.eup %8845  ;;  %6216 = vadd.xlane.f32.xlu0 %v6185_v2  ;;  %6678 = vmatmul.bf16.gmra.mxu1 %v6574_v15  ;;  %v6481_v44 = vmul.f32 %v11945_v9, %v6464_v17  ;;  %v8224_v2 = vld [vmem:[#allocation10 + $0xf4] sm:$0xf] }
 0xdbd   :  { %v6369_v31 = vmul.f32 %v8846_v10, %v6289_v62  ;;  %6727 = vmatmul.bf16.gmra.mxu2 %v6574_v15  ;;  %vm6375_vm5 = vweird.f32 %v8846_v10  ;;  %v8193_v62 = vor.u32 %v8401_v26, %v8192_v24  ;;  %v8409_v15 = vld [vmem:[#allocation10 + $0xf8] sm:$0xf0]  ;;  %v8406_v26 = vld [vmem:[#allocation10 + $0xc8] sm:$0xf0] }
 0xdbe   :  { %vm6376_vm7 = vmor %vm6374_vm6, %vm6375_vm5  ;;  %v6498_v57 = vadd.f32 %v11950_v61, %v6481_v44 }
 0xdbf   :  { %v6370_v6 = vmul.f32 %v8846_v10, %v6369_v31  ;;  %v6203_v8 = vpop.xlane.xlu0 %6202  ;;  %6902 = vmatpush.bf16.msra.mxu3 %v8193_v62  ;;  %v8225_v31 = vor.u32 %v8409_v15, %v8224_v2  ;;  %v8208_v15 = vld [vmem:[#allocation10 + $0xb4] sm:$0xf] }
 0xdc0   :  { %v6226_v46 = vmul.f32 %v6203_v8, %v12727_v19  ;;  %v12061_v58 = vadd.f32 %v6498_v57, %v12734_v52 }
 0xdc1   :  { %v6371_v13 = vmul.f32 0.5, %v6370_v6  ;;  %v8399_v6 = vld [vmem:[#allocation10 + $0x58] sm:$0xf0]  ;;  %6951 = vmatpush.bf16.msra.mxu0 %v8225_v31 }
 0xdc2   :  { %v6258_v43 = vsub.f32 %v6226_v46, %v6242_v0  ;;  %v8185_v8 = vor.u32 %v8399_v6, %v8184_v23  ;;  %v8408_v0 = vld [vmem:[#allocation10 + $0xe8] sm:$0xf0] }
 0xdc3   :  { %v6372_v50 = vsub.f32 1.5, %v6371_v13  ;;  %6903 = vmatpush.bf16.msra.mxu3 %v8189_v20  ;;  %v8221_v13 = vor.u32 %v8408_v0, %v8220_v41  ;;  %v8395_v41 = vld [vmem:[#allocation10 + $0x18] sm:$0xf0] }
 0xdc4   :  { %v6290_v3 = vadd.f32 1e-05, %v6258_v43 }
 0xdc5   :  { %v6373_v14 = vmul.f32 %v8846_v10, %v6372_v50  ;;  %v8180_v50 = vld [vmem:[#allocation10 + $0x44] sm:$0xf]  ;;  %6952 = vmatpush.bf16.msra.mxu0 %v8221_v13 }
 0xdc6   :  { %8847 = vrsqrt.f32 %v6290_v3  ;;  %vm6384_vm9 = vweird.f32 %v6290_v3 }
 0xdc7   :  { %v6377_v37 = vsel %vm6376_vm7, %v8846_v10, %v6373_v14  ;;  %v6141_v48 = vpop.xlane.xlu0 %6140  ;;  %6904 = vmatpush.bf16.msra.mxu3 %v8185_v8  ;;  %v8398_v14 = vld [vmem:[#allocation10 + $0x48] sm:$0xf0]  ;;  %v8168_v8 = vld [vmem:[#allocation10 + $0x14] sm:$0xf] }
 0xdc8   :  { %v6465_v4 = vmul.f32 %v6377_v37, %v6273_v38  ;;  %v12056_v21 = vmul.f32 %v6141_v48, %v12727_v19  ;;  %v8181_v38 = vor.u32 %v8398_v14, %v8180_v50  ;;  %v8216_v48 = vld [vmem:[#allocation10 + $0xd4] sm:$0xf] }
 0xdca   :  { %v6482_v30 = vmul.f32 %v11945_v9, %v6465_v4  ;;  %v6243_v36 = vmul.f32 %v12056_v21, %v12056_v21  ;;  %v8407_v4 = vld [vmem:[#allocation10 + $0xd8] sm:$0xf0]  ;;  %v6275_v20 = vsub.f32 %v11916_v63, %v12056_v21  ;;  %v8204_v21 = vld [vmem:[#allocation10 + $0xa4] sm:$0xf] }
 0xdcb   :  { %6905 = vmatpush.bf16.msra.mxu3 %v8181_v38  ;;  %v8394_v38 = vld [vmem:[#allocation10 + $0x8] sm:$0xf0] }
 0xdcc   :  { %v12053_v11 = vpop.eup %8847  ;;  %v6499_v39 = vadd.f32 %v11950_v61, %v6482_v30 }
 0xdcd   :  { %v6379_v60 = vmul.f32 %v12053_v11, %v6290_v3  ;;  %vm6385_vm8 = vweird.f32 %v12053_v11  ;;  %v6274_v3 = vsub.f32 %v11905_v18, %v12041_v54  ;;  %v8172_v18 = vld [vmem:[#allocation10 + $0x24] sm:$0xf]  ;;  %v8396_v54 = vld [vmem:[#allocation10 + $0x28] sm:$0xf0] }
 0xdce   :  { %v12064_v45 = vadd.f32 %v6499_v39, %v12735_v29  ;;  %vm12077_vm10 = vmor %vm6384_vm9, %vm6385_vm8  ;;  %v8173_v47 = vor.u32 %v8396_v54, %v8172_v18 }
 0xdcf   :  { %v6380_v28 = vmul.f32 %v12053_v11, %v6379_v60  ;;  %v6205_v49 = vpop.xlane.xlu0 %6204  ;;  %v8217_v60 = vor.u32 %v8407_v4, %v8216_v48  ;;  %v12738_v4 = vld [vmem:[#allocation65_spill] sm:$0xff] }
 0xdd0   :  { %v6227_v25 = vmul.f32 %v6205_v49, %v12727_v19  ;;  %v6575_v5 = vpack.c.bf16 %v12064_v45, %v12061_v58  ;;  %v8397_v49 = vld [vmem:[#allocation10 + $0x38] sm:$0xf0] }
 0xdd1   :  { %v6381_v22 = vmul.f32 0.5, %v6380_v28  ;;  %v8176_v28 = vld [vmem:[#allocation10 + $0x34] sm:$0xf]  ;;  %6953 = vmatpush.bf16.msra.mxu0 %v8217_v60 }
 0xdd2   :  { %v6259_v34 = vsub.f32 %v6227_v25, %v6243_v36  ;;  %6683 = vmatmul.bf16.gmra.mxu1 %v6575_v5  ;;  %6732 = vmatmul.bf16.gmra.mxu2 %v6575_v5  ;;  %v8177_v25 = vor.u32 %v8397_v49, %v8176_v28  ;;  %v8200_v60 = vld [vmem:[#allocation10 + $0x94] sm:$0xf] }
 0xdd3   :  { %v6382_v27 = vsub.f32 1.5, %v6381_v22 }
 0xdd4   :  { %v6291_v16 = vadd.f32 1e-05, %v6259_v34  ;;  %6906 = vmatpush.bf16.msra.mxu3 %v8177_v25 }
 0xdd5   :  { %v6383_v46 = vmul.f32 %v12053_v11, %v6382_v27  ;;  %v8405_v27 = vld [vmem:[#allocation10 + $0xb8] sm:$0xf0] }
 0xdd6   :  { %8849 = vrsqrt.f32 %v6291_v16  ;;  %vm6394_vm12 = vweird.f32 %v6291_v16  ;;  %v8209_v23 = vor.u32 %v8405_v27, %v8208_v15 }
 0xdd7   :  { %v6143_v10 = vpop.xlane.xlu0 %6142  ;;  %v6387_v30 = vsel %vm12077_vm10, %v12053_v11, %v6383_v46  ;;  %v8212_v11 = vld [vmem:[#allocation10 + $0xc4] sm:$0xf]  ;;  %v8404_v46 = vld [vmem:[#allocation10 + $0xa8] sm:$0xf0] }
 0xdd8   :  { %v12075_v43 = vmul.f32 %v6143_v10, %v12727_v19  ;;  %v6466_v5 = vmul.f32 %v6387_v30, %v6274_v3  ;;  %v8213_v34 = vor.u32 %v8406_v26, %v8212_v11  ;;  %6907 = vmatpush.bf16.msra.mxu3 %v8173_v47  ;;  %v8205_v13 = vor.u32 %v8404_v46, %v8204_v21  ;;  %v8403_v3 = vld [vmem:[#allocation10 + $0x98] sm:$0xf0]  ;;  %v8402_v11 = vld [vmem:[#allocation10 + $0x88] sm:$0xf0] }
 0xdd9   :  { %v8201_v28 = vor.u32 %v8403_v3, %v8200_v60 }
 0xdda   :  { %v6244_v52 = vmul.f32 %v12075_v43, %v12075_v43  ;;  %6954 = vmatpush.bf16.msra.mxu0 %v8213_v34  ;;  %v6483_v2 = vmul.f32 %v11945_v9, %v6466_v5 }
 0xddc   :  { %v8850_v17 = vpop.eup %8849  ;;  %v6500_v63 = vadd.f32 %v11950_v61, %v6483_v2 }
 0xddd   :  { %v6389_v44 = vmul.f32 %v8850_v17, %v6291_v16  ;;  %vm6395_vm11 = vweird.f32 %v8850_v17  ;;  %v8169_v16 = vor.u32 %v8395_v41, %v8168_v8 }
 0xdde   :  { %vm6396_vm13 = vmor %vm6394_vm12, %vm6395_vm11  ;;  %6955 = vmatpush.bf16.msra.mxu0 %v8209_v23  ;;  %v12101_v30 = vadd.f32 %v6500_v63, %v12738_v4  ;;  %v6276_v23 = vsub.f32 %v11931_v55, %v12075_v43 }
 0xddf   :  { %v6390_v57 = vmul.f32 %v8850_v17, %v6389_v44  ;;  %v6207_v39 = vpop.xlane.xlu0 %6206  ;;  %6908 = vmatpush.bf16.msra.mxu3 %v8169_v16  ;;  %v8164_v44 = vld [vmem:[#allocation10 + $0x4] sm:$0xf] }
 0xde0   :  { %v6228_v29 = vmul.f32 %v6207_v39, %v12727_v19  ;;  %v8165_v48 = vor.u32 %v8394_v38, %v8164_v44 }
 0xde1   :  { %v6391_v36 = vmul.f32 0.5, %v6390_v57  ;;  %v12739_v57 = vld [vmem:[#allocation57_spill] sm:$0xff] }
 0xde2   :  { %v6260_v24 = vsub.f32 %v6228_v29, %v6244_v52  ;;  %6956 = vmatpush.bf16.msra.mxu0 %v8205_v13 }
 0xde3   :  { %v6392_v62 = vsub.f32 1.5, %v6391_v36  ;;  %6909 = vmatpush.bf16.msra.mxu3 %v8165_v48 }
 0xde4   :  { %v12089_v22 = vadd.f32 1e-05, %v6260_v24  ;;  %v8196_v24 = vld [vmem:[#allocation10 + $0x84] sm:$0xf] }
 0xde5   :  { %v6393_v33 = vmul.f32 %v8850_v17, %v6392_v62  ;;  %v8197_v62 = vor.u32 %v8402_v11, %v8196_v24 }
 0xde6   :  { %8851 = vrsqrt.f32 %v12089_v22  ;;  %6957 = vmatpush.bf16.msra.mxu0 %v8201_v28  ;;  %vm6404_vm15 = vweird.f32 %v12089_v22 }
 0xde7   :  { %v6397_v10 = vsel %vm6396_vm13, %v8850_v17, %v6393_v33  ;;  %v6145_v31 = vpop.xlane.xlu0 %6144 }
 0xde8   :  { %v6467_v6 = vmul.f32 %v6397_v10, %v6275_v20  ;;  %v6165_v14 = vmul.f32 %v6145_v31, %v12727_v19 }
 0xdea   :  { %v6484_v0 = vmul.f32 %v11945_v9, %v6467_v6  ;;  %v6245_v49 = vmul.f32 %v6165_v14, %v6165_v14  ;;  %6958 = vmatpush.bf16.msra.mxu0 %v8197_v62  ;;  %v6277_v13 = vsub.f32 %v11947_v53, %v6165_v14 }
 0xdec   :  { %v8852_v50 = vpop.eup %8851  ;;  %v6501_v17 = vadd.f32 %v11950_v61, %v6484_v0 }
 0xded   :  { %v6399_v37 = vmul.f32 %v8852_v50, %v12089_v22  ;;  %vm6405_vm14 = vweird.f32 %v8852_v50 }
 0xdee   :  { %v12104_v39 = vadd.f32 %v6501_v17, %v12739_v57  ;;  %vm6406_vm0 = vmor %vm6404_vm15, %vm6405_vm14 }
 0xdef   :  { %v6400_v52 = vmul.f32 %v8852_v50, %v6399_v37  ;;  %v6209_v29 = vpop.xlane.xlu0 %6208 }
 0xdf0   :  { %v6229_v36 = vmul.f32 %v6209_v29, %v12727_v19  ;;  %v6576_v25 = vpack.c.bf16 %v12104_v39, %v12101_v30 }
 0xdf1   :  { %v6401_v26 = vmul.f32 0.5, %v6400_v52 }
 0xdf2   :  { %v6261_v5 = vsub.f32 %v6229_v36, %v6245_v49  ;;  %6688 = vmatmul.bf16.gmra.mxu1 %v6576_v25  ;;  %6737 = vmatmul.bf16.gmra.mxu2 %v6576_v25  ;;  %v12740_v49 = vld [vmem:[#allocation64_spill] sm:$0xff]  ;;  %v12741_v25 = vld [vmem:[#allocation69_spill] sm:$0xff] }
 0xdf3   :  { %v6402_v18 = vsub.f32 1.5, %v6401_v26 }
 0xdf4   :  { %v6293_v34 = vadd.f32 1e-05, %v6261_v5 }
 0xdf5   :  { %v6403_v33 = vmul.f32 %v8852_v50, %v6402_v18 }
 0xdf6   :  { %8853 = vrsqrt.f32 %v6293_v34  ;;  %vm6414_vm2 = vweird.f32 %v6293_v34 }
 0xdf7   :  { %v6147_v54 = vpop.xlane.xlu0 %6146  ;;  %v6407_v15 = vsel %vm6406_vm0, %v8852_v50, %v6403_v33 }
 0xdf8   :  { %v12110_v20 = vmul.f32 %v6147_v54, %v12727_v19  ;;  %v6468_v16 = vmul.f32 %v6407_v15, %v6276_v23 }
 0xdfa   :  { %v6246_v6 = vmul.f32 %v12110_v20, %v12110_v20  ;;  %v6485_v55 = vmul.f32 %v11945_v9, %v6468_v16 }
 0xdfc   :  { %v8854_v47 = vpop.eup %8853  ;;  %v6502_v57 = vadd.f32 %v11950_v61, %v6485_v55 }
 0xdfd   :  { %v6409_v2 = vmul.f32 %v8854_v47, %v6293_v34  ;;  %vm6415_vm1 = vweird.f32 %v8854_v47 }
 0xdfe   :  { %vm6416_vm3 = vmor %vm6414_vm2, %vm6415_vm1  ;;  %v12125_v36 = vadd.f32 %v6502_v57, %v12740_v49 }
 0xdff   :  { %v6410_v27 = vmul.f32 %v8854_v47, %v6409_v2  ;;  %v6669_v10 = vpop.f32.mrf.mxu1  ;;  %v6211_v31 = vpop.xlane.xlu0 %6210 }
 0xe00   :  { %v6230_v8 = vmul.f32 %v6211_v31, %v12727_v19  ;;  %v6758_v38 = vmax.f32 %v6669_v10, 0.0 }
 0xe01   :  { %v6411_v41 = vmul.f32 0.5, %v6410_v27 }
 0xe02   :  { %v6262_v0 = vsub.f32 %v6230_v8, %v6246_v6 }
 0xe03   :  { %v6412_v63 = vsub.f32 1.5, %v6411_v41 }
 0xe04   :  { %v6294_v22 = vadd.f32 1e-05, %v6262_v0  ;;  %v6278_v0 = vsub.f32 %v11970_v7, %v12110_v20 }
 0xe05   :  { %v6413_v21 = vmul.f32 %v8854_v47, %v6412_v63  ;;  %v6718_v46 = vpop.f32.mrf.mxu2 }
 0xe06   :  { %8855 = vrsqrt.f32 %v6294_v22  ;;  %v6759_v29 = vmax.f32 %v6718_v46, 0.0  ;;  %vm6424_vm5 = vweird.f32 %v6294_v22 }
 0xe07   :  { %v6417_v43 = vsel %vm6416_vm3, %v8854_v47, %v6413_v21  ;;  %v6671_v50 = vpop.f32.mrf.mxu1  ;;  %v6149_v17 = vpop.xlane.xlu0 %6148 }
 0xe08   :  { %v6469_v44 = vmul.f32 %v6417_v43, %v6277_v13  ;;  %v6760_v37 = vmax.f32 %v6671_v50, 0.0  ;;  %v6167_v3 = vmul.f32 %v6149_v17, %v12727_v19 }
 0xe0a   :  { %v6790_v48 = vpack.c.bf16 %v6760_v37, %v6758_v38  ;;  %v6486_v4 = vmul.f32 %v11945_v9, %v6469_v44  ;;  %v6247_v26 = vmul.f32 %v6167_v3, %v6167_v3  ;;  %v6279_v44 = vsub.f32 %v11983_v40, %v6167_v3 }
 0xe0c   :  { %v8856_v60 = vpop.eup %8855  ;;  %6910 = vmatmul.bf16.vlgmr.msra.gmra.mxu3 %v6790_v48  ;;  %v6503_v53 = vadd.f32 %v11950_v61, %v6486_v4 }
 0xe0d   :  { %v6419_v14 = vmul.f32 %v8856_v60, %v6294_v22  ;;  %v6720_v52 = vpop.f32.mrf.mxu2  ;;  %vm6425_vm4 = vweird.f32 %v8856_v60 }
 0xe0e   :  { %v6761_v28 = vmax.f32 %v6720_v52, 0.0  ;;  %v12128_v5 = vadd.f32 %v6503_v53, %v12741_v25  ;;  %vm6426_vm6 = vmor %vm6424_vm5, %vm6425_vm4 }
 0xe0f   :  { %v6420_v24 = vmul.f32 %v8856_v60, %v6419_v14  ;;  %v6213_v11 = vpop.xlane.xlu0 %6212 }
 0xe10   :  { %v6791_v62 = vpack.c.bf16 %v6761_v28, %v6759_v29  ;;  %v6231_v34 = vmul.f32 %v6213_v11, %v12727_v19  ;;  %v6577_v18 = vpack.c.bf16 %v12128_v5, %v12125_v36 }
 0xe11   :  { %v6421_v33 = vmul.f32 0.5, %v6420_v24  ;;  %v12742_v24 = vld [vmem:[#allocation58_spill] sm:$0xff] }
 0xe12   :  { %v6263_v54 = vsub.f32 %v6231_v34, %v6247_v26  ;;  %6693 = vmatmul.bf16.gmra.mxu1 %v6577_v18  ;;  %6742 = vmatmul.bf16.gmra.mxu2 %v6577_v18  ;;  %v12743_v26 = vld [vmem:[#allocation66_spill] sm:$0xff] }
 0xe13   :  { %6959 = vmatmul.bf16.vlgmr.msra.gmra.mxu0 %v6791_v62  ;;  %v6422_v2 = vsub.f32 1.5, %v6421_v33 }
 0xe14   :  { %v6295_v47 = vadd.f32 1e-05, %v6263_v54 }
 0xe15   :  { %v6423_v27 = vmul.f32 %v8856_v60, %v6422_v2 }
 0xe16   :  { %8857 = vrsqrt.f32 %v6295_v47  ;;  %vm6434_vm8 = vweird.f32 %v6295_v47 }
 0xe17   :  { %v6151_v15 = vpop.xlane.xlu0 %6150  ;;  %v6427_v6 = vsel %vm6426_vm6, %v8856_v60, %v6423_v27 }
 0xe18   :  { %v12134_v31 = vmul.f32 %v6151_v15, %v12727_v19  ;;  %v6470_v13 = vmul.f32 %v6427_v6, %v6278_v0 }
 0xe1a   :  { %v6248_v63 = vmul.f32 %v12134_v31, %v12134_v31  ;;  %v6487_v7 = vmul.f32 %v11945_v9, %v6470_v13 }
 0xe1c   :  { %v8858_v10 = vpop.eup %8857  ;;  %v6504_v14 = vadd.f32 %v11950_v61, %v6487_v7 }
 0xe1d   :  { %v6429_v23 = vmul.f32 %v8858_v10, %v6295_v47  ;;  %vm6435_vm7 = vweird.f32 %v8858_v10 }
 0xe1e   :  { %vm6436_vm9 = vmor %vm6434_vm8, %vm6435_vm7  ;;  %v12148_v11 = vadd.f32 %v6504_v14, %v12742_v24 }
 0xe1f   :  { %v6430_v8 = vmul.f32 %v8858_v10, %v6429_v23  ;;  %v6674_v41 = vpop.f32.mrf.mxu1  ;;  %v6215_v16 = vpop.xlane.xlu0 %6214 }
 0xe20   :  { %v6232_v21 = vmul.f32 %v6215_v16, %v12727_v19  ;;  %v6762_v4 = vmax.f32 %v6674_v41, 0.0 }
 0xe21   :  { %v6431_v46 = vmul.f32 0.5, %v6430_v8 }
 0xe22   :  { %v6264_v55 = vsub.f32 %v6232_v21, %v6248_v63  ;;  %v6280_v21 = vsub.f32 %v12009_v35, %v12134_v31 }
 0xe23   :  { %v6432_v43 = vsub.f32 1.5, %v6431_v46 }
 0xe24   :  { %v6296_v22 = vadd.f32 1e-05, %v6264_v55 }
 0xe25   :  { %v6433_v50 = vmul.f32 %v8858_v10, %v6432_v43  ;;  %v6723_v17 = vpop.f32.mrf.mxu2 }
 0xe26   :  { %8859 = vrsqrt.f32 %v6296_v22  ;;  %v6763_v49 = vmax.f32 %v6723_v17, 0.0  ;;  %vm6444_vm11 = vweird.f32 %v6296_v22 }
 0xe27   :  { %v6437_v20 = vsel %vm6436_vm9, %v8858_v10, %v6433_v50  ;;  %v6676_v38 = vpop.f32.mrf.mxu1  ;;  %v6153_v37 = vpop.xlane.xlu0 %6152 }
 0xe28   :  { %v6471_v48 = vmul.f32 %v6437_v20, %v6279_v44  ;;  %v6764_v57 = vmax.f32 %v6676_v38, 0.0  ;;  %v6169_v29 = vmul.f32 %v6153_v37, %v12727_v19 }
 0xe2a   :  { %v6792_v60 = vpack.c.bf16 %v6764_v57, %v6762_v4  ;;  %v6488_v53 = vmul.f32 %v11945_v9, %v6471_v48  ;;  %v6249_v54 = vmul.f32 %v6169_v29, %v6169_v29 }
 0xe2c   :  { %v8860_v52 = vpop.eup %8859  ;;  %6915 = vmatmul.bf16.gmra.mxu3 %v6792_v60  ;;  %v6505_v40 = vadd.f32 %v11950_v61, %v6488_v53 }
 0xe2d   :  { %v6439_v3 = vmul.f32 %v8860_v52, %v6296_v22  ;;  %v6725_v28 = vpop.f32.mrf.mxu2  ;;  %vm6445_vm10 = vweird.f32 %v8860_v52  ;;  %v6281_v22 = vsub.f32 %v12024_v59, %v6169_v29  ;;  %v12745_v59 = vld [vmem:[#allocation60_spill] sm:$0xff] }
 0xe2e   :  { %v6765_v25 = vmax.f32 %v6725_v28, 0.0  ;;  %v12151_v62 = vadd.f32 %v6505_v40, %v12743_v26  ;;  %vm6446_vm12 = vmor %vm6444_vm11, %vm6445_vm10 }
 0xe2f   :  { %v6440_v34 = vmul.f32 %v8860_v52, %v6439_v3  ;;  %v6217_v18 = vpop.xlane.xlu0 %6216 }
 0xe30   :  { %v6793_v33 = vpack.c.bf16 %v6765_v25, %v6763_v49  ;;  %v6233_v47 = vmul.f32 %v6217_v18, %v12727_v19  ;;  %v6578_v2 = vpack.c.bf16 %v12151_v62, %v12148_v11 }
 0xe31   :  { %v6441_v27 = vmul.f32 0.5, %v6440_v34 }
 0xe32   :  { %v6265_v15 = vsub.f32 %v6233_v47, %v6249_v54  ;;  %6698 = vmatmul.bf16.gmra.mxu1 %v6578_v2  ;;  %6747 = vmatmul.bf16.gmra.mxu2 %v6578_v2 }
 0xe33   :  { %6964 = vmatmul.bf16.gmra.mxu0 %v6793_v33  ;;  %v6442_v23 = vsub.f32 1.5, %v6441_v27 }
 0xe34   :  { %v6297_v10 = vadd.f32 1e-05, %v6265_v15 }
 0xe35   :  { %v6443_v8 = vmul.f32 %v8860_v52, %v6442_v23 }
 0xe36   :  { %8861 = vrsqrt.f32 %v6297_v10  ;;  %vm6454_vm14 = vweird.f32 %v6297_v10 }
 0xe37   :  { %v6447_v0 = vsel %vm6446_vm12, %v8860_v52, %v6443_v8  ;;  %v12744_v52 = vld [vmem:[#allocation70_spill] sm:$0xff] }
 0xe38   :  { %v6472_v43 = vmul.f32 %v6447_v0, %v6280_v21 }
 0xe39   :  { %v6679_v6 = vpop.f32.mrf.mxu1 }
 0xe3a   :  { %v6766_v50 = vmax.f32 %v6679_v6, 0.0  ;;  %v6489_v38 = vmul.f32 %v11945_v9, %v6472_v43 }
 0xe3c   :  { %v8862_v41 = vpop.eup %8861  ;;  %v6506_v60 = vadd.f32 %v11950_v61, %v6489_v38 }
 0xe3d   :  { %v6449_v16 = vmul.f32 %v8862_v41, %v6297_v10  ;;  %vm6455_vm13 = vweird.f32 %v8862_v41 }
 0xe3e   :  { %vm6456_vm15 = vmor %vm6454_vm14, %vm6455_vm13  ;;  %v12164_v40 = vadd.f32 %v6506_v60, %v12744_v52 }
 0xe3f   :  { %v6450_v63 = vmul.f32 %v8862_v41, %v6449_v16 }
 0xe40   :  { %v6728_v46 = vpop.f32.mrf.mxu2 }
 0xe41   :  { %v6451_v13 = vmul.f32 0.5, %v6450_v63  ;;  %v6681_v55 = vpop.f32.mrf.mxu1  ;;  %v6767_v31 = vmax.f32 %v6728_v46, 0.0 }
 0xe42   :  { %v6768_v17 = vmax.f32 %v6681_v55, 0.0 }
 0xe43   :  { %v6452_v44 = vsub.f32 1.5, %v6451_v13 }
 0xe44   :  { %v6794_v7 = vpack.c.bf16 %v6768_v17, %v6766_v50 }
 0xe45   :  { %v6453_v20 = vmul.f32 %v8862_v41, %v6452_v44 }
 0xe46   :  { %6920 = vmatmul.bf16.gmra.mxu3 %v6794_v7 }
 0xe47   :  { %v6457_v37 = vsel %vm6456_vm15, %v8862_v41, %v6453_v20 }
 0xe48   :  { %v6473_v48 = vmul.f32 %v6457_v37, %v6281_v22  ;;  %v6730_v35 = vpop.f32.mrf.mxu2 }
 0xe49   :  { %v6769_v4 = vmax.f32 %v6730_v35, 0.0 }
 0xe4a   :  { %v6490_v57 = vmul.f32 %v11945_v9, %v6473_v48 }
 0xe4b   :  { %v6795_v53 = vpack.c.bf16 %v6769_v4, %v6767_v31 }
 0xe4c   :  { %v6507_v14 = vadd.f32 %v11950_v61, %v6490_v57 }
 0xe4d   :  { %6969 = vmatmul.bf16.gmra.mxu0 %v6795_v53 }
 0xe4e   :  { %v12167_v29 = vadd.f32 %v6507_v14, %v12745_v59 }
 0xe4f   :  { %v6684_v3 = vpop.f32.mrf.mxu1 }
 0xe50   :  { %v6579_v28 = vpack.c.bf16 %v12167_v29, %v12164_v40  ;;  %v6770_v25 = vmax.f32 %v6684_v3, 0.0 }
 0xe52   :  { %6703 = vmatmul.bf16.gmra.mxu1 %v6579_v28  ;;  %6752 = vmatmul.bf16.gmra.mxu2 %v6579_v28 }
 0xe55   :  { %v6733_v49 = vpop.f32.mrf.mxu2 }
 0xe56   :  { %v6771_v34 = vmax.f32 %v6733_v49, 0.0 }
 0xe57   :  { %v6686_v9 = vpop.f32.mrf.mxu1 }
 0xe58   :  { %v6772_v24 = vmax.f32 %v6686_v9, 0.0 }
 0xe5a   :  { %v6796_v26 = vpack.c.bf16 %v6772_v24, %v6770_v25 }
 0xe5c   :  { %6925 = vmatmul.bf16.gmra.mxu3 %v6796_v26 }
 0xe5d   :  { %v6735_v61 = vpop.f32.mrf.mxu2 }
 0xe5e   :  { %v6773_v18 = vmax.f32 %v6735_v61, 0.0 }
 0xe60   :  { %v6797_v54 = vpack.c.bf16 %v6773_v18, %v6771_v34 }
 0xe62   :  { %6974 = vmatmul.bf16.gmra.mxu0 %v6797_v54 }
 0xe6f   :  { %v6689_v33 = vpop.f32.mrf.mxu1 }
 0xe70   :  { %v6774_v15 = vmax.f32 %v6689_v33, 0.0 }
 0xe75   :  { %v6738_v47 = vpop.f32.mrf.mxu2 }
 0xe76   :  { %v6775_v6 = vmax.f32 %v6738_v47, 0.0 }
 0xe77   :  { %v6691_v2 = vpop.f32.mrf.mxu1 }
 0xe78   :  { %v6776_v27 = vmax.f32 %v6691_v2, 0.0 }
 0xe7a   :  { %v6798_v10 = vpack.c.bf16 %v6776_v27, %v6774_v15 }
 0xe7c   :  { %6930 = vmatmul.bf16.gmra.mxu3 %v6798_v10 }
 0xe7d   :  { %v6740_v23 = vpop.f32.mrf.mxu2 }
 0xe7e   :  { %v6777_v8 = vmax.f32 %v6740_v23, 0.0 }
 0xe80   :  { %v6799_v41 = vpack.c.bf16 %v6777_v8, %v6775_v6 }
 0xe82   :  { %6979 = vmatmul.bf16.gmra.mxu0 %v6799_v41 }
 0xe8f   :  { %v6694_v16 = vpop.f32.mrf.mxu1  ;;  %v6911_v0 = vpop.f32.mrf.mxu3 }
 0xe90   :  { %v6960_v63 = vpop.f32.mrf.mxu0  ;;  %v6778_v50 = vmax.f32 %v6694_v16, 0.0 }
 0xe91   :  { %v12171_v21 = vadd.f32 %v6960_v63, %v6911_v0 }
 0xe93   :  { %7002 = vadd.xlane.f32.xlu0 %v12171_v21  ;;  %v7050_v46 = vmul.f32 %v12171_v21, %v12171_v21 }
 0xe95   :  { %7066 = vadd.xlane.f32.xlu2 %v7050_v46  ;;  %v6743_v13 = vpop.f32.mrf.mxu2 }
 0xe96   :  { %v6779_v38 = vmax.f32 %v6743_v13, 0.0 }
 0xe97   :  { %v6696_v55 = vpop.f32.mrf.mxu1  ;;  %v6913_v43 = vpop.f32.mrf.mxu3 }
 0xe98   :  { %v6780_v17 = vmax.f32 %v6696_v55, 0.0  ;;  %v6962_v44 = vpop.f32.mrf.mxu0 }
 0xe99   :  { %v12176_v7 = vadd.f32 %v6962_v44, %v6913_v43 }
 0xe9a   :  { %v6800_v20 = vpack.c.bf16 %v6780_v17, %v6778_v50 }
 0xe9b   :  { %7004 = vadd.xlane.f32.xlu0 %v12176_v7  ;;  %v7051_v35 = vmul.f32 %v12176_v7, %v12176_v7 }
 0xe9c   :  { %6935 = vmatmul.bf16.gmra.mxu3 %v6800_v20 }
 0xe9d   :  { %v6745_v22 = vpop.f32.mrf.mxu2 }
 0xe9e   :  { %v6781_v37 = vmax.f32 %v6745_v22, 0.0 }
 0xea0   :  { %v6801_v48 = vpack.c.bf16 %v6781_v37, %v6779_v38 }
 0xea2   :  { %6984 = vmatmul.bf16.gmra.mxu0 %v6801_v48 }
 0xea3   :  { %7068 = vadd.xlane.f32.xlu0 %v7051_v35 }
 0xeaf   :  { %v6699_v31 = vpop.f32.mrf.mxu1  ;;  %v6916_v4 = vpop.f32.mrf.mxu3 }
 0xeb0   :  { %v6965_v57 = vpop.f32.mrf.mxu0  ;;  %v6782_v3 = vmax.f32 %v6699_v31, 0.0 }
 0xeb1   :  { %v12181_v60 = vadd.f32 %v6965_v57, %v6916_v4 }
 0xeb3   :  { %7006 = vadd.xlane.f32.xlu0 %v12181_v60  ;;  %v7052_v53 = vmul.f32 %v12181_v60, %v12181_v60 }
 0xeb5   :  { %7070 = vadd.xlane.f32.xlu1 %v7052_v53  ;;  %v6748_v14 = vpop.f32.mrf.mxu2 }
 0xeb6   :  { %v6783_v61 = vmax.f32 %v6748_v14, 0.0 }
 0xeb7   :  { %v6701_v52 = vpop.f32.mrf.mxu1  ;;  %v6918_v59 = vpop.f32.mrf.mxu3 }
 0xeb8   :  { %v6784_v28 = vmax.f32 %v6701_v52, 0.0  ;;  %v6967_v49 = vpop.f32.mrf.mxu0 }
 0xeb9   :  { %v12186_v9 = vadd.f32 %v6967_v49, %v6918_v59 }
 0xeba   :  { %v6802_v25 = vpack.c.bf16 %v6784_v28, %v6782_v3 }
 0xebb   :  { %v7053_v24 = vmul.f32 %v12186_v9, %v12186_v9 }
 0xebc   :  { %6940 = vmatmul.bf16.gmra.mxu3 %v6802_v25 }
 0xebd   :  { %7008 = vadd.xlane.f32.xlu1 %v12186_v9  ;;  %7072 = vadd.xlane.f32.xlu2 %v7053_v24  ;;  %v6750_v26 = vpop.f32.mrf.mxu2 }
 0xebe   :  { %v6785_v34 = vmax.f32 %v6750_v26, 0.0 }
 0xec0   :  { %v6803_v18 = vpack.c.bf16 %v6785_v34, %v6783_v61 }
 0xec2   :  { %6989 = vmatmul.bf16.gmra.mxu0 %v6803_v18 }
 0xec9   :  { %v6921_v54 = vpop.f32.mrf.mxu3 }
 0xeca   :  { %v6970_v33 = vpop.f32.mrf.mxu0 }
 0xecb   :  { %v12191_v47 = vadd.f32 %v6970_v33, %v6921_v54 }
 0xecd   :  { %7010 = vadd.xlane.f32.xlu2 %v12191_v47  ;;  %v7054_v2 = vmul.f32 %v12191_v47, %v12191_v47 }
 0xecf   :  { %7074 = vadd.xlane.f32.xlu0 %v7054_v2  ;;  %v6704_v15 = vpop.f32.mrf.mxu1 }
 0xed0   :  { %v6786_v16 = vmax.f32 %v6704_v15, 0.0 }
 0xed1   :  { %v6923_v27 = vpop.f32.mrf.mxu3 }
 0xed2   :  { %v6972_v10 = vpop.f32.mrf.mxu0 }
 0xed3   :  { %v12196_v23 = vadd.f32 %v6972_v10, %v6923_v27 }
 0xed5   :  { %v6753_v6 = vpop.f32.mrf.mxu2  ;;  %v7055_v8 = vmul.f32 %v12196_v23, %v12196_v23 }
 0xed6   :  { %v6787_v13 = vmax.f32 %v6753_v6, 0.0 }
 0xed7   :  { %7012 = vadd.xlane.f32.xlu0 %v12196_v23  ;;  %7076 = vadd.xlane.f32.xlu1 %v7055_v8  ;;  %v6706_v41 = vpop.f32.mrf.mxu1 }
 0xed8   :  { %v6788_v0 = vmax.f32 %v6706_v41, 0.0 }
 0xeda   :  { %v6804_v63 = vpack.c.bf16 %v6788_v0, %v6786_v16 }
 0xedc   :  { %6945 = vmatmul.bf16.gmra.mxu3 %v6804_v63 }
 0xedd   :  { %v6755_v46 = vpop.f32.mrf.mxu2 }
 0xede   :  { %v6789_v55 = vmax.f32 %v6755_v46, 0.0  ;;  %v12226_v46 = vld [vmem:[#allocation11 + $0x8] ss:$0 sm:$0xff] }
 0xedf   :  { %v6926_v43 = vpop.f32.mrf.mxu3  ;;  %v6975_v50 = vpop.f32.mrf.mxu0 }
 0xee0   :  { %v6805_v17 = vpack.c.bf16 %v6789_v55, %v6787_v13  ;;  %v12201_v44 = vadd.f32 %v6975_v50, %v6926_v43 }
 0xee2   :  { %7014 = vadd.xlane.f32.xlu1 %v12201_v44  ;;  %6994 = vmatmul.bf16.gmra.mxu0 %v6805_v17  ;;  %v7056_v20 = vmul.f32 %v12201_v44, %v12201_v44  ;;  %v12230_v17 = vld [vmem:[#allocation11 + $0x9] ss:$0 sm:$0xff] }
 0xee4   :  { %7078 = vadd.xlane.f32.xlu2 %v7056_v20 }
 0xee7   :  { %v6928_v22 = vpop.f32.mrf.mxu3  ;;  %v6977_v38 = vpop.f32.mrf.mxu0 }
 0xee8   :  { %v12206_v37 = vadd.f32 %v6977_v38, %v6928_v22 }
 0xeea   :  { %v7057_v48 = vmul.f32 %v12206_v37, %v12206_v37 }
 0xeec   :  { %7016 = vadd.xlane.f32.xlu2 %v12206_v37  ;;  %7080 = vadd.xlane.f32.xlu0 %v7057_v48 }
 0xeff   :  { %v6931_v35 = vpop.f32.mrf.mxu3  ;;  %v6980_v31 = vpop.f32.mrf.mxu0 }
 0xf00   :  { %v12211_v4 = vadd.f32 %v6980_v31, %v6931_v35 }
 0xf02   :  { %7018 = vadd.xlane.f32.xlu0 %v12211_v4  ;;  %v7058_v57 = vmul.f32 %v12211_v4, %v12211_v4 }
 0xf04   :  { %7082 = vadd.xlane.f32.xlu1 %v7058_v57 }
 0xf06   :  { %v7003_v53 = vpop.xlane.xlu0 %7002 }
 0xf07   :  { %v7034_v14 = vmul.f32 %v7003_v53, %v12727_v19  ;;  %v6933_v52 = vpop.f32.mrf.mxu3  ;;  %v6982_v59 = vpop.f32.mrf.mxu0 }
 0xf08   :  { %v7067_v3 = vpop.xlane.xlu2 %7066  ;;  %v12217_v28 = vadd.f32 %v6982_v59, %v6933_v52 }
 0xf09   :  { %v7114_v49 = vmul.f32 %v7034_v14, %v7034_v14  ;;  %v7098_v25 = vmul.f32 %v7067_v3, %v12727_v19  ;;  %v7146_v63 = vsub.f32 %v12171_v21, %v7034_v14 }
 0xf0a   :  { %v7059_v24 = vmul.f32 %v12217_v28, %v12217_v28 }
 0xf0b   :  { %v7130_v26 = vsub.f32 %v7098_v25, %v7114_v49 }
 0xf0c   :  { %7020 = vadd.xlane.f32.xlu1 %v12217_v28  ;;  %7084 = vadd.xlane.f32.xlu2 %v7059_v24 }
 0xf0d   :  { %v7162_v61 = vadd.f32 1e-05, %v7130_v26 }
 0xf0e   :  { %v7005_v34 = vpop.xlane.xlu0 %7004 }
 0xf0f   :  { %8863 = vrsqrt.f32 %v7162_v61  ;;  %v7035_v18 = vmul.f32 %v7005_v34, %v12727_v19  ;;  %vm7184_vm1 = vweird.f32 %v7162_v61 }
 0xf11   :  { %v7115_v15 = vmul.f32 %v7035_v18, %v7035_v18 }
 0xf15   :  { %v8864_v54 = vpop.eup %8863 }
 0xf16   :  { %v7179_v33 = vmul.f32 %v8864_v54, %v7162_v61  ;;  %v7069_v2 = vpop.xlane.xlu0 %7068  ;;  %vm7185_vm0 = vweird.f32 %v8864_v54 }
 0xf17   :  { %v7099_v27 = vmul.f32 %v7069_v2, %v12727_v19  ;;  %vm7186_vm2 = vmor %vm7184_vm1, %vm7185_vm0 }
 0xf18   :  { %v7180_v10 = vmul.f32 %v8864_v54, %v7179_v33 }
 0xf19   :  { %v7131_v6 = vsub.f32 %v7099_v27, %v7115_v15 }
 0xf1a   :  { %v7181_v8 = vmul.f32 0.5, %v7180_v10 }
 0xf1b   :  { %v7163_v41 = vadd.f32 1e-05, %v7131_v6 }
 0xf1c   :  { %v7182_v16 = vsub.f32 1.5, %v7181_v8 }
 0xf1d   :  { %8865 = vrsqrt.f32 %v7163_v41  ;;  %vm7194_vm4 = vweird.f32 %v7163_v41 }
 0xf1e   :  { %v7183_v0 = vmul.f32 %v8864_v54, %v7182_v16 }
 0xf1f   :  { %v6936_v13 = vpop.f32.mrf.mxu3  ;;  %v6985_v55 = vpop.f32.mrf.mxu0 }
 0xf20   :  { %v7187_v43 = vsel %vm7186_vm2, %v8864_v54, %v7183_v0  ;;  %v12228_v50 = vadd.f32 %v6985_v55, %v6936_v13 }
 0xf21   :  { %v7338_v20 = vmul.f32 %v7187_v43, %v7146_v63 }
 0xf22   :  { %7022 = vadd.xlane.f32.xlu2 %v12228_v50  ;;  %v7060_v22 = vmul.f32 %v12228_v50, %v12228_v50 }
 0xf23   :  { %v8866_v38 = vpop.eup %8865  ;;  %v7355_v48 = vmul.f32 %v12226_v46, %v7338_v20 }
 0xf24   :  { %v7189_v21 = vmul.f32 %v8866_v38, %v7163_v41  ;;  %7086 = vadd.xlane.f32.xlu0 %v7060_v22  ;;  %vm7195_vm3 = vweird.f32 %v8866_v38 }
 0xf25   :  { %v7372_v35 = vadd.f32 %v12230_v17, %v7355_v48  ;;  %vm7196_vm5 = vmor %vm7194_vm4, %vm7195_vm3 }
 0xf26   :  { %v7190_v31 = vmul.f32 %v8866_v38, %v7189_v21  ;;  %v7007_v57 = vpop.xlane.xlu0 %7006 }
 0xf27   :  { %v7388_v53 = vadd.f32 %v7372_v35, %v11962_v1  ;;  %v7036_v14 = vmul.f32 %v7007_v57, %v12727_v19  ;;  %v6938_v52 = vpop.f32.mrf.mxu3  ;;  %v6987_v59 = vpop.f32.mrf.mxu0  ;;  %v7147_v1 = vsub.f32 %v12176_v7, %v7035_v18 }
 0xf28   :  { %v7191_v3 = vmul.f32 0.5, %v7190_v31  ;;  %v7071_v49 = vpop.xlane.xlu1 %7070  ;;  %v12239_v25 = vadd.f32 %v6987_v59, %v6938_v52 }
 0xf29   :  { %7404 = vst [vmem:[#allocation13] sm:$0xff] %v7388_v53  ;;  %v7116_v24 = vmul.f32 %v7036_v14, %v7036_v14  ;;  %v7100_v26 = vmul.f32 %v7071_v49, %v12727_v19  ;;  %v7148_v35 = vsub.f32 %v12181_v60, %v7036_v14 }
 0xf2a   :  { %v7192_v61 = vsub.f32 1.5, %v7191_v3  ;;  %v7061_v34 = vmul.f32 %v12239_v25, %v12239_v25 }
 0xf2b   :  { %v7132_v54 = vsub.f32 %v7100_v26, %v7116_v24 }
 0xf2c   :  { %v7193_v33 = vmul.f32 %v8866_v38, %v7192_v61  ;;  %7024 = vadd.xlane.f32.xlu0 %v12239_v25  ;;  %7088 = vadd.xlane.f32.xlu1 %v7061_v34 }
 0xf2d   :  { %v7164_v2 = vadd.f32 1e-05, %v7132_v54 }
 0xf2e   :  { %v7197_v15 = vsel %vm7196_vm5, %v8866_v38, %v7193_v33 }
 0xf2f   :  { %v7339_v27 = vmul.f32 %v7197_v15, %v7147_v1  ;;  %8867 = vrsqrt.f32 %v7164_v2  ;;  %vm7204_vm7 = vweird.f32 %v7164_v2 }
 0xf30   :  { %v7009_v10 = vpop.xlane.xlu1 %7008  ;;  %v7073_v6 = vpop.xlane.xlu2 %7072 }
 0xf31   :  { %v7356_v8 = vmul.f32 %v12226_v46, %v7339_v27  ;;  %v7037_v16 = vmul.f32 %v7009_v10, %v12727_v19  ;;  %v7101_v41 = vmul.f32 %v7073_v6, %v12727_v19 }
 0xf33   :  { %v7373_v0 = vadd.f32 %v12230_v17, %v7356_v8  ;;  %v7117_v63 = vmul.f32 %v7037_v16, %v7037_v16 }
 0xf35   :  { %v8868_v13 = vpop.eup %8867  ;;  %v7389_v55 = vadd.f32 %v7373_v0, %v11965_v51  ;;  %v7133_v7 = vsub.f32 %v7101_v41, %v7117_v63  ;;  %v7149_v0 = vsub.f32 %v12186_v9, %v7037_v16 }
 0xf36   :  { %v7199_v18 = vmul.f32 %v8868_v13, %v7164_v2  ;;  %vm7205_vm6 = vweird.f32 %v8868_v13 }
 0xf37   :  { %7405 = vst [vmem:[#allocation13 + $0x8] sm:$0xff] %v7389_v55  ;;  %v7165_v43 = vadd.f32 1e-05, %v7133_v7  ;;  %vm7206_vm8 = vmor %vm7204_vm7, %vm7205_vm6 }
 0xf38   :  { %v7200_v20 = vmul.f32 %v8868_v13, %v7199_v18 }
 0xf39   :  { %8869 = vrsqrt.f32 %v7165_v43  ;;  %vm7214_vm10 = vweird.f32 %v7165_v43 }
 0xf3a   :  { %v7201_v22 = vmul.f32 0.5, %v7200_v20 }
 0xf3c   :  { %v7202_v38 = vsub.f32 1.5, %v7201_v22 }
 0xf3e   :  { %v7203_v48 = vmul.f32 %v8868_v13, %v7202_v38 }
 0xf3f   :  { %v8870_v21 = vpop.eup %8869  ;;  %v6941_v31 = vpop.f32.mrf.mxu3 }
 0xf40   :  { %v6990_v57 = vpop.f32.mrf.mxu0  ;;  %v7207_v53 = vsel %vm7206_vm8, %v8868_v13, %v7203_v48  ;;  %v7209_v52 = vmul.f32 %v8870_v21, %v7165_v43  ;;  %v7011_v51 = vpop.xlane.xlu2 %7010  ;;  %vm7215_vm9 = vweird.f32 %v8870_v21 }
 0xf41   :  { %v12252_v59 = vadd.f32 %v6990_v57, %v6941_v31  ;;  %v7340_v3 = vmul.f32 %v7207_v53, %v7148_v35  ;;  %v7038_v49 = vmul.f32 %v7011_v51, %v12727_v19  ;;  %vm7216_vm11 = vmor %vm7214_vm10, %vm7215_vm9 }
 0xf42   :  { %v7210_v24 = vmul.f32 %v8870_v21, %v7209_v52  ;;  %v7075_v26 = vpop.xlane.xlu0 %7074 }
 0xf43   :  { %7026 = vadd.xlane.f32.xlu1 %v12252_v59  ;;  %v7062_v61 = vmul.f32 %v12252_v59, %v12252_v59  ;;  %v7357_v60 = vmul.f32 %v12226_v46, %v7340_v3  ;;  %v7118_v14 = vmul.f32 %v7038_v49, %v7038_v49  ;;  %v7102_v34 = vmul.f32 %v7075_v26, %v12727_v19 }
 0xf44   :  { %v7211_v54 = vmul.f32 0.5, %v7210_v24 }
 0xf45   :  { %7090 = vadd.xlane.f32.xlu2 %v7062_v61  ;;  %v7374_v33 = vadd.f32 %v12230_v17, %v7357_v60  ;;  %v7134_v1 = vsub.f32 %v7102_v34, %v7118_v14  ;;  %v7150_v61 = vsub.f32 %v12191_v47, %v7038_v49 }
 0xf46   :  { %v7212_v2 = vsub.f32 1.5, %v7211_v54 }
 0xf47   :  { %v7390_v15 = vadd.f32 %v7374_v33, %v11996_v56  ;;  %v7166_v27 = vadd.f32 1e-05, %v7134_v1  ;;  %v6943_v10 = vpop.f32.mrf.mxu3 }
 0xf48   :  { %v6992_v6 = vpop.f32.mrf.mxu0  ;;  %v7213_v8 = vmul.f32 %v8870_v21, %v7212_v2 }
 0xf49   :  { %7406 = vst [vmem:[#allocation13 + $0x10] sm:$0xff] %v7390_v15  ;;  %8871 = vrsqrt.f32 %v7166_v27  ;;  %v12263_v41 = vadd.f32 %v6992_v6, %v6943_v10  ;;  %vm7224_vm13 = vweird.f32 %v7166_v27 }
 0xf4a   :  { %v7217_v63 = vsel %vm7216_vm11, %v8870_v21, %v7213_v8  ;;  %v7077_v13 = vpop.xlane.xlu1 %7076  ;;  %v7013_v55 = vpop.xlane.xlu0 %7012 }
 0xf4b   :  { %v7341_v7 = vmul.f32 %v7217_v63, %v7149_v0  ;;  %v7039_v18 = vmul.f32 %v7013_v55, %v12727_v19  ;;  %v7103_v20 = vmul.f32 %v7077_v13, %v12727_v19 }
 0xf4d   :  { %7028 = vadd.xlane.f32.xlu2 %v12263_v41  ;;  %v7358_v56 = vmul.f32 %v12226_v46, %v7341_v7  ;;  %v7119_v43 = vmul.f32 %v7039_v18, %v7039_v18 }
 0xf4f   :  { %v8872_v22 = vpop.eup %8871  ;;  %v7375_v9 = vadd.f32 %v12230_v17, %v7358_v56  ;;  %v7135_v16 = vsub.f32 %v7103_v20, %v7119_v43  ;;  %v7151_v20 = vsub.f32 %v12196_v23, %v7039_v18  ;;  %v7063_v23 = vmul.f32 %v12263_v41, %v12263_v41 }
 0xf50   :  { %v7219_v38 = vmul.f32 %v8872_v22, %v7166_v27  ;;  %vm7225_vm12 = vweird.f32 %v8872_v22 }
 0xf51   :  { %v7391_v48 = vadd.f32 %v7375_v9, %v11999_v12  ;;  %v7167_v21 = vadd.f32 1e-05, %v7135_v16  ;;  %vm7226_vm14 = vmor %vm7224_vm13, %vm7225_vm12 }
 0xf52   :  { %v7220_v35 = vmul.f32 %v8872_v22, %v7219_v38 }
 0xf53   :  { %7407 = vst [vmem:[#allocation13 + $0x18] sm:$0xff] %v7391_v48  ;;  %8873 = vrsqrt.f32 %v7167_v21  ;;  %vm7234_vm0 = vweird.f32 %v7167_v21 }
 0xf54   :  { %v7221_v31 = vmul.f32 0.5, %v7220_v35 }
 0xf55   :  { %v7015_v57 = vpop.xlane.xlu1 %7014 }
 0xf56   :  { %v7222_v53 = vsub.f32 1.5, %v7221_v31  ;;  %v12272_v52 = vmul.f32 %v7015_v57, %v12727_v19 }
 0xf57   :  { %v7079_v51 = vpop.xlane.xlu2 %7078 }
 0xf58   :  { %v7223_v3 = vmul.f32 %v8872_v22, %v7222_v53  ;;  %v7120_v24 = vmul.f32 %v12272_v52, %v12272_v52  ;;  %v7104_v26 = vmul.f32 %v7079_v51, %v12727_v19 }
 0xf59   :  { %v8874_v12 = vpop.eup %8873 }
 0xf5a   :  { %v7227_v60 = vsel %vm7226_vm14, %v8872_v22, %v7223_v3  ;;  %v7229_v14 = vmul.f32 %v8874_v12, %v7167_v21  ;;  %v7136_v34 = vsub.f32 %v7104_v26, %v7120_v24  ;;  %vm7235_vm15 = vweird.f32 %v8874_v12 }
 0xf5b   :  { %v7342_v54 = vmul.f32 %v7227_v60, %v7150_v61  ;;  %vm7236_vm1 = vmor %vm7234_vm0, %vm7235_vm15  ;;  %v7152_v61 = vsub.f32 %v12201_v44, %v12272_v52 }
 0xf5c   :  { %v7230_v33 = vmul.f32 %v8874_v12, %v7229_v14  ;;  %v7168_v1 = vadd.f32 1e-05, %v7136_v34 }
 0xf5d   :  { %v7359_v2 = vmul.f32 %v12226_v46, %v7342_v54 }
 0xf5e   :  { %v7231_v15 = vmul.f32 0.5, %v7230_v33  ;;  %8875 = vrsqrt.f32 %v7168_v1  ;;  %vm7244_vm3 = vweird.f32 %v7168_v1 }
 0xf5f   :  { %v7376_v27 = vadd.f32 %v12230_v17, %v7359_v2  ;;  %v7017_v10 = vpop.xlane.xlu2 %7016  ;;  %v6946_v6 = vpop.f32.mrf.mxu3 }
 0xf60   :  { %v7232_v8 = vsub.f32 1.5, %v7231_v15  ;;  %v12281_v0 = vmul.f32 %v7017_v10, %v12727_v19  ;;  %v6995_v47 = vpop.f32.mrf.mxu0  ;;  %v7081_v49 = vpop.xlane.xlu0 %7080 }
 0xf61   :  { %v7392_v63 = vadd.f32 %v7376_v27, %v12031_v32  ;;  %v12284_v13 = vadd.f32 %v6995_v47, %v6946_v6  ;;  %v7105_v56 = vmul.f32 %v7081_v49, %v12727_v19 }
 0xf62   :  { %v7233_v55 = vmul.f32 %v8874_v12, %v7232_v8  ;;  %v7121_v7 = vmul.f32 %v12281_v0, %v12281_v0  ;;  %v7153_v8 = vsub.f32 %v12206_v37, %v12281_v0 }
 0xf63   :  { %7408 = vst [vmem:[#allocation13 + $0x20] sm:$0xff] %v7392_v63  ;;  %7030 = vadd.xlane.f32.xlu0 %v12284_v13  ;;  %v7064_v54 = vmul.f32 %v12284_v13, %v12284_v13 }
 0xf64   :  { %v8876_v43 = vpop.eup %8875  ;;  %v7237_v22 = vsel %vm7236_vm1, %v8874_v12, %v7233_v55  ;;  %v7137_v9 = vsub.f32 %v7105_v56, %v7121_v7 }
 0xf65   :  { %v7343_v16 = vmul.f32 %v7237_v22, %v7151_v20  ;;  %v7239_v32 = vmul.f32 %v8876_v43, %v7168_v1  ;;  %vm7245_vm2 = vweird.f32 %v8876_v43 }
 0xf66   :  { %v7169_v38 = vadd.f32 1e-05, %v7137_v9  ;;  %vm7246_vm4 = vmor %vm7244_vm3, %vm7245_vm2 }
 0xf67   :  { %v7360_v48 = vmul.f32 %v12226_v46, %v7343_v16  ;;  %v7240_v21 = vmul.f32 %v8876_v43, %v7239_v32  ;;  %v6948_v35 = vpop.f32.mrf.mxu3 }
 0xf68   :  { %8877 = vrsqrt.f32 %v7169_v38  ;;  %v6997_v31 = vpop.f32.mrf.mxu0  ;;  %vm7254_vm6 = vweird.f32 %v7169_v38 }
 0xf69   :  { %v7377_v57 = vadd.f32 %v12230_v17, %v7360_v48  ;;  %v7241_v53 = vmul.f32 0.5, %v7240_v21  ;;  %v12293_v51 = vadd.f32 %v6997_v31, %v6948_v35 }
 0xf6b   :  { %v7393_v18 = vadd.f32 %v7377_v57, %v12034_v42  ;;  %v7242_v3 = vsub.f32 1.5, %v7241_v53  ;;  %7092 = vadd.xlane.f32.xlu0 %v7063_v23  ;;  %7032 = vadd.xlane.f32.xlu1 %v12293_v51  ;;  %v7065_v24 = vmul.f32 %v12293_v51, %v12293_v51 }
 0xf6d   :  { %7409 = vst [vmem:[#allocation13 + $0x28] sm:$0xff] %v7393_v18  ;;  %v7243_v26 = vmul.f32 %v8876_v43, %v7242_v3  ;;  %7096 = vadd.xlane.f32.xlu2 %v7065_v24 }
 0xf6e   :  { %v8878_v12 = vpop.eup %8877 }
 0xf6f   :  { %v7247_v60 = vsel %vm7246_vm4, %v8876_v43, %v7243_v26  ;;  %v7249_v14 = vmul.f32 %v8878_v12, %v7169_v38  ;;  %vm7255_vm5 = vweird.f32 %v8878_v12 }
 0xf70   :  { %v7344_v42 = vmul.f32 %v7247_v60, %v7152_v61  ;;  %vm7256_vm7 = vmor %vm7254_vm6, %vm7255_vm5 }
 0xf71   :  { %v7250_v34 = vmul.f32 %v8878_v12, %v7249_v14 }
 0xf72   :  { %v7361_v33 = vmul.f32 %v12226_v46, %v7344_v42 }
 0xf73   :  { %v7251_v2 = vmul.f32 0.5, %v7250_v34  ;;  %7094 = vadd.xlane.f32.xlu1 %v7064_v54 }
 0xf74   :  { %v7378_v15 = vadd.f32 %v12230_v17, %v7361_v33 }
 0xf75   :  { %v7252_v1 = vsub.f32 1.5, %v7251_v2  ;;  %v7019_v27 = vpop.xlane.xlu0 %7018 }
 0xf76   :  { %v7394_v10 = vadd.f32 %v7378_v15, %v12061_v58  ;;  %v7042_v44 = vmul.f32 %v7019_v27, %v12727_v19 }
 0xf77   :  { %v7253_v52 = vmul.f32 %v8878_v12, %v7252_v1  ;;  %v7083_v6 = vpop.xlane.xlu1 %7082 }
 0xf78   :  { %7410 = vst [vmem:[#allocation13 + $0x30] sm:$0xff] %v7394_v10  ;;  %v7122_v47 = vmul.f32 %v7042_v44, %v7042_v44  ;;  %v7106_v49 = vmul.f32 %v7083_v6, %v12727_v19 }
 0xf79   :  { %v7257_v63 = vsel %vm7256_vm7, %v8878_v12, %v7253_v52 }
 0xf7a   :  { %v7345_v55 = vmul.f32 %v7257_v63, %v7153_v8  ;;  %v7138_v7 = vsub.f32 %v7106_v49, %v7122_v47 }
 0xf7c   :  { %v7362_v56 = vmul.f32 %v12226_v46, %v7345_v55  ;;  %v7170_v20 = vadd.f32 1e-05, %v7138_v7 }
 0xf7e   :  { %v7379_v58 = vadd.f32 %v12230_v17, %v7362_v56  ;;  %8879 = vrsqrt.f32 %v7170_v20  ;;  %vm7264_vm9 = vweird.f32 %v7170_v20 }
 0xf7f   :  { %v7021_v43 = vpop.xlane.xlu1 %7020  ;;  %v7085_v22 = vpop.xlane.xlu2 %7084 }
 0xf80   :  { %v7395_v9 = vadd.f32 %v7379_v58, %v12064_v45  ;;  %v7043_v16 = vmul.f32 %v7021_v43, %v12727_v19  ;;  %v7107_v0 = vmul.f32 %v7085_v22, %v12727_v19  ;;  %v7154_v45 = vsub.f32 %v12211_v4, %v7042_v44 }
 0xf82   :  { %7411 = vst [vmem:[#allocation13 + $0x38] sm:$0xff] %v7395_v9  ;;  %v7123_v37 = vmul.f32 %v7043_v16, %v7043_v16  ;;  %v7155_v2 = vsub.f32 %v12217_v28, %v7043_v16 }
 0xf84   :  { %v8880_v32 = vpop.eup %8879  ;;  %v7139_v38 = vsub.f32 %v7107_v0, %v7123_v37 }
 0xf85   :  { %v7259_v48 = vmul.f32 %v8880_v32, %v7170_v20  ;;  %vm7265_vm8 = vweird.f32 %v8880_v32 }
 0xf86   :  { %v7171_v21 = vadd.f32 1e-05, %v7139_v38  ;;  %vm7266_vm10 = vmor %vm7264_vm9, %vm7265_vm8 }
 0xf87   :  { %v7260_v35 = vmul.f32 %v8880_v32, %v7259_v48 }
 0xf88   :  { %8881 = vrsqrt.f32 %v7171_v21  ;;  %vm7274_vm12 = vweird.f32 %v7171_v21 }
 0xf89   :  { %v7261_v31 = vmul.f32 0.5, %v7260_v35 }
 0xf8b   :  { %v7262_v57 = vsub.f32 1.5, %v7261_v31 }
 0xf8d   :  { %v7263_v53 = vmul.f32 %v8880_v32, %v7262_v57 }
 0xf8e   :  { %v8882_v23 = vpop.eup %8881 }
 0xf8f   :  { %v7267_v18 = vsel %vm7266_vm10, %v8880_v32, %v7263_v53  ;;  %v7269_v3 = vmul.f32 %v8882_v23, %v7171_v21  ;;  %vm7275_vm11 = vweird.f32 %v8882_v23 }
 0xf90   :  { %v7346_v24 = vmul.f32 %v7267_v18, %v7154_v45  ;;  %vm7276_vm13 = vmor %vm7274_vm12, %vm7275_vm11 }
 0xf91   :  { %v7270_v26 = vmul.f32 %v8882_v23, %v7269_v3 }
 0xf92   :  { %v7363_v12 = vmul.f32 %v12226_v46, %v7346_v24 }
 0xf93   :  { %v7271_v61 = vmul.f32 0.5, %v7270_v26 }
 0xf94   :  { %v7380_v60 = vadd.f32 %v12230_v17, %v7363_v12 }
 0xf95   :  { %v7272_v14 = vsub.f32 1.5, %v7271_v61  ;;  %v7023_v42 = vpop.xlane.xlu2 %7022 }
 0xf96   :  { %v7396_v34 = vadd.f32 %v7380_v60, %v12101_v30  ;;  %v7044_v54 = vmul.f32 %v7023_v42, %v12727_v19 }
 0xf97   :  { %v7273_v33 = vmul.f32 %v8882_v23, %v7272_v14  ;;  %v7087_v4 = vpop.xlane.xlu0 %7086 }
 0xf98   :  { %7412 = vst [vmem:[#allocation13 + $0x40] sm:$0xff] %v7396_v34  ;;  %v7124_v15 = vmul.f32 %v7044_v54, %v7044_v54  ;;  %v7108_v1 = vmul.f32 %v7087_v4, %v12727_v19 }
 0xf99   :  { %v7277_v27 = vsel %vm7276_vm13, %v8882_v23, %v7273_v33 }
 0xf9a   :  { %v7347_v10 = vmul.f32 %v7277_v27, %v7155_v2  ;;  %v7140_v44 = vsub.f32 %v7108_v1, %v7124_v15 }
 0xf9c   :  { %v7364_v52 = vmul.f32 %v12226_v46, %v7347_v10  ;;  %v7172_v6 = vadd.f32 1e-05, %v7140_v44 }
 0xf9e   :  { %v7381_v30 = vadd.f32 %v12230_v17, %v7364_v52  ;;  %8883 = vrsqrt.f32 %v7172_v6  ;;  %vm7284_vm15 = vweird.f32 %v7172_v6 }
 0xf9f   :  { %v7089_v8 = vpop.xlane.xlu1 %7088  ;;  %v7025_v47 = vpop.xlane.xlu0 %7024 }
 0xfa0   :  { %v7397_v49 = vadd.f32 %v7381_v30, %v12104_v39  ;;  %v7045_v63 = vmul.f32 %v7025_v47, %v12727_v19  ;;  %v7109_v28 = vmul.f32 %v7089_v8, %v12727_v19  ;;  %v7156_v39 = vsub.f32 %v12228_v50, %v7044_v54 }
 0xfa2   :  { %7413 = vst [vmem:[#allocation13 + $0x48] sm:$0xff] %v7397_v49  ;;  %v7125_v55 = vmul.f32 %v7045_v63, %v7045_v63  ;;  %v7157_v3 = vsub.f32 %v12239_v25, %v7045_v63 }
 0xfa4   :  { %v8884_v7 = vpop.eup %8883  ;;  %v7141_v56 = vsub.f32 %v7109_v28, %v7125_v55 }
 0xfa5   :  { %v7279_v20 = vmul.f32 %v8884_v7, %v7172_v6  ;;  %vm7285_vm14 = vweird.f32 %v8884_v7 }
 0xfa6   :  { %v7173_v58 = vadd.f32 1e-05, %v7141_v56  ;;  %vm7286_vm0 = vmor %vm7284_vm15, %vm7285_vm14 }
 0xfa7   :  { %v7280_v43 = vmul.f32 %v8884_v7, %v7279_v20 }
 0xfa8   :  { %8885 = vrsqrt.f32 %v7173_v58  ;;  %vm7294_vm2 = vweird.f32 %v7173_v58 }
 0xfa9   :  { %v7281_v22 = vmul.f32 0.5, %v7280_v43 }
 0xfab   :  { %v7282_v9 = vsub.f32 1.5, %v7281_v22 }
 0xfad   :  { %v7283_v16 = vmul.f32 %v8884_v7, %v7282_v9 }
 0xfae   :  { %v8886_v37 = vpop.eup %8885 }
 0xfaf   :  { %v7287_v0 = vsel %vm7286_vm0, %v8884_v7, %v7283_v16  ;;  %v7289_v32 = vmul.f32 %v8886_v37, %v7173_v58  ;;  %vm7295_vm1 = vweird.f32 %v8886_v37 }
 0xfb0   :  { %v7348_v38 = vmul.f32 %v7287_v0, %v7156_v39  ;;  %vm7296_vm3 = vmor %vm7294_vm2, %vm7295_vm1 }
 0xfb1   :  { %v7290_v48 = vmul.f32 %v8886_v37, %v7289_v32 }
 0xfb2   :  { %v7365_v21 = vmul.f32 %v12226_v46, %v7348_v38 }
 0xfb3   :  { %v7291_v35 = vmul.f32 0.5, %v7290_v48 }
 0xfb4   :  { %v7382_v31 = vadd.f32 %v12230_v17, %v7365_v21 }
 0xfb5   :  { %v7292_v57 = vsub.f32 1.5, %v7291_v35 }
 0xfb6   :  { %v7027_v53 = vpop.xlane.xlu1 %7026  ;;  %v7398_v23 = vadd.f32 %v7382_v31, %v12125_v36 }
 0xfb7   :  { %v7046_v45 = vmul.f32 %v7027_v53, %v12727_v19  ;;  %v7293_v18 = vmul.f32 %v8886_v37, %v7292_v57 }
 0xfb8   :  { %v7091_v50 = vpop.xlane.xlu2 %7090  ;;  %7414 = vst [vmem:[#allocation13 + $0x50] sm:$0xff] %v7398_v23 }
 0xfb9   :  { %v7126_v24 = vmul.f32 %v7046_v45, %v7046_v45  ;;  %v7110_v26 = vmul.f32 %v7091_v50, %v12727_v19  ;;  %v7297_v12 = vsel %vm7296_vm3, %v8886_v37, %v7293_v18  ;;  %v7158_v1 = vsub.f32 %v12252_v59, %v7046_v45 }
 0xfba   :  { %v7349_v61 = vmul.f32 %v7297_v12, %v7157_v3 }
 0xfbb   :  { %v7142_v60 = vsub.f32 %v7110_v26, %v7126_v24 }
 0xfbc   :  { %v7366_v14 = vmul.f32 %v12226_v46, %v7349_v61 }
 0xfbd   :  { %v7174_v42 = vadd.f32 1e-05, %v7142_v60 }
 0xfbe   :  { %v7383_v36 = vadd.f32 %v12230_v17, %v7366_v14 }
 0xfbf   :  { %8887 = vrsqrt.f32 %v7174_v42  ;;  %vm7304_vm5 = vweird.f32 %v7174_v42 }
 0xfc0   :  { %v7399_v34 = vadd.f32 %v7383_v36, %v12128_v5  ;;  %v7029_v30 = vpop.xlane.xlu2 %7028 }
 0xfc1   :  { %v7047_v8 = vmul.f32 %v7029_v30, %v12727_v19 }
 0xfc2   :  { %7415 = vst [vmem:[#allocation13 + $0x58] sm:$0xff] %v7399_v34 }
 0xfc3   :  { %v7127_v63 = vmul.f32 %v7047_v8, %v7047_v8 }
 0xfc5   :  { %v8888_v54 = vpop.eup %8887 }
 0xfc6   :  { %v7299_v33 = vmul.f32 %v8888_v54, %v7174_v42  ;;  %vm7305_vm4 = vweird.f32 %v8888_v54 }
 0xfc7   :  { %vm7306_vm6 = vmor %vm7304_vm5, %vm7305_vm4 }
 0xfc8   :  { %v7300_v4 = vmul.f32 %v8888_v54, %v7299_v33 }
 0xfca   :  { %v7301_v25 = vmul.f32 0.5, %v7300_v4 }
 0xfcc   :  { %v7302_v2 = vsub.f32 1.5, %v7301_v25 }
 0xfce   :  { %v7303_v15 = vmul.f32 %v8888_v54, %v7302_v2 }
 0xfd0   :  { %v7307_v27 = vsel %vm7306_vm6, %v8888_v54, %v7303_v15 }
 0xfd1   :  { %v7350_v10 = vmul.f32 %v7307_v27, %v7158_v1 }
 0xfd3   :  { %v7367_v44 = vmul.f32 %v12226_v46, %v7350_v10 }
 0xfd5   :  { %v7384_v52 = vadd.f32 %v12230_v17, %v7367_v44 }
 0xfd6   :  { %v7031_v6 = vpop.xlane.xlu0 %7030 }
 0xfd7   :  { %v7400_v5 = vadd.f32 %v7384_v52, %v12148_v11  ;;  %v7048_v58 = vmul.f32 %v7031_v6, %v12727_v19 }
 0xfd9   :  { %7416 = vst [vmem:[#allocation13 + $0x60] sm:$0xff] %v7400_v5  ;;  %v7128_v16 = vmul.f32 %v7048_v58, %v7048_v58  ;;  %v7160_v25 = vsub.f32 %v12284_v13, %v7048_v58 }
 0xfde   :  { %v7033_v47 = vpop.xlane.xlu1 %7032  ;;  %v7093_v49 = vpop.xlane.xlu0 %7092 }
 0xfdf   :  { %v7049_v28 = vmul.f32 %v7033_v47, %v12727_v19  ;;  %v7111_v59 = vmul.f32 %v7093_v49, %v12727_v19 }
 0xfe0   :  { %v7097_v55 = vpop.xlane.xlu2 %7096 }
 0xfe1   :  { %v7129_v7 = vmul.f32 %v7049_v28, %v7049_v28  ;;  %v7143_v56 = vsub.f32 %v7111_v59, %v7127_v63  ;;  %v7113_v20 = vmul.f32 %v7097_v55, %v12727_v19  ;;  %v7161_v61 = vsub.f32 %v12293_v51, %v7049_v28 }
 0xfe3   :  { %v7175_v11 = vadd.f32 1e-05, %v7143_v56  ;;  %v7145_v43 = vsub.f32 %v7113_v20, %v7129_v7 }
 0xfe5   :  { %8889 = vrsqrt.f32 %v7175_v11  ;;  %v7177_v22 = vadd.f32 1e-05, %v7145_v43  ;;  %vm7314_vm8 = vweird.f32 %v7175_v11 }
 0xfe6   :  { %v7095_v9 = vpop.xlane.xlu1 %7094 }
 0xfe7   :  { %8891 = vrsqrt.f32 %v7177_v22  ;;  %v7112_v37 = vmul.f32 %v7095_v9, %v12727_v19  ;;  %v7159_v19 = vsub.f32 %v12263_v41, %v7047_v8  ;;  %vm7334_vm11 = vweird.f32 %v7177_v22 }
 0xfe9   :  { %v7144_v39 = vsub.f32 %v7112_v37, %v7128_v16 }
 0xfeb   :  { %v8890_v0 = vpop.eup %8889  ;;  %v7176_v32 = vadd.f32 1e-05, %v7144_v39 }
 0xfec   :  { %v7309_v38 = vmul.f32 %v8890_v0, %v7175_v11  ;;  %vm7315_vm7 = vweird.f32 %v8890_v0 }
 0xfed   :  { %v8892_v48 = vpop.eup %8891  ;;  %8893 = vrsqrt.f32 %v7176_v32  ;;  %vm7316_vm10 = vmor %vm7314_vm8, %vm7315_vm7  ;;  %vm7324_vm14 = vweird.f32 %v7176_v32 }
 0xfee   :  { %v7310_v21 = vmul.f32 %v8890_v0, %v7309_v38  ;;  %v7329_v35 = vmul.f32 %v8892_v48, %v7177_v22  ;;  %vm7335_vm9 = vweird.f32 %v8892_v48 }
 0xfef   :  { %vm7336_vm12 = vmor %vm7334_vm11, %vm7335_vm9 }
 0xff0   :  { %v7311_v31 = vmul.f32 0.5, %v7310_v21  ;;  %v7330_v57 = vmul.f32 %v8892_v48, %v7329_v35 }
 0xff2   :  { %v7312_v53 = vsub.f32 1.5, %v7311_v31  ;;  %v7331_v23 = vmul.f32 0.5, %v7330_v57 }
 0xff3   :  { %v8894_v45 = vpop.eup %8893 }
 0xff4   :  { %v7313_v18 = vmul.f32 %v8890_v0, %v7312_v53  ;;  %v7332_v50 = vsub.f32 1.5, %v7331_v23  ;;  %v7319_v3 = vmul.f32 %v8894_v45, %v7176_v32  ;;  %vm7325_vm13 = vweird.f32 %v8894_v45 }
 0xff5   :  { %vm7326_vm15 = vmor %vm7324_vm14, %vm7325_vm13 }
 0xff6   :  { %v7317_v24 = vsel %vm7316_vm10, %v8890_v0, %v7313_v18  ;;  %v7333_v26 = vmul.f32 %v8892_v48, %v7332_v50  ;;  %v7320_v12 = vmul.f32 %v8894_v45, %v7319_v3 }
 0xff7   :  { %v7351_v60 = vmul.f32 %v7317_v24, %v7159_v19 }
 0xff8   :  { %v7337_v14 = vsel %vm7336_vm12, %v8892_v48, %v7333_v26  ;;  %v7321_v42 = vmul.f32 0.5, %v7320_v12 }
 0xff9   :  { %v7368_v36 = vmul.f32 %v12226_v46, %v7351_v60  ;;  %v7353_v34 = vmul.f32 %v7337_v14, %v7161_v61 }
 0xffa   :  { %v7322_v54 = vsub.f32 1.5, %v7321_v42 }
 0xffb   :  { %v7385_v33 = vadd.f32 %v12230_v17, %v7368_v36  ;;  %v7370_v41 = vmul.f32 %v12226_v46, %v7353_v34 }
 0xffc   :  { %v7323_v4 = vmul.f32 %v8894_v45, %v7322_v54 }
 0xffd   :  { %v7401_v2 = vadd.f32 %v7385_v33, %v12151_v62  ;;  %v7387_v51 = vadd.f32 %v12230_v17, %v7370_v41 }
 0xffe   :  { %v7327_v15 = vsel %vm7326_vm15, %v8894_v45, %v7323_v4 }
 0xfff   :  { %7417 = vst [vmem:[#allocation13 + $0x68] sm:$0xff] %v7401_v2  ;;  %v7403_v1 = vadd.f32 %v7387_v51, %v12167_v29  ;;  %v7352_v27 = vmul.f32 %v7327_v15, %v7160_v25 }
0x1001   :  { %7419 = vst [vmem:[#allocation13 + $0x78] sm:$0xff] %v7403_v1  ;;  %v7369_v10 = vmul.f32 %v12226_v46, %v7352_v27 }
0x1003   :  { %v7386_v13 = vadd.f32 %v12230_v17, %v7369_v10 }
0x1005   :  { %v7402_v62 = vadd.f32 %v7386_v13, %v12164_v40 }
0x1007   :  { %7418 = vst [vmem:[#allocation13 + $0x70] sm:$0xff] %v7402_v62 }
0x1008   :  { %7432 = dma.vmem_to_hbm [thread:$0]  %s7425_s26, 2048, %s7427_s7, [#allocation4], %s9092_s29, %s9092_s29, %s9093_s30  }
0x1009   :  { %9089 = dma.done.wait [#allocation4], 2048  }
0x100a   :  { %9090 = vsyncadd [#allocation4], 4294965248 }
0x100b   :  { %7437 = vsyncpa [#allocation3], 1 }
0x100c   :  { %7438 = vsyncpa [#allocation6], 1 }
0x100d   :  { %7439 = vsyncpa [#allocation9], 1 }
0x100e   :  { %7440 = vsyncpa [#allocation12], 1 }
0x100f   :  { %7441 = vsyncpa [#allocation4], 1 }

</bundles_post_ra>
